<compile_context>
chip_gen: v7x
topology: tpu7x:2x2x1
jax: 0.10.0
libtpu: 0.0.40
codegen_flags: <defaults>
</compile_context>

<pallas_src>
import jax
import jax.numpy as jnp
from jax import lax
from jax.experimental import pallas as pl
from jax.experimental.pallas import tpu as pltpu

# ---- small, module-consistent sizes -----------------------------------------
POSE_DIM = 51      # pose_dim in the module
RF = 8             # rf (=81 in the module) -- kept small for the demo
BATCH = 2          # batch_size (=5 in the module) -- kept small for the demo
H1 = 128           # dense1 width
H = 100            # dense2 width / LSTM hidden
NEG_SLOPE = 0.01   # default leaky_relu slope

HP = 128           # lane-padded hidden / pose width
BP = 8             # sublane-padded batch

# Gate order inside the kernel: (i, f, o, g).  PyTorch/reference order is
# (i, f, g, o); the wrapper reorders the gate blocks so one sigmoid covers
# i,f,o contiguously and one tanh covers g.
_KERNEL_GATE_ORDER = (0, 1, 3, 2)


# ---- Pallas kernel -----------------------------------------------------------
def generator_kernel(
    x_ref,                       # (BP, HP)      padded input (also the residual)
    w1_ref, b1_ref,              # (HP, HP), (1, HP)
    w2_ref, b2_ref,              # (HP, HP), (1, HP)
    wih0_ref, whh0_ref,          # (HP, 4*HP)    layer-0 W_ih^T / W_hh^T (gate-padded, reordered)
    wf1_ref, wf2_ref,            # (2*HP, 4*HP)  layers 1/2 fused [W_ih^T; W_hh^T]
    bg0_ref, bg1_ref, bg2_ref,   # (1, 4*HP)     b_ih + b_hh per layer
    w6_ref, b6_ref,              # (HP, HP), (1, HP)
    out_ref,                     # (T*BP, HP)
):
    bp, hp = x_ref.shape
    T = out_ref.shape[0] // bp
    f32 = jnp.float32

    x = x_ref[...]                                               # (BP, HP)

    # ---- MLP head: tiled input is constant over time -> compute ONCE --------
    y = jnp.dot(x, w1_ref[...], preferred_element_type=f32) + b1_ref[...]
    y = jnp.where(y > 0, y, NEG_SLOPE * y)
    m = jnp.dot(y, w2_ref[...], preferred_element_type=f32) + b2_ref[...]
    m = jnp.where(m > 0, m, NEG_SLOPE * m)                       # (BP, HP)

    # ---- layer-0 input-to-hidden pre-gates are time-constant -> hoist -------
    pg0 = jnp.dot(m, wih0_ref[...], preferred_element_type=f32) + bg0_ref[...]

    # Loop-invariant weight/bias loads, hoisted out of the unrolled wavefront.
    whh0 = whh0_ref[...]
    wf1 = wf1_ref[...]
    wf2 = wf2_ref[...]
    bg1 = bg1_ref[...]
    bg2 = bg2_ref[...]
    w6 = w6_ref[...]
    xb6 = x + b6_ref[...]        # residual + output bias, hoisted

    def lstm_gates(gates, c):
        # Gate order (i, f, o, g): one wide sigmoid + one tanh (+ tanh(c_new)).
        sg = jax.nn.sigmoid(gates[:, : 3 * hp])
        i = sg[:, 0 * hp:1 * hp]
        f = sg[:, 1 * hp:2 * hp]
        o = sg[:, 2 * hp:3 * hp]
        g = jnp.tanh(gates[:, 3 * hp:4 * hp])
        c_new = f * c + i * g
        h_new = o * jnp.tanh(c_new)
        return h_new, c_new

    zeros = jnp.zeros((bp, hp), f32)
    h0, c0 = zeros, zeros
    h1, c1 = zeros, zeros
    h2, c2 = zeros, zeros

    # ---- wavefront over the 3 LSTM layers ------------------------------------
    # Super-step s: layer0 @ t=s, layer1 @ t=s-1, layer2 @ t=s-2.  The three
    # cells in a super-step are independent, so their matmuls / EUP chains
    # interleave.  T is a compile-time constant -> fully unrolled, static
    # sublane-aligned store offsets.  (At production RF=81, replace the
    # steady-state region with lax.fori_loop(..., unroll=4) + 2-step
    # prologue/epilogue to bound code size.)
    for s in range(T + 2):
        # Snapshots of the previous super-step's outputs (inputs for the next
        # layer down the wavefront).
        x1_in, x2_in = h0, h1

        if s <= T - 1:                      # layer 0, time s (constant input)
            g0 = pg0 + jnp.dot(h0, whh0, preferred_element_type=f32)
            h0, c0 = lstm_gates(g0, c0)

        if 1 <= s <= T:                     # layer 1, time s-1: fused [x, h] @ [Wih; Whh]
            g1 = jnp.dot(jnp.concatenate([x1_in, h1], axis=1), wf1,
                         preferred_element_type=f32) + bg1
            h1, c1 = lstm_gates(g1, c1)

        if 2 <= s <= T + 1:                 # layer 2, time s-2 + projection + residual
            g2 = jnp.dot(jnp.concatenate([x2_in, h2], axis=1), wf2,
                         preferred_element_type=f32) + bg2
            h2, c2 = lstm_gates(g2, c2)
            t = s - 2
            out_ref[pl.ds(t * bp, bp), :] = (
                jnp.dot(h2, w6, preferred_element_type=f32) + xb6)


# ---- padding helpers (wrapper side, run once per call on tiny arrays) -------
def _pad_gates(w, h, hp):
    """(..., 4*h) -> (..., 4*hp): per-gate zero pad + reorder to (i, f, o, g)."""
    pads = [(0, 0)] * (w.ndim - 1) + [(0, hp - h)]
    parts = [jnp.pad(w[..., g * h:(g + 1) * h], pads) for g in _KERNEL_GATE_ORDER]
    return jnp.concatenate(parts, axis=-1)


def _pad_rows(w, n):
    return jnp.pad(w, ((0, n - w.shape[0]), (0, 0)))


# ---- wrapper ----------------------------------------------------------------
def generator_forward(real_single, params, to_print=False):
    """real_single: (B, POSE_DIM) float32 -> (B, RF, POSE_DIM) float32."""
    B, P = real_single.shape
    T = RF
    f32 = jnp.float32

    # MLP weights: zero-pad to 128 lanes / rows.
    w1p = _pad_rows(params["w1"].astype(f32), HP)                          # (128,128)
    b1p = params["b1"].astype(f32)                                         # (1,128)
    w2p = jnp.pad(params["w2"].astype(f32), ((0, 0), (0, HP - H)))         # (128,128)
    b2p = jnp.pad(params["b2"].astype(f32), ((0, 0), (0, HP - H)))         # (1,128)

    # LSTM weights: per-gate pad to 128 lanes, reorder to (i,f,o,g), row-pad.
    def lstm_w(name):
        return _pad_rows(_pad_gates(params[name].astype(f32), H, HP), HP)  # (128,512)

    wih0 = lstm_w("wih0")
    whh0 = lstm_w("whh0")
    wf1 = jnp.concatenate([lstm_w("wih1"), lstm_w("whh1")], axis=0)        # (256,512)
    wf2 = jnp.concatenate([lstm_w("wih2"), lstm_w("whh2")], axis=0)        # (256,512)
    bg0 = _pad_gates(params["bg0"].astype(f32), H, HP)                     # (1,512)
    bg1 = _pad_gates(params["bg1"].astype(f32), H, HP)
    bg2 = _pad_gates(params["bg2"].astype(f32), H, HP)

    # Output projection: zero-pad rows (hidden) and cols (pose) to 128.
    w6p = _pad_rows(jnp.pad(params["w6"].astype(f32), ((0, 0), (0, HP - P))), HP)  # (128,128)
    b6p = jnp.pad(params["b6"].astype(f32), ((0, 0), (0, HP - P)))                 # (1,128)

    # Input padded to (8, 128); also serves as the residual term.
    xp = jnp.zeros((BP, HP), f32).at[:B, :P].set(real_single.astype(f32))

    vmem = pl.BlockSpec(memory_space=pltpu.MemorySpace.VMEM)

    out2d = pl.pallas_call(
        generator_kernel,
        out_shape=jax.ShapeDtypeStruct((T * BP, HP), f32),
        in_specs=[vmem] * 14,
        out_specs=vmem,
    )(xp, w1p, b1p, w2p, b2p, wih0, whh0, wf1, wf2, bg0, bg1, bg2, w6p, b6p)

    out = out2d.reshape(T, BP, HP)[:, :B, :P]     # strip padding
    out = jnp.transpose(out, (1, 0, 2))           # back to (B, RF, POSE_DIM)
    # TODO(synk): `to_print` in the torch module prints the intermediate y on host;
    # debug-only side effect, not part of the kernel math.
    return out


# ---- pure-JAX reference (same parameterization, unpadded) --------------------
def lstm_ref(seq, wih, whh, bg):
    B, T, _ = seq.shape
    Hh = whh.shape[0]

    def step(carry, xt):
        h, c = carry
        gates = xt @ wih + h @ whh + bg
        i = jax.nn.sigmoid(gates[:, :Hh])
        f = jax.nn.sigmoid(gates[:, Hh:2 * Hh])
        g = jnp.tanh(gates[:, 2 * Hh:3 * Hh])
        o = jax.nn.sigmoid(gates[:, 3 * Hh:])
        c = f * c + i * g
        h = o * jnp.tanh(c)
        return (h, c), h

    init = (jnp.zeros((B, Hh), jnp.float32), jnp.zeros((B, Hh), jnp.float32))
    _, ys = lax.scan(step, init, jnp.swapaxes(seq, 0, 1))
    return jnp.swapaxes(ys, 0, 1)


def generator_ref(real_single, params):
    B, P = real_single.shape
    x = jnp.broadcast_to(real_single[:, None, :], (B, RF, P)).astype(jnp.float32)
    y = x @ params["w1"] + params["b1"]
    y = jnp.where(y > 0, y, NEG_SLOPE * y)
    y = y @ params["w2"] + params["b2"]
    y = jnp.where(y > 0, y, NEG_SLOPE * y)
    y = lstm_ref(y, params["wih0"], params["whh0"], params["bg0"])
    y = lstm_ref(y, params["wih1"], params["whh1"], params["bg1"])
    y = lstm_ref(y, params["wih2"], params["whh2"], params["bg2"])
    y = y @ params["w6"] + params["b6"]
    return x + y


# ---- deterministic parameter init -------------------------------------------
def make_params(key):
    ks = jax.random.split(key, 17)

    def nrm(k, shape, scale=0.1):
        return (scale * jax.random.normal(k, shape)).astype(jnp.float32)

    p = {
        "w1": nrm(ks[0], (POSE_DIM, H1)), "b1": nrm(ks[1], (1, H1)),
        "w2": nrm(ks[2], (H1, H)),        "b2": nrm(ks[3], (1, H)),
        "w6": nrm(ks[4], (H, POSE_DIM)),  "b6": nrm(ks[5], (1, POSE_DIM)),
    }
    for l in range(3):
        p[f"wih{l}"] = nrm(ks[6 + 3 * l], (H, 4 * H))       # W_ih^T, gate order i,f,g,o
        p[f"whh{l}"] = nrm(ks[7 + 3 * l], (H, 4 * H))       # W_hh^T
        p[f"bg{l}"] = nrm(ks[8 + 3 * l], (1, 4 * H))        # b_ih + b_hh (combined)
    return p


if __name__ == "__main__":
    key = jax.random.PRNGKey(0)
    k_params, k_x = jax.random.split(key)
    params = make_params(k_params)
    real_single = jax.random.normal(k_x, (BATCH, POSE_DIM), dtype=jnp.float32)

    out = generator_forward(real_single, params, to_print=False)
    out = jax.block_until_ready(out)

    ref = jax.block_until_ready(generator_ref(real_single, params))
    assert out.shape == (BATCH, RF, POSE_DIM)
    assert jnp.allclose(out, ref, atol=1e-3, rtol=1e-3), (
        f"max abs err {float(jnp.max(jnp.abs(out - ref)))}"
    )
    print("KERNEL_OK")
</pallas_src>

<mosaic_0001>
module attributes {stable_mosaic.version = 11 : i64} {
  func.func @generator_kernel(%arg0: memref<8x128xf32, #tpu.memory_space<vmem>>, %arg1: memref<128x128xf32, #tpu.memory_space<vmem>>, %arg2: memref<1x128xf32, #tpu.memory_space<vmem>>, %arg3: memref<128x128xf32, #tpu.memory_space<vmem>>, %arg4: memref<1x128xf32, #tpu.memory_space<vmem>>, %arg5: memref<128x512xf32, #tpu.memory_space<vmem>>, %arg6: memref<128x512xf32, #tpu.memory_space<vmem>>, %arg7: memref<256x512xf32, #tpu.memory_space<vmem>>, %arg8: memref<256x512xf32, #tpu.memory_space<vmem>>, %arg9: memref<1x512xf32, #tpu.memory_space<vmem>>, %arg10: memref<1x512xf32, #tpu.memory_space<vmem>>, %arg11: memref<1x512xf32, #tpu.memory_space<vmem>>, %arg12: memref<128x128xf32, #tpu.memory_space<vmem>>, %arg13: memref<1x128xf32, #tpu.memory_space<vmem>>, %arg14: memref<64x128xf32, #tpu.memory_space<vmem>>) attributes {dimension_semantics = [], scalar_prefetch = 0 : i64, scratch_operands = 0 : i64, tpu.core_type = #tpu.core_type<tc>} {
    %c0 = arith.constant 0 : index
    %c0_0 = arith.constant 0 : index
    %0 = vector.load %arg0[%c0, %c0_0] : memref<8x128xf32, #tpu.memory_space<vmem>>, vector<8x128xf32>
    %c0_1 = arith.constant 0 : index
    %c0_2 = arith.constant 0 : index
    %1 = vector.load %arg1[%c0_1, %c0_2] : memref<128x128xf32, #tpu.memory_space<vmem>>, vector<128x128xf32>
    %cst = arith.constant dense<0.000000e+00> : vector<8x128xf32>
    %2 = tpu.matmul %0, %1, %cst {dimension_numbers = #tpu.dot_dimension_numbers<[1], [0], [0], [1], [0, 0, 1, 1], [], []>} : vector<8x128xf32>, vector<128x128xf32>, vector<8x128xf32> -> vector<8x128xf32>
    %c0_3 = arith.constant 0 : index
    %c0_4 = arith.constant 0 : index
    %3 = vector.load %arg2[%c0_3, %c0_4] : memref<1x128xf32, #tpu.memory_space<vmem>>, vector<1x128xf32>
    %4 = vector.broadcast %3 : vector<1x128xf32> to vector<8x128xf32>
    %5 = arith.addf %2, %4 : vector<8x128xf32>
    %cst_5 = arith.constant 0.000000e+00 : f32
    %6 = vector.broadcast %cst_5 : f32 to vector<8x128xf32>
    %7 = arith.cmpf ogt, %5, %6 : vector<8x128xf32>
    %cst_6 = arith.constant 0.00999999977 : f32
    %8 = vector.broadcast %cst_6 : f32 to vector<8x128xf32>
    %9 = arith.mulf %8, %5 : vector<8x128xf32>
    %10 = arith.select %7, %5, %9 : vector<8x128xi1>, vector<8x128xf32>
    %c0_7 = arith.constant 0 : index
    %c0_8 = arith.constant 0 : index
    %11 = vector.load %arg3[%c0_7, %c0_8] : memref<128x128xf32, #tpu.memory_space<vmem>>, vector<128x128xf32>
    %cst_9 = arith.constant dense<0.000000e+00> : vector<8x128xf32>
    %12 = tpu.matmul %10, %11, %cst_9 {dimension_numbers = #tpu.dot_dimension_numbers<[1], [0], [0], [1], [0, 0, 1, 1], [], []>} : vector<8x128xf32>, vector<128x128xf32>, vector<8x128xf32> -> vector<8x128xf32>
    %c0_10 = arith.constant 0 : index
    %c0_11 = arith.constant 0 : index
    %13 = vector.load %arg4[%c0_10, %c0_11] : memref<1x128xf32, #tpu.memory_space<vmem>>, vector<1x128xf32>
    %14 = vector.broadcast %13 : vector<1x128xf32> to vector<8x128xf32>
    %15 = arith.addf %12, %14 : vector<8x128xf32>
    %cst_12 = arith.constant 0.000000e+00 : f32
    %16 = vector.broadcast %cst_12 : f32 to vector<8x128xf32>
    %17 = arith.cmpf ogt, %15, %16 : vector<8x128xf32>
    %cst_13 = arith.constant 0.00999999977 : f32
    %18 = vector.broadcast %cst_13 : f32 to vector<8x128xf32>
    %19 = arith.mulf %18, %15 : vector<8x128xf32>
    %20 = arith.select %17, %15, %19 : vector<8x128xi1>, vector<8x128xf32>
    %c0_14 = arith.constant 0 : index
    %c0_15 = arith.constant 0 : index
    %21 = vector.load %arg5[%c0_14, %c0_15] : memref<128x512xf32, #tpu.memory_space<vmem>>, vector<128x512xf32>
    %cst_16 = arith.constant dense<0.000000e+00> : vector<8x512xf32>
    %22 = tpu.matmul %20, %21, %cst_16 {dimension_numbers = #tpu.dot_dimension_numbers<[1], [0], [0], [1], [0, 0, 1, 1], [], []>} : vector<8x128xf32>, vector<128x512xf32>, vector<8x512xf32> -> vector<8x512xf32>
    %c0_17 = arith.constant 0 : index
    %c0_18 = arith.constant 0 : index
    %23 = vector.load %arg9[%c0_17, %c0_18] : memref<1x512xf32, #tpu.memory_space<vmem>>, vector<1x512xf32>
    %24 = vector.broadcast %23 : vector<1x512xf32> to vector<8x512xf32>
    %25 = arith.addf %22, %24 : vector<8x512xf32>
    %c0_19 = arith.constant 0 : index
    %c0_20 = arith.constant 0 : index
    %26 = vector.load %arg6[%c0_19, %c0_20] : memref<128x512xf32, #tpu.memory_space<vmem>>, vector<128x512xf32>
    %c0_21 = arith.constant 0 : index
    %c0_22 = arith.constant 0 : index
    %27 = vector.load %arg7[%c0_21, %c0_22] : memref<256x512xf32, #tpu.memory_space<vmem>>, vector<256x512xf32>
    %c0_23 = arith.constant 0 : index
    %c0_24 = arith.constant 0 : index
    %28 = vector.load %arg8[%c0_23, %c0_24] : memref<256x512xf32, #tpu.memory_space<vmem>>, vector<256x512xf32>
    %c0_25 = arith.constant 0 : index
    %c0_26 = arith.constant 0 : index
    %29 = vector.load %arg10[%c0_25, %c0_26] : memref<1x512xf32, #tpu.memory_space<vmem>>, vector<1x512xf32>
    %c0_27 = arith.constant 0 : index
    %c0_28 = arith.constant 0 : index
    %30 = vector.load %arg11[%c0_27, %c0_28] : memref<1x512xf32, #tpu.memory_space<vmem>>, vector<1x512xf32>
    %c0_29 = arith.constant 0 : index
    %c0_30 = arith.constant 0 : index
    %31 = vector.load %arg12[%c0_29, %c0_30] : memref<128x128xf32, #tpu.memory_space<vmem>>, vector<128x128xf32>
    %c0_31 = arith.constant 0 : index
    %c0_32 = arith.constant 0 : index
    %32 = vector.load %arg13[%c0_31, %c0_32] : memref<1x128xf32, #tpu.memory_space<vmem>>, vector<1x128xf32>
    %33 = vector.broadcast %32 : vector<1x128xf32> to vector<8x128xf32>
    %34 = arith.addf %0, %33 : vector<8x128xf32>
    %cst_33 = arith.constant 0.000000e+00 : f32
    %35 = vector.broadcast %cst_33 : f32 to vector<8x128xf32>
    %cst_34 = arith.constant dense<0.000000e+00> : vector<8x512xf32>
    %36 = tpu.matmul %35, %26, %cst_34 {dimension_numbers = #tpu.dot_dimension_numbers<[1], [0], [0], [1], [0, 0, 1, 1], [], []>} : vector<8x128xf32>, vector<128x512xf32>, vector<8x512xf32> -> vector<8x512xf32>
    %37 = arith.addf %25, %36 : vector<8x512xf32>
    %38 = vector.extract_strided_slice %37 {offsets = [0, 0], sizes = [8, 384], strides = [1, 1]} : vector<8x512xf32> to vector<8x384xf32>
    %39 = arith.negf %38 : vector<8x384xf32>
    %40 = math.exp %39 : vector<8x384xf32>
    %cst_35 = arith.constant 1.000000e+00 : f32
    %41 = vector.broadcast %cst_35 : f32 to vector<8x384xf32>
    %42 = arith.addf %41, %40 : vector<8x384xf32>
    %43 = arith.divf %41, %42 : vector<8x384xf32>
    %44 = vector.extract_strided_slice %43 {offsets = [0, 0], sizes = [8, 128], strides = [1, 1]} : vector<8x384xf32> to vector<8x128xf32>
    %45 = vector.extract_strided_slice %43 {offsets = [0, 128], sizes = [8, 128], strides = [1, 1]} : vector<8x384xf32> to vector<8x128xf32>
    %46 = vector.extract_strided_slice %43 {offsets = [0, 256], sizes = [8, 128], strides = [1, 1]} : vector<8x384xf32> to vector<8x128xf32>
    %47 = vector.extract_strided_slice %37 {offsets = [0, 384], sizes = [8, 128], strides = [1, 1]} : vector<8x512xf32> to vector<8x128xf32>
    %48 = math.tanh %47 : vector<8x128xf32>
    %49 = arith.mulf %45, %35 : vector<8x128xf32>
    %50 = arith.mulf %44, %48 : vector<8x128xf32>
    %51 = arith.addf %49, %50 : vector<8x128xf32>
    %52 = math.tanh %51 : vector<8x128xf32>
    %53 = arith.mulf %46, %52 : vector<8x128xf32>
    %cst_36 = arith.constant dense<0.000000e+00> : vector<8x512xf32>
    %54 = tpu.matmul %53, %26, %cst_36 {dimension_numbers = #tpu.dot_dimension_numbers<[1], [0], [0], [1], [0, 0, 1, 1], [], []>} : vector<8x128xf32>, vector<128x512xf32>, vector<8x512xf32> -> vector<8x512xf32>
    %55 = arith.addf %25, %54 : vector<8x512xf32>
    %56 = vector.extract_strided_slice %55 {offsets = [0, 0], sizes = [8, 384], strides = [1, 1]} : vector<8x512xf32> to vector<8x384xf32>
    %57 = arith.negf %56 : vector<8x384xf32>
    %58 = math.exp %57 : vector<8x384xf32>
    %cst_37 = arith.constant 1.000000e+00 : f32
    %59 = vector.broadcast %cst_37 : f32 to vector<8x384xf32>
    %60 = arith.addf %59, %58 : vector<8x384xf32>
    %61 = arith.divf %59, %60 : vector<8x384xf32>
    %62 = vector.extract_strided_slice %61 {offsets = [0, 0], sizes = [8, 128], strides = [1, 1]} : vector<8x384xf32> to vector<8x128xf32>
    %63 = vector.extract_strided_slice %61 {offsets = [0, 128], sizes = [8, 128], strides = [1, 1]} : vector<8x384xf32> to vector<8x128xf32>
    %64 = vector.extract_strided_slice %61 {offsets = [0, 256], sizes = [8, 128], strides = [1, 1]} : vector<8x384xf32> to vector<8x128xf32>
    %65 = vector.extract_strided_slice %55 {offsets = [0, 384], sizes = [8, 128], strides = [1, 1]} : vector<8x512xf32> to vector<8x128xf32>
    %66 = math.tanh %65 : vector<8x128xf32>
    %67 = arith.mulf %63, %51 : vector<8x128xf32>
    %68 = arith.mulf %62, %66 : vector<8x128xf32>
    %69 = arith.addf %67, %68 : vector<8x128xf32>
    %70 = math.tanh %69 : vector<8x128xf32>
    %71 = arith.mulf %64, %70 : vector<8x128xf32>
    %72 = tpu.concatenate %53, %35 in 1 : vector<8x128xf32>, vector<8x128xf32> -> vector<8x256xf32>
    %cst_38 = arith.constant dense<0.000000e+00> : vector<8x512xf32>
    %73 = tpu.matmul %72, %27, %cst_38 {dimension_numbers = #tpu.dot_dimension_numbers<[1], [0], [0], [1], [0, 0, 1, 1], [], []>} : vector<8x256xf32>, vector<256x512xf32>, vector<8x512xf32> -> vector<8x512xf32>
    %74 = vector.broadcast %29 : vector<1x512xf32> to vector<8x512xf32>
    %75 = arith.addf %73, %74 : vector<8x512xf32>
    %76 = vector.extract_strided_slice %75 {offsets = [0, 0], sizes = [8, 384], strides = [1, 1]} : vector<8x512xf32> to vector<8x384xf32>
    %77 = arith.negf %76 : vector<8x384xf32>
    %78 = math.exp %77 : vector<8x384xf32>
    %cst_39 = arith.constant 1.000000e+00 : f32
    %79 = vector.broadcast %cst_39 : f32 to vector<8x384xf32>
    %80 = arith.addf %79, %78 : vector<8x384xf32>
    %81 = arith.divf %79, %80 : vector<8x384xf32>
    %82 = vector.extract_strided_slice %81 {offsets = [0, 0], sizes = [8, 128], strides = [1, 1]} : vector<8x384xf32> to vector<8x128xf32>
    %83 = vector.extract_strided_slice %81 {offsets = [0, 128], sizes = [8, 128], strides = [1, 1]} : vector<8x384xf32> to vector<8x128xf32>
    %84 = vector.extract_strided_slice %81 {offsets = [0, 256], sizes = [8, 128], strides = [1, 1]} : vector<8x384xf32> to vector<8x128xf32>
    %85 = vector.extract_strided_slice %75 {offsets = [0, 384], sizes = [8, 128], strides = [1, 1]} : vector<8x512xf32> to vector<8x128xf32>
    %86 = math.tanh %85 : vector<8x128xf32>
    %87 = arith.mulf %83, %35 : vector<8x128xf32>
    %88 = arith.mulf %82, %86 : vector<8x128xf32>
    %89 = arith.addf %87, %88 : vector<8x128xf32>
    %90 = math.tanh %89 : vector<8x128xf32>
    %91 = arith.mulf %84, %90 : vector<8x128xf32>
    %cst_40 = arith.constant dense<0.000000e+00> : vector<8x512xf32>
    %92 = tpu.matmul %71, %26, %cst_40 {dimension_numbers = #tpu.dot_dimension_numbers<[1], [0], [0], [1], [0, 0, 1, 1], [], []>} : vector<8x128xf32>, vector<128x512xf32>, vector<8x512xf32> -> vector<8x512xf32>
    %93 = arith.addf %25, %92 : vector<8x512xf32>
    %94 = vector.extract_strided_slice %93 {offsets = [0, 0], sizes = [8, 384], strides = [1, 1]} : vector<8x512xf32> to vector<8x384xf32>
    %95 = arith.negf %94 : vector<8x384xf32>
    %96 = math.exp %95 : vector<8x384xf32>
    %cst_41 = arith.constant 1.000000e+00 : f32
    %97 = vector.broadcast %cst_41 : f32 to vector<8x384xf32>
    %98 = arith.addf %97, %96 : vector<8x384xf32>
    %99 = arith.divf %97, %98 : vector<8x384xf32>
    %100 = vector.extract_strided_slice %99 {offsets = [0, 0], sizes = [8, 128], strides = [1, 1]} : vector<8x384xf32> to vector<8x128xf32>
    %101 = vector.extract_strided_slice %99 {offsets = [0, 128], sizes = [8, 128], strides = [1, 1]} : vector<8x384xf32> to vector<8x128xf32>
    %102 = vector.extract_strided_slice %99 {offsets = [0, 256], sizes = [8, 128], strides = [1, 1]} : vector<8x384xf32> to vector<8x128xf32>
    %103 = vector.extract_strided_slice %93 {offsets = [0, 384], sizes = [8, 128], strides = [1, 1]} : vector<8x512xf32> to vector<8x128xf32>
    %104 = math.tanh %103 : vector<8x128xf32>
    %105 = arith.mulf %101, %69 : vector<8x128xf32>
    %106 = arith.mulf %100, %104 : vector<8x128xf32>
    %107 = arith.addf %105, %106 : vector<8x128xf32>
    %108 = math.tanh %107 : vector<8x128xf32>
    %109 = arith.mulf %102, %108 : vector<8x128xf32>
    %110 = tpu.concatenate %71, %91 in 1 : vector<8x128xf32>, vector<8x128xf32> -> vector<8x256xf32>
    %cst_42 = arith.constant dense<0.000000e+00> : vector<8x512xf32>
    %111 = tpu.matmul %110, %27, %cst_42 {dimension_numbers = #tpu.dot_dimension_numbers<[1], [0], [0], [1], [0, 0, 1, 1], [], []>} : vector<8x256xf32>, vector<256x512xf32>, vector<8x512xf32> -> vector<8x512xf32>
    %112 = vector.broadcast %29 : vector<1x512xf32> to vector<8x512xf32>
    %113 = arith.addf %111, %112 : vector<8x512xf32>
    %114 = vector.extract_strided_slice %113 {offsets = [0, 0], sizes = [8, 384], strides = [1, 1]} : vector<8x512xf32> to vector<8x384xf32>
    %115 = arith.negf %114 : vector<8x384xf32>
    %116 = math.exp %115 : vector<8x384xf32>
    %cst_43 = arith.constant 1.000000e+00 : f32
    %117 = vector.broadcast %cst_43 : f32 to vector<8x384xf32>
    %118 = arith.addf %117, %116 : vector<8x384xf32>
    %119 = arith.divf %117, %118 : vector<8x384xf32>
    %120 = vector.extract_strided_slice %119 {offsets = [0, 0], sizes = [8, 128], strides = [1, 1]} : vector<8x384xf32> to vector<8x128xf32>
    %121 = vector.extract_strided_slice %119 {offsets = [0, 128], sizes = [8, 128], strides = [1, 1]} : vector<8x384xf32> to vector<8x128xf32>
    %122 = vector.extract_strided_slice %119 {offsets = [0, 256], sizes = [8, 128], strides = [1, 1]} : vector<8x384xf32> to vector<8x128xf32>
    %123 = vector.extract_strided_slice %113 {offsets = [0, 384], sizes = [8, 128], strides = [1, 1]} : vector<8x512xf32> to vector<8x128xf32>
    %124 = math.tanh %123 : vector<8x128xf32>
    %125 = arith.mulf %121, %89 : vector<8x128xf32>
    %126 = arith.mulf %120, %124 : vector<8x128xf32>
    %127 = arith.addf %125, %126 : vector<8x128xf32>
    %128 = math.tanh %127 : vector<8x128xf32>
    %129 = arith.mulf %122, %128 : vector<8x128xf32>
    %130 = tpu.concatenate %91, %35 in 1 : vector<8x128xf32>, vector<8x128xf32> -> vector<8x256xf32>
    %cst_44 = arith.constant dense<0.000000e+00> : vector<8x512xf32>
    %131 = tpu.matmul %130, %28, %cst_44 {dimension_numbers = #tpu.dot_dimension_numbers<[1], [0], [0], [1], [0, 0, 1, 1], [], []>} : vector<8x256xf32>, vector<256x512xf32>, vector<8x512xf32> -> vector<8x512xf32>
    %132 = vector.broadcast %30 : vector<1x512xf32> to vector<8x512xf32>
    %133 = arith.addf %131, %132 : vector<8x512xf32>
    %134 = vector.extract_strided_slice %133 {offsets = [0, 0], sizes = [8, 384], strides = [1, 1]} : vector<8x512xf32> to vector<8x384xf32>
    %135 = arith.negf %134 : vector<8x384xf32>
    %136 = math.exp %135 : vector<8x384xf32>
    %cst_45 = arith.constant 1.000000e+00 : f32
    %137 = vector.broadcast %cst_45 : f32 to vector<8x384xf32>
    %138 = arith.addf %137, %136 : vector<8x384xf32>
    %139 = arith.divf %137, %138 : vector<8x384xf32>
    %140 = vector.extract_strided_slice %139 {offsets = [0, 0], sizes = [8, 128], strides = [1, 1]} : vector<8x384xf32> to vector<8x128xf32>
    %141 = vector.extract_strided_slice %139 {offsets = [0, 128], sizes = [8, 128], strides = [1, 1]} : vector<8x384xf32> to vector<8x128xf32>
    %142 = vector.extract_strided_slice %139 {offsets = [0, 256], sizes = [8, 128], strides = [1, 1]} : vector<8x384xf32> to vector<8x128xf32>
    %143 = vector.extract_strided_slice %133 {offsets = [0, 384], sizes = [8, 128], strides = [1, 1]} : vector<8x512xf32> to vector<8x128xf32>
    %144 = math.tanh %143 : vector<8x128xf32>
    %145 = arith.mulf %141, %35 : vector<8x128xf32>
    %146 = arith.mulf %140, %144 : vector<8x128xf32>
    %147 = arith.addf %145, %146 : vector<8x128xf32>
    %148 = math.tanh %147 : vector<8x128xf32>
    %149 = arith.mulf %142, %148 : vector<8x128xf32>
    %cst_46 = arith.constant dense<0.000000e+00> : vector<8x128xf32>
    %150 = tpu.matmul %149, %31, %cst_46 {dimension_numbers = #tpu.dot_dimension_numbers<[1], [0], [0], [1], [0, 0, 1, 1], [], []>} : vector<8x128xf32>, vector<128x128xf32>, vector<8x128xf32> -> vector<8x128xf32>
    %151 = arith.addf %150, %34 : vector<8x128xf32>
    %c0_47 = arith.constant 0 : index
    %c0_48 = arith.constant 0 : index
    %152 = vector.load %arg14[%c0_47, %c0_48] : memref<64x128xf32, #tpu.memory_space<vmem>>, vector<8x128xf32>
    tpu.vector_store %arg14[%c0_47, %c0_48], %151 {strides = array<i32>} : memref<64x128xf32, #tpu.memory_space<vmem>>, vector<8x128xf32>,
    %cst_49 = arith.constant dense<0.000000e+00> : vector<8x512xf32>
    %153 = tpu.matmul %109, %26, %cst_49 {dimension_numbers = #tpu.dot_dimension_numbers<[1], [0], [0], [1], [0, 0, 1, 1], [], []>} : vector<8x128xf32>, vector<128x512xf32>, vector<8x512xf32> -> vector<8x512xf32>
    %154 = arith.addf %25, %153 : vector<8x512xf32>
    %155 = vector.extract_strided_slice %154 {offsets = [0, 0], sizes = [8, 384], strides = [1, 1]} : vector<8x512xf32> to vector<8x384xf32>
    %156 = arith.negf %155 : vector<8x384xf32>
    %157 = math.exp %156 : vector<8x384xf32>
    %cst_50 = arith.constant 1.000000e+00 : f32
    %158 = vector.broadcast %cst_50 : f32 to vector<8x384xf32>
    %159 = arith.addf %158, %157 : vector<8x384xf32>
    %160 = arith.divf %158, %159 : vector<8x384xf32>
    %161 = vector.extract_strided_slice %160 {offsets = [0, 0], sizes = [8, 128], strides = [1, 1]} : vector<8x384xf32> to vector<8x128xf32>
    %162 = vector.extract_strided_slice %160 {offsets = [0, 128], sizes = [8, 128], strides = [1, 1]} : vector<8x384xf32> to vector<8x128xf32>
    %163 = vector.extract_strided_slice %160 {offsets = [0, 256], sizes = [8, 128], strides = [1, 1]} : vector<8x384xf32> to vector<8x128xf32>
    %164 = vector.extract_strided_slice %154 {offsets = [0, 384], sizes = [8, 128], strides = [1, 1]} : vector<8x512xf32> to vector<8x128xf32>
    %165 = math.tanh %164 : vector<8x128xf32>
    %166 = arith.mulf %162, %107 : vector<8x128xf32>
    %167 = arith.mulf %161, %165 : vector<8x128xf32>
    %168 = arith.addf %166, %167 : vector<8x128xf32>
    %169 = math.tanh %168 : vector<8x128xf32>
    %170 = arith.mulf %163, %169 : vector<8x128xf32>
    %171 = tpu.concatenate %109, %129 in 1 : vector<8x128xf32>, vector<8x128xf32> -> vector<8x256xf32>
    %cst_51 = arith.constant dense<0.000000e+00> : vector<8x512xf32>
    %172 = tpu.matmul %171, %27, %cst_51 {dimension_numbers = #tpu.dot_dimension_numbers<[1], [0], [0], [1], [0, 0, 1, 1], [], []>} : vector<8x256xf32>, vector<256x512xf32>, vector<8x512xf32> -> vector<8x512xf32>
    %173 = vector.broadcast %29 : vector<1x512xf32> to vector<8x512xf32>
    %174 = arith.addf %172, %173 : vector<8x512xf32>
    %175 = vector.extract_strided_slice %174 {offsets = [0, 0], sizes = [8, 384], strides = [1, 1]} : vector<8x512xf32> to vector<8x384xf32>
    %176 = arith.negf %175 : vector<8x384xf32>
    %177 = math.exp %176 : vector<8x384xf32>
    %cst_52 = arith.constant 1.000000e+00 : f32
    %178 = vector.broadcast %cst_52 : f32 to vector<8x384xf32>
    %179 = arith.addf %178, %177 : vector<8x384xf32>
    %180 = arith.divf %178, %179 : vector<8x384xf32>
    %181 = vector.extract_strided_slice %180 {offsets = [0, 0], sizes = [8, 128], strides = [1, 1]} : vector<8x384xf32> to vector<8x128xf32>
    %182 = vector.extract_strided_slice %180 {offsets = [0, 128], sizes = [8, 128], strides = [1, 1]} : vector<8x384xf32> to vector<8x128xf32>
    %183 = vector.extract_strided_slice %180 {offsets = [0, 256], sizes = [8, 128], strides = [1, 1]} : vector<8x384xf32> to vector<8x128xf32>
    %184 = vector.extract_strided_slice %174 {offsets = [0, 384], sizes = [8, 128], strides = [1, 1]} : vector<8x512xf32> to vector<8x128xf32>
    %185 = math.tanh %184 : vector<8x128xf32>
    %186 = arith.mulf %182, %127 : vector<8x128xf32>
    %187 = arith.mulf %181, %185 : vector<8x128xf32>
    %188 = arith.addf %186, %187 : vector<8x128xf32>
    %189 = math.tanh %188 : vector<8x128xf32>
    %190 = arith.mulf %183, %189 : vector<8x128xf32>
    %191 = tpu.concatenate %129, %149 in 1 : vector<8x128xf32>, vector<8x128xf32> -> vector<8x256xf32>
    %cst_53 = arith.constant dense<0.000000e+00> : vector<8x512xf32>
    %192 = tpu.matmul %191, %28, %cst_53 {dimension_numbers = #tpu.dot_dimension_numbers<[1], [0], [0], [1], [0, 0, 1, 1], [], []>} : vector<8x256xf32>, vector<256x512xf32>, vector<8x512xf32> -> vector<8x512xf32>
    %193 = vector.broadcast %30 : vector<1x512xf32> to vector<8x512xf32>
    %194 = arith.addf %192, %193 : vector<8x512xf32>
    %195 = vector.extract_strided_slice %194 {offsets = [0, 0], sizes = [8, 384], strides = [1, 1]} : vector<8x512xf32> to vector<8x384xf32>
    %196 = arith.negf %195 : vector<8x384xf32>
    %197 = math.exp %196 : vector<8x384xf32>
    %cst_54 = arith.constant 1.000000e+00 : f32
    %198 = vector.broadcast %cst_54 : f32 to vector<8x384xf32>
    %199 = arith.addf %198, %197 : vector<8x384xf32>
    %200 = arith.divf %198, %199 : vector<8x384xf32>
    %201 = vector.extract_strided_slice %200 {offsets = [0, 0], sizes = [8, 128], strides = [1, 1]} : vector<8x384xf32> to vector<8x128xf32>
    %202 = vector.extract_strided_slice %200 {offsets = [0, 128], sizes = [8, 128], strides = [1, 1]} : vector<8x384xf32> to vector<8x128xf32>
    %203 = vector.extract_strided_slice %200 {offsets = [0, 256], sizes = [8, 128], strides = [1, 1]} : vector<8x384xf32> to vector<8x128xf32>
    %204 = vector.extract_strided_slice %194 {offsets = [0, 384], sizes = [8, 128], strides = [1, 1]} : vector<8x512xf32> to vector<8x128xf32>
    %205 = math.tanh %204 : vector<8x128xf32>
    %206 = arith.mulf %202, %147 : vector<8x128xf32>
    %207 = arith.mulf %201, %205 : vector<8x128xf32>
    %208 = arith.addf %206, %207 : vector<8x128xf32>
    %209 = math.tanh %208 : vector<8x128xf32>
    %210 = arith.mulf %203, %209 : vector<8x128xf32>
    %cst_55 = arith.constant dense<0.000000e+00> : vector<8x128xf32>
    %211 = tpu.matmul %210, %31, %cst_55 {dimension_numbers = #tpu.dot_dimension_numbers<[1], [0], [0], [1], [0, 0, 1, 1], [], []>} : vector<8x128xf32>, vector<128x128xf32>, vector<8x128xf32> -> vector<8x128xf32>
    %212 = arith.addf %211, %34 : vector<8x128xf32>
    %c8 = arith.constant 8 : index
    %c0_56 = arith.constant 0 : index
    %213 = vector.load %arg14[%c8, %c0_56] : memref<64x128xf32, #tpu.memory_space<vmem>>, vector<8x128xf32>
    tpu.vector_store %arg14[%c8, %c0_56], %212 {strides = array<i32>} : memref<64x128xf32, #tpu.memory_space<vmem>>, vector<8x128xf32>,
    %cst_57 = arith.constant dense<0.000000e+00> : vector<8x512xf32>
    %214 = tpu.matmul %170, %26, %cst_57 {dimension_numbers = #tpu.dot_dimension_numbers<[1], [0], [0], [1], [0, 0, 1, 1], [], []>} : vector<8x128xf32>, vector<128x512xf32>, vector<8x512xf32> -> vector<8x512xf32>
    %215 = arith.addf %25, %214 : vector<8x512xf32>
    %216 = vector.extract_strided_slice %215 {offsets = [0, 0], sizes = [8, 384], strides = [1, 1]} : vector<8x512xf32> to vector<8x384xf32>
    %217 = arith.negf %216 : vector<8x384xf32>
    %218 = math.exp %217 : vector<8x384xf32>
    %cst_58 = arith.constant 1.000000e+00 : f32
    %219 = vector.broadcast %cst_58 : f32 to vector<8x384xf32>
    %220 = arith.addf %219, %218 : vector<8x384xf32>
    %221 = arith.divf %219, %220 : vector<8x384xf32>
    %222 = vector.extract_strided_slice %221 {offsets = [0, 0], sizes = [8, 128], strides = [1, 1]} : vector<8x384xf32> to vector<8x128xf32>
    %223 = vector.extract_strided_slice %221 {offsets = [0, 128], sizes = [8, 128], strides = [1, 1]} : vector<8x384xf32> to vector<8x128xf32>
    %224 = vector.extract_strided_slice %221 {offsets = [0, 256], sizes = [8, 128], strides = [1, 1]} : vector<8x384xf32> to vector<8x128xf32>
    %225 = vector.extract_strided_slice %215 {offsets = [0, 384], sizes = [8, 128], strides = [1, 1]} : vector<8x512xf32> to vector<8x128xf32>
    %226 = math.tanh %225 : vector<8x128xf32>
    %227 = arith.mulf %223, %168 : vector<8x128xf32>
    %228 = arith.mulf %222, %226 : vector<8x128xf32>
    %229 = arith.addf %227, %228 : vector<8x128xf32>
    %230 = math.tanh %229 : vector<8x128xf32>
    %231 = arith.mulf %224, %230 : vector<8x128xf32>
    %232 = tpu.concatenate %170, %190 in 1 : vector<8x128xf32>, vector<8x128xf32> -> vector<8x256xf32>
    %cst_59 = arith.constant dense<0.000000e+00> : vector<8x512xf32>
    %233 = tpu.matmul %232, %27, %cst_59 {dimension_numbers = #tpu.dot_dimension_numbers<[1], [0], [0], [1], [0, 0, 1, 1], [], []>} : vector<8x256xf32>, vector<256x512xf32>, vector<8x512xf32> -> vector<8x512xf32>
    %234 = vector.broadcast %29 : vector<1x512xf32> to vector<8x512xf32>
    %235 = arith.addf %233, %234 : vector<8x512xf32>
    %236 = vector.extract_strided_slice %235 {offsets = [0, 0], sizes = [8, 384], strides = [1, 1]} : vector<8x512xf32> to vector<8x384xf32>
    %237 = arith.negf %236 : vector<8x384xf32>
    %238 = math.exp %237 : vector<8x384xf32>
    %cst_60 = arith.constant 1.000000e+00 : f32
    %239 = vector.broadcast %cst_60 : f32 to vector<8x384xf32>
    %240 = arith.addf %239, %238 : vector<8x384xf32>
    %241 = arith.divf %239, %240 : vector<8x384xf32>
    %242 = vector.extract_strided_slice %241 {offsets = [0, 0], sizes = [8, 128], strides = [1, 1]} : vector<8x384xf32> to vector<8x128xf32>
    %243 = vector.extract_strided_slice %241 {offsets = [0, 128], sizes = [8, 128], strides = [1, 1]} : vector<8x384xf32> to vector<8x128xf32>
    %244 = vector.extract_strided_slice %241 {offsets = [0, 256], sizes = [8, 128], strides = [1, 1]} : vector<8x384xf32> to vector<8x128xf32>
    %245 = vector.extract_strided_slice %235 {offsets = [0, 384], sizes = [8, 128], strides = [1, 1]} : vector<8x512xf32> to vector<8x128xf32>
    %246 = math.tanh %245 : vector<8x128xf32>
    %247 = arith.mulf %243, %188 : vector<8x128xf32>
    %248 = arith.mulf %242, %246 : vector<8x128xf32>
    %249 = arith.addf %247, %248 : vector<8x128xf32>
    %250 = math.tanh %249 : vector<8x128xf32>
    %251 = arith.mulf %244, %250 : vector<8x128xf32>
    %252 = tpu.concatenate %190, %210 in 1 : vector<8x128xf32>, vector<8x128xf32> -> vector<8x256xf32>
    %cst_61 = arith.constant dense<0.000000e+00> : vector<8x512xf32>
    %253 = tpu.matmul %252, %28, %cst_61 {dimension_numbers = #tpu.dot_dimension_numbers<[1], [0], [0], [1], [0, 0, 1, 1], [], []>} : vector<8x256xf32>, vector<256x512xf32>, vector<8x512xf32> -> vector<8x512xf32>
    %254 = vector.broadcast %30 : vector<1x512xf32> to vector<8x512xf32>
    %255 = arith.addf %253, %254 : vector<8x512xf32>
    %256 = vector.extract_strided_slice %255 {offsets = [0, 0], sizes = [8, 384], strides = [1, 1]} : vector<8x512xf32> to vector<8x384xf32>
    %257 = arith.negf %256 : vector<8x384xf32>
    %258 = math.exp %257 : vector<8x384xf32>
    %cst_62 = arith.constant 1.000000e+00 : f32
    %259 = vector.broadcast %cst_62 : f32 to vector<8x384xf32>
    %260 = arith.addf %259, %258 : vector<8x384xf32>
    %261 = arith.divf %259, %260 : vector<8x384xf32>
    %262 = vector.extract_strided_slice %261 {offsets = [0, 0], sizes = [8, 128], strides = [1, 1]} : vector<8x384xf32> to vector<8x128xf32>
    %263 = vector.extract_strided_slice %261 {offsets = [0, 128], sizes = [8, 128], strides = [1, 1]} : vector<8x384xf32> to vector<8x128xf32>
    %264 = vector.extract_strided_slice %261 {offsets = [0, 256], sizes = [8, 128], strides = [1, 1]} : vector<8x384xf32> to vector<8x128xf32>
    %265 = vector.extract_strided_slice %255 {offsets = [0, 384], sizes = [8, 128], strides = [1, 1]} : vector<8x512xf32> to vector<8x128xf32>
    %266 = math.tanh %265 : vector<8x128xf32>
    %267 = arith.mulf %263, %208 : vector<8x128xf32>
    %268 = arith.mulf %262, %266 : vector<8x128xf32>
    %269 = arith.addf %267, %268 : vector<8x128xf32>
    %270 = math.tanh %269 : vector<8x128xf32>
    %271 = arith.mulf %264, %270 : vector<8x128xf32>
    %cst_63 = arith.constant dense<0.000000e+00> : vector<8x128xf32>
    %272 = tpu.matmul %271, %31, %cst_63 {dimension_numbers = #tpu.dot_dimension_numbers<[1], [0], [0], [1], [0, 0, 1, 1], [], []>} : vector<8x128xf32>, vector<128x128xf32>, vector<8x128xf32> -> vector<8x128xf32>
    %273 = arith.addf %272, %34 : vector<8x128xf32>
    %c16 = arith.constant 16 : index
    %c0_64 = arith.constant 0 : index
    %274 = vector.load %arg14[%c16, %c0_64] : memref<64x128xf32, #tpu.memory_space<vmem>>, vector<8x128xf32>
    tpu.vector_store %arg14[%c16, %c0_64], %273 {strides = array<i32>} : memref<64x128xf32, #tpu.memory_space<vmem>>, vector<8x128xf32>,
    %cst_65 = arith.constant dense<0.000000e+00> : vector<8x512xf32>
    %275 = tpu.matmul %231, %26, %cst_65 {dimension_numbers = #tpu.dot_dimension_numbers<[1], [0], [0], [1], [0, 0, 1, 1], [], []>} : vector<8x128xf32>, vector<128x512xf32>, vector<8x512xf32> -> vector<8x512xf32>
    %276 = arith.addf %25, %275 : vector<8x512xf32>
    %277 = vector.extract_strided_slice %276 {offsets = [0, 0], sizes = [8, 384], strides = [1, 1]} : vector<8x512xf32> to vector<8x384xf32>
    %278 = arith.negf %277 : vector<8x384xf32>
    %279 = math.exp %278 : vector<8x384xf32>
    %cst_66 = arith.constant 1.000000e+00 : f32
    %280 = vector.broadcast %cst_66 : f32 to vector<8x384xf32>
    %281 = arith.addf %280, %279 : vector<8x384xf32>
    %282 = arith.divf %280, %281 : vector<8x384xf32>
    %283 = vector.extract_strided_slice %282 {offsets = [0, 0], sizes = [8, 128], strides = [1, 1]} : vector<8x384xf32> to vector<8x128xf32>
    %284 = vector.extract_strided_slice %282 {offsets = [0, 128], sizes = [8, 128], strides = [1, 1]} : vector<8x384xf32> to vector<8x128xf32>
    %285 = vector.extract_strided_slice %282 {offsets = [0, 256], sizes = [8, 128], strides = [1, 1]} : vector<8x384xf32> to vector<8x128xf32>
    %286 = vector.extract_strided_slice %276 {offsets = [0, 384], sizes = [8, 128], strides = [1, 1]} : vector<8x512xf32> to vector<8x128xf32>
    %287 = math.tanh %286 : vector<8x128xf32>
    %288 = arith.mulf %284, %229 : vector<8x128xf32>
    %289 = arith.mulf %283, %287 : vector<8x128xf32>
    %290 = arith.addf %288, %289 : vector<8x128xf32>
    %291 = math.tanh %290 : vector<8x128xf32>
    %292 = arith.mulf %285, %291 : vector<8x128xf32>
    %293 = tpu.concatenate %231, %251 in 1 : vector<8x128xf32>, vector<8x128xf32> -> vector<8x256xf32>
    %cst_67 = arith.constant dense<0.000000e+00> : vector<8x512xf32>
    %294 = tpu.matmul %293, %27, %cst_67 {dimension_numbers = #tpu.dot_dimension_numbers<[1], [0], [0], [1], [0, 0, 1, 1], [], []>} : vector<8x256xf32>, vector<256x512xf32>, vector<8x512xf32> -> vector<8x512xf32>
    %295 = vector.broadcast %29 : vector<1x512xf32> to vector<8x512xf32>
    %296 = arith.addf %294, %295 : vector<8x512xf32>
    %297 = vector.extract_strided_slice %296 {offsets = [0, 0], sizes = [8, 384], strides = [1, 1]} : vector<8x512xf32> to vector<8x384xf32>
    %298 = arith.negf %297 : vector<8x384xf32>
    %299 = math.exp %298 : vector<8x384xf32>
    %cst_68 = arith.constant 1.000000e+00 : f32
    %300 = vector.broadcast %cst_68 : f32 to vector<8x384xf32>
    %301 = arith.addf %300, %299 : vector<8x384xf32>
    %302 = arith.divf %300, %301 : vector<8x384xf32>
    %303 = vector.extract_strided_slice %302 {offsets = [0, 0], sizes = [8, 128], strides = [1, 1]} : vector<8x384xf32> to vector<8x128xf32>
    %304 = vector.extract_strided_slice %302 {offsets = [0, 128], sizes = [8, 128], strides = [1, 1]} : vector<8x384xf32> to vector<8x128xf32>
    %305 = vector.extract_strided_slice %302 {offsets = [0, 256], sizes = [8, 128], strides = [1, 1]} : vector<8x384xf32> to vector<8x128xf32>
    %306 = vector.extract_strided_slice %296 {offsets = [0, 384], sizes = [8, 128], strides = [1, 1]} : vector<8x512xf32> to vector<8x128xf32>
    %307 = math.tanh %306 : vector<8x128xf32>
    %308 = arith.mulf %304, %249 : vector<8x128xf32>
    %309 = arith.mulf %303, %307 : vector<8x128xf32>
    %310 = arith.addf %308, %309 : vector<8x128xf32>
    %311 = math.tanh %310 : vector<8x128xf32>
    %312 = arith.mulf %305, %311 : vector<8x128xf32>
    %313 = tpu.concatenate %251, %271 in 1 : vector<8x128xf32>, vector<8x128xf32> -> vector<8x256xf32>
    %cst_69 = arith.constant dense<0.000000e+00> : vector<8x512xf32>
    %314 = tpu.matmul %313, %28, %cst_69 {dimension_numbers = #tpu.dot_dimension_numbers<[1], [0], [0], [1], [0, 0, 1, 1], [], []>} : vector<8x256xf32>, vector<256x512xf32>, vector<8x512xf32> -> vector<8x512xf32>
    %315 = vector.broadcast %30 : vector<1x512xf32> to vector<8x512xf32>
    %316 = arith.addf %314, %315 : vector<8x512xf32>
    %317 = vector.extract_strided_slice %316 {offsets = [0, 0], sizes = [8, 384], strides = [1, 1]} : vector<8x512xf32> to vector<8x384xf32>
    %318 = arith.negf %317 : vector<8x384xf32>
    %319 = math.exp %318 : vector<8x384xf32>
    %cst_70 = arith.constant 1.000000e+00 : f32
    %320 = vector.broadcast %cst_70 : f32 to vector<8x384xf32>
    %321 = arith.addf %320, %319 : vector<8x384xf32>
    %322 = arith.divf %320, %321 : vector<8x384xf32>
    %323 = vector.extract_strided_slice %322 {offsets = [0, 0], sizes = [8, 128], strides = [1, 1]} : vector<8x384xf32> to vector<8x128xf32>
    %324 = vector.extract_strided_slice %322 {offsets = [0, 128], sizes = [8, 128], strides = [1, 1]} : vector<8x384xf32> to vector<8x128xf32>
    %325 = vector.extract_strided_slice %322 {offsets = [0, 256], sizes = [8, 128], strides = [1, 1]} : vector<8x384xf32> to vector<8x128xf32>
    %326 = vector.extract_strided_slice %316 {offsets = [0, 384], sizes = [8, 128], strides = [1, 1]} : vector<8x512xf32> to vector<8x128xf32>
    %327 = math.tanh %326 : vector<8x128xf32>
    %328 = arith.mulf %324, %269 : vector<8x128xf32>
    %329 = arith.mulf %323, %327 : vector<8x128xf32>
    %330 = arith.addf %328, %329 : vector<8x128xf32>
    %331 = math.tanh %330 : vector<8x128xf32>
    %332 = arith.mulf %325, %331 : vector<8x128xf32>
    %cst_71 = arith.constant dense<0.000000e+00> : vector<8x128xf32>
    %333 = tpu.matmul %332, %31, %cst_71 {dimension_numbers = #tpu.dot_dimension_numbers<[1], [0], [0], [1], [0, 0, 1, 1], [], []>} : vector<8x128xf32>, vector<128x128xf32>, vector<8x128xf32> -> vector<8x128xf32>
    %334 = arith.addf %333, %34 : vector<8x128xf32>
    %c24 = arith.constant 24 : index
    %c0_72 = arith.constant 0 : index
    %335 = vector.load %arg14[%c24, %c0_72] : memref<64x128xf32, #tpu.memory_space<vmem>>, vector<8x128xf32>
    tpu.vector_store %arg14[%c24, %c0_72], %334 {strides = array<i32>} : memref<64x128xf32, #tpu.memory_space<vmem>>, vector<8x128xf32>,
    %cst_73 = arith.constant dense<0.000000e+00> : vector<8x512xf32>
    %336 = tpu.matmul %292, %26, %cst_73 {dimension_numbers = #tpu.dot_dimension_numbers<[1], [0], [0], [1], [0, 0, 1, 1], [], []>} : vector<8x128xf32>, vector<128x512xf32>, vector<8x512xf32> -> vector<8x512xf32>
    %337 = arith.addf %25, %336 : vector<8x512xf32>
    %338 = vector.extract_strided_slice %337 {offsets = [0, 0], sizes = [8, 384], strides = [1, 1]} : vector<8x512xf32> to vector<8x384xf32>
    %339 = arith.negf %338 : vector<8x384xf32>
    %340 = math.exp %339 : vector<8x384xf32>
    %cst_74 = arith.constant 1.000000e+00 : f32
    %341 = vector.broadcast %cst_74 : f32 to vector<8x384xf32>
    %342 = arith.addf %341, %340 : vector<8x384xf32>
    %343 = arith.divf %341, %342 : vector<8x384xf32>
    %344 = vector.extract_strided_slice %343 {offsets = [0, 0], sizes = [8, 128], strides = [1, 1]} : vector<8x384xf32> to vector<8x128xf32>
    %345 = vector.extract_strided_slice %343 {offsets = [0, 128], sizes = [8, 128], strides = [1, 1]} : vector<8x384xf32> to vector<8x128xf32>
    %346 = vector.extract_strided_slice %343 {offsets = [0, 256], sizes = [8, 128], strides = [1, 1]} : vector<8x384xf32> to vector<8x128xf32>
    %347 = vector.extract_strided_slice %337 {offsets = [0, 384], sizes = [8, 128], strides = [1, 1]} : vector<8x512xf32> to vector<8x128xf32>
    %348 = math.tanh %347 : vector<8x128xf32>
    %349 = arith.mulf %345, %290 : vector<8x128xf32>
    %350 = arith.mulf %344, %348 : vector<8x128xf32>
    %351 = arith.addf %349, %350 : vector<8x128xf32>
    %352 = math.tanh %351 : vector<8x128xf32>
    %353 = arith.mulf %346, %352 : vector<8x128xf32>
    %354 = tpu.concatenate %292, %312 in 1 : vector<8x128xf32>, vector<8x128xf32> -> vector<8x256xf32>
    %cst_75 = arith.constant dense<0.000000e+00> : vector<8x512xf32>
    %355 = tpu.matmul %354, %27, %cst_75 {dimension_numbers = #tpu.dot_dimension_numbers<[1], [0], [0], [1], [0, 0, 1, 1], [], []>} : vector<8x256xf32>, vector<256x512xf32>, vector<8x512xf32> -> vector<8x512xf32>
    %356 = vector.broadcast %29 : vector<1x512xf32> to vector<8x512xf32>
    %357 = arith.addf %355, %356 : vector<8x512xf32>
    %358 = vector.extract_strided_slice %357 {offsets = [0, 0], sizes = [8, 384], strides = [1, 1]} : vector<8x512xf32> to vector<8x384xf32>
    %359 = arith.negf %358 : vector<8x384xf32>
    %360 = math.exp %359 : vector<8x384xf32>
    %cst_76 = arith.constant 1.000000e+00 : f32
    %361 = vector.broadcast %cst_76 : f32 to vector<8x384xf32>
    %362 = arith.addf %361, %360 : vector<8x384xf32>
    %363 = arith.divf %361, %362 : vector<8x384xf32>
    %364 = vector.extract_strided_slice %363 {offsets = [0, 0], sizes = [8, 128], strides = [1, 1]} : vector<8x384xf32> to vector<8x128xf32>
    %365 = vector.extract_strided_slice %363 {offsets = [0, 128], sizes = [8, 128], strides = [1, 1]} : vector<8x384xf32> to vector<8x128xf32>
    %366 = vector.extract_strided_slice %363 {offsets = [0, 256], sizes = [8, 128], strides = [1, 1]} : vector<8x384xf32> to vector<8x128xf32>
    %367 = vector.extract_strided_slice %357 {offsets = [0, 384], sizes = [8, 128], strides = [1, 1]} : vector<8x512xf32> to vector<8x128xf32>
    %368 = math.tanh %367 : vector<8x128xf32>
    %369 = arith.mulf %365, %310 : vector<8x128xf32>
    %370 = arith.mulf %364, %368 : vector<8x128xf32>
    %371 = arith.addf %369, %370 : vector<8x128xf32>
    %372 = math.tanh %371 : vector<8x128xf32>
    %373 = arith.mulf %366, %372 : vector<8x128xf32>
    %374 = tpu.concatenate %312, %332 in 1 : vector<8x128xf32>, vector<8x128xf32> -> vector<8x256xf32>
    %cst_77 = arith.constant dense<0.000000e+00> : vector<8x512xf32>
    %375 = tpu.matmul %374, %28, %cst_77 {dimension_numbers = #tpu.dot_dimension_numbers<[1], [0], [0], [1], [0, 0, 1, 1], [], []>} : vector<8x256xf32>, vector<256x512xf32>, vector<8x512xf32> -> vector<8x512xf32>
    %376 = vector.broadcast %30 : vector<1x512xf32> to vector<8x512xf32>
    %377 = arith.addf %375, %376 : vector<8x512xf32>
    %378 = vector.extract_strided_slice %377 {offsets = [0, 0], sizes = [8, 384], strides = [1, 1]} : vector<8x512xf32> to vector<8x384xf32>
    %379 = arith.negf %378 : vector<8x384xf32>
    %380 = math.exp %379 : vector<8x384xf32>
    %cst_78 = arith.constant 1.000000e+00 : f32
    %381 = vector.broadcast %cst_78 : f32 to vector<8x384xf32>
    %382 = arith.addf %381, %380 : vector<8x384xf32>
    %383 = arith.divf %381, %382 : vector<8x384xf32>
    %384 = vector.extract_strided_slice %383 {offsets = [0, 0], sizes = [8, 128], strides = [1, 1]} : vector<8x384xf32> to vector<8x128xf32>
    %385 = vector.extract_strided_slice %383 {offsets = [0, 128], sizes = [8, 128], strides = [1, 1]} : vector<8x384xf32> to vector<8x128xf32>
    %386 = vector.extract_strided_slice %383 {offsets = [0, 256], sizes = [8, 128], strides = [1, 1]} : vector<8x384xf32> to vector<8x128xf32>
    %387 = vector.extract_strided_slice %377 {offsets = [0, 384], sizes = [8, 128], strides = [1, 1]} : vector<8x512xf32> to vector<8x128xf32>
    %388 = math.tanh %387 : vector<8x128xf32>
    %389 = arith.mulf %385, %330 : vector<8x128xf32>
    %390 = arith.mulf %384, %388 : vector<8x128xf32>
    %391 = arith.addf %389, %390 : vector<8x128xf32>
    %392 = math.tanh %391 : vector<8x128xf32>
    %393 = arith.mulf %386, %392 : vector<8x128xf32>
    %cst_79 = arith.constant dense<0.000000e+00> : vector<8x128xf32>
    %394 = tpu.matmul %393, %31, %cst_79 {dimension_numbers = #tpu.dot_dimension_numbers<[1], [0], [0], [1], [0, 0, 1, 1], [], []>} : vector<8x128xf32>, vector<128x128xf32>, vector<8x128xf32> -> vector<8x128xf32>
    %395 = arith.addf %394, %34 : vector<8x128xf32>
    %c32 = arith.constant 32 : index
    %c0_80 = arith.constant 0 : index
    %396 = vector.load %arg14[%c32, %c0_80] : memref<64x128xf32, #tpu.memory_space<vmem>>, vector<8x128xf32>
    tpu.vector_store %arg14[%c32, %c0_80], %395 {strides = array<i32>} : memref<64x128xf32, #tpu.memory_space<vmem>>, vector<8x128xf32>,
    %cst_81 = arith.constant dense<0.000000e+00> : vector<8x512xf32>
    %397 = tpu.matmul %353, %26, %cst_81 {dimension_numbers = #tpu.dot_dimension_numbers<[1], [0], [0], [1], [0, 0, 1, 1], [], []>} : vector<8x128xf32>, vector<128x512xf32>, vector<8x512xf32> -> vector<8x512xf32>
    %398 = arith.addf %25, %397 : vector<8x512xf32>
    %399 = vector.extract_strided_slice %398 {offsets = [0, 0], sizes = [8, 384], strides = [1, 1]} : vector<8x512xf32> to vector<8x384xf32>
    %400 = arith.negf %399 : vector<8x384xf32>
    %401 = math.exp %400 : vector<8x384xf32>
    %cst_82 = arith.constant 1.000000e+00 : f32
    %402 = vector.broadcast %cst_82 : f32 to vector<8x384xf32>
    %403 = arith.addf %402, %401 : vector<8x384xf32>
    %404 = arith.divf %402, %403 : vector<8x384xf32>
    %405 = vector.extract_strided_slice %404 {offsets = [0, 0], sizes = [8, 128], strides = [1, 1]} : vector<8x384xf32> to vector<8x128xf32>
    %406 = vector.extract_strided_slice %404 {offsets = [0, 128], sizes = [8, 128], strides = [1, 1]} : vector<8x384xf32> to vector<8x128xf32>
    %407 = vector.extract_strided_slice %404 {offsets = [0, 256], sizes = [8, 128], strides = [1, 1]} : vector<8x384xf32> to vector<8x128xf32>
    %408 = vector.extract_strided_slice %398 {offsets = [0, 384], sizes = [8, 128], strides = [1, 1]} : vector<8x512xf32> to vector<8x128xf32>
    %409 = math.tanh %408 : vector<8x128xf32>
    %410 = arith.mulf %406, %351 : vector<8x128xf32>
    %411 = arith.mulf %405, %409 : vector<8x128xf32>
    %412 = arith.addf %410, %411 : vector<8x128xf32>
    %413 = math.tanh %412 : vector<8x128xf32>
    %414 = arith.mulf %407, %413 : vector<8x128xf32>
    %415 = tpu.concatenate %353, %373 in 1 : vector<8x128xf32>, vector<8x128xf32> -> vector<8x256xf32>
    %cst_83 = arith.constant dense<0.000000e+00> : vector<8x512xf32>
    %416 = tpu.matmul %415, %27, %cst_83 {dimension_numbers = #tpu.dot_dimension_numbers<[1], [0], [0], [1], [0, 0, 1, 1], [], []>} : vector<8x256xf32>, vector<256x512xf32>, vector<8x512xf32> -> vector<8x512xf32>
    %417 = vector.broadcast %29 : vector<1x512xf32> to vector<8x512xf32>
    %418 = arith.addf %416, %417 : vector<8x512xf32>
    %419 = vector.extract_strided_slice %418 {offsets = [0, 0], sizes = [8, 384], strides = [1, 1]} : vector<8x512xf32> to vector<8x384xf32>
    %420 = arith.negf %419 : vector<8x384xf32>
    %421 = math.exp %420 : vector<8x384xf32>
    %cst_84 = arith.constant 1.000000e+00 : f32
    %422 = vector.broadcast %cst_84 : f32 to vector<8x384xf32>
    %423 = arith.addf %422, %421 : vector<8x384xf32>
    %424 = arith.divf %422, %423 : vector<8x384xf32>
    %425 = vector.extract_strided_slice %424 {offsets = [0, 0], sizes = [8, 128], strides = [1, 1]} : vector<8x384xf32> to vector<8x128xf32>
    %426 = vector.extract_strided_slice %424 {offsets = [0, 128], sizes = [8, 128], strides = [1, 1]} : vector<8x384xf32> to vector<8x128xf32>
    %427 = vector.extract_strided_slice %424 {offsets = [0, 256], sizes = [8, 128], strides = [1, 1]} : vector<8x384xf32> to vector<8x128xf32>
    %428 = vector.extract_strided_slice %418 {offsets = [0, 384], sizes = [8, 128], strides = [1, 1]} : vector<8x512xf32> to vector<8x128xf32>
    %429 = math.tanh %428 : vector<8x128xf32>
    %430 = arith.mulf %426, %371 : vector<8x128xf32>
    %431 = arith.mulf %425, %429 : vector<8x128xf32>
    %432 = arith.addf %430, %431 : vector<8x128xf32>
    %433 = math.tanh %432 : vector<8x128xf32>
    %434 = arith.mulf %427, %433 : vector<8x128xf32>
    %435 = tpu.concatenate %373, %393 in 1 : vector<8x128xf32>, vector<8x128xf32> -> vector<8x256xf32>
    %cst_85 = arith.constant dense<0.000000e+00> : vector<8x512xf32>
    %436 = tpu.matmul %435, %28, %cst_85 {dimension_numbers = #tpu.dot_dimension_numbers<[1], [0], [0], [1], [0, 0, 1, 1], [], []>} : vector<8x256xf32>, vector<256x512xf32>, vector<8x512xf32> -> vector<8x512xf32>
    %437 = vector.broadcast %30 : vector<1x512xf32> to vector<8x512xf32>
    %438 = arith.addf %436, %437 : vector<8x512xf32>
    %439 = vector.extract_strided_slice %438 {offsets = [0, 0], sizes = [8, 384], strides = [1, 1]} : vector<8x512xf32> to vector<8x384xf32>
    %440 = arith.negf %439 : vector<8x384xf32>
    %441 = math.exp %440 : vector<8x384xf32>
    %cst_86 = arith.constant 1.000000e+00 : f32
    %442 = vector.broadcast %cst_86 : f32 to vector<8x384xf32>
    %443 = arith.addf %442, %441 : vector<8x384xf32>
    %444 = arith.divf %442, %443 : vector<8x384xf32>
    %445 = vector.extract_strided_slice %444 {offsets = [0, 0], sizes = [8, 128], strides = [1, 1]} : vector<8x384xf32> to vector<8x128xf32>
    %446 = vector.extract_strided_slice %444 {offsets = [0, 128], sizes = [8, 128], strides = [1, 1]} : vector<8x384xf32> to vector<8x128xf32>
    %447 = vector.extract_strided_slice %444 {offsets = [0, 256], sizes = [8, 128], strides = [1, 1]} : vector<8x384xf32> to vector<8x128xf32>
    %448 = vector.extract_strided_slice %438 {offsets = [0, 384], sizes = [8, 128], strides = [1, 1]} : vector<8x512xf32> to vector<8x128xf32>
    %449 = math.tanh %448 : vector<8x128xf32>
    %450 = arith.mulf %446, %391 : vector<8x128xf32>
    %451 = arith.mulf %445, %449 : vector<8x128xf32>
    %452 = arith.addf %450, %451 : vector<8x128xf32>
    %453 = math.tanh %452 : vector<8x128xf32>
    %454 = arith.mulf %447, %453 : vector<8x128xf32>
    %cst_87 = arith.constant dense<0.000000e+00> : vector<8x128xf32>
    %455 = tpu.matmul %454, %31, %cst_87 {dimension_numbers = #tpu.dot_dimension_numbers<[1], [0], [0], [1], [0, 0, 1, 1], [], []>} : vector<8x128xf32>, vector<128x128xf32>, vector<8x128xf32> -> vector<8x128xf32>
    %456 = arith.addf %455, %34 : vector<8x128xf32>
    %c40 = arith.constant 40 : index
    %c0_88 = arith.constant 0 : index
    %457 = vector.load %arg14[%c40, %c0_88] : memref<64x128xf32, #tpu.memory_space<vmem>>, vector<8x128xf32>
    tpu.vector_store %arg14[%c40, %c0_88], %456 {strides = array<i32>} : memref<64x128xf32, #tpu.memory_space<vmem>>, vector<8x128xf32>,
    %458 = tpu.concatenate %414, %434 in 1 : vector<8x128xf32>, vector<8x128xf32> -> vector<8x256xf32>
    %cst_89 = arith.constant dense<0.000000e+00> : vector<8x512xf32>
    %459 = tpu.matmul %458, %27, %cst_89 {dimension_numbers = #tpu.dot_dimension_numbers<[1], [0], [0], [1], [0, 0, 1, 1], [], []>} : vector<8x256xf32>, vector<256x512xf32>, vector<8x512xf32> -> vector<8x512xf32>
    %460 = vector.broadcast %29 : vector<1x512xf32> to vector<8x512xf32>
    %461 = arith.addf %459, %460 : vector<8x512xf32>
    %462 = vector.extract_strided_slice %461 {offsets = [0, 0], sizes = [8, 384], strides = [1, 1]} : vector<8x512xf32> to vector<8x384xf32>
    %463 = arith.negf %462 : vector<8x384xf32>
    %464 = math.exp %463 : vector<8x384xf32>
    %cst_90 = arith.constant 1.000000e+00 : f32
    %465 = vector.broadcast %cst_90 : f32 to vector<8x384xf32>
    %466 = arith.addf %465, %464 : vector<8x384xf32>
    %467 = arith.divf %465, %466 : vector<8x384xf32>
    %468 = vector.extract_strided_slice %467 {offsets = [0, 0], sizes = [8, 128], strides = [1, 1]} : vector<8x384xf32> to vector<8x128xf32>
    %469 = vector.extract_strided_slice %467 {offsets = [0, 128], sizes = [8, 128], strides = [1, 1]} : vector<8x384xf32> to vector<8x128xf32>
    %470 = vector.extract_strided_slice %467 {offsets = [0, 256], sizes = [8, 128], strides = [1, 1]} : vector<8x384xf32> to vector<8x128xf32>
    %471 = vector.extract_strided_slice %461 {offsets = [0, 384], sizes = [8, 128], strides = [1, 1]} : vector<8x512xf32> to vector<8x128xf32>
    %472 = math.tanh %471 : vector<8x128xf32>
    %473 = arith.mulf %469, %432 : vector<8x128xf32>
    %474 = arith.mulf %468, %472 : vector<8x128xf32>
    %475 = arith.addf %473, %474 : vector<8x128xf32>
    %476 = math.tanh %475 : vector<8x128xf32>
    %477 = arith.mulf %470, %476 : vector<8x128xf32>
    %478 = tpu.concatenate %434, %454 in 1 : vector<8x128xf32>, vector<8x128xf32> -> vector<8x256xf32>
    %cst_91 = arith.constant dense<0.000000e+00> : vector<8x512xf32>
    %479 = tpu.matmul %478, %28, %cst_91 {dimension_numbers = #tpu.dot_dimension_numbers<[1], [0], [0], [1], [0, 0, 1, 1], [], []>} : vector<8x256xf32>, vector<256x512xf32>, vector<8x512xf32> -> vector<8x512xf32>
    %480 = vector.broadcast %30 : vector<1x512xf32> to vector<8x512xf32>
    %481 = arith.addf %479, %480 : vector<8x512xf32>
    %482 = vector.extract_strided_slice %481 {offsets = [0, 0], sizes = [8, 384], strides = [1, 1]} : vector<8x512xf32> to vector<8x384xf32>
    %483 = arith.negf %482 : vector<8x384xf32>
    %484 = math.exp %483 : vector<8x384xf32>
    %cst_92 = arith.constant 1.000000e+00 : f32
    %485 = vector.broadcast %cst_92 : f32 to vector<8x384xf32>
    %486 = arith.addf %485, %484 : vector<8x384xf32>
    %487 = arith.divf %485, %486 : vector<8x384xf32>
    %488 = vector.extract_strided_slice %487 {offsets = [0, 0], sizes = [8, 128], strides = [1, 1]} : vector<8x384xf32> to vector<8x128xf32>
    %489 = vector.extract_strided_slice %487 {offsets = [0, 128], sizes = [8, 128], strides = [1, 1]} : vector<8x384xf32> to vector<8x128xf32>
    %490 = vector.extract_strided_slice %487 {offsets = [0, 256], sizes = [8, 128], strides = [1, 1]} : vector<8x384xf32> to vector<8x128xf32>
    %491 = vector.extract_strided_slice %481 {offsets = [0, 384], sizes = [8, 128], strides = [1, 1]} : vector<8x512xf32> to vector<8x128xf32>
    %492 = math.tanh %491 : vector<8x128xf32>
    %493 = arith.mulf %489, %452 : vector<8x128xf32>
    %494 = arith.mulf %488, %492 : vector<8x128xf32>
    %495 = arith.addf %493, %494 : vector<8x128xf32>
    %496 = math.tanh %495 : vector<8x128xf32>
    %497 = arith.mulf %490, %496 : vector<8x128xf32>
    %cst_93 = arith.constant dense<0.000000e+00> : vector<8x128xf32>
    %498 = tpu.matmul %497, %31, %cst_93 {dimension_numbers = #tpu.dot_dimension_numbers<[1], [0], [0], [1], [0, 0, 1, 1], [], []>} : vector<8x128xf32>, vector<128x128xf32>, vector<8x128xf32> -> vector<8x128xf32>
    %499 = arith.addf %498, %34 : vector<8x128xf32>
    %c48 = arith.constant 48 : index
    %c0_94 = arith.constant 0 : index
    %500 = vector.load %arg14[%c48, %c0_94] : memref<64x128xf32, #tpu.memory_space<vmem>>, vector<8x128xf32>
    tpu.vector_store %arg14[%c48, %c0_94], %499 {strides = array<i32>} : memref<64x128xf32, #tpu.memory_space<vmem>>, vector<8x128xf32>,
    %501 = tpu.concatenate %477, %497 in 1 : vector<8x128xf32>, vector<8x128xf32> -> vector<8x256xf32>
    %cst_95 = arith.constant dense<0.000000e+00> : vector<8x512xf32>
    %502 = tpu.matmul %501, %28, %cst_95 {dimension_numbers = #tpu.dot_dimension_numbers<[1], [0], [0], [1], [0, 0, 1, 1], [], []>} : vector<8x256xf32>, vector<256x512xf32>, vector<8x512xf32> -> vector<8x512xf32>
    %503 = vector.broadcast %30 : vector<1x512xf32> to vector<8x512xf32>
    %504 = arith.addf %502, %503 : vector<8x512xf32>
    %505 = vector.extract_strided_slice %504 {offsets = [0, 0], sizes = [8, 384], strides = [1, 1]} : vector<8x512xf32> to vector<8x384xf32>
    %506 = arith.negf %505 : vector<8x384xf32>
    %507 = math.exp %506 : vector<8x384xf32>
    %cst_96 = arith.constant 1.000000e+00 : f32
    %508 = vector.broadcast %cst_96 : f32 to vector<8x384xf32>
    %509 = arith.addf %508, %507 : vector<8x384xf32>
    %510 = arith.divf %508, %509 : vector<8x384xf32>
    %511 = vector.extract_strided_slice %510 {offsets = [0, 0], sizes = [8, 128], strides = [1, 1]} : vector<8x384xf32> to vector<8x128xf32>
    %512 = vector.extract_strided_slice %510 {offsets = [0, 128], sizes = [8, 128], strides = [1, 1]} : vector<8x384xf32> to vector<8x128xf32>
    %513 = vector.extract_strided_slice %510 {offsets = [0, 256], sizes = [8, 128], strides = [1, 1]} : vector<8x384xf32> to vector<8x128xf32>
    %514 = vector.extract_strided_slice %504 {offsets = [0, 384], sizes = [8, 128], strides = [1, 1]} : vector<8x512xf32> to vector<8x128xf32>
    %515 = math.tanh %514 : vector<8x128xf32>
    %516 = arith.mulf %512, %495 : vector<8x128xf32>
    %517 = arith.mulf %511, %515 : vector<8x128xf32>
    %518 = arith.addf %516, %517 : vector<8x128xf32>
    %519 = math.tanh %518 : vector<8x128xf32>
    %520 = arith.mulf %513, %519 : vector<8x128xf32>
    %cst_97 = arith.constant dense<0.000000e+00> : vector<8x128xf32>
    %521 = tpu.matmul %520, %31, %cst_97 {dimension_numbers = #tpu.dot_dimension_numbers<[1], [0], [0], [1], [0, 0, 1, 1], [], []>} : vector<8x128xf32>, vector<128x128xf32>, vector<8x128xf32> -> vector<8x128xf32>
    %522 = arith.addf %521, %34 : vector<8x128xf32>
    %c56 = arith.constant 56 : index
    %c0_98 = arith.constant 0 : index
    %523 = vector.load %arg14[%c56, %c0_98] : memref<64x128xf32, #tpu.memory_space<vmem>>, vector<8x128xf32>
    tpu.vector_store %arg14[%c56, %c0_98], %522 {strides = array<i32>} : memref<64x128xf32, #tpu.memory_space<vmem>>, vector<8x128xf32>,
    return
  }
}

</mosaic_0001>

<bundles_post_ra>
// kernel: tpu_custom_call.1
= control target key start
LH: loop header
LB: loop body
LE: loop exit
PB: predicated region body
PF: predicated region fallthrough
CT: control target
= control target key end

     0   :  { %19 = vsyncpa [#allocation3], 0  ;;  %s12139_s0 = inlined_call_operand.hbm [shape: f32[8,128], index: 0, kind: input, shape index: {}]   ;;  %s12140_s1 = inlined_call_operand.hbm [shape: f32[128,128], index: 1, kind: input, shape index: {}]   ;;  %s12141_s2 = inlined_call_operand.vmem [shape: f32[1,128], index: 2, kind: input, shape index: {}]   ;;  %s12142_s3 = inlined_call_operand.hbm [shape: f32[128,128], index: 3, kind: input, shape index: {}]   ;;  %s12143_s4 = inlined_call_operand.vmem [shape: f32[1,128], index: 4, kind: input, shape index: {}]   ;;  %s12144_s5 = inlined_call_operand.hbm [shape: f32[128,512], index: 5, kind: input, shape index: {}]   ;;  %s12145_s6 = inlined_call_operand.hbm [shape: f32[128,512], index: 6, kind: input, shape index: {}]   ;;  %s12146_s7 = inlined_call_operand.hbm [shape: f32[256,512], index: 7, kind: input, shape index: {}]   ;;  %s12147_s8 = inlined_call_operand.hbm [shape: f32[256,512], index: 8, kind: input, shape index: {}]   ;;  %s12148_s9 = inlined_call_operand.vmem [shape: f32[1,512], index: 9, kind: input, shape index: {}]   ;;  %s12149_s10 = inlined_call_operand.vmem [shape: f32[1,512], index: 10, kind: input, shape index: {}]   ;;  %s12150_s11 = inlined_call_operand.vmem [shape: f32[1,512], index: 11, kind: input, shape index: {}]   ;;  %s12151_s12 = inlined_call_operand.hbm [shape: f32[128,128], index: 12, kind: input, shape index: {}]   ;;  %s12152_s13 = inlined_call_operand.vmem [shape: f32[1,128], index: 13, kind: input, shape index: {}]   ;;  %s12153_s14 = inlined_call_operand.hbm [shape: f32[64,128], index: 14, kind: output, shape index: {}]  }
   0x1   :  { %20 = vsyncpa [#allocation6], 0 }
   0x2   :  { %21 = vsyncpa [#allocation9], 0 }
   0x3   :  { %22 = vsyncpa [#allocation12], 0 }
   0x4   :  { %23 = vsyncpa [#allocation15], 0 }
   0x5   :  { %24 = vsyncpa [#allocation4], 0  ;;  %s9639_s29 = smov [#allocation5]   ;;  %s9429_s17 = scalar_lea.hbm %s12140_s1, 2048 }
   0x6   :  { %s40_s30 = sshll.u32 %s9639_s29, 4  ;;  %p9430_p0 = scmp.ne.s32.totalorder %s12140_s1, %s9429_s17  ;;  %s41_s30 = int_to_ptr.vmem [resolvable:$true] %s40_s30 }
   0x7   :  { %p9433_p1 = scmp.lt.u32.totalorder %s9429_s17, %s12140_s1 }
   0x9   :  { %p9435_p2 = pnand %p9433_p1, %p9430_p0 }
   0xb   :  { %9438 = shalt.err (!%p9435_p2)
}
   0xc   :  { %s9439_s22 = scalar_lea.vmem %s41_s30, 2048  ;;  %p9444_p4 = scmp.lt.s32.totalorder %s41_s30, %s41_s30 }
   0xd   :  { %p9440_p3 = scmp.ne.s32.totalorder %s41_s30, %s9439_s22  ;;  %p9445_p5 = scmp.lt.s32.totalorder %s9439_s22, %s9439_s22 }
   0xf   :  { %p9446_p6 = por %p9445_p5, %p9444_p4 }
  0x11   :  { %p9447_p7 = pnand %p9446_p6, %p9440_p3 }
  0x13   :  { %9450 = shalt.err (!%p9447_p7)
}
  0x14   :  { %s12154_s23 = smov 128   ;;  %s9641_s24 = smov 8  }
  0x15   :  { %46 = dma.hbm_to_vmem [thread:$0]  %s12140_s1, 2048, %s41_s30, [#allocation6], %s12154_s23, %s12154_s23, %s9641_s24  }
  0x16   :  { %s9642_s27 = smov [#allocation8]   ;;  %s9451_s16 = scalar_lea.hbm %s12144_s5, 8192 }
  0x17   :  { %s68_s28 = sshll.u32 %s9642_s27, 4  ;;  %p9452_p8 = scmp.ne.s32.totalorder %s12144_s5, %s9451_s16  ;;  %s69_s28 = int_to_ptr.vmem [resolvable:$true] %s68_s28 }
  0x18   :  { %p9455_p9 = scmp.lt.u32.totalorder %s9451_s16, %s12144_s5 }
  0x1a   :  { %p9457_p10 = pnand %p9455_p9, %p9452_p8 }
  0x1c   :  { %9460 = shalt.err (!%p9457_p10)
}
  0x1d   :  { %s9461_s21 = scalar_lea.vmem %s69_s28, 8192  ;;  %p9466_p12 = scmp.lt.s32.totalorder %s69_s28, %s69_s28 }
  0x1e   :  { %p9462_p11 = scmp.ne.s32.totalorder %s69_s28, %s9461_s21  ;;  %p9467_p13 = scmp.lt.s32.totalorder %s9461_s21, %s9461_s21 }
  0x20   :  { %p9468_p0 = por %p9467_p13, %p9466_p12 }
  0x22   :  { %p9469_p1 = pnand %p9468_p0, %p9462_p11 }
  0x24   :  { %9472 = shalt.err (!%p9469_p1)
}
  0x25   :  { %s9643_s1 = smov 512   ;;  %s9644_s30 = smov 32  }
  0x26   :  { %74 = dma.hbm_to_vmem [thread:$0]  %s12144_s5, 8192, %s69_s28, [#allocation9], %s9643_s1, %s9643_s1, %s9644_s30  }
  0x27   :  { %s9645_s26 = smov [#allocation11]   ;;  %s9646_s29 = smov [#allocation2]  }
  0x28   :  { %s92_s27 = sshll.u32 %s9645_s26, 4  ;;  %s31_s15 = sshll.u32 %s9646_s29, 4  ;;  %s93_s27 = int_to_ptr.vmem [resolvable:$true] %s92_s27  ;;  %s32_s15 = int_to_ptr.vmem [resolvable:$true] %s31_s15 }
  0x29   :  { %s9473_s18 = scalar_lea.hbm %s12146_s7, 16384 }
  0x2a   :  { %p9474_p2 = scmp.ne.s32.totalorder %s12146_s7, %s9473_s18  ;;  %p9477_p3 = scmp.lt.u32.totalorder %s9473_s18, %s12146_s7 }
  0x2c   :  { %p9479_p4 = pnand %p9477_p3, %p9474_p2 }
  0x2e   :  { %9482 = shalt.err (!%p9479_p4)
}
  0x2f   :  { %s9483_s5 = scalar_lea.vmem %s93_s27, 16384  ;;  %p9488_p6 = scmp.lt.s32.totalorder %s93_s27, %s93_s27 }
  0x30   :  { %p9484_p5 = scmp.ne.s32.totalorder %s93_s27, %s9483_s5  ;;  %p9489_p7 = scmp.lt.s32.totalorder %s9483_s5, %s9483_s5 }
  0x32   :  { %p9490_p8 = por %p9489_p7, %p9488_p6 }
  0x34   :  { %p9491_p9 = pnand %p9490_p8, %p9484_p5 }
  0x36   :  { %9494 = shalt.err (!%p9491_p9)
}
  0x37   :  { %98 = dma.hbm_to_vmem [thread:$0]  %s12146_s7, 16384, %s93_s27, [#allocation12], %s9643_s1, %s9643_s1, %s9644_s30  }
  0x38   :  { %s9495_s23 = scalar_lea.hbm %s12139_s0, 128 }
  0x39   :  { %p9496_p10 = scmp.ne.s32.totalorder %s12139_s0, %s9495_s23  ;;  %p9499_p11 = scmp.lt.u32.totalorder %s9495_s23, %s12139_s0 }
  0x3b   :  { %p9501_p12 = pnand %p9499_p11, %p9496_p10 }
  0x3d   :  { %9504 = shalt.err (!%p9501_p12)
}
  0x3e   :  { %s9505_s19 = scalar_lea.vmem %s32_s15, 128  ;;  %p9510_p0 = scmp.lt.s32.totalorder %s32_s15, %s32_s15 }
  0x3f   :  { %p9506_p13 = scmp.ne.s32.totalorder %s32_s15, %s9505_s19  ;;  %p9511_p1 = scmp.lt.s32.totalorder %s9505_s19, %s9505_s19 }
  0x41   :  { %p9512_p2 = por %p9511_p1, %p9510_p0 }
  0x43   :  { %p9513_p3 = pnand %p9512_p2, %p9506_p13 }
  0x45   :  { %9516 = shalt.err (!%p9513_p3)
}
  0x46   :  { %34 = dma.hbm_to_vmem [thread:$0]  %s12139_s0, 128, %s32_s15, [#allocation3]  }
  0x47   :  { %s9647_s20 = smov [#allocation7]   ;;  %s9648_s5 = smov [#allocation10]  }
  0x48   :  { %s54_s21 = sshll.u32 %s9647_s20, 4  ;;  %s80_s28 = sshll.u32 %s9648_s5, 4  ;;  %s55_s21 = int_to_ptr.vmem [resolvable:$true] %s54_s21  ;;  %s9787_s28 = int_to_ptr.vmem [resolvable:$true] %s80_s28 }
  0x49   :  { %s9517_s26 = scalar_lea.hbm %s12142_s3, 2048 }
  0x4a   :  { %p9518_p4 = scmp.ne.s32.totalorder %s12142_s3, %s9517_s26  ;;  %p9521_p5 = scmp.lt.u32.totalorder %s9517_s26, %s12142_s3 }
  0x4c   :  { %p9523_p6 = pnand %p9521_p5, %p9518_p4 }
  0x4e   :  { %9526 = shalt.err (!%p9523_p6)
}
  0x4f   :  { %s9527_s0 = scalar_lea.vmem %s55_s21, 2048  ;;  %p9532_p8 = scmp.lt.s32.totalorder %s55_s21, %s55_s21 }
  0x50   :  { %p9528_p7 = scmp.ne.s32.totalorder %s55_s21, %s9527_s0  ;;  %p9533_p9 = scmp.lt.s32.totalorder %s9527_s0, %s9527_s0 }
  0x52   :  { %p9534_p10 = por %p9533_p9, %p9532_p8 }
  0x54   :  { %p9535_p11 = pnand %p9534_p10, %p9528_p7 }
  0x56   :  { %9538 = shalt.err (!%p9535_p11)
}
  0x57   :  { %s12586_s15 = smov 128   ;;  %s9539_s20 = scalar_lea.hbm %s12145_s6, 8192 }
  0x58   :  { %60 = dma.hbm_to_vmem [thread:$0]  %s12142_s3, 2048, %s55_s21, [#allocation6], %s12586_s15, %s12586_s15, %s9641_s24  }
  0x59   :  { %p9540_p12 = scmp.ne.s32.totalorder %s12145_s6, %s9539_s20  ;;  %p9543_p13 = scmp.lt.u32.totalorder %s9539_s20, %s12145_s6 }
  0x5b   :  { %p9545_p0 = pnand %p9543_p13, %p9540_p12 }
  0x5d   :  { %9548 = shalt.err (!%p9545_p0)
}
  0x5e   :  { %s9549_s23 = scalar_lea.vmem %s9787_s28, 8192  ;;  %p9554_p2 = scmp.lt.s32.totalorder %s9787_s28, %s9787_s28 }
  0x5f   :  { %p9550_p1 = scmp.ne.s32.totalorder %s9787_s28, %s9549_s23  ;;  %p9555_p3 = scmp.lt.s32.totalorder %s9549_s23, %s9549_s23 }
  0x61   :  { %p9556_p4 = por %p9555_p3, %p9554_p2 }
  0x63   :  { %p9557_p5 = pnand %p9556_p4, %p9550_p1 }
  0x65   :  { %9560 = shalt.err (!%p9557_p5)
}
  0x66   :  { %86 = dma.hbm_to_vmem [thread:$0]  %s12145_s6, 8192, %s9787_s28, [#allocation9], %s9643_s1, %s9643_s1, %s9644_s30  }
  0x67   :  { %s9649_s29 = smov [#allocation13]   ;;  %s9650_s17 = smov [#allocation14]  }
  0x68   :  { %s104_s16 = sshll.u32 %s9649_s29, 4  ;;  %s122_s0 = sshll.u32 %s9650_s17, 4  ;;  %s105_s16 = int_to_ptr.vmem [resolvable:$true] %s104_s16  ;;  %s9824_s0 = int_to_ptr.vmem [resolvable:$true] %s122_s0 }
  0x69   :  { %s9561_s7 = scalar_lea.hbm %s12147_s8, 16384 }
  0x6a   :  { %p9562_p6 = scmp.ne.s32.totalorder %s12147_s8, %s9561_s7  ;;  %p9565_p7 = scmp.lt.u32.totalorder %s9561_s7, %s12147_s8 }
  0x6c   :  { %p9567_p8 = pnand %p9565_p7, %p9562_p6 }
  0x6e   :  { %9570 = shalt.err (!%p9567_p8)
}
  0x6f   :  { %s9571_s6 = scalar_lea.vmem %s105_s16, 16384  ;;  %p9576_p10 = scmp.lt.s32.totalorder %s105_s16, %s105_s16 }
  0x70   :  { %p9572_p9 = scmp.ne.s32.totalorder %s105_s16, %s9571_s6  ;;  %p9577_p11 = scmp.lt.s32.totalorder %s9571_s6, %s9571_s6 }
  0x72   :  { %p9578_p12 = por %p9577_p11, %p9576_p10 }
  0x74   :  { %p9579_p13 = pnand %p9578_p12, %p9572_p9 }
  0x76   :  { %9582 = shalt.err (!%p9579_p13)
}
  0x77   :  { %110 = dma.hbm_to_vmem [thread:$0]  %s12147_s8, 16384, %s105_s16, [#allocation12], %s9643_s1, %s9643_s1, %s9644_s30  }
  0x78   :  { %s9583_s3 = scalar_lea.hbm %s12151_s12, 2048 }
  0x79   :  { %p9584_p0 = scmp.ne.s32.totalorder %s12151_s12, %s9583_s3  ;;  %p9587_p1 = scmp.lt.u32.totalorder %s9583_s3, %s12151_s12 }
  0x7b   :  { %p9589_p2 = pnand %p9587_p1, %p9584_p0 }
  0x7d   :  { %9592 = shalt.err (!%p9589_p2)
}
  0x7e   :  { %s9593_s19 = scalar_lea.vmem %s9824_s0, 2048  ;;  %p9598_p4 = scmp.lt.s32.totalorder %s9824_s0, %s9824_s0 }
  0x7f   :  { %p9594_p3 = scmp.ne.s32.totalorder %s9824_s0, %s9593_s19  ;;  %p9599_p5 = scmp.lt.s32.totalorder %s9593_s19, %s9593_s19 }
  0x81   :  { %p9600_p6 = por %p9599_p5, %p9598_p4 }
  0x83   :  { %p9601_p7 = pnand %p9600_p6, %p9594_p3 }
  0x85   :  { %9604 = shalt.err (!%p9601_p7)
}
  0x86   :  { %128 = dma.hbm_to_vmem [thread:$0]  %s12151_s12, 2048, %s9824_s0, [#allocation15], %s12586_s15, %s12586_s15, %s9641_s24  }
  0x87   :  { %9627 = dma.done.wait [#allocation3], 128  }
  0x88   :  { %9628 = vsyncadd [#allocation3], 4294967168 }
  0x89   :  { %9629 = dma.done.wait [#allocation6], 4096  }
  0x8a   :  { %9630 = vsyncadd [#allocation6], 4294963200 }
  0x8b   :  { %9631 = dma.done.wait [#allocation9], 16384  }
  0x8c   :  { %9632 = vsyncadd [#allocation9], 4294950912 }
  0x8d   :  { %9633 = dma.done.wait [#allocation12], 32768  }
  0x8e   :  { %9634 = vsyncadd [#allocation12], 4294934528 }
  0x8f   :  { %9635 = dma.done.wait [#allocation15], 2048  }
  0x90   :  { %9636 = vsyncadd [#allocation15], 4294965248  ;;  %v12156_v0 = vmov 0.0|0.0   ;;  %vm9652_vm0 = vmmov 0   ;;  %v12158_v1 = vmov 0.0   ;;  %v156_v2 = vld [vmem:[#allocation5] sm:$0xff] }
  0x91   :  { %6164 = vmatprep.subr.bf16.mxu0 %v12156_v0  ;;  %5846 = vmatprep.mubr.msk.f32.mxu0 %vm9652_vm0, %v12158_v1  ;;  %v157_v3 = vld [vmem:[#allocation5 + $0x8] sm:$0xff]  ;;  %v158_v4 = vld [vmem:[#allocation5 + $0x10] sm:$0xff]  ;;  %v159_v6 = vld [vmem:[#allocation5 + $0x18] sm:$0xff] }
  0x92   :  { %6188 = vmatprep.subr.bf16.mxu1 %v12156_v0  ;;  %5881 = vmatprep.mubr.msk.f32.mxu1 %vm9652_vm0, %v12158_v1  ;;  %v6165_v5 = vpack.c.bf16 %v157_v3, %v156_v2  ;;  %v6168_v7 = vpack.c.bf16 %v159_v6, %v158_v4  ;;  %v160_v8 = vld [vmem:[#allocation5 + $0x20] sm:$0xff]  ;;  %v161_v9 = vld [vmem:[#allocation5 + $0x28] sm:$0xff]  ;;  %v254_v12 = vld [vmem:[#allocation7 + $0x10] sm:$0xff] }
  0x93   :  { %v252_v10 = vld [vmem:[#allocation7] sm:$0xff]  ;;  %v253_v11 = vld [vmem:[#allocation7 + $0x8] sm:$0xff]  ;;  %v6171_v13 = vpack.c.bf16 %v161_v9, %v160_v8  ;;  %v255_v15 = vld [vmem:[#allocation7 + $0x18] sm:$0xff] }
  0x94   :  { %6166 = vmatpush3.bf16.msra.mxu0 %v6165_v5  ;;  %v6189_v14 = vpack.c.bf16 %v253_v11, %v252_v10  ;;  %v162_v16 = vld [vmem:[#allocation5 + $0x30] sm:$0xff]  ;;  %v163_v17 = vld [vmem:[#allocation5 + $0x38] sm:$0xff]  ;;  %v6192_v18 = vpack.c.bf16 %v255_v15, %v254_v12  ;;  %v256_v19 = vld [vmem:[#allocation7 + $0x20] sm:$0xff] }
  0x95   :  { %6167 = vmatprep.subr.bf16.mxu0 %v12156_v0  ;;  %v257_v20 = vld [vmem:[#allocation7 + $0x28] sm:$0xff]  ;;  %v6174_v21 = vpack.c.bf16 %v163_v17, %v162_v16  ;;  %v164_v22 = vld [vmem:[#allocation5 + $0x40] sm:$0xff]  ;;  %v258_v25 = vld [vmem:[#allocation7 + $0x30] sm:$0xff] }
  0x96   :  { %6190 = vmatpush3.bf16.msra.mxu1 %v6189_v14  ;;  %v165_v23 = vld [vmem:[#allocation5 + $0x48] sm:$0xff]  ;;  %v6195_v24 = vpack.c.bf16 %v257_v20, %v256_v19  ;;  %v259_v26 = vld [vmem:[#allocation7 + $0x38] sm:$0xff]  ;;  %v166_v28 = vld [vmem:[#allocation5 + $0x50] sm:$0xff] }
  0x97   :  { %6191 = vmatprep.subr.bf16.mxu1 %v12156_v0  ;;  %v6177_v27 = vpack.c.bf16 %v165_v23, %v164_v22  ;;  %v167_v29 = vld [vmem:[#allocation5 + $0x58] sm:$0xff]  ;;  %v6198_v30 = vpack.c.bf16 %v259_v26, %v258_v25  ;;  %v260_v31 = vld [vmem:[#allocation7 + $0x40] sm:$0xff]  ;;  %v261_v32 = vld [vmem:[#allocation7 + $0x48] sm:$0xff] }
  0x98   :  { %6169 = vmatpush3.bf16.msra.mxu0 %v6168_v7  ;;  %v6180_v33 = vpack.c.bf16 %v167_v29, %v166_v28  ;;  %v168_v34 = vld [vmem:[#allocation5 + $0x60] sm:$0xff]  ;;  %v169_v35 = vld [vmem:[#allocation5 + $0x68] sm:$0xff]  ;;  %v6201_v36 = vpack.c.bf16 %v261_v32, %v260_v31  ;;  %v262_v37 = vld [vmem:[#allocation7 + $0x50] sm:$0xff] }
  0x99   :  { %6170 = vmatprep.subr.bf16.mxu0 %v12156_v0  ;;  %v263_v38 = vld [vmem:[#allocation7 + $0x58] sm:$0xff]  ;;  %v6183_v39 = vpack.c.bf16 %v169_v35, %v168_v34  ;;  %v170_v40 = vld [vmem:[#allocation5 + $0x70] sm:$0xff]  ;;  %v264_v43 = vld [vmem:[#allocation7 + $0x60] sm:$0xff] }
  0x9a   :  { %6193 = vmatpush3.bf16.msra.mxu1 %v6192_v18  ;;  %v171_v41 = vld [vmem:[#allocation5 + $0x78] sm:$0xff]  ;;  %v6204_v42 = vpack.c.bf16 %v263_v38, %v262_v37  ;;  %v265_v44 = vld [vmem:[#allocation7 + $0x68] sm:$0xff]  ;;  %v266_v48 = vld [vmem:[#allocation7 + $0x70] sm:$0xff] }
  0x9b   :  { %6194 = vmatprep.subr.bf16.mxu1 %v12156_v0  ;;  %v6186_v45 = vpack.c.bf16 %v171_v41, %v170_v40  ;;  %v6207_v46 = vpack.c.bf16 %v265_v44, %v264_v43  ;;  %v155_v47 = vld [vmem:[#allocation2] sm:$0xff]  ;;  %v349_v51 = vld [vmem:[#allocation8 + $0x8] sm:$0xff]  ;;  %v348_v56 = vld [vmem:[#allocation8] sm:$0xff] }
  0x9c   :  { %6172 = vmatpush3.bf16.msra.mxu0 %v6171_v13  ;;  %v267_v49 = vld [vmem:[#allocation7 + $0x78] sm:$0xff]  ;;  %v353_v52 = vld [vmem:[#allocation8 + $0x28] sm:$0xff]  ;;  %v352_v57 = vld [vmem:[#allocation8 + $0x20] sm:$0xff] }
  0x9d   :  { %6173 = vmatprep.subr.bf16.mxu0 %v12156_v0  ;;  %v6210_v50 = vpack.c.bf16 %v267_v49, %v266_v48  ;;  %v351_v53 = vld [vmem:[#allocation8 + $0x18] sm:$0xff]  ;;  %v6212_v54 = vpack.c.bf16 %v353_v52, %v349_v51  ;;  %v6214_v59 = vpack.c.bf16 %v352_v57, %v348_v56  ;;  %v357_v60 = vld [vmem:[#allocation8 + $0x48] sm:$0xff]  ;;  %v356_v63 = vld [vmem:[#allocation8 + $0x40] sm:$0xff] }
  0x9e   :  { %6196 = vmatpush3.bf16.msra.mxu1 %v6195_v24  ;;  %v355_v55 = vld [vmem:[#allocation8 + $0x38] sm:$0xff]  ;;  %v361_v61 = vld [vmem:[#allocation8 + $0x68] sm:$0xff]  ;;  %v360_v2 = vld [vmem:[#allocation8 + $0x60] sm:$0xff] }
  0x9f   :  { %6197 = vmatprep.subr.bf16.mxu1 %v12156_v0  ;;  %v6244_v58 = vpack.c.bf16 %v355_v55, %v351_v53  ;;  %v6216_v62 = vpack.c.bf16 %v361_v61, %v357_v60  ;;  %v6218_v3 = vpack.c.bf16 %v360_v2, %v356_v63  ;;  %v365_v4 = vld [vmem:[#allocation8 + $0x88] sm:$0xff]  ;;  %v364_v7 = vld [vmem:[#allocation8 + $0x80] sm:$0xff]  ;;  %v5569_v34 = vld [vmem:[%s12141_s2] ss:$0 sm:$0xff] }
  0xa0   :  { %6175 = vmatpush3.bf16.msra.mxu0 %v6174_v21  ;;  %v369_v5 = vld [vmem:[#allocation8 + $0xa8] sm:$0xff]  ;;  %v368_v8 = vld [vmem:[#allocation8 + $0xa0] sm:$0xff]  ;;  %v354_v37 = vld [vmem:[#allocation8 + $0x30] sm:$0xff] }
  0xa1   :  { %6176 = vmatprep.subr.bf16.mxu0 %v12156_v0  ;;  %v6220_v6 = vpack.c.bf16 %v369_v5, %v365_v4  ;;  %v6222_v9 = vpack.c.bf16 %v368_v8, %v364_v7  ;;  %v373_v10 = vld [vmem:[#allocation8 + $0xc8] sm:$0xff]  ;;  %v372_v13 = vld [vmem:[#allocation8 + $0xc0] sm:$0xff]  ;;  %v359_v40 = vld [vmem:[#allocation8 + $0x58] sm:$0xff] }
  0xa2   :  { %6199 = vmatpush3.bf16.msra.mxu1 %v6198_v30  ;;  %v377_v11 = vld [vmem:[#allocation8 + $0xe8] sm:$0xff]  ;;  %v376_v14 = vld [vmem:[#allocation8 + $0xe0] sm:$0xff]  ;;  %v363_v41 = vld [vmem:[#allocation8 + $0x78] sm:$0xff] }
  0xa3   :  { %6200 = vmatprep.subr.bf16.mxu1 %v12156_v0  ;;  %v6224_v12 = vpack.c.bf16 %v377_v11, %v373_v10  ;;  %v6226_v15 = vpack.c.bf16 %v376_v14, %v372_v13  ;;  %v381_v16 = vld [vmem:[#allocation8 + $0x108] sm:$0xff]  ;;  %v380_v19 = vld [vmem:[#allocation8 + $0x100] sm:$0xff]  ;;  %v6248_v44 = vpack.c.bf16 %v363_v41, %v359_v40  ;;  %v367_v48 = vld [vmem:[#allocation8 + $0x98] sm:$0xff] }
  0xa4   :  { %6178 = vmatpush3.bf16.msra.mxu0 %v6177_v27  ;;  %v385_v17 = vld [vmem:[#allocation8 + $0x128] sm:$0xff]  ;;  %v384_v20 = vld [vmem:[#allocation8 + $0x120] sm:$0xff]  ;;  %v371_v49 = vld [vmem:[#allocation8 + $0xb8] sm:$0xff] }
  0xa5   :  { %6179 = vmatprep.subr.bf16.mxu0 %v12156_v0  ;;  %v6228_v18 = vpack.c.bf16 %v385_v17, %v381_v16  ;;  %v6230_v21 = vpack.c.bf16 %v384_v20, %v380_v19  ;;  %v389_v22 = vld [vmem:[#allocation8 + $0x148] sm:$0xff]  ;;  %v388_v25 = vld [vmem:[#allocation8 + $0x140] sm:$0xff]  ;;  %v6252_v51 = vpack.c.bf16 %v371_v49, %v367_v48  ;;  %v366_v52 = vld [vmem:[#allocation8 + $0x90] sm:$0xff] }
  0xa6   :  { %6202 = vmatpush3.bf16.msra.mxu1 %v6201_v36  ;;  %v393_v23 = vld [vmem:[#allocation8 + $0x168] sm:$0xff]  ;;  %v392_v26 = vld [vmem:[#allocation8 + $0x160] sm:$0xff]  ;;  %v350_v36 = vld [vmem:[#allocation8 + $0x10] sm:$0xff] }
  0xa7   :  { %6203 = vmatprep.subr.bf16.mxu1 %v12156_v0  ;;  %v6232_v24 = vpack.c.bf16 %v393_v23, %v389_v22  ;;  %v6234_v27 = vpack.c.bf16 %v392_v26, %v388_v25  ;;  %v397_v28 = vld [vmem:[#allocation8 + $0x188] sm:$0xff]  ;;  %v396_v31 = vld [vmem:[#allocation8 + $0x180] sm:$0xff]  ;;  %v6246_v43 = vpack.c.bf16 %v354_v37, %v350_v36  ;;  %v370_v53 = vld [vmem:[#allocation8 + $0xb0] sm:$0xff] }
  0xa8   :  { %6181 = vmatpush3.bf16.msra.mxu0 %v6180_v33  ;;  %v401_v29 = vld [vmem:[#allocation8 + $0x1a8] sm:$0xff]  ;;  %v400_v32 = vld [vmem:[#allocation8 + $0x1a0] sm:$0xff]  ;;  %v379_v55 = vld [vmem:[#allocation8 + $0xf8] sm:$0xff]  ;;  %v6254_v56 = vpack.c.bf16 %v370_v53, %v366_v52 }
  0xa9   :  { %6182 = vmatprep.subr.bf16.mxu0 %v12156_v0  ;;  %v6236_v30 = vpack.c.bf16 %v401_v29, %v397_v28  ;;  %v6238_v33 = vpack.c.bf16 %v400_v32, %v396_v31  ;;  %v383_v60 = vld [vmem:[#allocation8 + $0x118] sm:$0xff]  ;;  %v382_v2 = vld [vmem:[#allocation8 + $0x110] sm:$0xff]  ;;  %v405_v17 = vld [vmem:[#allocation8 + $0x1c8] sm:$0xff] }
  0xaa   :  { %6205 = vmatpush3.bf16.msra.mxu1 %v6204_v42  ;;  %v387_v61 = vld [vmem:[#allocation8 + $0x138] sm:$0xff]  ;;  %v390_v8 = vld [vmem:[#allocation8 + $0x150] sm:$0xff]  ;;  %v404_v22 = vld [vmem:[#allocation8 + $0x1c0] sm:$0xff] }
  0xab   :  { %6206 = vmatprep.subr.bf16.mxu1 %v12156_v0  ;;  %v6260_v63 = vpack.c.bf16 %v387_v61, %v383_v60  ;;  %v391_v4 = vld [vmem:[#allocation8 + $0x158] sm:$0xff]  ;;  %v398_v14 = vld [vmem:[#allocation8 + $0x190] sm:$0xff]  ;;  %v408_v23 = vld [vmem:[#allocation8 + $0x1e0] sm:$0xff] }
  0xac   :  { %6184 = vmatpush3.bf16.msra.mxu0 %v6183_v39  ;;  %v395_v5 = vld [vmem:[#allocation8 + $0x178] sm:$0xff]  ;;  %v6242_v25 = vpack.c.bf16 %v408_v23, %v404_v22  ;;  %v406_v26 = vld [vmem:[#allocation8 + $0x1d0] sm:$0xff]  ;;  %v577_v29 = vld [vmem:[#allocation10 + $0x8] sm:$0xff] }
  0xad   :  { %6185 = vmatprep.subr.bf16.mxu0 %v12156_v0  ;;  %v6264_v7 = vpack.c.bf16 %v395_v5, %v391_v4  ;;  %v399_v10 = vld [vmem:[#allocation8 + $0x198] sm:$0xff]  ;;  %v576_v36 = vld [vmem:[#allocation10] sm:$0xff]  ;;  %v582_v40 = vld [vmem:[#allocation10 + $0x30] sm:$0xff] }
  0xae   :  { %6208 = vmatpush3.bf16.msra.mxu1 %v6207_v46  ;;  %v362_v46 = vld [vmem:[#allocation8 + $0x70] sm:$0xff]  ;;  %v403_v11 = vld [vmem:[#allocation8 + $0x1b8] sm:$0xff]  ;;  %v580_v37 = vld [vmem:[#allocation10 + $0x20] sm:$0xff] }
  0xaf   :  { %6209 = vmatprep.subr.bf16.mxu1 %v12156_v0  ;;  %v6268_v13 = vpack.c.bf16 %v403_v11, %v399_v10  ;;  %v407_v19 = vld [vmem:[#allocation8 + $0x1d8] sm:$0xff]  ;;  %v585_v41 = vld [vmem:[#allocation10 + $0x48] sm:$0xff]  ;;  %v9895_v48 = vpack.c.bf16 %v580_v37, %v576_v36  ;;  %v594_v5 = vld [vmem:[#allocation10 + $0x90] sm:$0xff] }
  0xb0   :  { %6187 = vmatpush3.bf16.msra.mxu0 %v6186_v45  ;;  %v358_v45 = vld [vmem:[#allocation8 + $0x50] sm:$0xff]  ;;  %v579_v31 = vld [vmem:[#allocation10 + $0x18] sm:$0xff]  ;;  %v657_v0 = vld [vmem:[#allocation11 + $0x88] sm:$0xff] }
  0xb1   :  { %6213 = vmatprep.subr.bf16.mxu0 %v6212_v54  ;;  %v375_v54 = vld [vmem:[#allocation8 + $0xd8] sm:$0xff]  ;;  %12589 = vst [vmem:[#allocation25_spill] sm:$0xff] %v9895_v48 }
  0xb2   :  { %6211 = vmatpush3.bf16.msra.mxu1 %v6210_v50  ;;  %v6250_v50 = vpack.c.bf16 %v362_v46, %v358_v45  ;;  %v6256_v57 = vpack.c.bf16 %v379_v55, %v375_v54  ;;  %v587_v45 = vld [vmem:[#allocation10 + $0x58] sm:$0xff]  ;;  %v586_v54 = vld [vmem:[#allocation10 + $0x50] sm:$0xff] }
  0xb3   :  { %5847 = vmatmul.mubr.f32.vlgmr.msra.gmra.mrb[0].mxu0 %v155_v47  ;;  %6245 = vmatprep.subr.bf16.mxu1 %v6244_v58  ;;  %v374_v58 = vld [vmem:[#allocation8 + $0xd0] sm:$0xff]  ;;  %v591_v46 = vld [vmem:[#allocation10 + $0x78] sm:$0xff] }
  0xb4   :  { %498 = vmatprep.mubr.f32.mxu0 %v12158_v1  ;;  %6215 = vmatpush1.bf16.msra.mxu0 %v6214_v59  ;;  %v378_v59 = vld [vmem:[#allocation8 + $0xf0] sm:$0xff]  ;;  %v9901_v53 = vpack.c.bf16 %v591_v46, %v587_v45  ;;  %v599_v60 = vld [vmem:[#allocation10 + $0xb8] sm:$0xff]  ;;  %v625_v45 = vld [vmem:[#allocation10 + $0x188] sm:$0xff] }
  0xb5   :  { %6217 = vmatprep.subr.bf16.mxu0 %v6216_v62  ;;  %v6258_v62 = vpack.c.bf16 %v378_v59, %v374_v58  ;;  %v590_v55 = vld [vmem:[#allocation10 + $0x70] sm:$0xff]  ;;  %v597_v58 = vld [vmem:[#allocation10 + $0xa8] sm:$0xff]  ;;  %v595_v59 = vld [vmem:[#allocation10 + $0x98] sm:$0xff] }
  0xb6   :  { %12592 = vst [vmem:[#allocation28_spill] sm:$0xff] %v9901_v53  ;;  %v9913_v4 = vpack.c.bf16 %v599_v60, %v595_v59  ;;  %v607_v10 = vld [vmem:[#allocation10 + $0xf8] sm:$0xff]  ;;  %v629_v46 = vld [vmem:[#allocation10 + $0x1a8] sm:$0xff]  ;;  %v626_v59 = vld [vmem:[#allocation10 + $0x190] sm:$0xff] }
  0xb7   :  { %v615_v22 = vld [vmem:[#allocation10 + $0x138] sm:$0xff]  ;;  %v630_v60 = vld [vmem:[#allocation10 + $0x1b0] sm:$0xff] }
  0xb8   :  { %6219 = vmatpush1.bf16.msra.mxu0 %v6218_v3  ;;  %v386_v3 = vld [vmem:[#allocation8 + $0x130] sm:$0xff]  ;;  %12596 = vst [vmem:[#allocation32_spill] sm:$0xff] %v9913_v4  ;;  %v623_v36 = vld [vmem:[#allocation10 + $0x178] sm:$0xff] }
  0xb9   :  { %6221 = vmatprep.subr.bf16.mxu0 %v6220_v6  ;;  %v6262_v6 = vpack.c.bf16 %v386_v3, %v382_v2  ;;  %v596_v2 = vld [vmem:[#allocation10 + $0xa0] sm:$0xff] }
  0xbc   :  { %6223 = vmatpush1.bf16.msra.mxu0 %v6222_v9  ;;  %v394_v9 = vld [vmem:[#allocation8 + $0x170] sm:$0xff] }
  0xbd   :  { %6225 = vmatprep.subr.bf16.mxu0 %v6224_v12  ;;  %v6266_v12 = vpack.c.bf16 %v394_v9, %v390_v8  ;;  %v605_v8 = vld [vmem:[#allocation10 + $0xe8] sm:$0xff]  ;;  %v603_v9 = vld [vmem:[#allocation10 + $0xd8] sm:$0xff] }
  0xc0   :  { %6227 = vmatpush1.bf16.msra.mxu0 %v6226_v15  ;;  %v402_v15 = vld [vmem:[#allocation8 + $0x1b0] sm:$0xff] }
  0xc1   :  { %6229 = vmatprep.subr.bf16.mxu0 %v6228_v18  ;;  %v6270_v16 = vpack.c.bf16 %v402_v15, %v398_v14  ;;  %v409_v18 = vld [vmem:[#allocation8 + $0x1e8] sm:$0xff]  ;;  %v604_v14 = vld [vmem:[#allocation10 + $0xe0] sm:$0xff] }
  0xc2   :  { %v6240_v20 = vpack.c.bf16 %v409_v18, %v405_v17  ;;  %v602_v17 = vld [vmem:[#allocation10 + $0xd0] sm:$0xff] }
  0xc3   :  { %v606_v18 = vld [vmem:[#allocation10 + $0xf0] sm:$0xff] }
  0xc4   :  { %6231 = vmatpush1.bf16.msra.mxu0 %v6230_v21  ;;  %v411_v21 = vld [vmem:[#allocation8 + $0x1f8] sm:$0xff] }
  0xc5   :  { %6233 = vmatprep.subr.bf16.mxu0 %v6232_v24  ;;  %v6272_v24 = vpack.c.bf16 %v411_v21, %v407_v19  ;;  %v609_v19 = vld [vmem:[#allocation10 + $0x108] sm:$0xff]  ;;  %v611_v21 = vld [vmem:[#allocation10 + $0x118] sm:$0xff] }
  0xc8   :  { %6235 = vmatpush1.bf16.msra.mxu0 %v6234_v27  ;;  %v410_v27 = vld [vmem:[#allocation8 + $0x1f0] sm:$0xff] }
  0xc9   :  { %6237 = vmatprep.subr.bf16.mxu0 %v6236_v30  ;;  %v6274_v28 = vpack.c.bf16 %v410_v27, %v406_v26  ;;  %v581_v30 = vld [vmem:[#allocation10 + $0x28] sm:$0xff]  ;;  %v612_v26 = vld [vmem:[#allocation10 + $0x120] sm:$0xff] }
  0xca   :  { %v9886_v32 = vpack.c.bf16 %v581_v30, %v577_v29  ;;  %v610_v29 = vld [vmem:[#allocation10 + $0x110] sm:$0xff] }
  0xcb   :  { %v614_v30 = vld [vmem:[#allocation10 + $0x130] sm:$0xff] }
  0xcc   :  { %6239 = vmatpush1.bf16.msra.mxu0 %v6238_v33  ;;  %12587 = vst [vmem:[#allocation23_spill] sm:$0xff] %v9886_v32  ;;  %v583_v33 = vld [vmem:[#allocation10 + $0x38] sm:$0xff] }
  0xcd   :  { %6241 = vmatprep.subr.bf16.mxu0 %v6240_v20  ;;  %v613_v20 = vld [vmem:[#allocation10 + $0x128] sm:$0xff] }
  0xce   :  { %v9937_v27 = vpack.c.bf16 %v613_v20, %v609_v19 }
  0xd0   :  { %6243 = vmatpush1.bf16.msra.mxu0 %v6242_v25  ;;  %v608_v25 = vld [vmem:[#allocation10 + $0x100] sm:$0xff]  ;;  %12603 = vst [vmem:[#allocation39_spill] sm:$0xff] %v9937_v27 }
  0xd1   :  { %6277 = vmatprep.subr.bf16.mxu0 %v9886_v32  ;;  %v9943_v37 = vpack.c.bf16 %v612_v26, %v608_v25  ;;  %v643_v25 = vld [vmem:[#allocation11 + $0x18] sm:$0xff] }
  0xd3   :  { %12605 = vst [vmem:[#allocation41_spill] sm:$0xff] %v9943_v37 }
 0x186   :  { %v245_v35 = vpop.f32.mrb[0].mxu0 }
 0x187   :  { %v246_v38 = vadd.f32 %v5569_v34, %v245_v35  ;;  %v5848_v39 = vpop.f32.mrb[1].mxu0  ;;  %v9888_v34 = vpack.c.bf16 %v583_v33, %v579_v31  ;;  %v5570_v35 = vld [vmem:[%s12143_s4] ss:$0 sm:$0xff]  ;;  %v617_v31 = vld [vmem:[#allocation10 + $0x148] sm:$0xff] }
 0x188   :  { %v578_v39 = vld [vmem:[#allocation10 + $0x10] sm:$0xff]  ;;  %v621_v33 = vld [vmem:[#allocation10 + $0x168] sm:$0xff] }
 0x189   :  { %v250_v42 = vmul.f32 0.01, %v246_v38  ;;  %vm249_vm1 = vcmp.gt.f32.partialorder %v246_v38, 0.0  ;;  %12588 = vst [vmem:[#allocation24_spill] sm:$0xff] %v9888_v34  ;;  %v9897_v49 = vpack.c.bf16 %v582_v40, %v578_v39  ;;  %v616_v39 = vld [vmem:[#allocation10 + $0x140] sm:$0xff] }
 0x18a   :  { %v620_v40 = vld [vmem:[#allocation10 + $0x160] sm:$0xff] }
 0x18b   :  { %v251_v47 = vsel %vm249_vm1, %v246_v38, %v250_v42  ;;  %12590 = vst [vmem:[#allocation26_spill] sm:$0xff] %v9897_v49 }
 0x18c   :  { %5882 = vmatmul.mubr.f32.vlgmr.msra.gmra.mrb[0].mxu1 %v251_v47 }
 0x18d   :  { %6247 = vmatpush1.bf16.msra.mxu1 %v6246_v43  ;;  %569 = vmatprep.mubr.f32.mxu1 %v12158_v1 }
 0x18e   :  { %6249 = vmatprep.subr.bf16.mxu1 %v6248_v44  ;;  %v589_v44 = vld [vmem:[#allocation10 + $0x68] sm:$0xff] }
 0x18f   :  { %v9899_v52 = vpack.c.bf16 %v589_v44, %v585_v41  ;;  %v9949_v41 = vpack.c.bf16 %v621_v33, %v617_v31  ;;  %v622_v44 = vld [vmem:[#allocation10 + $0x170] sm:$0xff] }
 0x191   :  { %6251 = vmatpush1.bf16.msra.mxu1 %v6250_v50  ;;  %v584_v50 = vld [vmem:[#allocation10 + $0x40] sm:$0xff]  ;;  %12591 = vst [vmem:[#allocation27_spill] sm:$0xff] %v9899_v52  ;;  %12607 = vst [vmem:[#allocation43_spill] sm:$0xff] %v9949_v41 }
 0x192   :  { %6253 = vmatprep.subr.bf16.mxu1 %v6252_v51  ;;  %v588_v51 = vld [vmem:[#allocation10 + $0x60] sm:$0xff] }
 0x193   :  { %v9905_v61 = vpack.c.bf16 %v588_v51, %v584_v50  ;;  %v631_v50 = vld [vmem:[#allocation10 + $0x1b8] sm:$0xff]  ;;  %v9955_v51 = vpack.c.bf16 %v620_v40, %v616_v39  ;;  %v414_v39 = vlaneseq }
 0x195   :  { %6255 = vmatpush1.bf16.msra.mxu1 %v6254_v56  ;;  %v593_v56 = vld [vmem:[#allocation10 + $0x88] sm:$0xff]  ;;  %12593 = vst [vmem:[#allocation29_spill] sm:$0xff] %v9905_v61  ;;  %12609 = vst [vmem:[#allocation45_spill] sm:$0xff] %v9955_v51  ;;  %v415_v40 = vshrl.u32 %v414_v39, 7 }
 0x196   :  { %6257 = vmatprep.subr.bf16.mxu1 %v6256_v57  ;;  %v9911_v3 = vpack.c.bf16 %v597_v58, %v593_v56  ;;  %v628_v56 = vld [vmem:[#allocation10 + $0x1a0] sm:$0xff] }
 0x198   :  { %12595 = vst [vmem:[#allocation31_spill] sm:$0xff] %v9911_v3 }
 0x199   :  { %6259 = vmatpush1.bf16.msra.mxu1 %v6258_v62  ;;  %v9907_v62 = vpack.c.bf16 %v590_v55, %v586_v54  ;;  %v624_v55 = vld [vmem:[#allocation10 + $0x180] sm:$0xff] }
 0x19a   :  { %6261 = vmatprep.subr.bf16.mxu1 %v6260_v63  ;;  %v592_v63 = vld [vmem:[#allocation10 + $0x80] sm:$0xff] }
 0x19b   :  { %12594 = vst [vmem:[#allocation30_spill] sm:$0xff] %v9907_v62  ;;  %v9919_v11 = vpack.c.bf16 %v596_v2, %v592_v63  ;;  %v633_v63 = vld [vmem:[#allocation10 + $0x1c8] sm:$0xff] }
 0x19c   :  { %v637_v2 = vld [vmem:[#allocation10 + $0x1e8] sm:$0xff] }
 0x19d   :  { %6263 = vmatpush1.bf16.msra.mxu1 %v6262_v6  ;;  %v598_v6 = vld [vmem:[#allocation10 + $0xb0] sm:$0xff]  ;;  %12597 = vst [vmem:[#allocation33_spill] sm:$0xff] %v9919_v11 }
 0x19e   :  { %6265 = vmatprep.subr.bf16.mxu1 %v6264_v7  ;;  %v601_v7 = vld [vmem:[#allocation10 + $0xc8] sm:$0xff] }
 0x19f   :  { %v9925_v15 = vpack.c.bf16 %v605_v8, %v601_v7  ;;  %v9967_v7 = vpack.c.bf16 %v628_v56, %v624_v55  ;;  %v9969_v8 = vpack.c.bf16 %v630_v60, %v626_v59  ;;  %v10040_v55 = vsub.s32 2, %v415_v40 }
 0x1a1   :  { %6267 = vmatpush1.bf16.msra.mxu1 %v6266_v12  ;;  %v9921_v12 = vpack.c.bf16 %v598_v6, %v594_v5  ;;  %12599 = vst [vmem:[#allocation35_spill] sm:$0xff] %v9925_v15  ;;  %v635_v5 = vld [vmem:[#allocation10 + $0x1d8] sm:$0xff]  ;;  %12613 = vst [vmem:[#allocation49_spill] sm:$0xff] %v9967_v7 }
 0x1a2   :  { %6269 = vmatprep.subr.bf16.mxu1 %v6268_v13  ;;  %v600_v13 = vld [vmem:[#allocation10 + $0xc0] sm:$0xff]  ;;  %v639_v6 = vld [vmem:[#allocation10 + $0x1f8] sm:$0xff]  ;;  %12614 = vst [vmem:[#allocation50_spill] sm:$0xff] %v9969_v8  ;;  %12624 = vst [vmem:[#allocation60_spill] sm:$0xff] %v10040_v55 }
 0x1a3   :  { %12598 = vst [vmem:[#allocation34_spill] sm:$0xff] %v9921_v12  ;;  %v9931_v23 = vpack.c.bf16 %v604_v14, %v600_v13  ;;  %v9975_v13 = vpack.c.bf16 %v639_v6, %v635_v5  ;;  %v636_v14 = vld [vmem:[#allocation10 + $0x1e0] sm:$0xff]  ;;  %v10045_v6 = vsub.s32 3, %v415_v40 }
 0x1a5   :  { %6271 = vmatpush1.bf16.msra.mxu1 %v6270_v16  ;;  %v9927_v16 = vpack.c.bf16 %v607_v10, %v603_v9  ;;  %12601 = vst [vmem:[#allocation37_spill] sm:$0xff] %v9931_v23  ;;  %v632_v9 = vld [vmem:[#allocation10 + $0x1c0] sm:$0xff]  ;;  %v9973_v10 = vpack.c.bf16 %v637_v2, %v633_v63  ;;  %12616 = vst [vmem:[#allocation52_spill] sm:$0xff] %v9975_v13 }
 0x1a6   :  { %6273 = vmatprep.subr.bf16.mxu1 %v6272_v24  ;;  %v9933_v24 = vpack.c.bf16 %v606_v18, %v602_v17  ;;  %v634_v17 = vld [vmem:[#allocation10 + $0x1d0] sm:$0xff]  ;;  %v9979_v19 = vpack.c.bf16 %v636_v14, %v632_v9  ;;  %12626 = vst [vmem:[#allocation62_spill] sm:$0xff] %v10045_v6 }
 0x1a7   :  { %12600 = vst [vmem:[#allocation36_spill] sm:$0xff] %v9927_v16  ;;  %12615 = vst [vmem:[#allocation51_spill] sm:$0xff] %v9973_v10  ;;  %v638_v18 = vld [vmem:[#allocation10 + $0x1f0] sm:$0xff] }
 0x1a8   :  { %12602 = vst [vmem:[#allocation38_spill] sm:$0xff] %v9933_v24  ;;  %12617 = vst [vmem:[#allocation53_spill] sm:$0xff] %v9979_v19  ;;  %v9981_v20 = vpack.c.bf16 %v638_v18, %v634_v17 }
 0x1a9   :  { %6275 = vmatpush1.bf16.msra.mxu1 %v6274_v28  ;;  %v9939_v28 = vpack.c.bf16 %v615_v22, %v611_v21  ;;  %v641_v21 = vld [vmem:[#allocation11 + $0x8] sm:$0xff] }
 0x1aa   :  { %6309 = vmatprep.subr.bf16.mxu1 %v9888_v34  ;;  %12618 = vst [vmem:[#allocation54_spill] sm:$0xff] %v9981_v20  ;;  %v645_v22 = vld [vmem:[#allocation11 + $0x28] sm:$0xff] }
 0x1ab   :  { %12604 = vst [vmem:[#allocation40_spill] sm:$0xff] %v9939_v28  ;;  %v10023_v26 = vpack.c.bf16 %v645_v22, %v641_v21 }
 0x1ad   :  { %12619 = vst [vmem:[#allocation55_spill] sm:$0xff] %v10023_v26 }
 0x25f   :  { %v341_v38 = vpop.f32.mrb[0].mxu1 }
 0x260   :  { %v342_v42 = vadd.f32 %v5570_v35, %v341_v38  ;;  %v5883_v43 = vpop.f32.mrb[1].mxu1  ;;  %v619_v35 = vld [vmem:[#allocation10 + $0x158] sm:$0xff]  ;;  %v9945_v38 = vpack.c.bf16 %v614_v30, %v610_v29 }
 0x261   :  { %v618_v43 = vld [vmem:[#allocation10 + $0x150] sm:$0xff]  ;;  %v647_v29 = vld [vmem:[#allocation11 + $0x38] sm:$0xff] }
 0x262   :  { %vm345_vm2 = vcmp.gt.f32.partialorder %v342_v42, 0.0  ;;  %v346_v47 = vmul.f32 0.01, %v342_v42  ;;  %12606 = vst [vmem:[#allocation42_spill] sm:$0xff] %v9945_v38  ;;  %v9957_v54 = vpack.c.bf16 %v622_v44, %v618_v43  ;;  %v10025_v30 = vpack.c.bf16 %v647_v29, %v643_v25  ;;  %v412_v44 = vld [vmem:[%s12148_s9] sm:$0xf] }
 0x263   :  { %v10029_v43 = vsub.s32 0, %v415_v40  ;;  %v425_v14 = vrot.slane %v412_v44, %v10040_v55  ;;  %v429_v21 = vrot.slane %v412_v44, %v10045_v6  ;;  %v659_v6 = vld [vmem:[#allocation11 + $0x98] sm:$0xff] }
 0x264   :  { %v347_v57 = vsel %vm345_vm2, %v342_v42, %v346_v47  ;;  %v9951_v42 = vpack.c.bf16 %v623_v36, %v619_v35  ;;  %v627_v47 = vld [vmem:[#allocation10 + $0x198] sm:$0xff]  ;;  %12610 = vst [vmem:[#allocation46_spill] sm:$0xff] %v9957_v54  ;;  %12620 = vst [vmem:[#allocation56_spill] sm:$0xff] %v10025_v30 }
 0x265   :  { %499 = vmatmul.mubr.f32.vlgmr.msra.gmra.mrb[2].mxu0 %v347_v57  ;;  %570 = vmatmul.mubr.f32.vlgmr.msra.gmra.mrb[2].mxu1 %v347_v57  ;;  %v9961_v57 = vpack.c.bf16 %v629_v46, %v625_v45  ;;  %v9963_v58 = vpack.c.bf16 %v631_v50, %v627_v47  ;;  %12621 = vst [vmem:[#allocation57_spill] sm:$0xff] %v10029_v43  ;;  %v10034_v45 = vsub.s32 1, %v415_v40  ;;  %v663_v55 = vld [vmem:[#allocation11 + $0xb8] sm:$0xff] }
 0x266   :  { %6279 = vmatpush1.bf16.msra.mxu0 %v9895_v48  ;;  %6311 = vmatpush1.bf16.msra.mxu1 %v9897_v49  ;;  %12608 = vst [vmem:[#allocation44_spill] sm:$0xff] %v9951_v42  ;;  %v417_v46 = vrot.slane %v412_v44, %v10029_v43  ;;  %v671_v43 = vld [vmem:[#allocation11 + $0xf8] sm:$0xff] }
 0x267   :  { %6281 = vmatprep.subr.bf16.mxu0 %v9899_v52  ;;  %6313 = vmatprep.subr.bf16.mxu1 %v9901_v53  ;;  %12611 = vst [vmem:[#allocation47_spill] sm:$0xff] %v9961_v57  ;;  %12612 = vst [vmem:[#allocation48_spill] sm:$0xff] %v9963_v58  ;;  %v421_v47 = vrot.slane %v412_v44, %v10034_v45 }
 0x268   :  { %986 = vmatprep.mubr.f32.mxu0 %v12158_v1  ;;  %1057 = vmatprep.mubr.f32.mxu1 %v12158_v1  ;;  %12622 = vst [vmem:[#allocation58_spill] sm:$0xff] %v10034_v45  ;;  %v667_v45 = vld [vmem:[#allocation11 + $0xd8] sm:$0xff] }
 0x26a   :  { %6283 = vmatpush1.bf16.msra.mxu0 %v9905_v61  ;;  %6315 = vmatpush1.bf16.msra.mxu1 %v9907_v62 }
 0x26b   :  { %6285 = vmatprep.subr.bf16.mxu0 %v9911_v3  ;;  %6317 = vmatprep.subr.bf16.mxu1 %v9913_v4 }
 0x26e   :  { %6287 = vmatpush1.bf16.msra.mxu0 %v9919_v11  ;;  %6319 = vmatpush1.bf16.msra.mxu1 %v9921_v12 }
 0x26f   :  { %6289 = vmatprep.subr.bf16.mxu0 %v9925_v15  ;;  %6321 = vmatprep.subr.bf16.mxu1 %v9927_v16 }
 0x272   :  { %6291 = vmatpush1.bf16.msra.mxu0 %v9931_v23  ;;  %6323 = vmatpush1.bf16.msra.mxu1 %v9933_v24 }
 0x273   :  { %6293 = vmatprep.subr.bf16.mxu0 %v9937_v27  ;;  %6325 = vmatprep.subr.bf16.mxu1 %v9939_v28 }
 0x276   :  { %6295 = vmatpush1.bf16.msra.mxu0 %v9943_v37  ;;  %6327 = vmatpush1.bf16.msra.mxu1 %v9945_v38 }
 0x277   :  { %6297 = vmatprep.subr.bf16.mxu0 %v9949_v41  ;;  %6329 = vmatprep.subr.bf16.mxu1 %v9951_v42 }
 0x27a   :  { %6299 = vmatpush1.bf16.msra.mxu0 %v9955_v51  ;;  %6331 = vmatpush1.bf16.msra.mxu1 %v9957_v54 }
 0x27b   :  { %6301 = vmatprep.subr.bf16.mxu0 %v9961_v57  ;;  %6333 = vmatprep.subr.bf16.mxu1 %v9963_v58 }
 0x27e   :  { %6303 = vmatpush1.bf16.msra.mxu0 %v9967_v7  ;;  %6335 = vmatpush1.bf16.msra.mxu1 %v9969_v8 }
 0x27f   :  { %6305 = vmatprep.subr.bf16.mxu0 %v9973_v10  ;;  %6337 = vmatprep.subr.bf16.mxu1 %v9975_v13 }
 0x282   :  { %6307 = vmatpush1.bf16.msra.mxu0 %v9979_v19  ;;  %6339 = vmatpush1.bf16.msra.mxu1 %v9981_v20 }
 0x283   :  { %6341 = vmatprep.subr.bf16.mxu0 %v9886_v32  ;;  %6373 = vmatprep.subr.bf16.mxu1 %v9888_v34 }
 0x285   :  { %987 = vmatmul.mubr.f32.vlgmr.msra.gmra.mrb[4].mxu0 %v12158_v1  ;;  %1058 = vmatmul.mubr.f32.vlgmr.msra.gmra.mrb[4].mxu1 %v12158_v1 }
 0x286   :  { %6343 = vmatpush1.bf16.msra.mxu0 %v9895_v48  ;;  %6375 = vmatpush1.bf16.msra.mxu1 %v9897_v49 }
 0x287   :  { %6345 = vmatprep.subr.bf16.mxu0 %v9899_v52  ;;  %6377 = vmatprep.subr.bf16.mxu1 %v9901_v53 }
 0x288   :  { %1156 = vmatprep.mubr.f32.mxu0 %v12158_v1  ;;  %1227 = vmatprep.mubr.f32.mxu1 %v12158_v1  ;;  %v661_v1 = vld [vmem:[#allocation11 + $0xa8] sm:$0xff] }
 0x28a   :  { %6347 = vmatpush1.bf16.msra.mxu0 %v9905_v61  ;;  %6379 = vmatpush1.bf16.msra.mxu1 %v9907_v62 }
 0x28b   :  { %6349 = vmatprep.subr.bf16.mxu0 %v9911_v3  ;;  %6381 = vmatprep.subr.bf16.mxu1 %v9913_v4 }
 0x28e   :  { %6351 = vmatpush1.bf16.msra.mxu0 %v9919_v11  ;;  %6383 = vmatpush1.bf16.msra.mxu1 %v9921_v12 }
 0x28f   :  { %6353 = vmatprep.subr.bf16.mxu0 %v9925_v15  ;;  %6385 = vmatprep.subr.bf16.mxu1 %v9927_v16 }
 0x292   :  { %6355 = vmatpush1.bf16.msra.mxu0 %v9931_v23  ;;  %6387 = vmatpush1.bf16.msra.mxu1 %v9933_v24 }
 0x293   :  { %6357 = vmatprep.subr.bf16.mxu0 %v9937_v27  ;;  %6389 = vmatprep.subr.bf16.mxu1 %v9939_v28 }
 0x296   :  { %6359 = vmatpush1.bf16.msra.mxu0 %v9943_v37  ;;  %6391 = vmatpush1.bf16.msra.mxu1 %v9945_v38 }
 0x297   :  { %6361 = vmatprep.subr.bf16.mxu0 %v9949_v41  ;;  %6393 = vmatprep.subr.bf16.mxu1 %v9951_v42 }
 0x29a   :  { %6363 = vmatpush1.bf16.msra.mxu0 %v9955_v51  ;;  %6395 = vmatpush1.bf16.msra.mxu1 %v9957_v54 }
 0x29b   :  { %6365 = vmatprep.subr.bf16.mxu0 %v9961_v57  ;;  %6397 = vmatprep.subr.bf16.mxu1 %v9963_v58 }
 0x29e   :  { %6367 = vmatpush1.bf16.msra.mxu0 %v9967_v7  ;;  %6399 = vmatpush1.bf16.msra.mxu1 %v9969_v8 }
 0x29f   :  { %6369 = vmatprep.subr.bf16.mxu0 %v9973_v10  ;;  %6401 = vmatprep.subr.bf16.mxu1 %v9975_v13 }
 0x2a2   :  { %6371 = vmatpush1.bf16.msra.mxu0 %v9979_v19  ;;  %6403 = vmatpush1.bf16.msra.mxu1 %v9981_v20 }
 0x2a3   :  { %6405 = vmatprep.subr.bf16.mxu0 %v10023_v26  ;;  %6469 = vmatprep.subr.bf16.mxu1 %v10025_v30 }
 0x338   :  { %v500_v31 = vpop.f32.mrb[2].mxu0  ;;  %v571_v33 = vpop.f32.mrb[2].mxu1 }
 0x339   :  { %v502_v35 = vpop.f32.mrb[3].mxu0  ;;  %v573_v36 = vpop.f32.mrb[3].mxu1  ;;  %v10038_v50 = vadd.f32 %v500_v31, %v417_v46  ;;  %v10050_v22 = vadd.f32 %v571_v33, %v425_v14  ;;  %v644_v14 = vld [vmem:[#allocation11 + $0x20] sm:$0xff] }
 0x33a   :  { %v10042_v56 = vadd.f32 %v502_v35, %v421_v47  ;;  %v10053_v29 = vadd.f32 %v573_v36, %v429_v21  ;;  %v649_v21 = vld [vmem:[#allocation11 + $0x48] sm:$0xff] }
 0x33b   :  { %12623 = vst [vmem:[#allocation59_spill] sm:$0xff] %v10038_v50  ;;  %12627 = vst [vmem:[#allocation63_spill] sm:$0xff] %v10050_v22 }
 0x33c   :  { %12625 = vst [vmem:[#allocation61_spill] sm:$0xff] %v10042_v56  ;;  %12628 = vst [vmem:[#allocation64_spill] sm:$0xff] %v10053_v29 }
 0x358   :  { %v988_v59 = vpop.f32.mrb[4].mxu0  ;;  %v1059_v60 = vpop.f32.mrb[4].mxu1 }
 0x359   :  { %v1064_v63 = vadd.f32 %v988_v59, %v10038_v50  ;;  %v990_v2 = vpop.f32.mrb[5].mxu0  ;;  %v1061_v5 = vpop.f32.mrb[5].mxu1  ;;  %v1066_v25 = vadd.f32 %v1059_v60, %v10050_v22 }
 0x35a   :  { %v1065_v9 = vadd.f32 %v990_v2, %v10042_v56  ;;  %v1067_v31 = vadd.f32 %v1061_v5, %v10053_v29  ;;  %v640_v5 = vld [vmem:[#allocation11] sm:$0xff] }
 0x35b   :  { %v5572_v17 = vmul.f32 -1.442695, %v1064_v63  ;;  %v5574_v35 = vmul.f32 -1.442695, %v1066_v25  ;;  %v653_v25 = vld [vmem:[#allocation11 + $0x68] sm:$0xff] }
 0x35c   :  { %v5573_v18 = vmul.f32 -1.442695, %v1065_v9 }
 0x35d   :  { %9044 = vpow2.f32 %v5572_v17  ;;  %v642_v17 = vld [vmem:[#allocation11 + $0x10] sm:$0xff] }
 0x35e   :  { %9046 = vpow2.f32 %v5573_v18  ;;  %v646_v18 = vld [vmem:[#allocation11 + $0x30] sm:$0xff] }
 0x35f   :  { %9048 = vtanh.f32 %v1067_v31  ;;  %v651_v31 = vld [vmem:[#allocation11 + $0x58] sm:$0xff] }
 0x360   :  { %9050 = vpow2.f32 %v5574_v35  ;;  %v655_v35 = vld [vmem:[#allocation11 + $0x78] sm:$0xff] }
 0x367   :  { %v9045_v39 = vpop.eup %9044 }
 0x368   :  { %v1077_v40 = vadd.f32 1.0, %v9045_v39  ;;  %v9047_v46 = vpop.eup %9046 }
 0x369   :  { %v1078_v47 = vadd.f32 1.0, %v9047_v46  ;;  %v9049_v59 = vpop.eup %9048  ;;  %v10059_v46 = vpack.c.bf16 %v644_v14, %v640_v5 }
 0x36a   :  { %9052 = vrcp.f32 %v1077_v40  ;;  %v9051_v44 = vpop.eup %9050 }
 0x36b   :  { %9054 = vrcp.f32 %v1078_v47  ;;  %v1079_v9 = vadd.f32 1.0, %v9051_v44  ;;  %v10061_v47 = vpack.c.bf16 %v646_v18, %v642_v17  ;;  %v652_v44 = vld [vmem:[#allocation11 + $0x60] sm:$0xff] }
 0x36c   :  { %v656_v17 = vld [vmem:[#allocation11 + $0x80] sm:$0xff] }
 0x36d   :  { %9056 = vrcp.f32 %v1079_v9  ;;  %12629 = vst [vmem:[#allocation65_spill] sm:$0xff] %v10061_v47  ;;  %v650_v9 = vld [vmem:[#allocation11 + $0x50] sm:$0xff]  ;;  %v660_v18 = vld [vmem:[#allocation11 + $0xa0] sm:$0xff] }
 0x374   :  { %v9053_v33 = vpop.eup %9052 }
 0x375   :  { %v1088_v63 = vmul.f32 %v9053_v33, %v9049_v59  ;;  %v9055_v2 = vpop.eup %9054  ;;  %v648_v59 = vld [vmem:[#allocation11 + $0x40] sm:$0xff] }
 0x376   :  { %v1087_v60 = vmul.f32 0.0, %v9055_v2  ;;  %v10067_v2 = vpack.c.bf16 %v655_v35, %v651_v31  ;;  %v10073_v5 = vpack.c.bf16 %v652_v44, %v648_v59  ;;  %v658_v31 = vld [vmem:[#allocation11 + $0x90] sm:$0xff]  ;;  %v12636_v59 = vmov 0.0  }
 0x377   :  { %v9057_v39 = vpop.eup %9056  ;;  %v662_v35 = vld [vmem:[#allocation11 + $0xb0] sm:$0xff]  ;;  %v10087_v44 = vpack.c.bf16 %v660_v18, %v656_v17 }
 0x378   :  { %v10056_v36 = vadd.f32 %v1088_v63, %v1087_v60  ;;  %v10065_v63 = vpack.c.bf16 %v653_v25, %v649_v21  ;;  %12631 = vst [vmem:[#allocation67_spill] sm:$0xff] %v10067_v2  ;;  %v654_v60 = vld [vmem:[#allocation11 + $0x70] sm:$0xff]  ;;  %12632 = vst [vmem:[#allocation68_spill] sm:$0xff] %v10073_v5  ;;  %v10079_v21 = vpack.c.bf16 %v661_v1, %v657_v0  ;;  %v664_v1 = vld [vmem:[#allocation11 + $0xc0] sm:$0xff] }
 0x379   :  { %v10075_v14 = vpack.c.bf16 %v654_v60, %v650_v9  ;;  %v10081_v25 = vpack.c.bf16 %v663_v55, %v659_v6  ;;  %12637 = vst [vmem:[#allocation72_spill] sm:$0xff] %v10087_v44  ;;  %v10089_v0 = vpack.c.bf16 %v662_v35, %v658_v31  ;;  %v668_v55 = vld [vmem:[#allocation11 + $0xe0] sm:$0xff]  ;;  %v10095_v9 = vpack.c.bf16 %v671_v43, %v667_v45  ;;  %v666_v60 = vld [vmem:[#allocation11 + $0xd0] sm:$0xff] }
 0x37a   :  { %9058 = vtanh.f32 %v10056_v36  ;;  %12630 = vst [vmem:[#allocation66_spill] sm:$0xff] %v10065_v63  ;;  %12634 = vst [vmem:[#allocation70_spill] sm:$0xff] %v10079_v21  ;;  %v10099_v17 = vpack.c.bf16 %v668_v55, %v664_v1  ;;  %v672_v31 = vld [vmem:[#allocation11 + $0x100] sm:$0xff] }
 0x37b   :  { %12633 = vst [vmem:[#allocation69_spill] sm:$0xff] %v10075_v14  ;;  %12635 = vst [vmem:[#allocation71_spill] sm:$0xff] %v10081_v25  ;;  %v676_v35 = vld [vmem:[#allocation11 + $0x120] sm:$0xff] }
 0x37c   :  { %12638 = vst [vmem:[#allocation73_spill] sm:$0xff] %v10089_v0  ;;  %12640 = vst [vmem:[#allocation75_spill] sm:$0xff] %v10095_v9  ;;  %v680_v55 = vld [vmem:[#allocation11 + $0x140] sm:$0xff] }
 0x37d   :  { %12641 = vst [vmem:[#allocation76_spill] sm:$0xff] %v10099_v17 }
 0x384   :  { %v9059_v40 = vpop.eup %9058 }
 0x385   :  { %v10063_v33 = vmul.f32 %v9059_v40, %v9057_v39  ;;  %v665_v39 = vld [vmem:[#allocation11 + $0xc8] sm:$0xff] }
 0x386   :  { %v669_v40 = vld [vmem:[#allocation11 + $0xe8] sm:$0xff] }
 0x387   :  { %1157 = vmatmul.mubr.f32.vlgmr.msra.gmra.mrb[6].mxu0 %v10063_v33  ;;  %1228 = vmatmul.mubr.f32.vlgmr.msra.gmra.mrb[6].mxu1 %v10063_v33  ;;  %v10093_v6 = vpack.c.bf16 %v669_v40, %v665_v39  ;;  %v674_v39 = vld [vmem:[#allocation11 + $0x110] sm:$0xff] }
 0x388   :  { %6407 = vmatpush1.bf16.msra.mxu0 %v10059_v46  ;;  %6471 = vmatpush1.bf16.msra.mxu1 %v10061_v47  ;;  %v675_v47 = vld [vmem:[#allocation11 + $0x118] sm:$0xff]  ;;  %v678_v40 = vld [vmem:[#allocation11 + $0x130] sm:$0xff] }
 0x389   :  { %6409 = vmatprep.subr.bf16.mxu0 %v10065_v63  ;;  %6473 = vmatprep.subr.bf16.mxu1 %v10067_v2  ;;  %12639 = vst [vmem:[#allocation74_spill] sm:$0xff] %v10093_v6  ;;  %v670_v2 = vld [vmem:[#allocation11 + $0xf0] sm:$0xff]  ;;  %v673_v63 = vld [vmem:[#allocation11 + $0x108] sm:$0xff]  ;;  %v10113_v1 = vpack.c.bf16 %v678_v40, %v674_v39  ;;  %v688_v39 = vld [vmem:[#allocation11 + $0x180] sm:$0xff] }
 0x38a   :  { %1347 = vmatprep.mubr.f32.mxu0 %v12636_v59  ;;  %1418 = vmatprep.mubr.f32.mxu1 %v12636_v59  ;;  %v10101_v18 = vpack.c.bf16 %v670_v2, %v666_v60  ;;  %v10111_v2 = vpack.c.bf16 %v676_v35, %v672_v31  ;;  %v684_v60 = vld [vmem:[#allocation11 + $0x160] sm:$0xff] }
 0x38b   :  { %12646 = vst [vmem:[#allocation81_spill] sm:$0xff] %v10113_v1  ;;  %v10123_v31 = vpack.c.bf16 %v684_v60, %v680_v55  ;;  %v692_v40 = vld [vmem:[#allocation11 + $0x1a0] sm:$0xff] }
 0x38c   :  { %6411 = vmatpush1.bf16.msra.mxu0 %v10073_v5  ;;  %6475 = vmatpush1.bf16.msra.mxu1 %v10075_v14  ;;  %v677_v5 = vld [vmem:[#allocation11 + $0x128] sm:$0xff]  ;;  %v679_v14 = vld [vmem:[#allocation11 + $0x138] sm:$0xff]  ;;  %12642 = vst [vmem:[#allocation77_spill] sm:$0xff] %v10101_v18  ;;  %12645 = vst [vmem:[#allocation80_spill] sm:$0xff] %v10111_v2  ;;  %v10135_v55 = vpack.c.bf16 %v692_v40, %v688_v39 }
 0x38d   :  { %6413 = vmatprep.subr.bf16.mxu0 %v10079_v21  ;;  %6477 = vmatprep.subr.bf16.mxu1 %v10081_v25  ;;  %v10105_v43 = vpack.c.bf16 %v677_v5, %v673_v63  ;;  %v10107_v45 = vpack.c.bf16 %v679_v14, %v675_v47  ;;  %v681_v25 = vld [vmem:[#allocation11 + $0x148] sm:$0xff]  ;;  %v683_v21 = vld [vmem:[#allocation11 + $0x158] sm:$0xff]  ;;  %v682_v5 = vld [vmem:[#allocation11 + $0x150] sm:$0xff]  ;;  %12649 = vst [vmem:[#allocation84_spill] sm:$0xff] %v10123_v31 }
 0x38e   :  { %v686_v14 = vld [vmem:[#allocation11 + $0x170] sm:$0xff]  ;;  %12653 = vst [vmem:[#allocation88_spill] sm:$0xff] %v10135_v55 }
 0x38f   :  { %12643 = vst [vmem:[#allocation78_spill] sm:$0xff] %v10105_v43  ;;  %12644 = vst [vmem:[#allocation79_spill] sm:$0xff] %v10107_v45  ;;  %v10125_v35 = vpack.c.bf16 %v686_v14, %v682_v5  ;;  %v696_v5 = vld [vmem:[#allocation11 + $0x1c0] sm:$0xff] }
 0x390   :  { %6415 = vmatpush1.bf16.msra.mxu0 %v10087_v44  ;;  %6479 = vmatpush1.bf16.msra.mxu1 %v10089_v0  ;;  %v685_v44 = vld [vmem:[#allocation11 + $0x168] sm:$0xff]  ;;  %v687_v0 = vld [vmem:[#allocation11 + $0x178] sm:$0xff]  ;;  %v700_v14 = vld [vmem:[#allocation11 + $0x1e0] sm:$0xff] }
 0x391   :  { %6417 = vmatprep.subr.bf16.mxu0 %v10093_v6  ;;  %6481 = vmatprep.subr.bf16.mxu1 %v10095_v9  ;;  %v10117_v47 = vpack.c.bf16 %v685_v44, %v681_v25  ;;  %v10119_v63 = vpack.c.bf16 %v687_v0, %v683_v21  ;;  %v689_v9 = vld [vmem:[#allocation11 + $0x188] sm:$0xff]  ;;  %v691_v6 = vld [vmem:[#allocation11 + $0x198] sm:$0xff]  ;;  %12650 = vst [vmem:[#allocation85_spill] sm:$0xff] %v10125_v35  ;;  %v690_v44 = vld [vmem:[#allocation11 + $0x190] sm:$0xff] }
 0x392   :  { %v694_v0 = vld [vmem:[#allocation11 + $0x1b0] sm:$0xff]  ;;  %v10147_v39 = vpack.c.bf16 %v700_v14, %v696_v5 }
 0x393   :  { %12647 = vst [vmem:[#allocation82_spill] sm:$0xff] %v10117_v47  ;;  %12648 = vst [vmem:[#allocation83_spill] sm:$0xff] %v10119_v63  ;;  %v10137_v60 = vpack.c.bf16 %v694_v0, %v690_v44  ;;  %v704_v44 = vld [vmem:[#allocation11 + $0x200] sm:$0xff] }
 0x394   :  { %6419 = vmatpush1.bf16.msra.mxu0 %v10099_v17  ;;  %6483 = vmatpush1.bf16.msra.mxu1 %v10101_v18  ;;  %v693_v17 = vld [vmem:[#allocation11 + $0x1a8] sm:$0xff]  ;;  %v695_v18 = vld [vmem:[#allocation11 + $0x1b8] sm:$0xff]  ;;  %12657 = vst [vmem:[#allocation92_spill] sm:$0xff] %v10147_v39  ;;  %v708_v0 = vld [vmem:[#allocation11 + $0x220] sm:$0xff] }
 0x395   :  { %6421 = vmatprep.subr.bf16.mxu0 %v10105_v43  ;;  %6485 = vmatprep.subr.bf16.mxu1 %v10107_v45  ;;  %v10129_v21 = vpack.c.bf16 %v693_v17, %v689_v9  ;;  %v10131_v25 = vpack.c.bf16 %v695_v18, %v691_v6  ;;  %v697_v45 = vld [vmem:[#allocation11 + $0x1c8] sm:$0xff]  ;;  %v699_v43 = vld [vmem:[#allocation11 + $0x1d8] sm:$0xff]  ;;  %12654 = vst [vmem:[#allocation89_spill] sm:$0xff] %v10137_v60  ;;  %v698_v17 = vld [vmem:[#allocation11 + $0x1d0] sm:$0xff] }
 0x396   :  { %v702_v18 = vld [vmem:[#allocation11 + $0x1f0] sm:$0xff]  ;;  %v10159_v5 = vpack.c.bf16 %v708_v0, %v704_v44 }
 0x397   :  { %12651 = vst [vmem:[#allocation86_spill] sm:$0xff] %v10129_v21  ;;  %12652 = vst [vmem:[#allocation87_spill] sm:$0xff] %v10131_v25  ;;  %v10149_v40 = vpack.c.bf16 %v702_v18, %v698_v17  ;;  %v712_v17 = vld [vmem:[#allocation11 + $0x240] sm:$0xff] }
 0x398   :  { %6423 = vmatpush1.bf16.msra.mxu0 %v10111_v2  ;;  %6487 = vmatpush1.bf16.msra.mxu1 %v10113_v1  ;;  %v701_v2 = vld [vmem:[#allocation11 + $0x1e8] sm:$0xff]  ;;  %v703_v1 = vld [vmem:[#allocation11 + $0x1f8] sm:$0xff]  ;;  %12661 = vst [vmem:[#allocation96_spill] sm:$0xff] %v10159_v5  ;;  %v716_v18 = vld [vmem:[#allocation11 + $0x260] sm:$0xff] }
 0x399   :  { %6425 = vmatprep.subr.bf16.mxu0 %v10117_v47  ;;  %6489 = vmatprep.subr.bf16.mxu1 %v10119_v63  ;;  %v10141_v6 = vpack.c.bf16 %v701_v2, %v697_v45  ;;  %v10143_v9 = vpack.c.bf16 %v703_v1, %v699_v43  ;;  %v705_v63 = vld [vmem:[#allocation11 + $0x208] sm:$0xff]  ;;  %v707_v47 = vld [vmem:[#allocation11 + $0x218] sm:$0xff]  ;;  %12658 = vst [vmem:[#allocation93_spill] sm:$0xff] %v10149_v40  ;;  %v706_v2 = vld [vmem:[#allocation11 + $0x210] sm:$0xff] }
 0x39a   :  { %v710_v1 = vld [vmem:[#allocation11 + $0x230] sm:$0xff]  ;;  %v10171_v44 = vpack.c.bf16 %v716_v18, %v712_v17 }
 0x39b   :  { %12655 = vst [vmem:[#allocation90_spill] sm:$0xff] %v10141_v6  ;;  %12656 = vst [vmem:[#allocation91_spill] sm:$0xff] %v10143_v9  ;;  %v10161_v14 = vpack.c.bf16 %v710_v1, %v706_v2  ;;  %v720_v2 = vld [vmem:[#allocation11 + $0x280] sm:$0xff] }
 0x39c   :  { %6427 = vmatpush1.bf16.msra.mxu0 %v10123_v31  ;;  %6491 = vmatpush1.bf16.msra.mxu1 %v10125_v35  ;;  %v709_v31 = vld [vmem:[#allocation11 + $0x228] sm:$0xff]  ;;  %v711_v35 = vld [vmem:[#allocation11 + $0x238] sm:$0xff]  ;;  %12665 = vst [vmem:[#allocation100_spill] sm:$0xff] %v10171_v44  ;;  %v724_v1 = vld [vmem:[#allocation11 + $0x2a0] sm:$0xff] }
 0x39d   :  { %6429 = vmatprep.subr.bf16.mxu0 %v10129_v21  ;;  %6493 = vmatprep.subr.bf16.mxu1 %v10131_v25  ;;  %v10153_v43 = vpack.c.bf16 %v709_v31, %v705_v63  ;;  %v10155_v45 = vpack.c.bf16 %v711_v35, %v707_v47  ;;  %v713_v25 = vld [vmem:[#allocation11 + $0x248] sm:$0xff]  ;;  %v715_v21 = vld [vmem:[#allocation11 + $0x258] sm:$0xff]  ;;  %12662 = vst [vmem:[#allocation97_spill] sm:$0xff] %v10161_v14  ;;  %v714_v31 = vld [vmem:[#allocation11 + $0x250] sm:$0xff] }
 0x39e   :  { %v718_v35 = vld [vmem:[#allocation11 + $0x270] sm:$0xff]  ;;  %v10183_v17 = vpack.c.bf16 %v724_v1, %v720_v2 }
 0x39f   :  { %12659 = vst [vmem:[#allocation94_spill] sm:$0xff] %v10153_v43  ;;  %12660 = vst [vmem:[#allocation95_spill] sm:$0xff] %v10155_v45  ;;  %v10173_v0 = vpack.c.bf16 %v718_v35, %v714_v31  ;;  %v728_v31 = vld [vmem:[#allocation11 + $0x2c0] sm:$0xff] }
 0x3a0   :  { %6431 = vmatpush1.bf16.msra.mxu0 %v10135_v55  ;;  %6495 = vmatpush1.bf16.msra.mxu1 %v10137_v60  ;;  %v717_v55 = vld [vmem:[#allocation11 + $0x268] sm:$0xff]  ;;  %v719_v60 = vld [vmem:[#allocation11 + $0x278] sm:$0xff]  ;;  %12669 = vst [vmem:[#allocation104_spill] sm:$0xff] %v10183_v17  ;;  %v732_v35 = vld [vmem:[#allocation11 + $0x2e0] sm:$0xff] }
 0x3a1   :  { %6433 = vmatprep.subr.bf16.mxu0 %v10141_v6  ;;  %6497 = vmatprep.subr.bf16.mxu1 %v10143_v9  ;;  %v10165_v47 = vpack.c.bf16 %v717_v55, %v713_v25  ;;  %v10167_v63 = vpack.c.bf16 %v719_v60, %v715_v21  ;;  %v721_v9 = vld [vmem:[#allocation11 + $0x288] sm:$0xff]  ;;  %v723_v6 = vld [vmem:[#allocation11 + $0x298] sm:$0xff]  ;;  %12666 = vst [vmem:[#allocation101_spill] sm:$0xff] %v10173_v0  ;;  %v722_v55 = vld [vmem:[#allocation11 + $0x290] sm:$0xff] }
 0x3a2   :  { %v726_v60 = vld [vmem:[#allocation11 + $0x2b0] sm:$0xff]  ;;  %v10195_v2 = vpack.c.bf16 %v732_v35, %v728_v31 }
 0x3a3   :  { %12663 = vst [vmem:[#allocation98_spill] sm:$0xff] %v10165_v47  ;;  %12664 = vst [vmem:[#allocation99_spill] sm:$0xff] %v10167_v63  ;;  %v10185_v18 = vpack.c.bf16 %v726_v60, %v722_v55  ;;  %v736_v55 = vld [vmem:[#allocation11 + $0x300] sm:$0xff] }
 0x3a4   :  { %6435 = vmatpush1.bf16.msra.mxu0 %v10147_v39  ;;  %6499 = vmatpush1.bf16.msra.mxu1 %v10149_v40  ;;  %v725_v39 = vld [vmem:[#allocation11 + $0x2a8] sm:$0xff]  ;;  %v727_v40 = vld [vmem:[#allocation11 + $0x2b8] sm:$0xff]  ;;  %12673 = vst [vmem:[#allocation108_spill] sm:$0xff] %v10195_v2  ;;  %v740_v60 = vld [vmem:[#allocation11 + $0x320] sm:$0xff] }
 0x3a5   :  { %6437 = vmatprep.subr.bf16.mxu0 %v10153_v43  ;;  %6501 = vmatprep.subr.bf16.mxu1 %v10155_v45  ;;  %v10177_v21 = vpack.c.bf16 %v725_v39, %v721_v9  ;;  %v10179_v25 = vpack.c.bf16 %v727_v40, %v723_v6  ;;  %v729_v45 = vld [vmem:[#allocation11 + $0x2c8] sm:$0xff]  ;;  %v731_v43 = vld [vmem:[#allocation11 + $0x2d8] sm:$0xff]  ;;  %12670 = vst [vmem:[#allocation105_spill] sm:$0xff] %v10185_v18  ;;  %v730_v39 = vld [vmem:[#allocation11 + $0x2d0] sm:$0xff] }
 0x3a6   :  { %v734_v40 = vld [vmem:[#allocation11 + $0x2f0] sm:$0xff]  ;;  %v10207_v31 = vpack.c.bf16 %v740_v60, %v736_v55 }
 0x3a7   :  { %12667 = vst [vmem:[#allocation102_spill] sm:$0xff] %v10177_v21  ;;  %12668 = vst [vmem:[#allocation103_spill] sm:$0xff] %v10179_v25  ;;  %v10197_v1 = vpack.c.bf16 %v734_v40, %v730_v39  ;;  %v744_v39 = vld [vmem:[#allocation11 + $0x340] sm:$0xff] }
 0x3a8   :  { %6439 = vmatpush1.bf16.msra.mxu0 %v10159_v5  ;;  %6503 = vmatpush1.bf16.msra.mxu1 %v10161_v14  ;;  %v733_v5 = vld [vmem:[#allocation11 + $0x2e8] sm:$0xff]  ;;  %v735_v14 = vld [vmem:[#allocation11 + $0x2f8] sm:$0xff]  ;;  %12677 = vst [vmem:[#allocation112_spill] sm:$0xff] %v10207_v31  ;;  %v748_v40 = vld [vmem:[#allocation11 + $0x360] sm:$0xff] }
 0x3a9   :  { %6441 = vmatprep.subr.bf16.mxu0 %v10165_v47  ;;  %6505 = vmatprep.subr.bf16.mxu1 %v10167_v63  ;;  %v10189_v6 = vpack.c.bf16 %v733_v5, %v729_v45  ;;  %v10191_v9 = vpack.c.bf16 %v735_v14, %v731_v43  ;;  %v737_v63 = vld [vmem:[#allocation11 + $0x308] sm:$0xff]  ;;  %v739_v47 = vld [vmem:[#allocation11 + $0x318] sm:$0xff]  ;;  %12674 = vst [vmem:[#allocation109_spill] sm:$0xff] %v10197_v1  ;;  %v738_v5 = vld [vmem:[#allocation11 + $0x310] sm:$0xff] }
 0x3aa   :  { %v742_v14 = vld [vmem:[#allocation11 + $0x330] sm:$0xff]  ;;  %v10219_v55 = vpack.c.bf16 %v748_v40, %v744_v39 }
 0x3ab   :  { %12671 = vst [vmem:[#allocation106_spill] sm:$0xff] %v10189_v6  ;;  %12672 = vst [vmem:[#allocation107_spill] sm:$0xff] %v10191_v9  ;;  %v10209_v35 = vpack.c.bf16 %v742_v14, %v738_v5  ;;  %v752_v5 = vld [vmem:[#allocation11 + $0x380] sm:$0xff] }
 0x3ac   :  { %6443 = vmatpush1.bf16.msra.mxu0 %v10171_v44  ;;  %6507 = vmatpush1.bf16.msra.mxu1 %v10173_v0  ;;  %v741_v44 = vld [vmem:[#allocation11 + $0x328] sm:$0xff]  ;;  %v743_v0 = vld [vmem:[#allocation11 + $0x338] sm:$0xff]  ;;  %12681 = vst [vmem:[#allocation116_spill] sm:$0xff] %v10219_v55  ;;  %v756_v14 = vld [vmem:[#allocation11 + $0x3a0] sm:$0xff] }
 0x3ad   :  { %6445 = vmatprep.subr.bf16.mxu0 %v10177_v21  ;;  %6509 = vmatprep.subr.bf16.mxu1 %v10179_v25  ;;  %v10201_v43 = vpack.c.bf16 %v741_v44, %v737_v63  ;;  %v10203_v45 = vpack.c.bf16 %v743_v0, %v739_v47  ;;  %v745_v25 = vld [vmem:[#allocation11 + $0x348] sm:$0xff]  ;;  %v747_v21 = vld [vmem:[#allocation11 + $0x358] sm:$0xff]  ;;  %12678 = vst [vmem:[#allocation113_spill] sm:$0xff] %v10209_v35  ;;  %v746_v44 = vld [vmem:[#allocation11 + $0x350] sm:$0xff] }
 0x3ae   :  { %v750_v0 = vld [vmem:[#allocation11 + $0x370] sm:$0xff]  ;;  %v10231_v39 = vpack.c.bf16 %v756_v14, %v752_v5 }
 0x3af   :  { %12675 = vst [vmem:[#allocation110_spill] sm:$0xff] %v10201_v43  ;;  %12676 = vst [vmem:[#allocation111_spill] sm:$0xff] %v10203_v45  ;;  %v10221_v60 = vpack.c.bf16 %v750_v0, %v746_v44  ;;  %v760_v44 = vld [vmem:[#allocation11 + $0x3c0] sm:$0xff]  ;;  %v766_v0 = vld [vmem:[#allocation11 + $0x3f0] sm:$0xff] }
 0x3b0   :  { %6447 = vmatpush1.bf16.msra.mxu0 %v10183_v17  ;;  %6511 = vmatpush1.bf16.msra.mxu1 %v10185_v18  ;;  %v749_v17 = vld [vmem:[#allocation11 + $0x368] sm:$0xff]  ;;  %v751_v18 = vld [vmem:[#allocation11 + $0x378] sm:$0xff]  ;;  %12685 = vst [vmem:[#allocation120_spill] sm:$0xff] %v10231_v39 }
 0x3b1   :  { %6449 = vmatprep.subr.bf16.mxu0 %v10189_v6  ;;  %6513 = vmatprep.subr.bf16.mxu1 %v10191_v9  ;;  %v10213_v47 = vpack.c.bf16 %v749_v17, %v745_v25  ;;  %v10215_v63 = vpack.c.bf16 %v751_v18, %v747_v21  ;;  %v753_v9 = vld [vmem:[#allocation11 + $0x388] sm:$0xff]  ;;  %v755_v6 = vld [vmem:[#allocation11 + $0x398] sm:$0xff]  ;;  %12682 = vst [vmem:[#allocation117_spill] sm:$0xff] %v10221_v60  ;;  %v754_v17 = vld [vmem:[#allocation11 + $0x390] sm:$0xff] }
 0x3b2   :  { %v758_v18 = vld [vmem:[#allocation11 + $0x3b0] sm:$0xff] }
 0x3b3   :  { %12679 = vst [vmem:[#allocation114_spill] sm:$0xff] %v10213_v47  ;;  %12680 = vst [vmem:[#allocation115_spill] sm:$0xff] %v10215_v63  ;;  %v10233_v40 = vpack.c.bf16 %v758_v18, %v754_v17 }
 0x3b4   :  { %6451 = vmatpush1.bf16.msra.mxu0 %v10195_v2  ;;  %6515 = vmatpush1.bf16.msra.mxu1 %v10197_v1  ;;  %v757_v2 = vld [vmem:[#allocation11 + $0x3a8] sm:$0xff]  ;;  %v759_v1 = vld [vmem:[#allocation11 + $0x3b8] sm:$0xff] }
 0x3b5   :  { %6453 = vmatprep.subr.bf16.mxu0 %v10201_v43  ;;  %6517 = vmatprep.subr.bf16.mxu1 %v10203_v45  ;;  %v10225_v21 = vpack.c.bf16 %v757_v2, %v753_v9  ;;  %v10227_v25 = vpack.c.bf16 %v759_v1, %v755_v6  ;;  %v761_v45 = vld [vmem:[#allocation11 + $0x3c8] sm:$0xff]  ;;  %v763_v43 = vld [vmem:[#allocation11 + $0x3d8] sm:$0xff]  ;;  %12686 = vst [vmem:[#allocation121_spill] sm:$0xff] %v10233_v40  ;;  %v764_v2 = vld [vmem:[#allocation11 + $0x3e0] sm:$0xff] }
 0x3b6   :  { %v762_v1 = vld [vmem:[#allocation11 + $0x3d0] sm:$0xff]  ;;  %v10243_v5 = vpack.c.bf16 %v764_v2, %v760_v44 }
 0x3b7   :  { %12683 = vst [vmem:[#allocation118_spill] sm:$0xff] %v10225_v21  ;;  %12684 = vst [vmem:[#allocation119_spill] sm:$0xff] %v10227_v25  ;;  %v10245_v14 = vpack.c.bf16 %v766_v0, %v762_v1 }
 0x3b8   :  { %6455 = vmatpush1.bf16.msra.mxu0 %v10207_v31  ;;  %6519 = vmatpush1.bf16.msra.mxu1 %v10209_v35  ;;  %v765_v31 = vld [vmem:[#allocation11 + $0x3e8] sm:$0xff]  ;;  %v767_v35 = vld [vmem:[#allocation11 + $0x3f8] sm:$0xff]  ;;  %12689 = vst [vmem:[#allocation124_spill] sm:$0xff] %v10243_v5 }
 0x3b9   :  { %6457 = vmatprep.subr.bf16.mxu0 %v10213_v47  ;;  %6521 = vmatprep.subr.bf16.mxu1 %v10215_v63  ;;  %v10237_v6 = vpack.c.bf16 %v765_v31, %v761_v45  ;;  %v10239_v9 = vpack.c.bf16 %v767_v35, %v763_v43  ;;  %12690 = vst [vmem:[#allocation125_spill] sm:$0xff] %v10245_v14 }
 0x3bb   :  { %12687 = vst [vmem:[#allocation122_spill] sm:$0xff] %v10237_v6  ;;  %12688 = vst [vmem:[#allocation123_spill] sm:$0xff] %v10239_v9 }
 0x3bc   :  { %6459 = vmatpush1.bf16.msra.mxu0 %v10219_v55  ;;  %6523 = vmatpush1.bf16.msra.mxu1 %v10221_v60 }
 0x3bd   :  { %6461 = vmatprep.subr.bf16.mxu0 %v10225_v21  ;;  %6525 = vmatprep.subr.bf16.mxu1 %v10227_v25 }
 0x3c0   :  { %6463 = vmatpush1.bf16.msra.mxu0 %v10231_v39  ;;  %6527 = vmatpush1.bf16.msra.mxu1 %v10233_v40 }
 0x3c1   :  { %6465 = vmatprep.subr.bf16.mxu0 %v10237_v6  ;;  %6529 = vmatprep.subr.bf16.mxu1 %v10239_v9 }
 0x3c4   :  { %6467 = vmatpush1.bf16.msra.mxu0 %v10243_v5  ;;  %6531 = vmatpush1.bf16.msra.mxu1 %v10245_v14 }
 0x3c5   :  { %6533 = vmatprep.subr.bf16.mxu0 %v9886_v32  ;;  %6565 = vmatprep.subr.bf16.mxu1 %v9888_v34 }
 0x3c7   :  { %1348 = vmatmul.mubr.f32.vlgmr.msra.gmra.mrb[8].mxu0 %v10063_v33  ;;  %1419 = vmatmul.mubr.f32.vlgmr.msra.gmra.mrb[8].mxu1 %v10063_v33 }
 0x3c8   :  { %6535 = vmatpush1.bf16.msra.mxu0 %v9895_v48  ;;  %6567 = vmatpush1.bf16.msra.mxu1 %v9897_v49  ;;  %v12714_v49 = vld [vmem:[#allocation60_spill] sm:$0xff] }
 0x3c9   :  { %6537 = vmatprep.subr.bf16.mxu0 %v9899_v52  ;;  %6569 = vmatprep.subr.bf16.mxu1 %v9901_v53 }
 0x3ca   :  { %1513 = vmatprep.mubr.f32.mxu0 %v12636_v59  ;;  %1584 = vmatprep.mubr.f32.mxu1 %v12636_v59 }
 0x3cc   :  { %6539 = vmatpush1.bf16.msra.mxu0 %v9905_v61  ;;  %6571 = vmatpush1.bf16.msra.mxu1 %v9907_v62 }
 0x3cd   :  { %6541 = vmatprep.subr.bf16.mxu0 %v9911_v3  ;;  %6573 = vmatprep.subr.bf16.mxu1 %v9913_v4  ;;  %v12713_v4 = vld [vmem:[#allocation83_spill] sm:$0xff] }
 0x3d0   :  { %6543 = vmatpush1.bf16.msra.mxu0 %v9919_v11  ;;  %6575 = vmatpush1.bf16.msra.mxu1 %v9921_v12 }
 0x3d1   :  { %6545 = vmatprep.subr.bf16.mxu0 %v9925_v15  ;;  %6577 = vmatprep.subr.bf16.mxu1 %v9927_v16 }
 0x3d4   :  { %6547 = vmatpush1.bf16.msra.mxu0 %v9931_v23  ;;  %6579 = vmatpush1.bf16.msra.mxu1 %v9933_v24 }
 0x3d5   :  { %6549 = vmatprep.subr.bf16.mxu0 %v9937_v27  ;;  %6581 = vmatprep.subr.bf16.mxu1 %v9939_v28  ;;  %v12710_v28 = vld [vmem:[#allocation80_spill] sm:$0xff] }
 0x3d8   :  { %6551 = vmatpush1.bf16.msra.mxu0 %v9943_v37  ;;  %6583 = vmatpush1.bf16.msra.mxu1 %v9945_v38 }
 0x3d9   :  { %6553 = vmatprep.subr.bf16.mxu0 %v9949_v41  ;;  %6585 = vmatprep.subr.bf16.mxu1 %v9951_v42 }
 0x3dc   :  { %6555 = vmatpush1.bf16.msra.mxu0 %v9955_v51  ;;  %6587 = vmatpush1.bf16.msra.mxu1 %v9957_v54 }
 0x3dd   :  { %6557 = vmatprep.subr.bf16.mxu0 %v9961_v57  ;;  %6589 = vmatprep.subr.bf16.mxu1 %v9963_v58 }
 0x3e0   :  { %6559 = vmatpush1.bf16.msra.mxu0 %v9967_v7  ;;  %6591 = vmatpush1.bf16.msra.mxu1 %v9969_v8 }
 0x3e1   :  { %6561 = vmatprep.subr.bf16.mxu0 %v9973_v10  ;;  %6593 = vmatprep.subr.bf16.mxu1 %v9975_v13 }
 0x3e4   :  { %6563 = vmatpush1.bf16.msra.mxu0 %v9979_v19  ;;  %6595 = vmatpush1.bf16.msra.mxu1 %v9981_v20 }
 0x3e5   :  { %6597 = vmatprep.subr.bf16.mxu0 %v10023_v26  ;;  %6661 = vmatprep.subr.bf16.mxu1 %v10025_v30 }
 0x45a   :  { %v1158_v33 = vpop.f32.mrb[6].mxu0  ;;  %v1229_v43 = vpop.f32.mrb[6].mxu1 }
 0x45b   :  { %v1234_v45 = vadd.f32 %v1158_v33, %v10038_v50  ;;  %v1160_v31 = vpop.f32.mrb[7].mxu0  ;;  %v1231_v35 = vpop.f32.mrb[7].mxu1  ;;  %v1236_v2 = vadd.f32 %v1229_v43, %v10050_v22 }
 0x45c   :  { %v1235_v17 = vadd.f32 %v1160_v31, %v10042_v56  ;;  %v1237_v1 = vadd.f32 %v1231_v35, %v10053_v29 }
 0x45d   :  { %v5575_v18 = vmul.f32 -1.442695, %v1234_v45  ;;  %v5577_v0 = vmul.f32 -1.442695, %v1236_v2 }
 0x45e   :  { %v5576_v44 = vmul.f32 -1.442695, %v1235_v17 }
 0x45f   :  { %9060 = vpow2.f32 %v5575_v18 }
 0x460   :  { %9062 = vpow2.f32 %v5576_v44 }
 0x461   :  { %9064 = vtanh.f32 %v1237_v1  ;;  %v12696_v1 = vld [vmem:[#allocation70_spill] sm:$0xff] }
 0x462   :  { %9066 = vpow2.f32 %v5577_v0  ;;  %v12697_v0 = vld [vmem:[#allocation71_spill] sm:$0xff] }
 0x469   :  { %v9061_v20 = vpop.eup %9060 }
 0x46a   :  { %v1247_v13 = vadd.f32 1.0, %v9061_v20  ;;  %v9063_v30 = vpop.eup %9062 }
 0x46b   :  { %v1248_v33 = vadd.f32 1.0, %v9063_v30  ;;  %v9065_v8 = vpop.eup %9064  ;;  %v12694_v30 = vld [vmem:[#allocation68_spill] sm:$0xff] }
 0x46c   :  { %9068 = vrcp.f32 %v1247_v13  ;;  %v9067_v58 = vpop.eup %9066  ;;  %v12693_v13 = vld [vmem:[#allocation67_spill] sm:$0xff] }
 0x46d   :  { %9070 = vrcp.f32 %v1248_v33  ;;  %v1249_v18 = vadd.f32 1.0, %v9067_v58  ;;  %v12692_v58 = vld [vmem:[#allocation66_spill] sm:$0xff]  ;;  %v12698_v33 = vld [vmem:[#allocation72_spill] sm:$0xff] }
 0x46f   :  { %9072 = vrcp.f32 %v1249_v18  ;;  %v12701_v18 = vld [vmem:[#allocation75_spill] sm:$0xff] }
 0x476   :  { %v9069_v31 = vpop.eup %9068 }
 0x477   :  { %v1258_v45 = vmul.f32 %v9069_v31, %v9065_v8  ;;  %v9071_v17 = vpop.eup %9070  ;;  %v12691_v8 = vld [vmem:[#allocation65_spill] sm:$0xff] }
 0x478   :  { %v1257_v44 = vmul.f32 %v9071_v17, %v10056_v36  ;;  %v12695_v36 = vld [vmem:[#allocation69_spill] sm:$0xff]  ;;  %v12700_v17 = vld [vmem:[#allocation74_spill] sm:$0xff] }
 0x479   :  { %v9073_v20 = vpop.eup %9072  ;;  %v12699_v31 = vld [vmem:[#allocation73_spill] sm:$0xff] }
 0x47a   :  { %v10294_v43 = vadd.f32 %v1258_v45, %v1257_v44  ;;  %v896_v45 = vld [vmem:[%s12149_s10] sm:$0xf]  ;;  %v12702_v44 = vld [vmem:[#allocation57_spill] sm:$0xff] }
 0x47c   :  { %9074 = vtanh.f32 %v10294_v43 }
 0x486   :  { %v9075_v35 = vpop.eup %9074 }
 0x487   :  { %v10297_v2 = vmul.f32 %v9075_v35, %v9073_v20  ;;  %v10317_v20 = vrot.slane %v896_v45, %v12702_v44  ;;  %v12704_v35 = vld [vmem:[#allocation76_spill] sm:$0xff]  ;;  %v12718_v44 = vld [vmem:[#allocation86_spill] sm:$0xff] }
 0x489   :  { %1514 = vmatmul.mubr.f32.vlgmr.msra.gmra.mrb[10].mxu0 %v10297_v2  ;;  %1585 = vmatmul.mubr.f32.vlgmr.msra.gmra.mrb[10].mxu1 %v10297_v2  ;;  %12703 = vst [vmem:[#allocation66_spill] sm:$0xff] %v10317_v20 }
 0x48a   :  { %6599 = vmatpush1.bf16.msra.mxu0 %v10059_v46  ;;  %6663 = vmatpush1.bf16.msra.mxu1 %v12691_v8  ;;  %v12708_v8 = vld [vmem:[#allocation78_spill] sm:$0xff] }
 0x48b   :  { %6601 = vmatprep.subr.bf16.mxu0 %v12692_v58  ;;  %6665 = vmatprep.subr.bf16.mxu1 %v12693_v13 }
 0x48e   :  { %6603 = vmatpush1.bf16.msra.mxu0 %v12694_v30  ;;  %6667 = vmatpush1.bf16.msra.mxu1 %v12695_v36  ;;  %v12705_v36 = vld [vmem:[#allocation77_spill] sm:$0xff] }
 0x48f   :  { %6605 = vmatprep.subr.bf16.mxu0 %v12696_v1  ;;  %6669 = vmatprep.subr.bf16.mxu1 %v12697_v0  ;;  %v12706_v0 = vld [vmem:[#allocation58_spill] sm:$0xff] }
 0x490   :  { %v10322_v13 = vrot.slane %v896_v45, %v12706_v0  ;;  %v12716_v0 = vld [vmem:[#allocation84_spill] sm:$0xff] }
 0x492   :  { %6607 = vmatpush1.bf16.msra.mxu0 %v12698_v33  ;;  %6671 = vmatpush1.bf16.msra.mxu1 %v12699_v31  ;;  %12707 = vst [vmem:[#allocation126_spill] sm:$0xff] %v10322_v13  ;;  %v12709_v31 = vld [vmem:[#allocation79_spill] sm:$0xff] }
 0x493   :  { %6609 = vmatprep.subr.bf16.mxu0 %v12700_v17  ;;  %6673 = vmatprep.subr.bf16.mxu1 %v12701_v18  ;;  %v12711_v18 = vld [vmem:[#allocation81_spill] sm:$0xff] }
 0x496   :  { %6611 = vmatpush1.bf16.msra.mxu0 %v12704_v35  ;;  %6675 = vmatpush1.bf16.msra.mxu1 %v12705_v36  ;;  %v12712_v36 = vld [vmem:[#allocation82_spill] sm:$0xff] }
 0x497   :  { %6613 = vmatprep.subr.bf16.mxu0 %v12708_v8  ;;  %6677 = vmatprep.subr.bf16.mxu1 %v12709_v31  ;;  %v10333_v31 = vrot.slane %v896_v45, %v12714_v49  ;;  %v12724_v49 = vld [vmem:[#allocation90_spill] sm:$0xff] }
 0x499   :  { %12715 = vst [vmem:[#allocation127_spill] sm:$0xff] %v10333_v31 }
 0x49a   :  { %v1349_v54 = vpop.f32.mrb[8].mxu0  ;;  %v1420_v42 = vpop.f32.mrb[8].mxu1  ;;  %6615 = vmatpush1.bf16.msra.mxu0 %v12710_v28  ;;  %6679 = vmatpush1.bf16.msra.mxu1 %v12711_v18  ;;  %v12719_v18 = vld [vmem:[#allocation87_spill] sm:$0xff] }
 0x49b   :  { %v1350_v38 = vadd.f32 %v1349_v54, %v10317_v20  ;;  %v1351_v24 = vpop.f32.mrb[9].mxu0  ;;  %v1422_v16 = vpop.f32.mrb[9].mxu1  ;;  %6617 = vmatprep.subr.bf16.mxu0 %v12712_v36  ;;  %6681 = vmatprep.subr.bf16.mxu1 %v12713_v4  ;;  %v12717_v54 = vld [vmem:[#allocation85_spill] sm:$0xff]  ;;  %v1421_v4 = vadd.f32 %v1420_v42, %v10333_v31 }
 0x49c   :  { %v1352_v12 = vadd.f32 %v1351_v24, %v10322_v13  ;;  %v12720_v24 = vld [vmem:[#allocation62_spill] sm:$0xff] }
 0x49d   :  { %v5578_v62 = vmul.f32 -1.442695, %v1350_v38  ;;  %v10340_v13 = vrot.slane %v896_v45, %v12720_v24  ;;  %v12722_v38 = vld [vmem:[#allocation88_spill] sm:$0xff]  ;;  %v12729_v45 = vld [vmem:[#allocation95_spill] sm:$0xff] }
 0x49e   :  { %v5579_v53 = vmul.f32 -1.442695, %v1352_v12  ;;  %6619 = vmatpush1.bf16.msra.mxu0 %v12716_v0  ;;  %6683 = vmatpush1.bf16.msra.mxu1 %v12717_v54  ;;  %v12723_v12 = vld [vmem:[#allocation89_spill] sm:$0xff]  ;;  %v5580_v0 = vmul.f32 -1.442695, %v1421_v4  ;;  %v12732_v4 = vld [vmem:[#allocation98_spill] sm:$0xff] }
 0x49f   :  { %9076 = vpow2.f32 %v5578_v62  ;;  %6621 = vmatprep.subr.bf16.mxu0 %v12718_v44  ;;  %6685 = vmatprep.subr.bf16.mxu1 %v12719_v18  ;;  %12721 = vst [vmem:[#allocation128_spill] sm:$0xff] %v10340_v13  ;;  %v12725_v62 = vld [vmem:[#allocation91_spill] sm:$0xff]  ;;  %v1423_v54 = vadd.f32 %v1422_v16, %v10340_v13  ;;  %v12726_v44 = vld [vmem:[#allocation92_spill] sm:$0xff]  ;;  %v12727_v18 = vld [vmem:[#allocation93_spill] sm:$0xff] }
 0x4a0   :  { %9078 = vpow2.f32 %v5579_v53  ;;  %v12728_v53 = vld [vmem:[#allocation94_spill] sm:$0xff]  ;;  %v12746_v13 = vld [vmem:[#allocation112_spill] sm:$0xff] }
 0x4a1   :  { %9080 = vtanh.f32 %v1423_v54  ;;  %v12737_v54 = vld [vmem:[#allocation103_spill] sm:$0xff] }
 0x4a2   :  { %6623 = vmatpush1.bf16.msra.mxu0 %v12722_v38  ;;  %6687 = vmatpush1.bf16.msra.mxu1 %v12723_v12  ;;  %9082 = vpow2.f32 %v5580_v0  ;;  %v12730_v12 = vld [vmem:[#allocation96_spill] sm:$0xff] }
 0x4a3   :  { %6625 = vmatprep.subr.bf16.mxu0 %v12724_v49  ;;  %6689 = vmatprep.subr.bf16.mxu1 %v12725_v62  ;;  %v12731_v49 = vld [vmem:[#allocation97_spill] sm:$0xff]  ;;  %v12733_v62 = vld [vmem:[#allocation99_spill] sm:$0xff]  ;;  %v12738_v0 = vld [vmem:[#allocation104_spill] sm:$0xff] }
 0x4a6   :  { %6627 = vmatpush1.bf16.msra.mxu0 %v12726_v44  ;;  %6691 = vmatpush1.bf16.msra.mxu1 %v12727_v18  ;;  %v12734_v18 = vld [vmem:[#allocation100_spill] sm:$0xff]  ;;  %v12744_v44 = vld [vmem:[#allocation110_spill] sm:$0xff] }
 0x4a7   :  { %6629 = vmatprep.subr.bf16.mxu0 %v12728_v53  ;;  %6693 = vmatprep.subr.bf16.mxu1 %v12729_v45  ;;  %v12735_v53 = vld [vmem:[#allocation101_spill] sm:$0xff]  ;;  %v12736_v45 = vld [vmem:[#allocation102_spill] sm:$0xff] }
 0x4a9   :  { %v9077_v42 = vpop.eup %9076 }
 0x4aa   :  { %v1434_v24 = vadd.f32 1.0, %v9077_v42  ;;  %v9079_v31 = vpop.eup %9078  ;;  %6631 = vmatpush1.bf16.msra.mxu0 %v12730_v12  ;;  %6695 = vmatpush1.bf16.msra.mxu1 %v12731_v49  ;;  %v12739_v42 = vld [vmem:[#allocation105_spill] sm:$0xff]  ;;  %v12742_v12 = vld [vmem:[#allocation108_spill] sm:$0xff] }
 0x4ab   :  { %v1435_v16 = vadd.f32 1.0, %v9079_v31  ;;  %6633 = vmatprep.subr.bf16.mxu0 %v12732_v4  ;;  %6697 = vmatprep.subr.bf16.mxu1 %v12733_v62  ;;  %v9081_v49 = vpop.eup %9080  ;;  %v12741_v31 = vld [vmem:[#allocation107_spill] sm:$0xff] }
 0x4ac   :  { %9084 = vrcp.f32 %v1434_v24  ;;  %v12740_v24 = vld [vmem:[#allocation106_spill] sm:$0xff]  ;;  %v9083_v4 = vpop.eup %9082 }
 0x4ad   :  { %9086 = vrcp.f32 %v1435_v16 }
 0x4ae   :  { %6635 = vmatpush1.bf16.msra.mxu0 %v12734_v18  ;;  %6699 = vmatpush1.bf16.msra.mxu1 %v12735_v53  ;;  %v12743_v18 = vld [vmem:[#allocation109_spill] sm:$0xff] }
 0x4af   :  { %6637 = vmatprep.subr.bf16.mxu0 %v12736_v45  ;;  %6701 = vmatprep.subr.bf16.mxu1 %v12737_v54  ;;  %v1436_v45 = vadd.f32 1.0, %v9083_v4  ;;  %v12745_v54 = vld [vmem:[#allocation111_spill] sm:$0xff]  ;;  %v775_v4 = vld [vmem:[#allocation13 + $0x38] sm:$0xff] }
 0x4b1   :  { %9088 = vrcp.f32 %v1436_v45 }
 0x4b2   :  { %6639 = vmatpush1.bf16.msra.mxu0 %v12738_v0  ;;  %6703 = vmatpush1.bf16.msra.mxu1 %v12739_v42 }
 0x4b3   :  { %6641 = vmatprep.subr.bf16.mxu0 %v12740_v24  ;;  %6705 = vmatprep.subr.bf16.mxu1 %v12741_v31  ;;  %v12747_v24 = vld [vmem:[#allocation113_spill] sm:$0xff]  ;;  %v779_v31 = vld [vmem:[#allocation13 + $0x58] sm:$0xff] }
 0x4b6   :  { %v9085_v62 = vpop.eup %9084  ;;  %6643 = vmatpush1.bf16.msra.mxu0 %v12742_v12  ;;  %6707 = vmatpush1.bf16.msra.mxu1 %v12743_v18  ;;  %v781_v18 = vld [vmem:[#allocation13 + $0x68] sm:$0xff] }
 0x4b7   :  { %v1445_v16 = vmul.f32 %v9085_v62, %v9081_v49  ;;  %v9087_v53 = vpop.eup %9086  ;;  %6645 = vmatprep.subr.bf16.mxu0 %v12744_v44  ;;  %6709 = vmatprep.subr.bf16.mxu1 %v12745_v54  ;;  %v769_v49 = vld [vmem:[#allocation13 + $0x8] sm:$0xff] }
 0x4b8   :  { %v1444_v0 = vmul.f32 0.0, %v9087_v53  ;;  %v773_v62 = vld [vmem:[#allocation13 + $0x28] sm:$0xff]  ;;  %v771_v53 = vld [vmem:[#allocation13 + $0x18] sm:$0xff] }
 0x4b9   :  { %v10383_v45 = vpack.c.bf16 %v773_v62, %v769_v49 }
 0x4ba   :  { %v10368_v42 = vadd.f32 %v1445_v16, %v1444_v0  ;;  %6647 = vmatpush1.bf16.msra.mxu0 %v12746_v13  ;;  %6711 = vmatpush1.bf16.msra.mxu1 %v12747_v24  ;;  %v10385_v0 = vpack.c.bf16 %v775_v4, %v771_v53  ;;  %v768_v16 = vld [vmem:[#allocation13] sm:$0xff]  ;;  %v777_v24 = vld [vmem:[#allocation13 + $0x48] sm:$0xff] }
 0x4bb   :  { %6649 = vmatprep.subr.bf16.mxu0 %v10213_v47  ;;  %6713 = vmatprep.subr.bf16.mxu1 %v10215_v63  ;;  %12748 = vst [vmem:[#allocation129_spill] sm:$0xff] %v10383_v45  ;;  %v770_v63 = vld [vmem:[#allocation13 + $0x10] sm:$0xff]  ;;  %v9089_v54 = vpop.eup %9088  ;;  %v776_v53 = vld [vmem:[#allocation13 + $0x40] sm:$0xff]  ;;  %v785_v47 = vld [vmem:[#allocation13 + $0x88] sm:$0xff] }
 0x4bc   :  { %9090 = vtanh.f32 %v10368_v42  ;;  %12749 = vst [vmem:[#allocation130_spill] sm:$0xff] %v10385_v0  ;;  %v780_v4 = vld [vmem:[#allocation13 + $0x60] sm:$0xff] }
 0x4be   :  { %6651 = vmatpush1.bf16.msra.mxu0 %v10219_v55  ;;  %6715 = vmatpush1.bf16.msra.mxu1 %v10221_v60  ;;  %v772_v60 = vld [vmem:[#allocation13 + $0x20] sm:$0xff]  ;;  %v778_v55 = vld [vmem:[#allocation13 + $0x50] sm:$0xff] }
 0x4bf   :  { %6653 = vmatprep.subr.bf16.mxu0 %v10225_v21  ;;  %6717 = vmatprep.subr.bf16.mxu1 %v10227_v25  ;;  %v774_v25 = vld [vmem:[#allocation13 + $0x30] sm:$0xff]  ;;  %v783_v21 = vld [vmem:[#allocation13 + $0x78] sm:$0xff]  ;;  %v10393_v49 = vpack.c.bf16 %v772_v60, %v768_v16  ;;  %v793_v16 = vld [vmem:[#allocation13 + $0xc8] sm:$0xff] }
 0x4c0   :  { %v10395_v62 = vpack.c.bf16 %v774_v25, %v770_v63  ;;  %v10407_v63 = vpack.c.bf16 %v780_v4, %v776_v53  ;;  %v788_v25 = vld [vmem:[#allocation13 + $0xa0] sm:$0xff] }
 0x4c1   :  { %12750 = vst [vmem:[#allocation131_spill] sm:$0xff] %v10393_v49 }
 0x4c2   :  { %6655 = vmatpush1.bf16.msra.mxu0 %v10231_v39  ;;  %6719 = vmatpush1.bf16.msra.mxu1 %v10233_v40  ;;  %12751 = vst [vmem:[#allocation132_spill] sm:$0xff] %v10395_v62  ;;  %12754 = vst [vmem:[#allocation135_spill] sm:$0xff] %v10407_v63 }
 0x4c3   :  { %6657 = vmatprep.subr.bf16.mxu0 %v10237_v6  ;;  %6721 = vmatprep.subr.bf16.mxu1 %v10239_v9  ;;  %v10397_v9 = vpack.c.bf16 %v781_v18, %v777_v24  ;;  %v10399_v6 = vpack.c.bf16 %v783_v21, %v779_v31  ;;  %v784_v21 = vld [vmem:[#allocation13 + $0x80] sm:$0xff]  ;;  %v786_v31 = vld [vmem:[#allocation13 + $0x90] sm:$0xff] }
 0x4c5   :  { %12752 = vst [vmem:[#allocation133_spill] sm:$0xff] %v10397_v9  ;;  %12753 = vst [vmem:[#allocation134_spill] sm:$0xff] %v10399_v6 }
 0x4c6   :  { %v9091_v39 = vpop.eup %9090  ;;  %6659 = vmatpush1.bf16.msra.mxu0 %v10243_v5  ;;  %6723 = vmatpush1.bf16.msra.mxu1 %v10245_v14  ;;  %v782_v5 = vld [vmem:[#allocation13 + $0x70] sm:$0xff]  ;;  %v797_v14 = vld [vmem:[#allocation13 + $0xe8] sm:$0xff] }
 0x4c7   :  { %v10389_v40 = vmul.f32 %v9091_v39, %v9089_v54  ;;  %6725 = vmatprep.subr.bf16.mxu0 %v10383_v45  ;;  %6789 = vmatprep.subr.bf16.mxu1 %v10385_v0  ;;  %v789_v39 = vld [vmem:[#allocation13 + $0xa8] sm:$0xff]  ;;  %v787_v54 = vld [vmem:[#allocation13 + $0x98] sm:$0xff]  ;;  %v10409_v60 = vpack.c.bf16 %v782_v5, %v778_v55  ;;  %v10421_v55 = vpack.c.bf16 %v788_v25, %v784_v21  ;;  %v792_v5 = vld [vmem:[#allocation13 + $0xc0] sm:$0xff] }
 0x4c8   :  { %v791_v0 = vld [vmem:[#allocation13 + $0xb8] sm:$0xff]  ;;  %v10413_v18 = vpack.c.bf16 %v789_v39, %v785_v47  ;;  %v10427_v53 = vpack.c.bf16 %v797_v14, %v793_v16  ;;  %v794_v39 = vld [vmem:[#allocation13 + $0xd0] sm:$0xff] }
 0x4c9   :  { %1683 = vmatprep.mubr.f32.mxu0 %v10389_v40  ;;  %1754 = vmatprep.mubr.f32.mxu1 %v10389_v40  ;;  %12755 = vst [vmem:[#allocation136_spill] sm:$0xff] %v10409_v60  ;;  %v10415_v24 = vpack.c.bf16 %v791_v0, %v787_v54  ;;  %12758 = vst [vmem:[#allocation139_spill] sm:$0xff] %v10421_v55  ;;  %v796_v0 = vld [vmem:[#allocation13 + $0xe0] sm:$0xff]  ;;  %v798_v54 = vld [vmem:[#allocation13 + $0xf0] sm:$0xff] }
 0x4ca   :  { %1684 = vmatmul.mubr.f32.vlgmr.msra.gmra.mrb[12].mxu0 %v10297_v2  ;;  %1755 = vmatmul.mubr.f32.vlgmr.msra.gmra.mrb[12].mxu1 %v10297_v2  ;;  %12756 = vst [vmem:[#allocation137_spill] sm:$0xff] %v10413_v18  ;;  %v790_v2 = vld [vmem:[#allocation13 + $0xb0] sm:$0xff]  ;;  %12760 = vst [vmem:[#allocation141_spill] sm:$0xff] %v10427_v53  ;;  %v10433_v21 = vpack.c.bf16 %v796_v0, %v792_v5  ;;  %v10435_v25 = vpack.c.bf16 %v798_v54, %v794_v39  ;;  %v808_v39 = vld [vmem:[#allocation13 + $0x140] sm:$0xff] }
 0x4cb   :  { %6727 = vmatpush1.bf16.msra.mxu0 %v10393_v49  ;;  %6791 = vmatpush1.bf16.msra.mxu1 %v10395_v62  ;;  %12757 = vst [vmem:[#allocation138_spill] sm:$0xff] %v10415_v24  ;;  %v795_v49 = vld [vmem:[#allocation13 + $0xd8] sm:$0xff]  ;;  %v10423_v47 = vpack.c.bf16 %v790_v2, %v786_v31  ;;  %v800_v31 = vld [vmem:[#allocation13 + $0x100] sm:$0xff]  ;;  %v806_v16 = vld [vmem:[#allocation13 + $0x130] sm:$0xff] }
 0x4cc   :  { %6729 = vmatprep.subr.bf16.mxu0 %v10397_v9  ;;  %6793 = vmatprep.subr.bf16.mxu1 %v10399_v6  ;;  %v799_v62 = vld [vmem:[#allocation13 + $0xf8] sm:$0xff]  ;;  %v801_v6 = vld [vmem:[#allocation13 + $0x108] sm:$0xff]  ;;  %12762 = vst [vmem:[#allocation143_spill] sm:$0xff] %v10433_v21  ;;  %12763 = vst [vmem:[#allocation144_spill] sm:$0xff] %v10435_v25 }
 0x4cd   :  { %1870 = vmatprep.mubr.f32.mxu0 %v12636_v59  ;;  %1941 = vmatprep.mubr.f32.mxu1 %v12636_v59  ;;  %12759 = vst [vmem:[#allocation140_spill] sm:$0xff] %v10423_v47  ;;  %v10429_v4 = vpack.c.bf16 %v799_v62, %v795_v49  ;;  %v803_v9 = vld [vmem:[#allocation13 + $0x118] sm:$0xff]  ;;  %v804_v2 = vld [vmem:[#allocation13 + $0x120] sm:$0xff]  ;;  %v802_v62 = vld [vmem:[#allocation13 + $0x110] sm:$0xff] }
 0x4ce   :  { %v10445_v5 = vpack.c.bf16 %v804_v2, %v800_v31  ;;  %v10447_v0 = vpack.c.bf16 %v806_v16, %v802_v62  ;;  %v812_v54 = vld [vmem:[#allocation13 + $0x160] sm:$0xff] }
 0x4cf   :  { %6731 = vmatpush1.bf16.msra.mxu0 %v10407_v63  ;;  %6795 = vmatpush1.bf16.msra.mxu1 %v10409_v60  ;;  %12761 = vst [vmem:[#allocation142_spill] sm:$0xff] %v10429_v4  ;;  %v805_v63 = vld [vmem:[#allocation13 + $0x128] sm:$0xff]  ;;  %v807_v60 = vld [vmem:[#allocation13 + $0x138] sm:$0xff]  ;;  %v10457_v31 = vpack.c.bf16 %v812_v54, %v808_v39  ;;  %v816_v62 = vld [vmem:[#allocation13 + $0x180] sm:$0xff] }
 0x4d0   :  { %6733 = vmatprep.subr.bf16.mxu0 %v10413_v18  ;;  %6797 = vmatprep.subr.bf16.mxu1 %v10415_v24  ;;  %v10439_v14 = vpack.c.bf16 %v805_v63, %v801_v6  ;;  %v10441_v49 = vpack.c.bf16 %v807_v60, %v803_v9  ;;  %v809_v24 = vld [vmem:[#allocation13 + $0x148] sm:$0xff]  ;;  %v811_v18 = vld [vmem:[#allocation13 + $0x158] sm:$0xff]  ;;  %12766 = vst [vmem:[#allocation147_spill] sm:$0xff] %v10445_v5  ;;  %12767 = vst [vmem:[#allocation148_spill] sm:$0xff] %v10447_v0 }
 0x4d1   :  { %v810_v63 = vld [vmem:[#allocation13 + $0x150] sm:$0xff]  ;;  %12770 = vst [vmem:[#allocation151_spill] sm:$0xff] %v10457_v31  ;;  %v820_v16 = vld [vmem:[#allocation13 + $0x1a0] sm:$0xff] }
 0x4d2   :  { %12764 = vst [vmem:[#allocation145_spill] sm:$0xff] %v10439_v14  ;;  %12765 = vst [vmem:[#allocation146_spill] sm:$0xff] %v10441_v49  ;;  %v814_v60 = vld [vmem:[#allocation13 + $0x170] sm:$0xff]  ;;  %v10469_v39 = vpack.c.bf16 %v820_v16, %v816_v62 }
 0x4d3   :  { %6735 = vmatpush1.bf16.msra.mxu0 %v10421_v55  ;;  %6799 = vmatpush1.bf16.msra.mxu1 %v10423_v47  ;;  %v813_v55 = vld [vmem:[#allocation13 + $0x168] sm:$0xff]  ;;  %v815_v47 = vld [vmem:[#allocation13 + $0x178] sm:$0xff]  ;;  %v10459_v2 = vpack.c.bf16 %v814_v60, %v810_v63  ;;  %v824_v63 = vld [vmem:[#allocation13 + $0x1c0] sm:$0xff] }
 0x4d4   :  { %6737 = vmatprep.subr.bf16.mxu0 %v10427_v53  ;;  %6801 = vmatprep.subr.bf16.mxu1 %v10429_v4  ;;  %v10451_v6 = vpack.c.bf16 %v813_v55, %v809_v24  ;;  %v10453_v9 = vpack.c.bf16 %v815_v47, %v811_v18  ;;  %v817_v4 = vld [vmem:[#allocation13 + $0x188] sm:$0xff]  ;;  %v819_v53 = vld [vmem:[#allocation13 + $0x198] sm:$0xff]  ;;  %v818_v55 = vld [vmem:[#allocation13 + $0x190] sm:$0xff]  ;;  %12774 = vst [vmem:[#allocation155_spill] sm:$0xff] %v10469_v39 }
 0x4d5   :  { %12771 = vst [vmem:[#allocation152_spill] sm:$0xff] %v10459_v2  ;;  %v822_v47 = vld [vmem:[#allocation13 + $0x1b0] sm:$0xff]  ;;  %v828_v60 = vld [vmem:[#allocation13 + $0x1e0] sm:$0xff] }
 0x4d6   :  { %12768 = vst [vmem:[#allocation149_spill] sm:$0xff] %v10451_v6  ;;  %12769 = vst [vmem:[#allocation150_spill] sm:$0xff] %v10453_v9  ;;  %v10471_v54 = vpack.c.bf16 %v822_v47, %v818_v55  ;;  %v10481_v62 = vpack.c.bf16 %v828_v60, %v824_v63  ;;  %v832_v55 = vld [vmem:[#allocation13 + $0x200] sm:$0xff] }
 0x4d7   :  { %6739 = vmatpush1.bf16.msra.mxu0 %v10433_v21  ;;  %6803 = vmatpush1.bf16.msra.mxu1 %v10435_v25  ;;  %v821_v21 = vld [vmem:[#allocation13 + $0x1a8] sm:$0xff]  ;;  %v823_v25 = vld [vmem:[#allocation13 + $0x1b8] sm:$0xff]  ;;  %v836_v47 = vld [vmem:[#allocation13 + $0x220] sm:$0xff] }
 0x4d8   :  { %6741 = vmatprep.subr.bf16.mxu0 %v10439_v14  ;;  %6805 = vmatprep.subr.bf16.mxu1 %v10441_v49  ;;  %v10463_v18 = vpack.c.bf16 %v821_v21, %v817_v4  ;;  %v10465_v24 = vpack.c.bf16 %v823_v25, %v819_v53  ;;  %v825_v49 = vld [vmem:[#allocation13 + $0x1c8] sm:$0xff]  ;;  %v827_v14 = vld [vmem:[#allocation13 + $0x1d8] sm:$0xff]  ;;  %12775 = vst [vmem:[#allocation156_spill] sm:$0xff] %v10471_v54  ;;  %v826_v21 = vld [vmem:[#allocation13 + $0x1d0] sm:$0xff] }
 0x4d9   :  { %v830_v25 = vld [vmem:[#allocation13 + $0x1f0] sm:$0xff]  ;;  %12778 = vst [vmem:[#allocation159_spill] sm:$0xff] %v10481_v62  ;;  %v10493_v63 = vpack.c.bf16 %v836_v47, %v832_v55 }
 0x4da   :  { %12772 = vst [vmem:[#allocation153_spill] sm:$0xff] %v10463_v18  ;;  %12773 = vst [vmem:[#allocation154_spill] sm:$0xff] %v10465_v24  ;;  %v10483_v16 = vpack.c.bf16 %v830_v25, %v826_v21  ;;  %v840_v21 = vld [vmem:[#allocation13 + $0x240] sm:$0xff] }
 0x4db   :  { %6743 = vmatpush1.bf16.msra.mxu0 %v10445_v5  ;;  %6807 = vmatpush1.bf16.msra.mxu1 %v10447_v0  ;;  %v829_v5 = vld [vmem:[#allocation13 + $0x1e8] sm:$0xff]  ;;  %v831_v0 = vld [vmem:[#allocation13 + $0x1f8] sm:$0xff]  ;;  %12782 = vst [vmem:[#allocation163_spill] sm:$0xff] %v10493_v63  ;;  %v844_v25 = vld [vmem:[#allocation13 + $0x260] sm:$0xff] }
 0x4dc   :  { %6745 = vmatprep.subr.bf16.mxu0 %v10451_v6  ;;  %6809 = vmatprep.subr.bf16.mxu1 %v10453_v9  ;;  %v10475_v53 = vpack.c.bf16 %v829_v5, %v825_v49  ;;  %v10477_v4 = vpack.c.bf16 %v831_v0, %v827_v14  ;;  %v833_v9 = vld [vmem:[#allocation13 + $0x208] sm:$0xff]  ;;  %v835_v6 = vld [vmem:[#allocation13 + $0x218] sm:$0xff]  ;;  %12779 = vst [vmem:[#allocation160_spill] sm:$0xff] %v10483_v16  ;;  %v834_v5 = vld [vmem:[#allocation13 + $0x210] sm:$0xff] }
 0x4dd   :  { %v838_v0 = vld [vmem:[#allocation13 + $0x230] sm:$0xff]  ;;  %v10505_v55 = vpack.c.bf16 %v844_v25, %v840_v21 }
 0x4de   :  { %12776 = vst [vmem:[#allocation157_spill] sm:$0xff] %v10475_v53  ;;  %12777 = vst [vmem:[#allocation158_spill] sm:$0xff] %v10477_v4  ;;  %v10495_v60 = vpack.c.bf16 %v838_v0, %v834_v5  ;;  %v848_v5 = vld [vmem:[#allocation13 + $0x280] sm:$0xff] }
 0x4df   :  { %6747 = vmatpush1.bf16.msra.mxu0 %v10457_v31  ;;  %6811 = vmatpush1.bf16.msra.mxu1 %v10459_v2  ;;  %v837_v31 = vld [vmem:[#allocation13 + $0x228] sm:$0xff]  ;;  %v839_v2 = vld [vmem:[#allocation13 + $0x238] sm:$0xff]  ;;  %12786 = vst [vmem:[#allocation167_spill] sm:$0xff] %v10505_v55  ;;  %v852_v0 = vld [vmem:[#allocation13 + $0x2a0] sm:$0xff] }
 0x4e0   :  { %6749 = vmatprep.subr.bf16.mxu0 %v10463_v18  ;;  %6813 = vmatprep.subr.bf16.mxu1 %v10465_v24  ;;  %v10487_v14 = vpack.c.bf16 %v837_v31, %v833_v9  ;;  %v10489_v49 = vpack.c.bf16 %v839_v2, %v835_v6  ;;  %v841_v24 = vld [vmem:[#allocation13 + $0x248] sm:$0xff]  ;;  %v843_v18 = vld [vmem:[#allocation13 + $0x258] sm:$0xff]  ;;  %12783 = vst [vmem:[#allocation164_spill] sm:$0xff] %v10495_v60  ;;  %v842_v31 = vld [vmem:[#allocation13 + $0x250] sm:$0xff] }
 0x4e1   :  { %v846_v2 = vld [vmem:[#allocation13 + $0x270] sm:$0xff]  ;;  %v10517_v21 = vpack.c.bf16 %v852_v0, %v848_v5 }
 0x4e2   :  { %12780 = vst [vmem:[#allocation161_spill] sm:$0xff] %v10487_v14  ;;  %12781 = vst [vmem:[#allocation162_spill] sm:$0xff] %v10489_v49  ;;  %v10507_v47 = vpack.c.bf16 %v846_v2, %v842_v31  ;;  %v856_v31 = vld [vmem:[#allocation13 + $0x2c0] sm:$0xff] }
 0x4e3   :  { %6751 = vmatpush1.bf16.msra.mxu0 %v10469_v39  ;;  %6815 = vmatpush1.bf16.msra.mxu1 %v10471_v54  ;;  %v845_v39 = vld [vmem:[#allocation13 + $0x268] sm:$0xff]  ;;  %v847_v54 = vld [vmem:[#allocation13 + $0x278] sm:$0xff]  ;;  %12790 = vst [vmem:[#allocation171_spill] sm:$0xff] %v10517_v21  ;;  %v860_v2 = vld [vmem:[#allocation13 + $0x2e0] sm:$0xff] }
 0x4e4   :  { %6753 = vmatprep.subr.bf16.mxu0 %v10475_v53  ;;  %6817 = vmatprep.subr.bf16.mxu1 %v10477_v4  ;;  %v10499_v6 = vpack.c.bf16 %v845_v39, %v841_v24  ;;  %v10501_v9 = vpack.c.bf16 %v847_v54, %v843_v18  ;;  %v849_v4 = vld [vmem:[#allocation13 + $0x288] sm:$0xff]  ;;  %v851_v53 = vld [vmem:[#allocation13 + $0x298] sm:$0xff]  ;;  %12787 = vst [vmem:[#allocation168_spill] sm:$0xff] %v10507_v47  ;;  %v850_v39 = vld [vmem:[#allocation13 + $0x290] sm:$0xff] }
 0x4e5   :  { %v854_v54 = vld [vmem:[#allocation13 + $0x2b0] sm:$0xff]  ;;  %v10529_v5 = vpack.c.bf16 %v860_v2, %v856_v31 }
 0x4e6   :  { %12784 = vst [vmem:[#allocation165_spill] sm:$0xff] %v10499_v6  ;;  %12785 = vst [vmem:[#allocation166_spill] sm:$0xff] %v10501_v9  ;;  %v10519_v25 = vpack.c.bf16 %v854_v54, %v850_v39  ;;  %v864_v39 = vld [vmem:[#allocation13 + $0x300] sm:$0xff] }
 0x4e7   :  { %6755 = vmatpush1.bf16.msra.mxu0 %v10481_v62  ;;  %6819 = vmatpush1.bf16.msra.mxu1 %v10483_v16  ;;  %v853_v62 = vld [vmem:[#allocation13 + $0x2a8] sm:$0xff]  ;;  %v855_v16 = vld [vmem:[#allocation13 + $0x2b8] sm:$0xff]  ;;  %12794 = vst [vmem:[#allocation175_spill] sm:$0xff] %v10529_v5  ;;  %v868_v54 = vld [vmem:[#allocation13 + $0x320] sm:$0xff] }
 0x4e8   :  { %6757 = vmatprep.subr.bf16.mxu0 %v10487_v14  ;;  %6821 = vmatprep.subr.bf16.mxu1 %v10489_v49  ;;  %v10511_v18 = vpack.c.bf16 %v853_v62, %v849_v4  ;;  %v10513_v24 = vpack.c.bf16 %v855_v16, %v851_v53  ;;  %v857_v49 = vld [vmem:[#allocation13 + $0x2c8] sm:$0xff]  ;;  %v859_v14 = vld [vmem:[#allocation13 + $0x2d8] sm:$0xff]  ;;  %12791 = vst [vmem:[#allocation172_spill] sm:$0xff] %v10519_v25  ;;  %v858_v62 = vld [vmem:[#allocation13 + $0x2d0] sm:$0xff] }
 0x4e9   :  { %v862_v16 = vld [vmem:[#allocation13 + $0x2f0] sm:$0xff]  ;;  %v10541_v31 = vpack.c.bf16 %v868_v54, %v864_v39 }
 0x4ea   :  { %12788 = vst [vmem:[#allocation169_spill] sm:$0xff] %v10511_v18  ;;  %12789 = vst [vmem:[#allocation170_spill] sm:$0xff] %v10513_v24  ;;  %v10531_v0 = vpack.c.bf16 %v862_v16, %v858_v62  ;;  %v872_v62 = vld [vmem:[#allocation13 + $0x340] sm:$0xff] }
 0x4eb   :  { %6759 = vmatpush1.bf16.msra.mxu0 %v10493_v63  ;;  %6823 = vmatpush1.bf16.msra.mxu1 %v10495_v60  ;;  %v861_v63 = vld [vmem:[#allocation13 + $0x2e8] sm:$0xff]  ;;  %v863_v60 = vld [vmem:[#allocation13 + $0x2f8] sm:$0xff]  ;;  %12798 = vst [vmem:[#allocation179_spill] sm:$0xff] %v10541_v31  ;;  %v876_v16 = vld [vmem:[#allocation13 + $0x360] sm:$0xff] }
 0x4ec   :  { %6761 = vmatprep.subr.bf16.mxu0 %v10499_v6  ;;  %6825 = vmatprep.subr.bf16.mxu1 %v10501_v9  ;;  %v10523_v53 = vpack.c.bf16 %v861_v63, %v857_v49  ;;  %v10525_v4 = vpack.c.bf16 %v863_v60, %v859_v14  ;;  %v865_v9 = vld [vmem:[#allocation13 + $0x308] sm:$0xff]  ;;  %v867_v6 = vld [vmem:[#allocation13 + $0x318] sm:$0xff]  ;;  %12795 = vst [vmem:[#allocation176_spill] sm:$0xff] %v10531_v0  ;;  %v866_v63 = vld [vmem:[#allocation13 + $0x310] sm:$0xff] }
 0x4ed   :  { %v870_v60 = vld [vmem:[#allocation13 + $0x330] sm:$0xff]  ;;  %v10553_v39 = vpack.c.bf16 %v876_v16, %v872_v62 }
 0x4ee   :  { %12792 = vst [vmem:[#allocation173_spill] sm:$0xff] %v10523_v53  ;;  %12793 = vst [vmem:[#allocation174_spill] sm:$0xff] %v10525_v4  ;;  %v10543_v2 = vpack.c.bf16 %v870_v60, %v866_v63  ;;  %v880_v63 = vld [vmem:[#allocation13 + $0x380] sm:$0xff] }
 0x4ef   :  { %6763 = vmatpush1.bf16.msra.mxu0 %v10505_v55  ;;  %6827 = vmatpush1.bf16.msra.mxu1 %v10507_v47  ;;  %v869_v55 = vld [vmem:[#allocation13 + $0x328] sm:$0xff]  ;;  %v871_v47 = vld [vmem:[#allocation13 + $0x338] sm:$0xff]  ;;  %12802 = vst [vmem:[#allocation183_spill] sm:$0xff] %v10553_v39  ;;  %v884_v60 = vld [vmem:[#allocation13 + $0x3a0] sm:$0xff] }
 0x4f0   :  { %6765 = vmatprep.subr.bf16.mxu0 %v10511_v18  ;;  %6829 = vmatprep.subr.bf16.mxu1 %v10513_v24  ;;  %v10535_v14 = vpack.c.bf16 %v869_v55, %v865_v9  ;;  %v10537_v49 = vpack.c.bf16 %v871_v47, %v867_v6  ;;  %v873_v24 = vld [vmem:[#allocation13 + $0x348] sm:$0xff]  ;;  %v875_v18 = vld [vmem:[#allocation13 + $0x358] sm:$0xff]  ;;  %12799 = vst [vmem:[#allocation180_spill] sm:$0xff] %v10543_v2  ;;  %v874_v55 = vld [vmem:[#allocation13 + $0x350] sm:$0xff] }
 0x4f1   :  { %v878_v47 = vld [vmem:[#allocation13 + $0x370] sm:$0xff]  ;;  %v10565_v62 = vpack.c.bf16 %v884_v60, %v880_v63 }
 0x4f2   :  { %12796 = vst [vmem:[#allocation177_spill] sm:$0xff] %v10535_v14  ;;  %12797 = vst [vmem:[#allocation178_spill] sm:$0xff] %v10537_v49  ;;  %v10555_v54 = vpack.c.bf16 %v878_v47, %v874_v55  ;;  %v888_v55 = vld [vmem:[#allocation13 + $0x3c0] sm:$0xff]  ;;  %v894_v47 = vld [vmem:[#allocation13 + $0x3f0] sm:$0xff] }
 0x4f3   :  { %6767 = vmatpush1.bf16.msra.mxu0 %v10517_v21  ;;  %6831 = vmatpush1.bf16.msra.mxu1 %v10519_v25  ;;  %v877_v21 = vld [vmem:[#allocation13 + $0x368] sm:$0xff]  ;;  %v879_v25 = vld [vmem:[#allocation13 + $0x378] sm:$0xff]  ;;  %12806 = vst [vmem:[#allocation187_spill] sm:$0xff] %v10565_v62 }
 0x4f4   :  { %6769 = vmatprep.subr.bf16.mxu0 %v10523_v53  ;;  %6833 = vmatprep.subr.bf16.mxu1 %v10525_v4  ;;  %v10547_v6 = vpack.c.bf16 %v877_v21, %v873_v24  ;;  %v10549_v9 = vpack.c.bf16 %v879_v25, %v875_v18  ;;  %v881_v4 = vld [vmem:[#allocation13 + $0x388] sm:$0xff]  ;;  %v883_v53 = vld [vmem:[#allocation13 + $0x398] sm:$0xff]  ;;  %12803 = vst [vmem:[#allocation184_spill] sm:$0xff] %v10555_v54  ;;  %v882_v21 = vld [vmem:[#allocation13 + $0x390] sm:$0xff] }
 0x4f5   :  { %v886_v25 = vld [vmem:[#allocation13 + $0x3b0] sm:$0xff] }
 0x4f6   :  { %12800 = vst [vmem:[#allocation181_spill] sm:$0xff] %v10547_v6  ;;  %12801 = vst [vmem:[#allocation182_spill] sm:$0xff] %v10549_v9  ;;  %v10567_v16 = vpack.c.bf16 %v886_v25, %v882_v21 }
 0x4f7   :  { %6771 = vmatpush1.bf16.msra.mxu0 %v10529_v5  ;;  %6835 = vmatpush1.bf16.msra.mxu1 %v10531_v0  ;;  %v885_v5 = vld [vmem:[#allocation13 + $0x3a8] sm:$0xff]  ;;  %v887_v0 = vld [vmem:[#allocation13 + $0x3b8] sm:$0xff] }
 0x4f8   :  { %6773 = vmatprep.subr.bf16.mxu0 %v10535_v14  ;;  %6837 = vmatprep.subr.bf16.mxu1 %v10537_v49  ;;  %v10559_v18 = vpack.c.bf16 %v885_v5, %v881_v4  ;;  %v10561_v24 = vpack.c.bf16 %v887_v0, %v883_v53  ;;  %v889_v49 = vld [vmem:[#allocation13 + $0x3c8] sm:$0xff]  ;;  %v891_v14 = vld [vmem:[#allocation13 + $0x3d8] sm:$0xff]  ;;  %12807 = vst [vmem:[#allocation188_spill] sm:$0xff] %v10567_v16  ;;  %v892_v5 = vld [vmem:[#allocation13 + $0x3e0] sm:$0xff] }
 0x4f9   :  { %v890_v0 = vld [vmem:[#allocation13 + $0x3d0] sm:$0xff]  ;;  %v10577_v63 = vpack.c.bf16 %v892_v5, %v888_v55 }
 0x4fa   :  { %12804 = vst [vmem:[#allocation185_spill] sm:$0xff] %v10559_v18  ;;  %12805 = vst [vmem:[#allocation186_spill] sm:$0xff] %v10561_v24  ;;  %v10579_v60 = vpack.c.bf16 %v894_v47, %v890_v0 }
 0x4fb   :  { %6775 = vmatpush1.bf16.msra.mxu0 %v10541_v31  ;;  %6839 = vmatpush1.bf16.msra.mxu1 %v10543_v2  ;;  %v893_v31 = vld [vmem:[#allocation13 + $0x3e8] sm:$0xff]  ;;  %v895_v2 = vld [vmem:[#allocation13 + $0x3f8] sm:$0xff]  ;;  %12810 = vst [vmem:[#allocation191_spill] sm:$0xff] %v10577_v63 }
 0x4fc   :  { %6777 = vmatprep.subr.bf16.mxu0 %v10547_v6  ;;  %6841 = vmatprep.subr.bf16.mxu1 %v10549_v9  ;;  %v10571_v53 = vpack.c.bf16 %v893_v31, %v889_v49  ;;  %v10573_v4 = vpack.c.bf16 %v895_v2, %v891_v14  ;;  %12811 = vst [vmem:[#allocation192_spill] sm:$0xff] %v10579_v60  ;;  %v12812_v14 = vmov 0.0|0.0  }
 0x4fe   :  { %12808 = vst [vmem:[#allocation189_spill] sm:$0xff] %v10571_v53  ;;  %12809 = vst [vmem:[#allocation190_spill] sm:$0xff] %v10573_v4 }
 0x4ff   :  { %6779 = vmatpush1.bf16.msra.mxu0 %v10553_v39  ;;  %6843 = vmatpush1.bf16.msra.mxu1 %v10555_v54 }
 0x500   :  { %6781 = vmatprep.subr.bf16.mxu0 %v10559_v18  ;;  %6845 = vmatprep.subr.bf16.mxu1 %v10561_v24 }
 0x503   :  { %6783 = vmatpush1.bf16.msra.mxu0 %v10565_v62  ;;  %6847 = vmatpush1.bf16.msra.mxu1 %v10567_v16 }
 0x504   :  { %6785 = vmatprep.subr.bf16.mxu0 %v10571_v53  ;;  %6849 = vmatprep.subr.bf16.mxu1 %v10573_v4 }
 0x507   :  { %6787 = vmatpush1.bf16.msra.mxu0 %v10577_v63  ;;  %6851 = vmatpush1.bf16.msra.mxu1 %v10579_v60 }
 0x508   :  { %6877 = vmatprep.subr.bf16.mxu1 %v9886_v32  ;;  %6852 = vmatprep.subr.bf16.mxu0 %v12812_v14 }
 0x50a   :  { %1871 = vmatmul.mubr.f32.vlgmr.msra.gmra.mrb[14].mxu0 %v10389_v40  ;;  %1942 = vmatmul.mubr.f32.vlgmr.msra.gmra.mrb[14].mxu1 %v10389_v40 }
 0x50b   :  { %6879 = vmatpush1.bf16.msra.mxu1 %v9895_v48  ;;  %2107 = vmatprep.mubr.f32.mxu1 %v12636_v59 }
 0x50c   :  { %6881 = vmatprep.subr.bf16.mxu1 %v9899_v52  ;;  %5916 = vmatprep.mubr.msk.f32.mxu0 %vm9652_vm0, %v12636_v59 }
 0x50f   :  { %6883 = vmatpush1.bf16.msra.mxu1 %v9905_v61 }
 0x510   :  { %6885 = vmatprep.subr.bf16.mxu1 %v9911_v3 }
 0x513   :  { %6887 = vmatpush1.bf16.msra.mxu1 %v9919_v11 }
 0x514   :  { %6889 = vmatprep.subr.bf16.mxu1 %v9925_v15 }
 0x517   :  { %6891 = vmatpush1.bf16.msra.mxu1 %v9931_v23 }
 0x518   :  { %6893 = vmatprep.subr.bf16.mxu1 %v9937_v27 }
 0x51b   :  { %6895 = vmatpush1.bf16.msra.mxu1 %v9943_v37 }
 0x51c   :  { %6897 = vmatprep.subr.bf16.mxu1 %v9949_v41 }
 0x51f   :  { %6899 = vmatpush1.bf16.msra.mxu1 %v9955_v51 }
 0x520   :  { %6901 = vmatprep.subr.bf16.mxu1 %v9961_v57 }
 0x523   :  { %6903 = vmatpush1.bf16.msra.mxu1 %v9967_v7  ;;  %v899_v7 = vld [vmem:[#allocation14 + $0x8] sm:$0xff] }
 0x524   :  { %6905 = vmatprep.subr.bf16.mxu1 %v9973_v10 }
 0x527   :  { %6907 = vmatpush1.bf16.msra.mxu1 %v9979_v19  ;;  %v898_v19 = vld [vmem:[#allocation14] sm:$0xff] }
 0x528   :  { %6941 = vmatprep.subr.bf16.mxu1 %v10023_v26  ;;  %v10612_v57 = vpack.c.bf16 %v899_v7, %v898_v19  ;;  %v902_v7 = vld [vmem:[#allocation14 + $0x20] sm:$0xff]  ;;  %v903_v19 = vld [vmem:[#allocation14 + $0x28] sm:$0xff] }
 0x52a   :  { %12813 = vst [vmem:[#allocation193_spill] sm:$0xff] %v10612_v57  ;;  %6854 = vmatpush3.bf16.msra.mxu0 %v10612_v57 }
 0x52b   :  { %6855 = vmatprep.subr.bf16.mxu0 %v12812_v14 }
 0x55c   :  { %v1515_v40 = vpop.f32.mrb[10].mxu0  ;;  %v1586_v49 = vpop.f32.mrb[10].mxu1 }
 0x55d   :  { %v1591_v31 = vadd.f32 %v1515_v40, %v10038_v50  ;;  %v1517_v2 = vpop.f32.mrb[11].mxu0  ;;  %v1588_v21 = vpop.f32.mrb[11].mxu1  ;;  %v1593_v0 = vadd.f32 %v1586_v49, %v10050_v22  ;;  %v901_v49 = vld [vmem:[#allocation14 + $0x18] sm:$0xff] }
 0x55e   :  { %v1592_v25 = vadd.f32 %v1517_v2, %v10042_v56  ;;  %v1594_v47 = vadd.f32 %v1588_v21, %v10053_v29  ;;  %v900_v2 = vld [vmem:[#allocation14 + $0x10] sm:$0xff]  ;;  %v905_v21 = vld [vmem:[#allocation14 + $0x38] sm:$0xff] }
 0x55f   :  { %v5581_v55 = vmul.f32 -1.442695, %v1591_v31  ;;  %v5583_v10 = vmul.f32 -1.442695, %v1593_v0 }
 0x560   :  { %v5582_v5 = vmul.f32 -1.442695, %v1592_v25  ;;  %v10616_v25 = vpack.c.bf16 %v901_v49, %v900_v2  ;;  %v906_v2 = vld [vmem:[#allocation14 + $0x40] sm:$0xff]  ;;  %v907_v49 = vld [vmem:[#allocation14 + $0x48] sm:$0xff] }
 0x561   :  { %9092 = vpow2.f32 %v5581_v55 }
 0x562   :  { %9094 = vpow2.f32 %v5582_v5  ;;  %12814 = vst [vmem:[#allocation194_spill] sm:$0xff] %v10616_v25  ;;  %6857 = vmatpush3.bf16.msra.mxu0 %v10616_v25 }
 0x563   :  { %9096 = vtanh.f32 %v1594_v47  ;;  %6858 = vmatprep.subr.bf16.mxu0 %v12812_v14 }
 0x564   :  { %9098 = vpow2.f32 %v5583_v10 }
 0x56b   :  { %v9093_v26 = vpop.eup %9092 }
 0x56c   :  { %v1604_v51 = vadd.f32 1.0, %v9093_v26  ;;  %v9095_v40 = vpop.eup %9094  ;;  %v10620_v26 = vpack.c.bf16 %v903_v19, %v902_v7  ;;  %v10629_v19 = vpack.c.bf16 %v907_v49, %v906_v2 }
 0x56d   :  { %v1605_v31 = vadd.f32 1.0, %v9095_v40  ;;  %v9097_v10 = vpop.eup %9096 }
 0x56e   :  { %9100 = vrcp.f32 %v1604_v51  ;;  %12815 = vst [vmem:[#allocation195_spill] sm:$0xff] %v10620_v26  ;;  %6860 = vmatpush3.bf16.msra.mxu0 %v10620_v26  ;;  %v904_v51 = vld [vmem:[#allocation14 + $0x30] sm:$0xff]  ;;  %v9099_v55 = vpop.eup %9098  ;;  %12817 = vst [vmem:[#allocation197_spill] sm:$0xff] %v10629_v19 }
 0x56f   :  { %9102 = vrcp.f32 %v1605_v31  ;;  %6861 = vmatprep.subr.bf16.mxu0 %v12812_v14  ;;  %v10624_v5 = vpack.c.bf16 %v905_v21, %v904_v51  ;;  %v1606_v31 = vadd.f32 1.0, %v9099_v55  ;;  %v909_v51 = vld [vmem:[#allocation14 + $0x58] sm:$0xff]  ;;  %v911_v55 = vld [vmem:[#allocation14 + $0x68] sm:$0xff] }
 0x571   :  { %12816 = vst [vmem:[#allocation196_spill] sm:$0xff] %v10624_v5  ;;  %9104 = vrcp.f32 %v1606_v31 }
 0x572   :  { %6863 = vmatpush3.bf16.msra.mxu0 %v10624_v5 }
 0x573   :  { %6864 = vmatprep.subr.bf16.mxu0 %v12812_v14 }
 0x576   :  { %6866 = vmatpush3.bf16.msra.mxu0 %v10629_v19 }
 0x577   :  { %6867 = vmatprep.subr.bf16.mxu0 %v12812_v14 }
 0x578   :  { %v9101_v0 = vpop.eup %9100 }
 0x579   :  { %v1615_v47 = vmul.f32 %v9101_v0, %v9097_v10  ;;  %v9103_v40 = vpop.eup %9102  ;;  %v908_v10 = vld [vmem:[#allocation14 + $0x50] sm:$0xff] }
 0x57a   :  { %v1614_v7 = vmul.f32 %v9103_v40, %v10294_v43  ;;  %v10636_v21 = vpack.c.bf16 %v909_v51, %v908_v10  ;;  %v910_v43 = vld [vmem:[#allocation14 + $0x60] sm:$0xff]  ;;  %v913_v40 = vld [vmem:[#allocation14 + $0x78] sm:$0xff] }
 0x57b   :  { %v10640_v0 = vpack.c.bf16 %v911_v55, %v910_v43  ;;  %v9105_v2 = vpop.eup %9104 }
 0x57c   :  { %v10631_v29 = vadd.f32 %v1615_v47, %v1614_v7  ;;  %12818 = vst [vmem:[#allocation198_spill] sm:$0xff] %v10636_v21  ;;  %6869 = vmatpush3.bf16.msra.mxu0 %v10636_v21  ;;  %v912_v47 = vld [vmem:[#allocation14 + $0x70] sm:$0xff] }
 0x57d   :  { %6870 = vmatprep.subr.bf16.mxu0 %v12812_v14  ;;  %12819 = vst [vmem:[#allocation199_spill] sm:$0xff] %v10640_v0  ;;  %v10644_v31 = vpack.c.bf16 %v913_v40, %v912_v47  ;;  %v12821_v40 = vld [vmem:[#allocation126_spill] sm:$0xff] }
 0x57e   :  { %9106 = vtanh.f32 %v10631_v29 }
 0x57f   :  { %12820 = vst [vmem:[#allocation200_spill] sm:$0xff] %v10644_v31 }
 0x580   :  { %6872 = vmatpush3.bf16.msra.mxu0 %v10640_v0 }
 0x581   :  { %6873 = vmatprep.subr.bf16.mxu0 %v12812_v14 }
 0x584   :  { %6875 = vmatpush3.bf16.msra.mxu0 %v10644_v31 }
 0x585   :  { %6909 = vmatprep.subr.bf16.mxu0 %v9888_v34 }
 0x588   :  { %v9107_v49 = vpop.eup %9106 }
 0x589   :  { %v10647_v7 = vmul.f32 %v9107_v49, %v9105_v2 }
 0x58b   :  { %2108 = vmatmul.mubr.f32.vlgmr.msra.gmra.mrb[16].mxu1 %v10647_v7 }
 0x58c   :  { %6943 = vmatpush1.bf16.msra.mxu1 %v10059_v46 }
 0x58d   :  { %6945 = vmatprep.subr.bf16.mxu1 %v12692_v58 }
 0x590   :  { %6947 = vmatpush1.bf16.msra.mxu1 %v12694_v30  ;;  %v12827_v30 = vld [vmem:[#allocation92_spill] sm:$0xff] }
 0x591   :  { %6949 = vmatprep.subr.bf16.mxu1 %v12696_v1  ;;  %v12822_v1 = vld [vmem:[#allocation84_spill] sm:$0xff] }
 0x594   :  { %6951 = vmatpush1.bf16.msra.mxu1 %v12698_v33 }
 0x595   :  { %6953 = vmatprep.subr.bf16.mxu1 %v12700_v17  ;;  %v12825_v17 = vld [vmem:[#allocation90_spill] sm:$0xff] }
 0x598   :  { %6955 = vmatpush1.bf16.msra.mxu1 %v12704_v35  ;;  %v12823_v35 = vld [vmem:[#allocation86_spill] sm:$0xff] }
 0x599   :  { %6957 = vmatprep.subr.bf16.mxu1 %v12708_v8  ;;  %v12824_v8 = vld [vmem:[#allocation127_spill] sm:$0xff] }
 0x59c   :  { %6959 = vmatpush1.bf16.msra.mxu1 %v12710_v28 }
 0x59d   :  { %v1685_v10 = vpop.f32.mrb[12].mxu0  ;;  %v1756_v51 = vpop.f32.mrb[12].mxu1  ;;  %6961 = vmatprep.subr.bf16.mxu1 %v12712_v36 }
 0x59e   :  { %v1686_v43 = vadd.f32 %v1685_v10, %v10317_v20  ;;  %v1687_v55 = vpop.f32.mrb[13].mxu0  ;;  %v1758_v47 = vpop.f32.mrb[13].mxu1  ;;  %v1757_v28 = vadd.f32 %v1756_v51, %v12824_v8  ;;  %v12826_v10 = vld [vmem:[#allocation128_spill] sm:$0xff] }
 0x59f   :  { %v1688_v2 = vadd.f32 %v1687_v55, %v12821_v40  ;;  %v1759_v20 = vadd.f32 %v1758_v47, %v12826_v10  ;;  %v12828_v55 = vld [vmem:[#allocation94_spill] sm:$0xff]  ;;  %v12831_v8 = vld [vmem:[#allocation100_spill] sm:$0xff] }
 0x5a0   :  { %v5584_v49 = vmul.f32 -1.442695, %v1686_v43  ;;  %6963 = vmatpush1.bf16.msra.mxu1 %v12822_v1  ;;  %v5586_v36 = vmul.f32 -1.442695, %v1757_v28  ;;  %v12832_v47 = vld [vmem:[#allocation102_spill] sm:$0xff]  ;;  %v12833_v10 = vld [vmem:[#allocation104_spill] sm:$0xff] }
 0x5a1   :  { %v5585_v33 = vmul.f32 -1.442695, %v1688_v2  ;;  %6965 = vmatprep.subr.bf16.mxu1 %v12823_v35  ;;  %v12834_v28 = vld [vmem:[#allocation106_spill] sm:$0xff] }
 0x5a2   :  { %9108 = vpow2.f32 %v5584_v49  ;;  %v12829_v49 = vld [vmem:[#allocation96_spill] sm:$0xff] }
 0x5a3   :  { %9110 = vpow2.f32 %v5585_v33  ;;  %v12830_v33 = vld [vmem:[#allocation98_spill] sm:$0xff] }
 0x5a4   :  { %6967 = vmatpush1.bf16.msra.mxu1 %v12722_v38  ;;  %9112 = vtanh.f32 %v1759_v20 }
 0x5a5   :  { %6969 = vmatprep.subr.bf16.mxu1 %v12825_v17  ;;  %9114 = vpow2.f32 %v5586_v36 }
 0x5a8   :  { %6971 = vmatpush1.bf16.msra.mxu1 %v12827_v30 }
 0x5a9   :  { %6973 = vmatprep.subr.bf16.mxu1 %v12828_v55 }
 0x5ac   :  { %v9109_v43 = vpop.eup %9108  ;;  %6975 = vmatpush1.bf16.msra.mxu1 %v12829_v49 }
 0x5ad   :  { %v1770_v2 = vadd.f32 1.0, %v9109_v43  ;;  %v9111_v35 = vpop.eup %9110  ;;  %6977 = vmatprep.subr.bf16.mxu1 %v12830_v33 }
 0x5ae   :  { %v1771_v51 = vadd.f32 1.0, %v9111_v35  ;;  %v9113_v55 = vpop.eup %9112 }
 0x5af   :  { %9116 = vrcp.f32 %v1770_v2  ;;  %v9115_v43 = vpop.eup %9114 }
 0x5b0   :  { %9118 = vrcp.f32 %v1771_v51  ;;  %6979 = vmatpush1.bf16.msra.mxu1 %v12831_v8  ;;  %v1772_v2 = vadd.f32 1.0, %v9115_v43 }
 0x5b1   :  { %6981 = vmatprep.subr.bf16.mxu1 %v12832_v47  ;;  %v12836_v47 = vld [vmem:[#allocation114_spill] sm:$0xff] }
 0x5b2   :  { %9120 = vrcp.f32 %v1772_v2  ;;  %v12843_v2 = vld [vmem:[#allocation133_spill] sm:$0xff] }
 0x5b4   :  { %6983 = vmatpush1.bf16.msra.mxu1 %v12833_v10  ;;  %v12838_v10 = vld [vmem:[#allocation118_spill] sm:$0xff] }
 0x5b5   :  { %6985 = vmatprep.subr.bf16.mxu1 %v12834_v28  ;;  %v12837_v28 = vld [vmem:[#allocation116_spill] sm:$0xff] }
 0x5b8   :  { %6987 = vmatpush1.bf16.msra.mxu1 %v12742_v12  ;;  %v12854_v12 = vld [vmem:[#allocation147_spill] sm:$0xff] }
 0x5b9   :  { %v9117_v20 = vpop.eup %9116  ;;  %6989 = vmatprep.subr.bf16.mxu1 %v12744_v44  ;;  %v12841_v44 = vld [vmem:[#allocation124_spill] sm:$0xff] }
 0x5ba   :  { %v1781_v49 = vmul.f32 %v9117_v20, %v9113_v55  ;;  %v9119_v36 = vpop.eup %9118  ;;  %v12839_v55 = vld [vmem:[#allocation120_spill] sm:$0xff]  ;;  %v12840_v20 = vld [vmem:[#allocation122_spill] sm:$0xff] }
 0x5bb   :  { %v1780_v35 = vmul.f32 %v9119_v36, %v10368_v42  ;;  %v12842_v36 = vld [vmem:[#allocation131_spill] sm:$0xff] }
 0x5bc   :  { %6991 = vmatpush1.bf16.msra.mxu1 %v12746_v13  ;;  %v9121_v43 = vpop.eup %9120 }
 0x5bd   :  { %v10681_v51 = vadd.f32 %v1781_v49, %v1780_v35  ;;  %6993 = vmatprep.subr.bf16.mxu1 %v12836_v47  ;;  %v12844_v35 = vld [vmem:[#allocation135_spill] sm:$0xff] }
 0x5bf   :  { %12835 = vst [vmem:[#allocation201_spill] sm:$0xff] %v10681_v51  ;;  %9122 = vtanh.f32 %v10681_v51 }
 0x5c0   :  { %6995 = vmatpush1.bf16.msra.mxu1 %v12837_v28 }
 0x5c1   :  { %6997 = vmatprep.subr.bf16.mxu1 %v12838_v10  ;;  %v12850_v10 = vld [vmem:[#allocation58_spill] sm:$0xff] }
 0x5c4   :  { %6999 = vmatpush1.bf16.msra.mxu1 %v12839_v55  ;;  %v12845_v55 = vld [vmem:[#allocation137_spill] sm:$0xff] }
 0x5c5   :  { %7001 = vmatprep.subr.bf16.mxu1 %v12840_v20  ;;  %v12846_v20 = vld [vmem:[#allocation139_spill] sm:$0xff] }
 0x5c8   :  { %7003 = vmatpush1.bf16.msra.mxu1 %v12841_v44  ;;  %v897_v44 = vld [vmem:[%s12150_s11] sm:$0xf] }
 0x5c9   :  { %v9123_v42 = vpop.eup %9122  ;;  %7069 = vmatprep.subr.bf16.mxu1 %v10383_v45  ;;  %v10708_v28 = vrot.slane %v897_v44, %v12850_v10  ;;  %v12856_v10 = vld [vmem:[#allocation60_spill] sm:$0xff] }
 0x5ca   :  { %v10691_v49 = vmul.f32 %v9123_v42, %v9121_v43  ;;  %v12847_v43 = vld [vmem:[#allocation141_spill] sm:$0xff]  ;;  %v10717_v33 = vrot.slane %v897_v44, %v12856_v10  ;;  %v12864_v10 = vld [vmem:[#allocation159_spill] sm:$0xff] }
 0x5cb   :  { %v12848_v42 = vld [vmem:[#allocation57_spill] sm:$0xff]  ;;  %12851 = vst [vmem:[#allocation58_spill] sm:$0xff] %v10708_v28 }
 0x5cc   :  { %2277 = vmatprep.mubr.f32.mxu1 %v10691_v49  ;;  %v10705_v45 = vrot.slane %v897_v44, %v12848_v42  ;;  %v12855_v42 = vld [vmem:[#allocation149_spill] sm:$0xff]  ;;  %12857 = vst [vmem:[#allocation60_spill] sm:$0xff] %v10717_v33 }
 0x5cd   :  { %2278 = vmatmul.mubr.f32.vlgmr.msra.gmra.mrb[18].mxu1 %v10647_v7 }
 0x5ce   :  { %7071 = vmatpush1.bf16.msra.mxu1 %v12842_v36  ;;  %12849 = vst [vmem:[#allocation57_spill] sm:$0xff] %v10705_v45  ;;  %v12852_v36 = vld [vmem:[#allocation143_spill] sm:$0xff] }
 0x5cf   :  { %7073 = vmatprep.subr.bf16.mxu1 %v12843_v2  ;;  %v12853_v2 = vld [vmem:[#allocation145_spill] sm:$0xff] }
 0x5d2   :  { %7075 = vmatpush1.bf16.msra.mxu1 %v12844_v35 }
 0x5d3   :  { %7077 = vmatprep.subr.bf16.mxu1 %v12845_v55 }
 0x5d6   :  { %7079 = vmatpush1.bf16.msra.mxu1 %v12846_v20 }
 0x5d7   :  { %7081 = vmatprep.subr.bf16.mxu1 %v12847_v43 }
 0x5da   :  { %7083 = vmatpush1.bf16.msra.mxu1 %v12852_v36  ;;  %v12858_v36 = vld [vmem:[#allocation151_spill] sm:$0xff] }
 0x5db   :  { %7085 = vmatprep.subr.bf16.mxu1 %v12853_v2  ;;  %v12859_v2 = vld [vmem:[#allocation153_spill] sm:$0xff] }
 0x5dd   :  { %v1872_v35 = vpop.f32.mrb[14].mxu0  ;;  %v1943_v55 = vpop.f32.mrb[14].mxu1 }
 0x5de   :  { %v1873_v47 = vadd.f32 %v1872_v35, %v10705_v45  ;;  %v1874_v13 = vpop.f32.mrb[15].mxu0  ;;  %v1945_v51 = vpop.f32.mrb[15].mxu1  ;;  %7087 = vmatpush1.bf16.msra.mxu1 %v12854_v12  ;;  %v12860_v35 = vld [vmem:[#allocation62_spill] sm:$0xff]  ;;  %v12865_v12 = vld [vmem:[#allocation161_spill] sm:$0xff] }
 0x5df   :  { %v1875_v20 = vadd.f32 %v1874_v13, %v10708_v28  ;;  %7089 = vmatprep.subr.bf16.mxu1 %v12855_v42  ;;  %v10722_v45 = vrot.slane %v897_v44, %v12860_v35  ;;  %v1944_v13 = vadd.f32 %v1943_v55, %v10717_v33  ;;  %v12862_v28 = vld [vmem:[#allocation155_spill] sm:$0xff]  ;;  %v12867_v55 = vld [vmem:[#allocation165_spill] sm:$0xff] }
 0x5e0   :  { %v5587_v43 = vmul.f32 -1.442695, %v1873_v47  ;;  %v12863_v47 = vld [vmem:[#allocation157_spill] sm:$0xff]  ;;  %v12866_v35 = vld [vmem:[#allocation163_spill] sm:$0xff] }
 0x5e1   :  { %v5588_v8 = vmul.f32 -1.442695, %v1875_v20  ;;  %12861 = vst [vmem:[#allocation62_spill] sm:$0xff] %v10722_v45  ;;  %v1946_v20 = vadd.f32 %v1945_v51, %v10722_v45  ;;  %v5589_v42 = vmul.f32 -1.442695, %v1944_v13  ;;  %v12868_v33 = vld [vmem:[#allocation167_spill] sm:$0xff] }
 0x5e2   :  { %9124 = vpow2.f32 %v5587_v43  ;;  %7091 = vmatpush1.bf16.msra.mxu1 %v12858_v36  ;;  %v12869_v51 = vld [vmem:[#allocation169_spill] sm:$0xff]  ;;  %v12870_v45 = vld [vmem:[#allocation171_spill] sm:$0xff] }
 0x5e3   :  { %9126 = vpow2.f32 %v5588_v8  ;;  %7093 = vmatprep.subr.bf16.mxu1 %v12859_v2 }
 0x5e4   :  { %9128 = vtanh.f32 %v1946_v20 }
 0x5e5   :  { %9130 = vpow2.f32 %v5589_v42 }
 0x5e6   :  { %7095 = vmatpush1.bf16.msra.mxu1 %v12862_v28 }
 0x5e7   :  { %7097 = vmatprep.subr.bf16.mxu1 %v12863_v47  ;;  %v12873_v47 = vld [vmem:[#allocation177_spill] sm:$0xff] }
 0x5ea   :  { %7099 = vmatpush1.bf16.msra.mxu1 %v12864_v10 }
 0x5eb   :  { %7101 = vmatprep.subr.bf16.mxu1 %v12865_v12  ;;  %v12871_v12 = vld [vmem:[#allocation173_spill] sm:$0xff] }
 0x5ec   :  { %v9125_v43 = vpop.eup %9124 }
 0x5ed   :  { %v1957_v8 = vadd.f32 1.0, %v9125_v43  ;;  %v9127_v2 = vpop.eup %9126 }
 0x5ee   :  { %v1958_v44 = vadd.f32 1.0, %v9127_v2  ;;  %7103 = vmatpush1.bf16.msra.mxu1 %v12866_v35  ;;  %v9129_v13 = vpop.eup %9128  ;;  %v12872_v2 = vld [vmem:[#allocation175_spill] sm:$0xff] }
 0x5ef   :  { %9132 = vrcp.f32 %v1957_v8  ;;  %7105 = vmatprep.subr.bf16.mxu1 %v12867_v55  ;;  %v9131_v10 = vpop.eup %9130 }
 0x5f0   :  { %9134 = vrcp.f32 %v1958_v44  ;;  %v1959_v8 = vadd.f32 1.0, %v9131_v10 }
 0x5f2   :  { %7107 = vmatpush1.bf16.msra.mxu1 %v12868_v33  ;;  %9136 = vrcp.f32 %v1959_v8  ;;  %v12874_v33 = vld [vmem:[#allocation179_spill] sm:$0xff]  ;;  %v12878_v8 = vld [vmem:[#allocation32_spill] sm:$0xff] }
 0x5f3   :  { %7109 = vmatprep.subr.bf16.mxu1 %v12869_v51 }
 0x5f6   :  { %7111 = vmatpush1.bf16.msra.mxu1 %v12870_v45 }
 0x5f7   :  { %7113 = vmatprep.subr.bf16.mxu1 %v12871_v12 }
 0x5f9   :  { %v9133_v20 = vpop.eup %9132 }
 0x5fa   :  { %v1968_v43 = vmul.f32 %v9133_v20, %v9129_v13  ;;  %v9135_v42 = vpop.eup %9134  ;;  %7115 = vmatpush1.bf16.msra.mxu1 %v12872_v2  ;;  %v12875_v20 = vld [vmem:[#allocation26_spill] sm:$0xff] }
 0x5fb   :  { %v1967_v35 = vmul.f32 0.0, %v9135_v42  ;;  %7117 = vmatprep.subr.bf16.mxu1 %v12873_v47  ;;  %v12877_v42 = vld [vmem:[#allocation30_spill] sm:$0xff] }
 0x5fc   :  { %v9137_v10 = vpop.eup %9136 }
 0x5fd   :  { %v10738_v44 = vadd.f32 %v1968_v43, %v1967_v35  ;;  %v12876_v43 = vld [vmem:[#allocation28_spill] sm:$0xff] }
 0x5fe   :  { %7119 = vmatpush1.bf16.msra.mxu1 %v12874_v33 }
 0x5ff   :  { %9138 = vtanh.f32 %v10738_v44  ;;  %7121 = vmatprep.subr.bf16.mxu1 %v10547_v6 }
 0x602   :  { %7123 = vmatpush1.bf16.msra.mxu1 %v10553_v39 }
 0x603   :  { %7125 = vmatprep.subr.bf16.mxu1 %v10559_v18 }
 0x606   :  { %7127 = vmatpush1.bf16.msra.mxu1 %v10565_v62 }
 0x607   :  { %7129 = vmatprep.subr.bf16.mxu1 %v10571_v53 }
 0x609   :  { %v9139_v13 = vpop.eup %9138 }
 0x60a   :  { %7131 = vmatpush1.bf16.msra.mxu1 %v10577_v63  ;;  %v10748_v35 = vmul.f32 %v9139_v13, %v9137_v10  ;;  %v12879_v10 = vld [vmem:[#allocation34_spill] sm:$0xff]  ;;  %v12880_v13 = vld [vmem:[#allocation36_spill] sm:$0xff] }
 0x60b   :  { %7196 = vmatprep.subr.bf16.mxu1 %v12812_v14 }
 0x60c   :  { %5917 = vmatmul.mubr.f32.vlgmr.msra.gmra.mrb[16].mxu0 %v10748_v35  ;;  %2443 = vmatprep.mubr.f32.mxu1 %v10748_v35 }
 0x60d   :  { %6911 = vmatpush1.bf16.msra.mxu0 %v12875_v20  ;;  %2444 = vmatmul.mubr.f32.vlgmr.msra.gmra.mrb[20].mxu1 %v10691_v49 }
 0x60e   :  { %6913 = vmatprep.subr.bf16.mxu0 %v12876_v43  ;;  %2178 = vmatprep.mubr.f32.mxu0 %v12636_v59  ;;  %v12882_v43 = vld [vmem:[#allocation40_spill] sm:$0xff] }
 0x60f   :  { %7198 = vmatpush3.bf16.msra.mxu1 %v10612_v57  ;;  %5951 = vmatprep.mubr.msk.f32.mxu1 %vm9652_vm0, %v12636_v59  ;;  %v12881_v57 = vld [vmem:[#allocation38_spill] sm:$0xff] }
 0x610   :  { %7199 = vmatprep.subr.bf16.mxu1 %v12812_v14 }
 0x611   :  { %6915 = vmatpush1.bf16.msra.mxu0 %v12877_v42 }
 0x612   :  { %6917 = vmatprep.subr.bf16.mxu0 %v12878_v8  ;;  %v12883_v8 = vld [vmem:[#allocation42_spill] sm:$0xff] }
 0x613   :  { %7201 = vmatpush3.bf16.msra.mxu1 %v10616_v25  ;;  %v12884_v25 = vld [vmem:[#allocation44_spill] sm:$0xff] }
 0x614   :  { %7202 = vmatprep.subr.bf16.mxu1 %v12812_v14 }
 0x615   :  { %6919 = vmatpush1.bf16.msra.mxu0 %v12879_v10 }
 0x616   :  { %6921 = vmatprep.subr.bf16.mxu0 %v12880_v13  ;;  %v12885_v13 = vld [vmem:[#allocation46_spill] sm:$0xff] }
 0x617   :  { %7204 = vmatpush3.bf16.msra.mxu1 %v10620_v26  ;;  %v12886_v26 = vld [vmem:[#allocation48_spill] sm:$0xff] }
 0x618   :  { %7205 = vmatprep.subr.bf16.mxu1 %v12812_v14 }
 0x619   :  { %6923 = vmatpush1.bf16.msra.mxu0 %v12881_v57 }
 0x61a   :  { %6925 = vmatprep.subr.bf16.mxu0 %v12882_v43  ;;  %v12887_v43 = vld [vmem:[#allocation50_spill] sm:$0xff] }
 0x61b   :  { %7207 = vmatpush3.bf16.msra.mxu1 %v10624_v5  ;;  %v12888_v5 = vld [vmem:[#allocation52_spill] sm:$0xff] }
 0x61c   :  { %7208 = vmatprep.subr.bf16.mxu1 %v12812_v14 }
 0x61d   :  { %6927 = vmatpush1.bf16.msra.mxu0 %v12883_v8  ;;  %v12902_v8 = vld [vmem:[#allocation87_spill] sm:$0xff] }
 0x61e   :  { %6929 = vmatprep.subr.bf16.mxu0 %v12884_v25  ;;  %v12889_v25 = vld [vmem:[#allocation54_spill] sm:$0xff] }
 0x61f   :  { %7210 = vmatpush3.bf16.msra.mxu1 %v10629_v19  ;;  %v12890_v19 = vld [vmem:[#allocation56_spill] sm:$0xff] }
 0x620   :  { %7211 = vmatprep.subr.bf16.mxu1 %v12812_v14 }
 0x621   :  { %6931 = vmatpush1.bf16.msra.mxu0 %v12885_v13  ;;  %v12899_v13 = vld [vmem:[#allocation81_spill] sm:$0xff] }
 0x622   :  { %6933 = vmatprep.subr.bf16.mxu0 %v12886_v26  ;;  %v12895_v26 = vld [vmem:[#allocation73_spill] sm:$0xff] }
 0x623   :  { %7213 = vmatpush3.bf16.msra.mxu1 %v10636_v21  ;;  %v12891_v21 = vld [vmem:[#allocation65_spill] sm:$0xff] }
 0x624   :  { %7214 = vmatprep.subr.bf16.mxu1 %v12812_v14 }
 0x625   :  { %6935 = vmatpush1.bf16.msra.mxu0 %v12887_v43  ;;  %v12892_v43 = vld [vmem:[#allocation67_spill] sm:$0xff] }
 0x626   :  { %6937 = vmatprep.subr.bf16.mxu0 %v12888_v5  ;;  %v12893_v5 = vld [vmem:[#allocation69_spill] sm:$0xff] }
 0x627   :  { %7216 = vmatpush3.bf16.msra.mxu1 %v10640_v0  ;;  %v12894_v0 = vld [vmem:[#allocation71_spill] sm:$0xff] }
 0x628   :  { %7217 = vmatprep.subr.bf16.mxu1 %v12812_v14 }
 0x629   :  { %6939 = vmatpush1.bf16.msra.mxu0 %v12889_v25  ;;  %v12896_v25 = vld [vmem:[#allocation75_spill] sm:$0xff] }
 0x62a   :  { %7005 = vmatprep.subr.bf16.mxu0 %v12890_v19  ;;  %v12897_v19 = vld [vmem:[#allocation77_spill] sm:$0xff] }
 0x62b   :  { %7219 = vmatpush3.bf16.msra.mxu1 %v10644_v31  ;;  %v12898_v31 = vld [vmem:[#allocation79_spill] sm:$0xff] }
 0x62c   :  { %2179 = vmatmul.mubr.f32.vlgmr.msra.gmra.mrb[18].mxu0 %v10647_v7  ;;  %7253 = vmatprep.subr.bf16.mxu1 %v9888_v34  ;;  %v12900_v34 = vld [vmem:[#allocation83_spill] sm:$0xff] }
 0x62d   :  { %7007 = vmatpush1.bf16.msra.mxu0 %v12891_v21  ;;  %2348 = vmatprep.mubr.f32.mxu0 %v10691_v49  ;;  %v12901_v21 = vld [vmem:[#allocation85_spill] sm:$0xff] }
 0x62e   :  { %7009 = vmatprep.subr.bf16.mxu0 %v12892_v43  ;;  %v12903_v43 = vld [vmem:[#allocation89_spill] sm:$0xff] }
 0x631   :  { %7011 = vmatpush1.bf16.msra.mxu0 %v12893_v5  ;;  %v12904_v5 = vld [vmem:[#allocation91_spill] sm:$0xff] }
 0x632   :  { %7013 = vmatprep.subr.bf16.mxu0 %v12894_v0  ;;  %v12905_v0 = vld [vmem:[#allocation93_spill] sm:$0xff] }
 0x635   :  { %7015 = vmatpush1.bf16.msra.mxu0 %v12895_v26  ;;  %v12906_v26 = vld [vmem:[#allocation95_spill] sm:$0xff] }
 0x636   :  { %7017 = vmatprep.subr.bf16.mxu0 %v12896_v25  ;;  %v12907_v25 = vld [vmem:[#allocation97_spill] sm:$0xff] }
 0x639   :  { %7019 = vmatpush1.bf16.msra.mxu0 %v12897_v19  ;;  %v12908_v19 = vld [vmem:[#allocation99_spill] sm:$0xff] }
 0x63a   :  { %7021 = vmatprep.subr.bf16.mxu0 %v12898_v31  ;;  %v12909_v31 = vld [vmem:[#allocation101_spill] sm:$0xff] }
 0x63d   :  { %7023 = vmatpush1.bf16.msra.mxu0 %v12899_v13  ;;  %v12910_v13 = vld [vmem:[#allocation103_spill] sm:$0xff] }
 0x63e   :  { %7025 = vmatprep.subr.bf16.mxu0 %v12900_v34  ;;  %v12911_v34 = vld [vmem:[#allocation105_spill] sm:$0xff] }
 0x641   :  { %7027 = vmatpush1.bf16.msra.mxu0 %v12901_v21  ;;  %v12912_v21 = vld [vmem:[#allocation107_spill] sm:$0xff] }
 0x642   :  { %7029 = vmatprep.subr.bf16.mxu0 %v12902_v8  ;;  %v12913_v8 = vld [vmem:[#allocation109_spill] sm:$0xff] }
 0x645   :  { %7031 = vmatpush1.bf16.msra.mxu0 %v12903_v43  ;;  %v12914_v43 = vld [vmem:[#allocation111_spill] sm:$0xff] }
 0x646   :  { %7033 = vmatprep.subr.bf16.mxu0 %v12904_v5  ;;  %v12915_v5 = vld [vmem:[#allocation113_spill] sm:$0xff] }
 0x649   :  { %7035 = vmatpush1.bf16.msra.mxu0 %v12905_v0  ;;  %v12916_v0 = vld [vmem:[#allocation115_spill] sm:$0xff] }
 0x64a   :  { %7037 = vmatprep.subr.bf16.mxu0 %v12906_v26 }
 0x64d   :  { %7039 = vmatpush1.bf16.msra.mxu0 %v12907_v25 }
 0x64e   :  { %7041 = vmatprep.subr.bf16.mxu0 %v12908_v19  ;;  %v12917_v19 = vld [vmem:[#allocation117_spill] sm:$0xff] }
 0x651   :  { %7043 = vmatpush1.bf16.msra.mxu0 %v12909_v31  ;;  %v12918_v31 = vld [vmem:[#allocation119_spill] sm:$0xff] }
 0x652   :  { %7045 = vmatprep.subr.bf16.mxu0 %v12910_v13  ;;  %v12919_v13 = vld [vmem:[#allocation121_spill] sm:$0xff] }
 0x655   :  { %7047 = vmatpush1.bf16.msra.mxu0 %v12911_v34  ;;  %v12920_v34 = vld [vmem:[#allocation123_spill] sm:$0xff] }
 0x656   :  { %7049 = vmatprep.subr.bf16.mxu0 %v12912_v21  ;;  %v12921_v21 = vld [vmem:[#allocation125_spill] sm:$0xff] }
 0x659   :  { %7051 = vmatpush1.bf16.msra.mxu0 %v12913_v8  ;;  %v12922_v8 = vld [vmem:[#allocation130_spill] sm:$0xff] }
 0x65a   :  { %7053 = vmatprep.subr.bf16.mxu0 %v12914_v43  ;;  %v12925_v43 = vld [vmem:[#allocation136_spill] sm:$0xff] }
 0x65d   :  { %7055 = vmatpush1.bf16.msra.mxu0 %v12915_v5  ;;  %v12923_v5 = vld [vmem:[#allocation132_spill] sm:$0xff] }
 0x65e   :  { %7057 = vmatprep.subr.bf16.mxu0 %v12916_v0  ;;  %v10817_v26 = vpop.f32.mrb[16].mxu1  ;;  %v12924_v0 = vld [vmem:[#allocation134_spill] sm:$0xff] }
 0x65f   :  { %v10819_v25 = vpop.f32.mrb[17].mxu1 }
 0x661   :  { %7059 = vmatpush1.bf16.msra.mxu0 %v12917_v19  ;;  %v12926_v19 = vld [vmem:[#allocation138_spill] sm:$0xff] }
 0x662   :  { %7061 = vmatprep.subr.bf16.mxu0 %v12918_v31  ;;  %v12927_v31 = vld [vmem:[#allocation140_spill] sm:$0xff] }
 0x665   :  { %7063 = vmatpush1.bf16.msra.mxu0 %v12919_v13  ;;  %v12928_v13 = vld [vmem:[#allocation142_spill] sm:$0xff] }
 0x666   :  { %7065 = vmatprep.subr.bf16.mxu0 %v12920_v34  ;;  %v12929_v34 = vld [vmem:[#allocation144_spill] sm:$0xff] }
 0x669   :  { %7067 = vmatpush1.bf16.msra.mxu0 %v12921_v21  ;;  %v12930_v21 = vld [vmem:[#allocation146_spill] sm:$0xff] }
 0x66a   :  { %7133 = vmatprep.subr.bf16.mxu0 %v12922_v8  ;;  %v12931_v8 = vld [vmem:[#allocation148_spill] sm:$0xff] }
 0x66c   :  { %2349 = vmatmul.mubr.f32.vlgmr.msra.gmra.mrb[20].mxu0 %v10647_v7  ;;  %v12932_v7 = vld [vmem:[#allocation150_spill] sm:$0xff] }
 0x66d   :  { %7135 = vmatpush1.bf16.msra.mxu0 %v12923_v5  ;;  %2514 = vmatprep.mubr.f32.mxu0 %v10748_v35  ;;  %v12933_v5 = vld [vmem:[#allocation152_spill] sm:$0xff]  ;;  %v12934_v35 = vld [vmem:[#allocation154_spill] sm:$0xff] }
 0x66e   :  { %7137 = vmatprep.subr.bf16.mxu0 %v12924_v0  ;;  %v12935_v0 = vld [vmem:[#allocation156_spill] sm:$0xff] }
 0x671   :  { %7139 = vmatpush1.bf16.msra.mxu0 %v12925_v43  ;;  %v12936_v43 = vld [vmem:[#allocation158_spill] sm:$0xff] }
 0x672   :  { %7141 = vmatprep.subr.bf16.mxu0 %v12926_v19  ;;  %v12937_v19 = vld [vmem:[#allocation160_spill] sm:$0xff] }
 0x675   :  { %7143 = vmatpush1.bf16.msra.mxu0 %v12927_v31  ;;  %v12938_v31 = vld [vmem:[#allocation162_spill] sm:$0xff] }
 0x676   :  { %7145 = vmatprep.subr.bf16.mxu0 %v12928_v13  ;;  %v12939_v13 = vld [vmem:[#allocation164_spill] sm:$0xff] }
 0x679   :  { %7147 = vmatpush1.bf16.msra.mxu0 %v12929_v34  ;;  %v12940_v34 = vld [vmem:[#allocation166_spill] sm:$0xff] }
 0x67a   :  { %7149 = vmatprep.subr.bf16.mxu0 %v12930_v21  ;;  %v12941_v21 = vld [vmem:[#allocation168_spill] sm:$0xff] }
 0x67d   :  { %7151 = vmatpush1.bf16.msra.mxu0 %v12931_v8  ;;  %v12942_v8 = vld [vmem:[#allocation170_spill] sm:$0xff] }
 0x67e   :  { %7153 = vmatprep.subr.bf16.mxu0 %v12932_v7  ;;  %v12943_v7 = vld [vmem:[#allocation172_spill] sm:$0xff] }
 0x681   :  { %7155 = vmatpush1.bf16.msra.mxu0 %v12933_v5  ;;  %v12944_v5 = vld [vmem:[#allocation174_spill] sm:$0xff] }
 0x682   :  { %7157 = vmatprep.subr.bf16.mxu0 %v12934_v35  ;;  %v12945_v35 = vld [vmem:[#allocation176_spill] sm:$0xff] }
 0x685   :  { %7159 = vmatpush1.bf16.msra.mxu0 %v12935_v0  ;;  %v12946_v0 = vld [vmem:[#allocation178_spill] sm:$0xff] }
 0x686   :  { %7161 = vmatprep.subr.bf16.mxu0 %v12936_v43  ;;  %v12947_v43 = vld [vmem:[#allocation180_spill] sm:$0xff] }
 0x689   :  { %7163 = vmatpush1.bf16.msra.mxu0 %v12937_v19 }
 0x68a   :  { %7165 = vmatprep.subr.bf16.mxu0 %v12938_v31 }
 0x68d   :  { %7167 = vmatpush1.bf16.msra.mxu0 %v12939_v13 }
 0x68e   :  { %7169 = vmatprep.subr.bf16.mxu0 %v12940_v34 }
 0x691   :  { %7171 = vmatpush1.bf16.msra.mxu0 %v12941_v21 }
 0x692   :  { %7173 = vmatprep.subr.bf16.mxu0 %v12942_v8 }
 0x695   :  { %7175 = vmatpush1.bf16.msra.mxu0 %v12943_v7 }
 0x696   :  { %7177 = vmatprep.subr.bf16.mxu0 %v12944_v5 }
 0x699   :  { %7179 = vmatpush1.bf16.msra.mxu0 %v12945_v35 }
 0x69a   :  { %7181 = vmatprep.subr.bf16.mxu0 %v12946_v0 }
 0x69d   :  { %7183 = vmatpush1.bf16.msra.mxu0 %v12947_v43 }
 0x69e   :  { %7185 = vmatprep.subr.bf16.mxu0 %v10549_v9 }
 0x6a0   :  { %v10855_v31 = vpop.f32.mrb[18].mxu1 }
 0x6a1   :  { %7187 = vmatpush1.bf16.msra.mxu0 %v10555_v54  ;;  %v10858_v34 = vpop.f32.mrb[19].mxu1 }
 0x6a2   :  { %7189 = vmatprep.subr.bf16.mxu0 %v10561_v24 }
 0x6a5   :  { %7191 = vmatpush1.bf16.msra.mxu0 %v10567_v16 }
 0x6a6   :  { %7193 = vmatprep.subr.bf16.mxu0 %v10573_v4 }
 0x6a9   :  { %7195 = vmatpush1.bf16.msra.mxu0 %v10579_v60 }
 0x6aa   :  { %7221 = vmatprep.subr.bf16.mxu0 %v9886_v32 }
 0x6ac   :  { %2515 = vmatmul.mubr.f32.vlgmr.msra.gmra.mrb[22].mxu0 %v10691_v49  ;;  %v12948_v49 = vld [vmem:[#allocation45_spill] sm:$0xff] }
 0x6ad   :  { %7223 = vmatpush1.bf16.msra.mxu0 %v9895_v48  ;;  %2680 = vmatprep.mubr.f32.mxu0 %v12636_v59  ;;  %v12949_v48 = vld [vmem:[#allocation47_spill] sm:$0xff] }
 0x6ae   :  { %7225 = vmatprep.subr.bf16.mxu0 %v9899_v52  ;;  %v12950_v52 = vld [vmem:[#allocation49_spill] sm:$0xff] }
 0x6b1   :  { %7227 = vmatpush1.bf16.msra.mxu0 %v9905_v61  ;;  %v12951_v61 = vld [vmem:[#allocation51_spill] sm:$0xff] }
 0x6b2   :  { %7229 = vmatprep.subr.bf16.mxu0 %v9911_v3  ;;  %v12952_v3 = vld [vmem:[#allocation53_spill] sm:$0xff] }
 0x6b5   :  { %7231 = vmatpush1.bf16.msra.mxu0 %v9919_v11  ;;  %v12953_v11 = vld [vmem:[#allocation55_spill] sm:$0xff] }
 0x6b6   :  { %7233 = vmatprep.subr.bf16.mxu0 %v9925_v15 }
 0x6b9   :  { %7235 = vmatpush1.bf16.msra.mxu0 %v9931_v23  ;;  %v9428_v23 = vld [vmem:[#allocation2] sm:$0xff] }
 0x6ba   :  { %7237 = vmatprep.subr.bf16.mxu0 %v9937_v27  ;;  %v5571_v27 = vld [vmem:[%s12152_s13] ss:$0 sm:$0xff]  ;;  %s9654_s13 = smov [#allocation16]  }
 0x6bb   :  { %s5553_s5 = sshll.u32 %s9654_s13, 4  ;;  %s5554_s5 = int_to_ptr.vmem [resolvable:$true] %s5553_s5 }
 0x6bc   :  { %s9605_s22 = scalar_lea.vmem %s5554_s5, 1024  ;;  %p9610_p9 = scmp.lt.s32.totalorder %s5554_s5, %s5554_s5 }
 0x6bd   :  { %7239 = vmatpush1.bf16.msra.mxu0 %v9943_v37  ;;  %v10886_v37 = vadd.f32 %v9428_v23, %v5571_v27  ;;  %p9606_p8 = scmp.ne.s32.totalorder %s5554_s5, %s9605_s22  ;;  %p9611_p10 = scmp.lt.s32.totalorder %s9605_s22, %s9605_s22 }
 0x6be   :  { %7241 = vmatprep.subr.bf16.mxu0 %v9949_v41 }
 0x6bf   :  { %12954 = vst [vmem:[#allocation165_spill] sm:$0xff] %v10886_v37  ;;  %p9612_p11 = por %p9611_p10, %p9610_p9 }
 0x6c1   :  { %7243 = vmatpush1.bf16.msra.mxu0 %v12948_v49  ;;  %p9613_p12 = pnand %p9612_p11, %p9606_p8 }
 0x6c2   :  { %7245 = vmatprep.subr.bf16.mxu0 %v12949_v48 }
 0x6c5   :  { %7247 = vmatpush1.bf16.msra.mxu0 %v12950_v52 }
 0x6c6   :  { %7249 = vmatprep.subr.bf16.mxu0 %v12951_v61 }
 0x6c9   :  { %7251 = vmatpush1.bf16.msra.mxu0 %v12952_v3  ;;  %v2186_v3 = vadd.f32 %v10819_v25, %v10042_v56 }
 0x6ca   :  { %7285 = vmatprep.subr.bf16.mxu0 %v12953_v11  ;;  %v2185_v11 = vadd.f32 %v10817_v26, %v10038_v50 }
 0x6cb   :  { %v5591_v61 = vmul.f32 -1.442695, %v2186_v3 }
 0x6cc   :  { %v5590_v32 = vmul.f32 -1.442695, %v2185_v11 }
 0x6cd   :  { %9140 = vpow2.f32 %v5591_v61 }
 0x6ce   :  { %9142 = vpow2.f32 %v5590_v32 }
 0x6d7   :  { %v9141_v23 = vpop.eup %9140 }
 0x6d8   :  { %v9143_v27 = vpop.eup %9142  ;;  %v2199_v60 = vadd.f32 1.0, %v9141_v23 }
 0x6da   :  { %9144 = vrcp.f32 %v2199_v60 }
 0x6df   :  { %v2038_v41 = vpop.f32.mrb[16].mxu0 }
 0x6e0   :  { %v2039_v49 = vadd.f32 %v2038_v41, %v10886_v37  ;;  %v5918_v15 = vpop.f32.mrb[17].mxu0  ;;  %v10889_v48 = vpop.f32.mrb[20].mxu1  ;;  %v2198_v41 = vadd.f32 1.0, %v9143_v27 }
 0x6e1   :  { %v10891_v52 = vpop.f32.mrb[21].mxu1 }
 0x6e2   :  { %2042 = vst [vmem:[#allocation16] sm:$0xff] %v2039_v49  ;;  %v12955_v49 = vld [vmem:[#allocation64_spill] sm:$0xff]  ;;  %9146 = vrcp.f32 %v2198_v41  ;;  %v12959_v41 = vld [vmem:[#allocation66_spill] sm:$0xff] }
 0x6e4   :  { %v9145_v26 = vpop.eup %9144 }
 0x6e5   :  { %v2208_v32 = vmul.f32 %v9145_v26, %v10631_v29  ;;  %v12957_v29 = vld [vmem:[#allocation70_spill] sm:$0xff] }
 0x6e6   :  { %v12960_v26 = vld [vmem:[#allocation74_spill] sm:$0xff] }
 0x6ec   :  { %v9147_v3 = vpop.eup %9146 }
 0x6ff   :  { %v2180_v15 = vpop.f32.mrb[18].mxu0 }
 0x700   :  { %v2187_v37 = vadd.f32 %v2180_v15, %v10050_v22  ;;  %v2182_v4 = vpop.f32.mrb[19].mxu0 }
 0x701   :  { %v2188_v16 = vadd.f32 %v2182_v4, %v12955_v49 }
 0x702   :  { %v5592_v25 = vmul.f32 -1.442695, %v2187_v37  ;;  %v12956_v37 = vld [vmem:[#allocation68_spill] sm:$0xff] }
 0x703   :  { %9148 = vtanh.f32 %v2188_v16  ;;  %v12958_v16 = vld [vmem:[#allocation72_spill] sm:$0xff] }
 0x704   :  { %9150 = vpow2.f32 %v5592_v25  ;;  %v2280_v25 = vadd.f32 %v10855_v31, %v12959_v41 }
 0x70d   :  { %v9149_v11 = vpop.eup %9148 }
 0x70e   :  { %v9151_v61 = vpop.eup %9150  ;;  %v2209_v50 = vmul.f32 %v9149_v11, %v9147_v3  ;;  %v12961_v11 = vld [vmem:[#allocation76_spill] sm:$0xff] }
 0x70f   :  { %v2200_v23 = vadd.f32 1.0, %v9151_v61  ;;  %v5593_v61 = vmul.f32 -1.442695, %v2280_v25  ;;  %v12966_v25 = vld [vmem:[#allocation94_spill] sm:$0xff] }
 0x710   :  { %v10900_v27 = vadd.f32 %v2209_v50, %v2208_v32  ;;  %v2282_v50 = vadd.f32 %v10858_v34, %v12821_v40  ;;  %v12962_v32 = vld [vmem:[#allocation78_spill] sm:$0xff] }
 0x711   :  { %9152 = vrcp.f32 %v2200_v23  ;;  %v12963_v23 = vld [vmem:[#allocation80_spill] sm:$0xff]  ;;  %v12965_v34 = vld [vmem:[#allocation86_spill] sm:$0xff] }
 0x712   :  { %9154 = vtanh.f32 %v10900_v27  ;;  %v5594_v3 = vmul.f32 -1.442695, %v2282_v50 }
 0x714   :  { %9156 = vpow2.f32 %v5594_v3 }
 0x715   :  { %9158 = vpow2.f32 %v5593_v61  ;;  %v12967_v61 = vld [vmem:[#allocation127_spill] sm:$0xff] }
 0x71b   :  { %v9153_v60 = vpop.eup %9152 }
 0x71c   :  { %v9155_v15 = vpop.eup %9154 }
 0x71d   :  { %v10903_v4 = vmul.f32 %v9155_v15, %v9153_v60  ;;  %v12964_v60 = vld [vmem:[#allocation82_spill] sm:$0xff] }
 0x71e   :  { %v9157_v31 = vpop.eup %9156 }
 0x71f   :  { %2681 = vmatmul.mubr.f32.vlgmr.msra.gmra.mrb[24].mxu0 %v10903_v4  ;;  %v9159_v15 = vpop.eup %9158  ;;  %v2365_v50 = vadd.f32 1.0, %v9157_v31  ;;  %v12972_v31 = vld [vmem:[#allocation102_spill] sm:$0xff] }
 0x720   :  { %7287 = vmatpush1.bf16.msra.mxu0 %v10059_v46  ;;  %v2364_v3 = vadd.f32 1.0, %v9159_v15  ;;  %v12973_v15 = vld [vmem:[#allocation104_spill] sm:$0xff] }
 0x721   :  { %7289 = vmatprep.subr.bf16.mxu0 %v12692_v58  ;;  %9160 = vrcp.f32 %v2365_v50 }
 0x722   :  { %9162 = vrcp.f32 %v2364_v3  ;;  %v12977_v3 = vld [vmem:[#allocation201_spill] sm:$0xff] }
 0x724   :  { %7291 = vmatpush1.bf16.msra.mxu0 %v12956_v37 }
 0x725   :  { %7293 = vmatprep.subr.bf16.mxu0 %v12957_v29 }
 0x728   :  { %7295 = vmatpush1.bf16.msra.mxu0 %v12958_v16 }
 0x729   :  { %7297 = vmatprep.subr.bf16.mxu0 %v12960_v26 }
 0x72c   :  { %7299 = vmatpush1.bf16.msra.mxu0 %v12961_v11  ;;  %v12968_v11 = vld [vmem:[#allocation96_spill] sm:$0xff] }
 0x72d   :  { %7301 = vmatprep.subr.bf16.mxu0 %v12962_v32 }
 0x730   :  { %7303 = vmatpush1.bf16.msra.mxu0 %v12963_v23 }
 0x731   :  { %7305 = vmatprep.subr.bf16.mxu0 %v12964_v60 }
 0x734   :  { %7307 = vmatpush1.bf16.msra.mxu0 %v12822_v1 }
 0x735   :  { %7309 = vmatprep.subr.bf16.mxu0 %v12965_v34  ;;  %v12969_v34 = vld [vmem:[#allocation128_spill] sm:$0xff] }
 0x738   :  { %7311 = vmatpush1.bf16.msra.mxu0 %v12722_v38  ;;  %v12970_v38 = vld [vmem:[#allocation98_spill] sm:$0xff] }
 0x739   :  { %7313 = vmatprep.subr.bf16.mxu0 %v12825_v17 }
 0x73c   :  { %7315 = vmatpush1.bf16.msra.mxu0 %v12827_v30  ;;  %v12971_v30 = vld [vmem:[#allocation100_spill] sm:$0xff] }
 0x73d   :  { %7317 = vmatprep.subr.bf16.mxu0 %v12966_v25  ;;  %v12974_v25 = vld [vmem:[#allocation106_spill] sm:$0xff] }
 0x73f   :  { %v2350_v23 = vpop.f32.mrb[20].mxu0 }
 0x740   :  { %v2351_v32 = vadd.f32 %v2350_v23, %v12967_v61  ;;  %v2352_v60 = vpop.f32.mrb[21].mxu0  ;;  %7319 = vmatpush1.bf16.msra.mxu0 %v12968_v11  ;;  %v9161_v23 = vpop.eup %9160  ;;  %v12975_v11 = vld [vmem:[#allocation108_spill] sm:$0xff] }
 0x741   :  { %v2353_v1 = vadd.f32 %v2352_v60, %v12969_v34  ;;  %7321 = vmatprep.subr.bf16.mxu0 %v12970_v38  ;;  %v9163_v61 = vpop.eup %9162  ;;  %v12976_v60 = vld [vmem:[#allocation110_spill] sm:$0xff] }
 0x742   :  { %v5595_v17 = vmul.f32 -1.442695, %v2351_v32  ;;  %v2374_v32 = vmul.f32 %v9161_v23, %v12977_v3  ;;  %v12985_v3 = vld [vmem:[#allocation129_spill] sm:$0xff] }
 0x743   :  { %9164 = vtanh.f32 %v2353_v1 }
 0x744   :  { %9166 = vpow2.f32 %v5595_v17  ;;  %7323 = vmatpush1.bf16.msra.mxu0 %v12971_v30  ;;  %v12978_v30 = vld [vmem:[#allocation112_spill] sm:$0xff] }
 0x745   :  { %7325 = vmatprep.subr.bf16.mxu0 %v12972_v31  ;;  %v12982_v31 = vld [vmem:[#allocation120_spill] sm:$0xff] }
 0x748   :  { %7327 = vmatpush1.bf16.msra.mxu0 %v12973_v15  ;;  %v12979_v15 = vld [vmem:[#allocation114_spill] sm:$0xff] }
 0x749   :  { %7329 = vmatprep.subr.bf16.mxu0 %v12974_v25  ;;  %v12980_v25 = vld [vmem:[#allocation116_spill] sm:$0xff] }
 0x74c   :  { %7331 = vmatpush1.bf16.msra.mxu0 %v12975_v11  ;;  %v12981_v11 = vld [vmem:[#allocation118_spill] sm:$0xff] }
 0x74d   :  { %v9165_v50 = vpop.eup %9164  ;;  %7333 = vmatprep.subr.bf16.mxu0 %v12976_v60  ;;  %v12983_v60 = vld [vmem:[#allocation122_spill] sm:$0xff] }
 0x74e   :  { %v9167_v38 = vpop.eup %9166  ;;  %v2375_v1 = vmul.f32 %v9165_v50, %v9163_v61 }
 0x74f   :  { %v2366_v17 = vadd.f32 1.0, %v9167_v38  ;;  %v12984_v38 = vld [vmem:[#allocation124_spill] sm:$0xff] }
 0x750   :  { %v10937_v34 = vadd.f32 %v2375_v1, %v2374_v32  ;;  %7335 = vmatpush1.bf16.msra.mxu0 %v12978_v30  ;;  %v12986_v32 = vld [vmem:[#allocation131_spill] sm:$0xff]  ;;  %v12987_v1 = vld [vmem:[#allocation133_spill] sm:$0xff] }
 0x751   :  { %9168 = vrcp.f32 %v2366_v17  ;;  %7337 = vmatprep.subr.bf16.mxu0 %v12979_v15  ;;  %v12988_v17 = vld [vmem:[#allocation135_spill] sm:$0xff] }
 0x752   :  { %9170 = vtanh.f32 %v10937_v34  ;;  %v12994_v30 = vld [vmem:[#allocation143_spill] sm:$0xff] }
 0x754   :  { %7339 = vmatpush1.bf16.msra.mxu0 %v12980_v25 }
 0x755   :  { %7341 = vmatprep.subr.bf16.mxu0 %v12981_v11 }
 0x758   :  { %7343 = vmatpush1.bf16.msra.mxu0 %v12982_v31  ;;  %v12989_v31 = vld [vmem:[#allocation137_spill] sm:$0xff] }
 0x759   :  { %7345 = vmatprep.subr.bf16.mxu0 %v12983_v60  ;;  %v12990_v60 = vld [vmem:[#allocation58_spill] sm:$0xff] }
 0x75a   :  { %v2448_v11 = vadd.f32 %v10891_v52, %v12990_v60  ;;  %v12998_v52 = vld [vmem:[#allocation153_spill] sm:$0xff] }
 0x75b   :  { %v9169_v23 = vpop.eup %9168 }
 0x75c   :  { %v9171_v61 = vpop.eup %9170  ;;  %7347 = vmatpush1.bf16.msra.mxu0 %v12984_v38  ;;  %v12991_v38 = vld [vmem:[#allocation57_spill] sm:$0xff]  ;;  %v5597_v25 = vmul.f32 -1.442695, %v2448_v11 }
 0x75d   :  { %v10947_v50 = vmul.f32 %v9171_v61, %v9169_v23  ;;  %7413 = vmatprep.subr.bf16.mxu0 %v12985_v3  ;;  %v2446_v23 = vadd.f32 %v10889_v48, %v12991_v38  ;;  %v12992_v61 = vld [vmem:[#allocation139_spill] sm:$0xff]  ;;  %v12993_v3 = vld [vmem:[#allocation141_spill] sm:$0xff] }
 0x75e   :  { %9172 = vpow2.f32 %v5597_v25  ;;  %v13001_v25 = vld [vmem:[#allocation161_spill] sm:$0xff] }
 0x75f   :  { %2850 = vmatprep.mubr.f32.mxu0 %v10947_v50  ;;  %v5596_v15 = vmul.f32 -1.442695, %v2446_v23 }
 0x760   :  { %2851 = vmatmul.mubr.f32.vlgmr.msra.gmra.mrb[26].mxu0 %v10903_v4 }
 0x761   :  { %7415 = vmatpush1.bf16.msra.mxu0 %v12986_v32  ;;  %v12995_v32 = vld [vmem:[#allocation145_spill] sm:$0xff]  ;;  %9174 = vpow2.f32 %v5596_v15 }
 0x762   :  { %7417 = vmatprep.subr.bf16.mxu0 %v12987_v1 }
 0x765   :  { %7419 = vmatpush1.bf16.msra.mxu0 %v12988_v17  ;;  %v12996_v17 = vld [vmem:[#allocation147_spill] sm:$0xff] }
 0x766   :  { %7421 = vmatprep.subr.bf16.mxu0 %v12989_v31  ;;  %v12997_v31 = vld [vmem:[#allocation149_spill] sm:$0xff] }
 0x768   :  { %v9173_v48 = vpop.eup %9172 }
 0x769   :  { %7423 = vmatpush1.bf16.msra.mxu0 %v12992_v61  ;;  %v2531_v23 = vadd.f32 1.0, %v9173_v48  ;;  %v13005_v48 = vld [vmem:[#allocation167_spill] sm:$0xff] }
 0x76a   :  { %7425 = vmatprep.subr.bf16.mxu0 %v12993_v3  ;;  %v12999_v3 = vld [vmem:[#allocation157_spill] sm:$0xff] }
 0x76b   :  { %v9175_v11 = vpop.eup %9174  ;;  %9176 = vrcp.f32 %v2531_v23 }
 0x76d   :  { %7427 = vmatpush1.bf16.msra.mxu0 %v12994_v30  ;;  %v13000_v30 = vld [vmem:[#allocation159_spill] sm:$0xff] }
 0x76e   :  { %7429 = vmatprep.subr.bf16.mxu0 %v12995_v32  ;;  %v2530_v32 = vadd.f32 1.0, %v9175_v11 }
 0x770   :  { %9178 = vrcp.f32 %v2530_v32 }
 0x771   :  { %7431 = vmatpush1.bf16.msra.mxu0 %v12996_v17  ;;  %v13002_v17 = vld [vmem:[#allocation60_spill] sm:$0xff] }
 0x772   :  { %7433 = vmatprep.subr.bf16.mxu0 %v12997_v31 }
 0x775   :  { %7435 = vmatpush1.bf16.msra.mxu0 %v12858_v36  ;;  %v13003_v36 = vld [vmem:[#allocation62_spill] sm:$0xff]  ;;  %v9177_v11 = vpop.eup %9176 }
 0x776   :  { %7437 = vmatprep.subr.bf16.mxu0 %v12998_v52  ;;  %v13004_v52 = vld [vmem:[#allocation163_spill] sm:$0xff]  ;;  %v2540_v32 = vmul.f32 %v9177_v11, %v10738_v44 }
 0x779   :  { %7439 = vmatpush1.bf16.msra.mxu0 %v12862_v28 }
 0x77a   :  { %7441 = vmatprep.subr.bf16.mxu0 %v12999_v3  ;;  %v9179_v23 = vpop.eup %9178 }
 0x77d   :  { %7443 = vmatpush1.bf16.msra.mxu0 %v13000_v30 }
 0x77e   :  { %7445 = vmatprep.subr.bf16.mxu0 %v13001_v25 }
 0x77f   :  { %v2516_v15 = vpop.f32.mrb[22].mxu0 }
 0x780   :  { %v2517_v61 = vadd.f32 %v2516_v15, %v13002_v17  ;;  %v2518_v31 = vpop.f32.mrb[23].mxu0 }
 0x781   :  { %v2519_v38 = vadd.f32 %v2518_v31, %v13003_v36  ;;  %7447 = vmatpush1.bf16.msra.mxu0 %v13004_v52 }
 0x782   :  { %v5598_v28 = vmul.f32 -1.442695, %v2517_v61  ;;  %7449 = vmatprep.subr.bf16.mxu0 %v12867_v55 }
 0x783   :  { %9180 = vtanh.f32 %v2519_v38 }
 0x784   :  { %9182 = vpow2.f32 %v5598_v28 }
 0x785   :  { %7451 = vmatpush1.bf16.msra.mxu0 %v13005_v48 }
 0x786   :  { %7453 = vmatprep.subr.bf16.mxu0 %v12869_v51 }
 0x789   :  { %7455 = vmatpush1.bf16.msra.mxu0 %v12870_v45 }
 0x78a   :  { %7457 = vmatprep.subr.bf16.mxu0 %v12871_v12 }
 0x78d   :  { %v9181_v15 = vpop.eup %9180  ;;  %7459 = vmatpush1.bf16.msra.mxu0 %v12872_v2 }
 0x78e   :  { %v9183_v31 = vpop.eup %9182  ;;  %v2541_v61 = vmul.f32 %v9181_v15, %v9179_v23  ;;  %7461 = vmatprep.subr.bf16.mxu0 %v12873_v47  ;;  %v13006_v15 = vld [vmem:[#allocation28_spill] sm:$0xff] }
 0x78f   :  { %v2532_v28 = vadd.f32 1.0, %v9183_v31  ;;  %v13007_v31 = vld [vmem:[#allocation193_spill] sm:$0xff] }
 0x790   :  { %v10983_v38 = vadd.f32 %v2541_v61, %v2540_v32  ;;  %v13008_v32 = vld [vmem:[#allocation32_spill] sm:$0xff]  ;;  %v13009_v61 = vld [vmem:[#allocation194_spill] sm:$0xff] }
 0x791   :  { %9184 = vrcp.f32 %v2532_v28  ;;  %7463 = vmatpush1.bf16.msra.mxu0 %v12874_v33  ;;  %v13010_v28 = vld [vmem:[#allocation36_spill] sm:$0xff] }
 0x792   :  { %9186 = vtanh.f32 %v10983_v38  ;;  %7465 = vmatprep.subr.bf16.mxu0 %v10547_v6 }
 0x795   :  { %7467 = vmatpush1.bf16.msra.mxu0 %v10553_v39 }
 0x796   :  { %7469 = vmatprep.subr.bf16.mxu0 %v10559_v18 }
 0x799   :  { %7471 = vmatpush1.bf16.msra.mxu0 %v10565_v62 }
 0x79a   :  { %7473 = vmatprep.subr.bf16.mxu0 %v10571_v53 }
 0x79b   :  { %v9185_v44 = vpop.eup %9184 }
 0x79c   :  { %v9187_v11 = vpop.eup %9186 }
 0x79d   :  { %7475 = vmatpush1.bf16.msra.mxu0 %v10577_v63  ;;  %v10993_v23 = vmul.f32 %v9187_v11, %v9185_v44  ;;  %v13011_v44 = vld [vmem:[#allocation195_spill] sm:$0xff]  ;;  %v13012_v11 = vld [vmem:[#allocation40_spill] sm:$0xff] }
 0x79e   :  { %7540 = vmatprep.subr.bf16.mxu0 %v12812_v14 }
 0x79f   :  { %5952 = vmatmul.mubr.f32.vlgmr.msra.gmra.mrb[22].mxu1 %v10993_v23  ;;  %3016 = vmatprep.mubr.f32.mxu0 %v10993_v23 }
 0x7a0   :  { %7255 = vmatpush1.bf16.msra.mxu1 %v12875_v20  ;;  %3017 = vmatmul.mubr.f32.vlgmr.msra.gmra.mrb[28].mxu0 %v10947_v50  ;;  %v13038_v20 = vld [vmem:[#allocation87_spill] sm:$0xff] }
 0x7a1   :  { %7257 = vmatprep.subr.bf16.mxu1 %v13006_v15  ;;  %2751 = vmatprep.mubr.f32.mxu1 %v12636_v59  ;;  %v13035_v15 = vld [vmem:[#allocation81_spill] sm:$0xff] }
 0x7a2   :  { %7542 = vmatpush3.bf16.msra.mxu0 %v13007_v31  ;;  %5986 = vmatprep.mubr.msk.f32.mxu0 %vm9652_vm0, %v12636_v59  ;;  %v13013_v31 = vld [vmem:[#allocation196_spill] sm:$0xff] }
 0x7a3   :  { %7543 = vmatprep.subr.bf16.mxu0 %v12812_v14 }
 0x7a4   :  { %7259 = vmatpush1.bf16.msra.mxu1 %v12877_v42  ;;  %v13016_v42 = vld [vmem:[#allocation197_spill] sm:$0xff] }
 0x7a5   :  { %7261 = vmatprep.subr.bf16.mxu1 %v13008_v32  ;;  %v13014_v32 = vld [vmem:[#allocation42_spill] sm:$0xff] }
 0x7a6   :  { %7545 = vmatpush3.bf16.msra.mxu0 %v13009_v61  ;;  %v13015_v61 = vld [vmem:[#allocation44_spill] sm:$0xff] }
 0x7a7   :  { %7546 = vmatprep.subr.bf16.mxu0 %v12812_v14 }
 0x7a8   :  { %7263 = vmatpush1.bf16.msra.mxu1 %v12879_v10  ;;  %v13019_v10 = vld [vmem:[#allocation198_spill] sm:$0xff] }
 0x7a9   :  { %7265 = vmatprep.subr.bf16.mxu1 %v13010_v28  ;;  %v13017_v28 = vld [vmem:[#allocation46_spill] sm:$0xff] }
 0x7aa   :  { %7548 = vmatpush3.bf16.msra.mxu0 %v13011_v44  ;;  %v13018_v44 = vld [vmem:[#allocation48_spill] sm:$0xff] }
 0x7ab   :  { %7549 = vmatprep.subr.bf16.mxu0 %v12812_v14 }
 0x7ac   :  { %7267 = vmatpush1.bf16.msra.mxu1 %v12881_v57  ;;  %v13022_v57 = vld [vmem:[#allocation199_spill] sm:$0xff] }
 0x7ad   :  { %7269 = vmatprep.subr.bf16.mxu1 %v13012_v11  ;;  %v13020_v11 = vld [vmem:[#allocation50_spill] sm:$0xff] }
 0x7ae   :  { %7551 = vmatpush3.bf16.msra.mxu0 %v13013_v31  ;;  %v13021_v31 = vld [vmem:[#allocation52_spill] sm:$0xff] }
 0x7af   :  { %7552 = vmatprep.subr.bf16.mxu0 %v12812_v14 }
 0x7b0   :  { %7271 = vmatpush1.bf16.msra.mxu1 %v13014_v32  ;;  %v13025_v32 = vld [vmem:[#allocation200_spill] sm:$0xff] }
 0x7b1   :  { %7273 = vmatprep.subr.bf16.mxu1 %v13015_v61  ;;  %v13023_v61 = vld [vmem:[#allocation54_spill] sm:$0xff] }
 0x7b2   :  { %7554 = vmatpush3.bf16.msra.mxu0 %v13016_v42  ;;  %v13024_v42 = vld [vmem:[#allocation56_spill] sm:$0xff] }
 0x7b3   :  { %7555 = vmatprep.subr.bf16.mxu0 %v12812_v14 }
 0x7b4   :  { %7275 = vmatpush1.bf16.msra.mxu1 %v13017_v28  ;;  %v13031_v28 = vld [vmem:[#allocation73_spill] sm:$0xff] }
 0x7b5   :  { %7277 = vmatprep.subr.bf16.mxu1 %v13018_v44  ;;  %v13026_v44 = vld [vmem:[#allocation24_spill] sm:$0xff] }
 0x7b6   :  { %7557 = vmatpush3.bf16.msra.mxu0 %v13019_v10  ;;  %v13027_v10 = vld [vmem:[#allocation65_spill] sm:$0xff] }
 0x7b7   :  { %7558 = vmatprep.subr.bf16.mxu0 %v12812_v14 }
 0x7b8   :  { %7279 = vmatpush1.bf16.msra.mxu1 %v13020_v11  ;;  %v13028_v11 = vld [vmem:[#allocation67_spill] sm:$0xff] }
 0x7b9   :  { %7281 = vmatprep.subr.bf16.mxu1 %v13021_v31  ;;  %v13029_v31 = vld [vmem:[#allocation69_spill] sm:$0xff] }
 0x7ba   :  { %7560 = vmatpush3.bf16.msra.mxu0 %v13022_v57  ;;  %v13030_v57 = vld [vmem:[#allocation71_spill] sm:$0xff] }
 0x7bb   :  { %7561 = vmatprep.subr.bf16.mxu0 %v12812_v14 }
 0x7bc   :  { %7283 = vmatpush1.bf16.msra.mxu1 %v13023_v61  ;;  %v13032_v61 = vld [vmem:[#allocation75_spill] sm:$0xff] }
 0x7bd   :  { %7349 = vmatprep.subr.bf16.mxu1 %v13024_v42  ;;  %v13033_v42 = vld [vmem:[#allocation77_spill] sm:$0xff] }
 0x7be   :  { %7563 = vmatpush3.bf16.msra.mxu0 %v13025_v32  ;;  %v13034_v32 = vld [vmem:[#allocation79_spill] sm:$0xff] }
 0x7bf   :  { %2752 = vmatmul.mubr.f32.vlgmr.msra.gmra.mrb[24].mxu1 %v10903_v4  ;;  %7597 = vmatprep.subr.bf16.mxu0 %v13026_v44  ;;  %v13036_v44 = vld [vmem:[#allocation83_spill] sm:$0xff] }
 0x7c0   :  { %7351 = vmatpush1.bf16.msra.mxu1 %v13027_v10  ;;  %2921 = vmatprep.mubr.f32.mxu1 %v10947_v50  ;;  %v13037_v10 = vld [vmem:[#allocation85_spill] sm:$0xff] }
 0x7c1   :  { %7353 = vmatprep.subr.bf16.mxu1 %v13028_v11  ;;  %v13039_v11 = vld [vmem:[#allocation89_spill] sm:$0xff] }
 0x7c4   :  { %7355 = vmatpush1.bf16.msra.mxu1 %v13029_v31  ;;  %v13040_v31 = vld [vmem:[#allocation91_spill] sm:$0xff] }
 0x7c5   :  { %7357 = vmatprep.subr.bf16.mxu1 %v13030_v57  ;;  %v13041_v57 = vld [vmem:[#allocation93_spill] sm:$0xff] }
 0x7c8   :  { %7359 = vmatpush1.bf16.msra.mxu1 %v13031_v28  ;;  %v13042_v28 = vld [vmem:[#allocation95_spill] sm:$0xff] }
 0x7c9   :  { %7361 = vmatprep.subr.bf16.mxu1 %v13032_v61  ;;  %v13043_v61 = vld [vmem:[#allocation97_spill] sm:$0xff] }
 0x7cc   :  { %7363 = vmatpush1.bf16.msra.mxu1 %v13033_v42  ;;  %v13044_v42 = vld [vmem:[#allocation99_spill] sm:$0xff] }
 0x7cd   :  { %7365 = vmatprep.subr.bf16.mxu1 %v13034_v32  ;;  %v13045_v32 = vld [vmem:[#allocation101_spill] sm:$0xff] }
 0x7d0   :  { %7367 = vmatpush1.bf16.msra.mxu1 %v13035_v15  ;;  %v13046_v15 = vld [vmem:[#allocation103_spill] sm:$0xff] }
 0x7d1   :  { %7369 = vmatprep.subr.bf16.mxu1 %v13036_v44  ;;  %v13047_v44 = vld [vmem:[#allocation105_spill] sm:$0xff] }
 0x7d4   :  { %7371 = vmatpush1.bf16.msra.mxu1 %v13037_v10  ;;  %v13048_v10 = vld [vmem:[#allocation107_spill] sm:$0xff] }
 0x7d5   :  { %7373 = vmatprep.subr.bf16.mxu1 %v13038_v20  ;;  %v13049_v20 = vld [vmem:[#allocation109_spill] sm:$0xff] }
 0x7d8   :  { %7375 = vmatpush1.bf16.msra.mxu1 %v13039_v11  ;;  %v13050_v11 = vld [vmem:[#allocation111_spill] sm:$0xff] }
 0x7d9   :  { %7377 = vmatprep.subr.bf16.mxu1 %v13040_v31  ;;  %v13051_v31 = vld [vmem:[#allocation113_spill] sm:$0xff] }
 0x7dc   :  { %7379 = vmatpush1.bf16.msra.mxu1 %v13041_v57  ;;  %v13052_v57 = vld [vmem:[#allocation115_spill] sm:$0xff] }
 0x7dd   :  { %7381 = vmatprep.subr.bf16.mxu1 %v13042_v28 }
 0x7e0   :  { %7383 = vmatpush1.bf16.msra.mxu1 %v13043_v61 }
 0x7e1   :  { %7385 = vmatprep.subr.bf16.mxu1 %v13044_v42  ;;  %v13053_v42 = vld [vmem:[#allocation117_spill] sm:$0xff] }
 0x7e4   :  { %7387 = vmatpush1.bf16.msra.mxu1 %v13045_v32  ;;  %v13054_v32 = vld [vmem:[#allocation119_spill] sm:$0xff] }
 0x7e5   :  { %7389 = vmatprep.subr.bf16.mxu1 %v13046_v15  ;;  %v13055_v15 = vld [vmem:[#allocation121_spill] sm:$0xff] }
 0x7e8   :  { %7391 = vmatpush1.bf16.msra.mxu1 %v13047_v44  ;;  %v13056_v44 = vld [vmem:[#allocation123_spill] sm:$0xff] }
 0x7e9   :  { %7393 = vmatprep.subr.bf16.mxu1 %v13048_v10  ;;  %v13057_v10 = vld [vmem:[#allocation125_spill] sm:$0xff] }
 0x7ec   :  { %7395 = vmatpush1.bf16.msra.mxu1 %v13049_v20  ;;  %v13058_v20 = vld [vmem:[#allocation130_spill] sm:$0xff] }
 0x7ed   :  { %7397 = vmatprep.subr.bf16.mxu1 %v13050_v11  ;;  %v13061_v11 = vld [vmem:[#allocation136_spill] sm:$0xff] }
 0x7f0   :  { %7399 = vmatpush1.bf16.msra.mxu1 %v13051_v31  ;;  %v13059_v31 = vld [vmem:[#allocation132_spill] sm:$0xff] }
 0x7f1   :  { %7401 = vmatprep.subr.bf16.mxu1 %v13052_v57  ;;  %v13060_v57 = vld [vmem:[#allocation134_spill] sm:$0xff] }
 0x7f2   :  { %v11062_v28 = vpop.f32.mrb[24].mxu0 }
 0x7f3   :  { %v11064_v61 = vpop.f32.mrb[25].mxu0 }
 0x7f4   :  { %7403 = vmatpush1.bf16.msra.mxu1 %v13053_v42  ;;  %v13062_v42 = vld [vmem:[#allocation138_spill] sm:$0xff] }
 0x7f5   :  { %7405 = vmatprep.subr.bf16.mxu1 %v13054_v32  ;;  %v13063_v32 = vld [vmem:[#allocation140_spill] sm:$0xff] }
 0x7f8   :  { %7407 = vmatpush1.bf16.msra.mxu1 %v13055_v15  ;;  %v13064_v15 = vld [vmem:[#allocation142_spill] sm:$0xff] }
 0x7f9   :  { %7409 = vmatprep.subr.bf16.mxu1 %v13056_v44  ;;  %v13065_v44 = vld [vmem:[#allocation144_spill] sm:$0xff] }
 0x7fc   :  { %7411 = vmatpush1.bf16.msra.mxu1 %v13057_v10  ;;  %v13066_v10 = vld [vmem:[#allocation146_spill] sm:$0xff] }
 0x7fd   :  { %7477 = vmatprep.subr.bf16.mxu1 %v13058_v20  ;;  %v13067_v20 = vld [vmem:[#allocation148_spill] sm:$0xff] }
 0x7ff   :  { %2922 = vmatmul.mubr.f32.vlgmr.msra.gmra.mrb[26].mxu1 %v10903_v4  ;;  %v13068_v4 = vld [vmem:[#allocation150_spill] sm:$0xff] }
 0x800   :  { %7479 = vmatpush1.bf16.msra.mxu1 %v13059_v31  ;;  %3087 = vmatprep.mubr.f32.mxu1 %v10993_v23  ;;  %v13069_v31 = vld [vmem:[#allocation152_spill] sm:$0xff]  ;;  %v13070_v23 = vld [vmem:[#allocation154_spill] sm:$0xff] }
 0x801   :  { %7481 = vmatprep.subr.bf16.mxu1 %v13060_v57  ;;  %v13071_v57 = vld [vmem:[#allocation156_spill] sm:$0xff] }
 0x804   :  { %7483 = vmatpush1.bf16.msra.mxu1 %v13061_v11  ;;  %v13072_v11 = vld [vmem:[#allocation158_spill] sm:$0xff] }
 0x805   :  { %7485 = vmatprep.subr.bf16.mxu1 %v13062_v42 }
 0x808   :  { %7487 = vmatpush1.bf16.msra.mxu1 %v13063_v32  ;;  %v13073_v32 = vld [vmem:[#allocation162_spill] sm:$0xff] }
 0x809   :  { %7489 = vmatprep.subr.bf16.mxu1 %v13064_v15 }
 0x80c   :  { %7491 = vmatpush1.bf16.msra.mxu1 %v13065_v44  ;;  %v13074_v44 = vld [vmem:[#allocation166_spill] sm:$0xff] }
 0x80d   :  { %7493 = vmatprep.subr.bf16.mxu1 %v13066_v10 }
 0x810   :  { %7495 = vmatpush1.bf16.msra.mxu1 %v13067_v20 }
 0x811   :  { %7497 = vmatprep.subr.bf16.mxu1 %v13068_v4 }
 0x814   :  { %7499 = vmatpush1.bf16.msra.mxu1 %v13069_v31 }
 0x815   :  { %7501 = vmatprep.subr.bf16.mxu1 %v13070_v23 }
 0x818   :  { %7503 = vmatpush1.bf16.msra.mxu1 %v13071_v57 }
 0x819   :  { %7505 = vmatprep.subr.bf16.mxu1 %v13072_v11 }
 0x81c   :  { %7507 = vmatpush1.bf16.msra.mxu1 %v12937_v19 }
 0x81d   :  { %7509 = vmatprep.subr.bf16.mxu1 %v13073_v32 }
 0x820   :  { %7511 = vmatpush1.bf16.msra.mxu1 %v12939_v13 }
 0x821   :  { %7513 = vmatprep.subr.bf16.mxu1 %v13074_v44 }
 0x824   :  { %7515 = vmatpush1.bf16.msra.mxu1 %v12941_v21  ;;  %v13090_v21 = vld [vmem:[#allocation47_spill] sm:$0xff] }
 0x825   :  { %7517 = vmatprep.subr.bf16.mxu1 %v12942_v8  ;;  %v13075_v8 = vld [vmem:[#allocation188_spill] sm:$0xff] }
 0x828   :  { %7519 = vmatpush1.bf16.msra.mxu1 %v12943_v7  ;;  %v13076_v7 = vld [vmem:[#allocation190_spill] sm:$0xff] }
 0x829   :  { %7521 = vmatprep.subr.bf16.mxu1 %v12944_v5  ;;  %v13077_v5 = vld [vmem:[#allocation192_spill] sm:$0xff] }
 0x82c   :  { %7523 = vmatpush1.bf16.msra.mxu1 %v12945_v35  ;;  %v13078_v35 = vld [vmem:[#allocation23_spill] sm:$0xff] }
 0x82d   :  { %7525 = vmatprep.subr.bf16.mxu1 %v12946_v0  ;;  %v13082_v0 = vld [vmem:[#allocation31_spill] sm:$0xff] }
 0x830   :  { %7527 = vmatpush1.bf16.msra.mxu1 %v12947_v43  ;;  %v13079_v43 = vld [vmem:[#allocation25_spill] sm:$0xff] }
 0x831   :  { %7529 = vmatprep.subr.bf16.mxu1 %v10549_v9  ;;  %v13080_v9 = vld [vmem:[#allocation27_spill] sm:$0xff] }
 0x833   :  { %v11100_v32 = vpop.f32.mrb[26].mxu0 }
 0x834   :  { %7531 = vmatpush1.bf16.msra.mxu1 %v10555_v54  ;;  %v11103_v44 = vpop.f32.mrb[27].mxu0  ;;  %v13081_v54 = vld [vmem:[#allocation29_spill] sm:$0xff] }
 0x835   :  { %7533 = vmatprep.subr.bf16.mxu1 %v10561_v24  ;;  %v13083_v24 = vld [vmem:[#allocation33_spill] sm:$0xff] }
 0x838   :  { %7535 = vmatpush1.bf16.msra.mxu1 %v13075_v8  ;;  %v13084_v8 = vld [vmem:[#allocation35_spill] sm:$0xff] }
 0x839   :  { %7537 = vmatprep.subr.bf16.mxu1 %v13076_v7  ;;  %v13085_v7 = vld [vmem:[#allocation37_spill] sm:$0xff] }
 0x83c   :  { %7539 = vmatpush1.bf16.msra.mxu1 %v13077_v5  ;;  %v13086_v5 = vld [vmem:[#allocation39_spill] sm:$0xff] }
 0x83d   :  { %7565 = vmatprep.subr.bf16.mxu1 %v13078_v35  ;;  %v13087_v35 = vld [vmem:[#allocation41_spill] sm:$0xff] }
 0x83f   :  { %3088 = vmatmul.mubr.f32.vlgmr.msra.gmra.mrb[28].mxu1 %v10947_v50  ;;  %v13088_v50 = vld [vmem:[#allocation43_spill] sm:$0xff] }
 0x840   :  { %7567 = vmatpush1.bf16.msra.mxu1 %v13079_v43  ;;  %3253 = vmatprep.mubr.f32.mxu1 %v12636_v59  ;;  %v13089_v43 = vld [vmem:[#allocation45_spill] sm:$0xff] }
 0x841   :  { %7569 = vmatprep.subr.bf16.mxu1 %v13080_v9  ;;  %v13091_v9 = vld [vmem:[#allocation49_spill] sm:$0xff] }
 0x844   :  { %7571 = vmatpush1.bf16.msra.mxu1 %v13081_v54  ;;  %v13092_v54 = vld [vmem:[#allocation51_spill] sm:$0xff] }
 0x845   :  { %7573 = vmatprep.subr.bf16.mxu1 %v13082_v0  ;;  %v13093_v0 = vld [vmem:[#allocation53_spill] sm:$0xff] }
 0x848   :  { %7575 = vmatpush1.bf16.msra.mxu1 %v13083_v24  ;;  %v13094_v24 = vld [vmem:[#allocation55_spill] sm:$0xff] }
 0x849   :  { %7577 = vmatprep.subr.bf16.mxu1 %v13084_v8 }
 0x84c   :  { %7579 = vmatpush1.bf16.msra.mxu1 %v13085_v7  ;;  %v13095_v7 = vld [vmem:[#allocation165_spill] sm:$0xff] }
 0x84d   :  { %7581 = vmatprep.subr.bf16.mxu1 %v13086_v5 }
 0x850   :  { %7583 = vmatpush1.bf16.msra.mxu1 %v13087_v35 }
 0x851   :  { %7585 = vmatprep.subr.bf16.mxu1 %v13088_v50 }
 0x854   :  { %7587 = vmatpush1.bf16.msra.mxu1 %v13089_v43  ;;  %v13096_v43 = vld [vmem:[#allocation59_spill] sm:$0xff] }
 0x855   :  { %7589 = vmatprep.subr.bf16.mxu1 %v13090_v21  ;;  %v2759_v21 = vadd.f32 %v11064_v61, %v10042_v56 }
 0x858   :  { %7591 = vmatpush1.bf16.msra.mxu1 %v13091_v9  ;;  %v2758_v9 = vadd.f32 %v11062_v28, %v13096_v43 }
 0x859   :  { %7593 = vmatprep.subr.bf16.mxu1 %v13092_v54  ;;  %v5600_v54 = vmul.f32 -1.442695, %v2759_v21 }
 0x85a   :  { %v5599_v50 = vmul.f32 -1.442695, %v2758_v9 }
 0x85b   :  { %9188 = vpow2.f32 %v5600_v54 }
 0x85c   :  { %7595 = vmatpush1.bf16.msra.mxu1 %v13093_v0  ;;  %9190 = vpow2.f32 %v5599_v50 }
 0x85d   :  { %7629 = vmatprep.subr.bf16.mxu1 %v13094_v24 }
 0x865   :  { %v9189_v24 = vpop.eup %9188 }
 0x866   :  { %v9191_v0 = vpop.eup %9190  ;;  %v2772_v11 = vadd.f32 1.0, %v9189_v24 }
 0x868   :  { %9192 = vrcp.f32 %v2772_v11 }
 0x872   :  { %v2611_v8 = vpop.f32.mrb[22].mxu1  ;;  %v9193_v28 = vpop.eup %9192 }
 0x873   :  { %v2612_v13 = vadd.f32 %v2611_v8, %v13095_v7  ;;  %v5953_v5 = vpop.f32.mrb[23].mxu1  ;;  %v11129_v19 = vpop.f32.mrb[28].mxu0  ;;  %v2771_v8 = vadd.f32 1.0, %v9191_v0  ;;  %v2781_v50 = vmul.f32 %v9193_v28, %v10900_v27  ;;  %v13099_v28 = vld [vmem:[#allocation80_spill] sm:$0xff] }
 0x874   :  { %v11131_v35 = vpop.f32.mrb[29].mxu0 }
 0x875   :  { %2615 = vst [vmem:[#allocation16 + $0x8] sm:$0xff] %v2612_v13  ;;  %9194 = vrcp.f32 %v2771_v8  ;;  %v13097_v8 = vld [vmem:[#allocation76_spill] sm:$0xff] }
 0x87f   :  { %v9195_v21 = vpop.eup %9194 }
 0x892   :  { %v2753_v5 = vpop.f32.mrb[24].mxu1 }
 0x893   :  { %v2760_v7 = vadd.f32 %v2753_v5, %v10050_v22  ;;  %v2755_v57 = vpop.f32.mrb[25].mxu1 }
 0x894   :  { %v2761_v13 = vadd.f32 %v2755_v57, %v12955_v49 }
 0x895   :  { %v5601_v61 = vmul.f32 -1.442695, %v2760_v7  ;;  %v2853_v7 = vadd.f32 %v11100_v32, %v12959_v41  ;;  %v13104_v32 = vld [vmem:[#allocation90_spill] sm:$0xff] }
 0x896   :  { %9196 = vtanh.f32 %v2761_v13 }
 0x897   :  { %9198 = vpow2.f32 %v5601_v61  ;;  %v5602_v13 = vmul.f32 -1.442695, %v2853_v7  ;;  %v13098_v61 = vld [vmem:[#allocation78_spill] sm:$0xff] }
 0x8a0   :  { %v9197_v9 = vpop.eup %9196 }
 0x8a1   :  { %v9199_v54 = vpop.eup %9198  ;;  %v2782_v43 = vmul.f32 %v9197_v9, %v9195_v21  ;;  %v13100_v21 = vld [vmem:[#allocation82_spill] sm:$0xff] }
 0x8a2   :  { %v2773_v24 = vadd.f32 1.0, %v9199_v54  ;;  %v13102_v9 = vld [vmem:[#allocation86_spill] sm:$0xff]  ;;  %v13103_v54 = vld [vmem:[#allocation88_spill] sm:$0xff] }
 0x8a3   :  { %v11140_v0 = vadd.f32 %v2782_v43, %v2781_v50  ;;  %v2855_v43 = vadd.f32 %v11103_v44, %v12821_v40  ;;  %v13101_v44 = vld [vmem:[#allocation84_spill] sm:$0xff] }
 0x8a4   :  { %9200 = vrcp.f32 %v2773_v24 }
 0x8a5   :  { %9202 = vtanh.f32 %v11140_v0  ;;  %v5603_v27 = vmul.f32 -1.442695, %v2855_v43  ;;  %v13106_v43 = vld [vmem:[#allocation94_spill] sm:$0xff] }
 0x8a7   :  { %9204 = vpow2.f32 %v5603_v27 }
 0x8a8   :  { %9206 = vpow2.f32 %v5602_v13  ;;  %v13107_v13 = vld [vmem:[#allocation127_spill] sm:$0xff] }
 0x8ae   :  { %v9201_v11 = vpop.eup %9200 }
 0x8af   :  { %v9203_v5 = vpop.eup %9202 }
 0x8b0   :  { %v11143_v57 = vmul.f32 %v9203_v5, %v9201_v11  ;;  %v13105_v11 = vld [vmem:[#allocation92_spill] sm:$0xff] }
 0x8b1   :  { %v9205_v50 = vpop.eup %9204 }
 0x8b2   :  { %3254 = vmatmul.mubr.f32.vlgmr.msra.gmra.mrb[30].mxu1 %v11143_v57  ;;  %v9207_v24 = vpop.eup %9206  ;;  %v2938_v5 = vadd.f32 1.0, %v9205_v50  ;;  %v13112_v50 = vld [vmem:[#allocation102_spill] sm:$0xff] }
 0x8b3   :  { %7631 = vmatpush1.bf16.msra.mxu1 %v10059_v46  ;;  %v2937_v7 = vadd.f32 1.0, %v9207_v24  ;;  %v13113_v24 = vld [vmem:[#allocation104_spill] sm:$0xff] }
 0x8b4   :  { %7633 = vmatprep.subr.bf16.mxu1 %v12692_v58  ;;  %9208 = vrcp.f32 %v2938_v5 }
 0x8b5   :  { %9210 = vrcp.f32 %v2937_v7 }
 0x8b7   :  { %7635 = vmatpush1.bf16.msra.mxu1 %v12956_v37 }
 0x8b8   :  { %7637 = vmatprep.subr.bf16.mxu1 %v12957_v29 }
 0x8bb   :  { %7639 = vmatpush1.bf16.msra.mxu1 %v12958_v16 }
 0x8bc   :  { %7641 = vmatprep.subr.bf16.mxu1 %v12960_v26 }
 0x8bf   :  { %7643 = vmatpush1.bf16.msra.mxu1 %v13097_v8 }
 0x8c0   :  { %7645 = vmatprep.subr.bf16.mxu1 %v13098_v61  ;;  %v13108_v61 = vld [vmem:[#allocation96_spill] sm:$0xff] }
 0x8c3   :  { %7647 = vmatpush1.bf16.msra.mxu1 %v13099_v28 }
 0x8c4   :  { %7649 = vmatprep.subr.bf16.mxu1 %v13100_v21 }
 0x8c7   :  { %7651 = vmatpush1.bf16.msra.mxu1 %v13101_v44 }
 0x8c8   :  { %7653 = vmatprep.subr.bf16.mxu1 %v13102_v9  ;;  %v13109_v9 = vld [vmem:[#allocation128_spill] sm:$0xff] }
 0x8cb   :  { %7655 = vmatpush1.bf16.msra.mxu1 %v13103_v54  ;;  %v13110_v54 = vld [vmem:[#allocation98_spill] sm:$0xff] }
 0x8cc   :  { %7657 = vmatprep.subr.bf16.mxu1 %v13104_v32 }
 0x8cf   :  { %7659 = vmatpush1.bf16.msra.mxu1 %v13105_v11  ;;  %v13111_v11 = vld [vmem:[#allocation100_spill] sm:$0xff] }
 0x8d0   :  { %7661 = vmatprep.subr.bf16.mxu1 %v13106_v43  ;;  %v13114_v43 = vld [vmem:[#allocation106_spill] sm:$0xff] }
 0x8d2   :  { %v2923_v27 = vpop.f32.mrb[26].mxu1 }
 0x8d3   :  { %v2924_v28 = vadd.f32 %v2923_v27, %v13107_v13  ;;  %v2925_v21 = vpop.f32.mrb[27].mxu1  ;;  %7663 = vmatpush1.bf16.msra.mxu1 %v13108_v61  ;;  %v9209_v27 = vpop.eup %9208  ;;  %v13115_v61 = vld [vmem:[#allocation108_spill] sm:$0xff] }
 0x8d4   :  { %v2926_v44 = vadd.f32 %v2925_v21, %v13109_v9  ;;  %7665 = vmatprep.subr.bf16.mxu1 %v13110_v54  ;;  %v9211_v13 = vpop.eup %9210  ;;  %v13116_v21 = vld [vmem:[#allocation110_spill] sm:$0xff] }
 0x8d5   :  { %v5604_v32 = vmul.f32 -1.442695, %v2924_v28  ;;  %v2947_v28 = vmul.f32 %v9209_v27, %v10937_v34 }
 0x8d6   :  { %9212 = vtanh.f32 %v2926_v44 }
 0x8d7   :  { %9214 = vpow2.f32 %v5604_v32  ;;  %7667 = vmatpush1.bf16.msra.mxu1 %v13111_v11  ;;  %v13117_v11 = vld [vmem:[#allocation112_spill] sm:$0xff] }
 0x8d8   :  { %7669 = vmatprep.subr.bf16.mxu1 %v13112_v50  ;;  %v13121_v50 = vld [vmem:[#allocation120_spill] sm:$0xff] }
 0x8db   :  { %7671 = vmatpush1.bf16.msra.mxu1 %v13113_v24  ;;  %v13118_v24 = vld [vmem:[#allocation114_spill] sm:$0xff] }
 0x8dc   :  { %7673 = vmatprep.subr.bf16.mxu1 %v13114_v43  ;;  %v13119_v43 = vld [vmem:[#allocation116_spill] sm:$0xff] }
 0x8df   :  { %7675 = vmatpush1.bf16.msra.mxu1 %v13115_v61  ;;  %v13120_v61 = vld [vmem:[#allocation118_spill] sm:$0xff] }
 0x8e0   :  { %v9213_v5 = vpop.eup %9212  ;;  %7677 = vmatprep.subr.bf16.mxu1 %v13116_v21  ;;  %v13122_v21 = vld [vmem:[#allocation122_spill] sm:$0xff] }
 0x8e1   :  { %v9215_v54 = vpop.eup %9214  ;;  %v2948_v44 = vmul.f32 %v9213_v5, %v9211_v13  ;;  %v13124_v5 = vld [vmem:[#allocation129_spill] sm:$0xff] }
 0x8e2   :  { %v2939_v32 = vadd.f32 1.0, %v9215_v54  ;;  %v13123_v54 = vld [vmem:[#allocation124_spill] sm:$0xff] }
 0x8e3   :  { %v11177_v7 = vadd.f32 %v2948_v44, %v2947_v28  ;;  %7679 = vmatpush1.bf16.msra.mxu1 %v13117_v11  ;;  %v13125_v28 = vld [vmem:[#allocation131_spill] sm:$0xff] }
 0x8e4   :  { %9216 = vrcp.f32 %v2939_v32  ;;  %7681 = vmatprep.subr.bf16.mxu1 %v13118_v24  ;;  %v13126_v44 = vld [vmem:[#allocation135_spill] sm:$0xff]  ;;  %v13127_v32 = vld [vmem:[#allocation137_spill] sm:$0xff] }
 0x8e5   :  { %9218 = vtanh.f32 %v11177_v7 }
 0x8e7   :  { %7683 = vmatpush1.bf16.msra.mxu1 %v13119_v43  ;;  %v13131_v43 = vld [vmem:[#allocation143_spill] sm:$0xff] }
 0x8e8   :  { %7685 = vmatprep.subr.bf16.mxu1 %v13120_v61 }
 0x8eb   :  { %7687 = vmatpush1.bf16.msra.mxu1 %v13121_v50 }
 0x8ec   :  { %7689 = vmatprep.subr.bf16.mxu1 %v13122_v21  ;;  %v3021_v21 = vadd.f32 %v11131_v35, %v12990_v60  ;;  %v13135_v35 = vld [vmem:[#allocation151_spill] sm:$0xff]  ;;  %v13136_v60 = vld [vmem:[#allocation153_spill] sm:$0xff] }
 0x8ee   :  { %v9217_v34 = vpop.eup %9216  ;;  %v5606_v50 = vmul.f32 -1.442695, %v3021_v21 }
 0x8ef   :  { %v9219_v13 = vpop.eup %9218  ;;  %7691 = vmatpush1.bf16.msra.mxu1 %v13123_v54  ;;  %v13128_v54 = vld [vmem:[#allocation57_spill] sm:$0xff] }
 0x8f0   :  { %v11187_v27 = vmul.f32 %v9219_v13, %v9217_v34  ;;  %7757 = vmatprep.subr.bf16.mxu1 %v13124_v5  ;;  %v3019_v34 = vadd.f32 %v11129_v19, %v13128_v54  ;;  %v13129_v13 = vld [vmem:[#allocation139_spill] sm:$0xff]  ;;  %v13130_v5 = vld [vmem:[#allocation141_spill] sm:$0xff]  ;;  %9220 = vpow2.f32 %v5606_v50 }
 0x8f1   :  { %v13137_v19 = vld [vmem:[#allocation155_spill] sm:$0xff] }
 0x8f2   :  { %3423 = vmatprep.mubr.f32.mxu1 %v11187_v27  ;;  %v5605_v61 = vmul.f32 -1.442695, %v3019_v34 }
 0x8f3   :  { %3424 = vmatmul.mubr.f32.vlgmr.msra.gmra.mrb[32].mxu1 %v11143_v57 }
 0x8f4   :  { %7759 = vmatpush1.bf16.msra.mxu1 %v13125_v28  ;;  %v13132_v28 = vld [vmem:[#allocation145_spill] sm:$0xff]  ;;  %9222 = vpow2.f32 %v5605_v61 }
 0x8f5   :  { %7761 = vmatprep.subr.bf16.mxu1 %v12987_v1 }
 0x8f8   :  { %7763 = vmatpush1.bf16.msra.mxu1 %v13126_v44  ;;  %v13133_v44 = vld [vmem:[#allocation147_spill] sm:$0xff] }
 0x8f9   :  { %7765 = vmatprep.subr.bf16.mxu1 %v13127_v32  ;;  %v13134_v32 = vld [vmem:[#allocation149_spill] sm:$0xff] }
 0x8fc   :  { %7767 = vmatpush1.bf16.msra.mxu1 %v13129_v13  ;;  %v9221_v13 = vpop.eup %9220 }
 0x8fd   :  { %7769 = vmatprep.subr.bf16.mxu1 %v13130_v5  ;;  %v3104_v34 = vadd.f32 1.0, %v9221_v13 }
 0x8fe   :  { %v9223_v21 = vpop.eup %9222 }
 0x8ff   :  { %9224 = vrcp.f32 %v3104_v34 }
 0x900   :  { %7771 = vmatpush1.bf16.msra.mxu1 %v13131_v43 }
 0x901   :  { %7773 = vmatprep.subr.bf16.mxu1 %v13132_v28  ;;  %v3103_v28 = vadd.f32 1.0, %v9223_v21 }
 0x903   :  { %9226 = vrcp.f32 %v3103_v28 }
 0x904   :  { %7775 = vmatpush1.bf16.msra.mxu1 %v13133_v44 }
 0x905   :  { %7777 = vmatprep.subr.bf16.mxu1 %v13134_v32 }
 0x908   :  { %7779 = vmatpush1.bf16.msra.mxu1 %v13135_v35 }
 0x909   :  { %7781 = vmatprep.subr.bf16.mxu1 %v13136_v60  ;;  %v9225_v13 = vpop.eup %9224 }
 0x90a   :  { %v3113_v28 = vmul.f32 %v9225_v13, %v10983_v38 }
 0x90c   :  { %7783 = vmatpush1.bf16.msra.mxu1 %v13137_v19 }
 0x90d   :  { %7785 = vmatprep.subr.bf16.mxu1 %v12999_v3  ;;  %v9227_v21 = vpop.eup %9226 }
 0x910   :  { %7787 = vmatpush1.bf16.msra.mxu1 %v13000_v30 }
 0x911   :  { %7789 = vmatprep.subr.bf16.mxu1 %v13001_v25 }
 0x912   :  { %v3089_v61 = vpop.f32.mrb[28].mxu1 }
 0x913   :  { %v3090_v50 = vadd.f32 %v3089_v61, %v13002_v17  ;;  %v3091_v32 = vpop.f32.mrb[29].mxu1 }
 0x914   :  { %v3092_v35 = vadd.f32 %v3091_v32, %v13003_v36  ;;  %7791 = vmatpush1.bf16.msra.mxu1 %v13004_v52 }
 0x915   :  { %v5607_v19 = vmul.f32 -1.442695, %v3090_v50  ;;  %7793 = vmatprep.subr.bf16.mxu1 %v12867_v55 }
 0x916   :  { %9228 = vtanh.f32 %v3092_v35 }
 0x917   :  { %9230 = vpow2.f32 %v5607_v19 }
 0x918   :  { %7795 = vmatpush1.bf16.msra.mxu1 %v13005_v48 }
 0x919   :  { %7797 = vmatprep.subr.bf16.mxu1 %v12869_v51 }
 0x91c   :  { %7799 = vmatpush1.bf16.msra.mxu1 %v12870_v45 }
 0x91d   :  { %7801 = vmatprep.subr.bf16.mxu1 %v12871_v12 }
 0x920   :  { %v9229_v34 = vpop.eup %9228  ;;  %7803 = vmatpush1.bf16.msra.mxu1 %v12872_v2 }
 0x921   :  { %v9231_v32 = vpop.eup %9230  ;;  %v3114_v61 = vmul.f32 %v9229_v34, %v9227_v21  ;;  %7805 = vmatprep.subr.bf16.mxu1 %v12873_v47  ;;  %v13138_v21 = vld [vmem:[#allocation26_spill] sm:$0xff]  ;;  %v13139_v34 = vld [vmem:[#allocation28_spill] sm:$0xff] }
 0x922   :  { %v3105_v35 = vadd.f32 1.0, %v9231_v32  ;;  %v13140_v32 = vld [vmem:[#allocation193_spill] sm:$0xff] }
 0x923   :  { %v11223_v19 = vadd.f32 %v3114_v61, %v3113_v28  ;;  %v13141_v28 = vld [vmem:[#allocation30_spill] sm:$0xff]  ;;  %v13142_v61 = vld [vmem:[#allocation32_spill] sm:$0xff] }
 0x924   :  { %9232 = vrcp.f32 %v3105_v35  ;;  %7807 = vmatpush1.bf16.msra.mxu1 %v12874_v33  ;;  %v13143_v35 = vld [vmem:[#allocation194_spill] sm:$0xff] }
 0x925   :  { %9234 = vtanh.f32 %v11223_v19  ;;  %7809 = vmatprep.subr.bf16.mxu1 %v10547_v6 }
 0x928   :  { %7811 = vmatpush1.bf16.msra.mxu1 %v10553_v39 }
 0x929   :  { %7813 = vmatprep.subr.bf16.mxu1 %v10559_v18 }
 0x92c   :  { %7815 = vmatpush1.bf16.msra.mxu1 %v10565_v62 }
 0x92d   :  { %7817 = vmatprep.subr.bf16.mxu1 %v10571_v53  ;;  %v13174_v53 = vld [vmem:[#allocation87_spill] sm:$0xff] }
 0x92e   :  { %v9233_v38 = vpop.eup %9232 }
 0x92f   :  { %v9235_v50 = vpop.eup %9234 }
 0x930   :  { %7819 = vmatpush1.bf16.msra.mxu1 %v10577_v63  ;;  %v11233_v13 = vmul.f32 %v9235_v50, %v9233_v38  ;;  %v13144_v38 = vld [vmem:[#allocation34_spill] sm:$0xff]  ;;  %v13145_v50 = vld [vmem:[#allocation36_spill] sm:$0xff] }
 0x931   :  { %7884 = vmatprep.subr.bf16.mxu1 %v12812_v14  ;;  %v13149_v63 = vld [vmem:[#allocation196_spill] sm:$0xff] }
 0x932   :  { %5987 = vmatmul.mubr.f32.vlgmr.msra.gmra.mrb[30].mxu0 %v11233_v13  ;;  %3589 = vmatprep.mubr.f32.mxu1 %v11233_v13 }
 0x933   :  { %7599 = vmatpush1.bf16.msra.mxu0 %v13138_v21  ;;  %3590 = vmatmul.mubr.f32.vlgmr.msra.gmra.mrb[34].mxu1 %v11187_v27  ;;  %v13148_v21 = vld [vmem:[#allocation40_spill] sm:$0xff] }
 0x934   :  { %7601 = vmatprep.subr.bf16.mxu0 %v13139_v34  ;;  %3324 = vmatprep.mubr.f32.mxu0 %v12636_v59  ;;  %v13146_v34 = vld [vmem:[#allocation195_spill] sm:$0xff] }
 0x935   :  { %7886 = vmatpush3.bf16.msra.mxu1 %v13140_v32  ;;  %6021 = vmatprep.mubr.msk.f32.mxu1 %vm9652_vm0, %v12636_v59  ;;  %v13147_v32 = vld [vmem:[#allocation38_spill] sm:$0xff] }
 0x936   :  { %7887 = vmatprep.subr.bf16.mxu1 %v12812_v14 }
 0x937   :  { %7603 = vmatpush1.bf16.msra.mxu0 %v13141_v28  ;;  %v13152_v28 = vld [vmem:[#allocation197_spill] sm:$0xff] }
 0x938   :  { %7605 = vmatprep.subr.bf16.mxu0 %v13142_v61  ;;  %v13150_v61 = vld [vmem:[#allocation42_spill] sm:$0xff] }
 0x939   :  { %7889 = vmatpush3.bf16.msra.mxu1 %v13143_v35  ;;  %v13151_v35 = vld [vmem:[#allocation44_spill] sm:$0xff] }
 0x93a   :  { %7890 = vmatprep.subr.bf16.mxu1 %v12812_v14 }
 0x93b   :  { %7607 = vmatpush1.bf16.msra.mxu0 %v13144_v38  ;;  %v13155_v38 = vld [vmem:[#allocation198_spill] sm:$0xff] }
 0x93c   :  { %7609 = vmatprep.subr.bf16.mxu0 %v13145_v50  ;;  %v13153_v50 = vld [vmem:[#allocation46_spill] sm:$0xff] }
 0x93d   :  { %7892 = vmatpush3.bf16.msra.mxu1 %v13146_v34  ;;  %v13154_v34 = vld [vmem:[#allocation48_spill] sm:$0xff] }
 0x93e   :  { %7893 = vmatprep.subr.bf16.mxu1 %v12812_v14 }
 0x93f   :  { %7611 = vmatpush1.bf16.msra.mxu0 %v13147_v32  ;;  %v13158_v32 = vld [vmem:[#allocation199_spill] sm:$0xff] }
 0x940   :  { %7613 = vmatprep.subr.bf16.mxu0 %v13148_v21  ;;  %v13156_v21 = vld [vmem:[#allocation50_spill] sm:$0xff] }
 0x941   :  { %7895 = vmatpush3.bf16.msra.mxu1 %v13149_v63  ;;  %v13157_v63 = vld [vmem:[#allocation52_spill] sm:$0xff] }
 0x942   :  { %7896 = vmatprep.subr.bf16.mxu1 %v12812_v14 }
 0x943   :  { %7615 = vmatpush1.bf16.msra.mxu0 %v13150_v61  ;;  %v13161_v61 = vld [vmem:[#allocation200_spill] sm:$0xff] }
 0x944   :  { %7617 = vmatprep.subr.bf16.mxu0 %v13151_v35  ;;  %v13159_v35 = vld [vmem:[#allocation54_spill] sm:$0xff] }
 0x945   :  { %7898 = vmatpush3.bf16.msra.mxu1 %v13152_v28  ;;  %v13160_v28 = vld [vmem:[#allocation56_spill] sm:$0xff] }
 0x946   :  { %7899 = vmatprep.subr.bf16.mxu1 %v12812_v14 }
 0x947   :  { %7619 = vmatpush1.bf16.msra.mxu0 %v13153_v50  ;;  %v13167_v50 = vld [vmem:[#allocation73_spill] sm:$0xff] }
 0x948   :  { %7621 = vmatprep.subr.bf16.mxu0 %v13154_v34  ;;  %v13162_v34 = vld [vmem:[#allocation24_spill] sm:$0xff] }
 0x949   :  { %7901 = vmatpush3.bf16.msra.mxu1 %v13155_v38  ;;  %v13163_v38 = vld [vmem:[#allocation65_spill] sm:$0xff] }
 0x94a   :  { %7902 = vmatprep.subr.bf16.mxu1 %v12812_v14 }
 0x94b   :  { %7623 = vmatpush1.bf16.msra.mxu0 %v13156_v21  ;;  %v13164_v21 = vld [vmem:[#allocation67_spill] sm:$0xff] }
 0x94c   :  { %7625 = vmatprep.subr.bf16.mxu0 %v13157_v63  ;;  %v13165_v63 = vld [vmem:[#allocation69_spill] sm:$0xff] }
 0x94d   :  { %7904 = vmatpush3.bf16.msra.mxu1 %v13158_v32  ;;  %v13166_v32 = vld [vmem:[#allocation71_spill] sm:$0xff] }
 0x94e   :  { %7905 = vmatprep.subr.bf16.mxu1 %v12812_v14  ;;  %v13171_v14 = vld [vmem:[#allocation81_spill] sm:$0xff] }
 0x94f   :  { %7627 = vmatpush1.bf16.msra.mxu0 %v13159_v35  ;;  %v13168_v35 = vld [vmem:[#allocation75_spill] sm:$0xff] }
 0x950   :  { %7693 = vmatprep.subr.bf16.mxu0 %v13160_v28  ;;  %v13169_v28 = vld [vmem:[#allocation77_spill] sm:$0xff] }
 0x951   :  { %7907 = vmatpush3.bf16.msra.mxu1 %v13161_v61  ;;  %v13170_v61 = vld [vmem:[#allocation79_spill] sm:$0xff] }
 0x952   :  { %3325 = vmatmul.mubr.f32.vlgmr.msra.gmra.mrb[32].mxu0 %v11143_v57  ;;  %7941 = vmatprep.subr.bf16.mxu1 %v13162_v34  ;;  %v13172_v34 = vld [vmem:[#allocation83_spill] sm:$0xff] }
 0x953   :  { %7695 = vmatpush1.bf16.msra.mxu0 %v13163_v38  ;;  %3494 = vmatprep.mubr.f32.mxu0 %v11187_v27  ;;  %v13173_v38 = vld [vmem:[#allocation85_spill] sm:$0xff] }
 0x954   :  { %7697 = vmatprep.subr.bf16.mxu0 %v13164_v21  ;;  %v13175_v21 = vld [vmem:[#allocation89_spill] sm:$0xff] }
 0x957   :  { %7699 = vmatpush1.bf16.msra.mxu0 %v13165_v63  ;;  %v13176_v63 = vld [vmem:[#allocation91_spill] sm:$0xff] }
 0x958   :  { %7701 = vmatprep.subr.bf16.mxu0 %v13166_v32  ;;  %v13177_v32 = vld [vmem:[#allocation93_spill] sm:$0xff] }
 0x95b   :  { %7703 = vmatpush1.bf16.msra.mxu0 %v13167_v50  ;;  %v13178_v50 = vld [vmem:[#allocation95_spill] sm:$0xff] }
 0x95c   :  { %7705 = vmatprep.subr.bf16.mxu0 %v13168_v35  ;;  %v13179_v35 = vld [vmem:[#allocation97_spill] sm:$0xff] }
 0x95f   :  { %7707 = vmatpush1.bf16.msra.mxu0 %v13169_v28  ;;  %v13180_v28 = vld [vmem:[#allocation99_spill] sm:$0xff] }
 0x960   :  { %7709 = vmatprep.subr.bf16.mxu0 %v13170_v61  ;;  %v13181_v61 = vld [vmem:[#allocation101_spill] sm:$0xff] }
 0x963   :  { %7711 = vmatpush1.bf16.msra.mxu0 %v13171_v14  ;;  %v13182_v14 = vld [vmem:[#allocation103_spill] sm:$0xff] }
 0x964   :  { %7713 = vmatprep.subr.bf16.mxu0 %v13172_v34  ;;  %v13183_v34 = vld [vmem:[#allocation105_spill] sm:$0xff] }
 0x967   :  { %7715 = vmatpush1.bf16.msra.mxu0 %v13173_v38  ;;  %v13184_v38 = vld [vmem:[#allocation107_spill] sm:$0xff] }
 0x968   :  { %7717 = vmatprep.subr.bf16.mxu0 %v13174_v53  ;;  %v13185_v53 = vld [vmem:[#allocation109_spill] sm:$0xff] }
 0x96b   :  { %7719 = vmatpush1.bf16.msra.mxu0 %v13175_v21  ;;  %v13186_v21 = vld [vmem:[#allocation111_spill] sm:$0xff] }
 0x96c   :  { %7721 = vmatprep.subr.bf16.mxu0 %v13176_v63  ;;  %v13187_v63 = vld [vmem:[#allocation113_spill] sm:$0xff] }
 0x96f   :  { %7723 = vmatpush1.bf16.msra.mxu0 %v13177_v32  ;;  %v13188_v32 = vld [vmem:[#allocation115_spill] sm:$0xff] }
 0x970   :  { %7725 = vmatprep.subr.bf16.mxu0 %v13178_v50 }
 0x973   :  { %7727 = vmatpush1.bf16.msra.mxu0 %v13179_v35 }
 0x974   :  { %7729 = vmatprep.subr.bf16.mxu0 %v13180_v28  ;;  %v13189_v28 = vld [vmem:[#allocation117_spill] sm:$0xff] }
 0x977   :  { %7731 = vmatpush1.bf16.msra.mxu0 %v13181_v61  ;;  %v13190_v61 = vld [vmem:[#allocation119_spill] sm:$0xff] }
 0x978   :  { %7733 = vmatprep.subr.bf16.mxu0 %v13182_v14  ;;  %v13191_v14 = vld [vmem:[#allocation121_spill] sm:$0xff] }
 0x97b   :  { %7735 = vmatpush1.bf16.msra.mxu0 %v13183_v34  ;;  %v13192_v34 = vld [vmem:[#allocation123_spill] sm:$0xff] }
 0x97c   :  { %7737 = vmatprep.subr.bf16.mxu0 %v13184_v38  ;;  %v13193_v38 = vld [vmem:[#allocation125_spill] sm:$0xff] }
 0x97f   :  { %7739 = vmatpush1.bf16.msra.mxu0 %v13185_v53  ;;  %v13194_v53 = vld [vmem:[#allocation130_spill] sm:$0xff] }
 0x980   :  { %7741 = vmatprep.subr.bf16.mxu0 %v13186_v21  ;;  %v13197_v21 = vld [vmem:[#allocation136_spill] sm:$0xff] }
 0x983   :  { %7743 = vmatpush1.bf16.msra.mxu0 %v13187_v63  ;;  %v13195_v63 = vld [vmem:[#allocation132_spill] sm:$0xff] }
 0x984   :  { %7745 = vmatprep.subr.bf16.mxu0 %v13188_v32  ;;  %v13196_v32 = vld [vmem:[#allocation134_spill] sm:$0xff] }
 0x985   :  { %v11302_v50 = vpop.f32.mrb[30].mxu1 }
 0x986   :  { %v11304_v35 = vpop.f32.mrb[31].mxu1 }
 0x987   :  { %7747 = vmatpush1.bf16.msra.mxu0 %v13189_v28 }
 0x988   :  { %7749 = vmatprep.subr.bf16.mxu0 %v13190_v61  ;;  %v13198_v61 = vld [vmem:[#allocation140_spill] sm:$0xff] }
 0x98b   :  { %7751 = vmatpush1.bf16.msra.mxu0 %v13191_v14 }
 0x98c   :  { %7753 = vmatprep.subr.bf16.mxu0 %v13192_v34  ;;  %v13199_v34 = vld [vmem:[#allocation144_spill] sm:$0xff] }
 0x98f   :  { %7755 = vmatpush1.bf16.msra.mxu0 %v13193_v38 }
 0x990   :  { %7821 = vmatprep.subr.bf16.mxu0 %v13194_v53 }
 0x992   :  { %3495 = vmatmul.mubr.f32.vlgmr.msra.gmra.mrb[34].mxu0 %v11143_v57  ;;  %v13200_v57 = vld [vmem:[#allocation156_spill] sm:$0xff] }
 0x993   :  { %7823 = vmatpush1.bf16.msra.mxu0 %v13195_v63  ;;  %3660 = vmatprep.mubr.f32.mxu0 %v11233_v13  ;;  %v13201_v13 = vld [vmem:[#allocation158_spill] sm:$0xff] }
 0x994   :  { %7825 = vmatprep.subr.bf16.mxu0 %v13196_v32 }
 0x997   :  { %7827 = vmatpush1.bf16.msra.mxu0 %v13197_v21  ;;  %v13231_v21 = vld [vmem:[#allocation47_spill] sm:$0xff] }
 0x998   :  { %7829 = vmatprep.subr.bf16.mxu0 %v13062_v42  ;;  %v13202_v42 = vld [vmem:[#allocation160_spill] sm:$0xff] }
 0x99b   :  { %7831 = vmatpush1.bf16.msra.mxu0 %v13198_v61  ;;  %v13203_v61 = vld [vmem:[#allocation162_spill] sm:$0xff] }
 0x99c   :  { %7833 = vmatprep.subr.bf16.mxu0 %v13064_v15  ;;  %v13204_v15 = vld [vmem:[#allocation164_spill] sm:$0xff] }
 0x99f   :  { %7835 = vmatpush1.bf16.msra.mxu0 %v13199_v34  ;;  %v13205_v34 = vld [vmem:[#allocation166_spill] sm:$0xff] }
 0x9a0   :  { %7837 = vmatprep.subr.bf16.mxu0 %v13066_v10  ;;  %v13206_v10 = vld [vmem:[#allocation168_spill] sm:$0xff] }
 0x9a3   :  { %7839 = vmatpush1.bf16.msra.mxu0 %v13067_v20  ;;  %v13207_v20 = vld [vmem:[#allocation170_spill] sm:$0xff] }
 0x9a4   :  { %7841 = vmatprep.subr.bf16.mxu0 %v13068_v4  ;;  %v13208_v4 = vld [vmem:[#allocation172_spill] sm:$0xff] }
 0x9a7   :  { %7843 = vmatpush1.bf16.msra.mxu0 %v13069_v31  ;;  %v13209_v31 = vld [vmem:[#allocation174_spill] sm:$0xff] }
 0x9a8   :  { %7845 = vmatprep.subr.bf16.mxu0 %v13070_v23  ;;  %v13210_v23 = vld [vmem:[#allocation176_spill] sm:$0xff] }
 0x9ab   :  { %7847 = vmatpush1.bf16.msra.mxu0 %v13200_v57  ;;  %v13211_v57 = vld [vmem:[#allocation178_spill] sm:$0xff] }
 0x9ac   :  { %7849 = vmatprep.subr.bf16.mxu0 %v13201_v13  ;;  %v13212_v13 = vld [vmem:[#allocation180_spill] sm:$0xff] }
 0x9af   :  { %7851 = vmatpush1.bf16.msra.mxu0 %v13202_v42  ;;  %v13213_v42 = vld [vmem:[#allocation182_spill] sm:$0xff] }
 0x9b0   :  { %7853 = vmatprep.subr.bf16.mxu0 %v13203_v61 }
 0x9b3   :  { %7855 = vmatpush1.bf16.msra.mxu0 %v13204_v15  ;;  %v13214_v15 = vld [vmem:[#allocation184_spill] sm:$0xff] }
 0x9b4   :  { %7857 = vmatprep.subr.bf16.mxu0 %v13205_v34 }
 0x9b7   :  { %7859 = vmatpush1.bf16.msra.mxu0 %v13206_v10  ;;  %v13215_v10 = vld [vmem:[#allocation186_spill] sm:$0xff] }
 0x9b8   :  { %7861 = vmatprep.subr.bf16.mxu0 %v13207_v20  ;;  %v13216_v20 = vld [vmem:[#allocation188_spill] sm:$0xff] }
 0x9bb   :  { %7863 = vmatpush1.bf16.msra.mxu0 %v13208_v4  ;;  %v13217_v4 = vld [vmem:[#allocation190_spill] sm:$0xff] }
 0x9bc   :  { %7865 = vmatprep.subr.bf16.mxu0 %v13209_v31  ;;  %v13218_v31 = vld [vmem:[#allocation192_spill] sm:$0xff] }
 0x9bf   :  { %7867 = vmatpush1.bf16.msra.mxu0 %v13210_v23  ;;  %v13219_v23 = vld [vmem:[#allocation23_spill] sm:$0xff] }
 0x9c0   :  { %7869 = vmatprep.subr.bf16.mxu0 %v13211_v57  ;;  %v13223_v57 = vld [vmem:[#allocation31_spill] sm:$0xff] }
 0x9c3   :  { %7871 = vmatpush1.bf16.msra.mxu0 %v13212_v13  ;;  %v13220_v13 = vld [vmem:[#allocation25_spill] sm:$0xff] }
 0x9c4   :  { %7873 = vmatprep.subr.bf16.mxu0 %v13213_v42  ;;  %v13221_v42 = vld [vmem:[#allocation27_spill] sm:$0xff] }
 0x9c6   :  { %v11340_v61 = vpop.f32.mrb[32].mxu1 }
 0x9c7   :  { %7875 = vmatpush1.bf16.msra.mxu0 %v13214_v15  ;;  %v11343_v34 = vpop.f32.mrb[33].mxu1  ;;  %v13222_v15 = vld [vmem:[#allocation29_spill] sm:$0xff] }
 0x9c8   :  { %7877 = vmatprep.subr.bf16.mxu0 %v13215_v10  ;;  %v13224_v10 = vld [vmem:[#allocation33_spill] sm:$0xff] }
 0x9cb   :  { %7879 = vmatpush1.bf16.msra.mxu0 %v13216_v20  ;;  %v13225_v20 = vld [vmem:[#allocation35_spill] sm:$0xff] }
 0x9cc   :  { %7881 = vmatprep.subr.bf16.mxu0 %v13217_v4  ;;  %v13226_v4 = vld [vmem:[#allocation37_spill] sm:$0xff] }
 0x9cf   :  { %7883 = vmatpush1.bf16.msra.mxu0 %v13218_v31  ;;  %v13227_v31 = vld [vmem:[#allocation39_spill] sm:$0xff] }
 0x9d0   :  { %7909 = vmatprep.subr.bf16.mxu0 %v13219_v23  ;;  %v13228_v23 = vld [vmem:[#allocation41_spill] sm:$0xff] }
 0x9d2   :  { %3661 = vmatmul.mubr.f32.vlgmr.msra.gmra.mrb[36].mxu0 %v11187_v27  ;;  %v13229_v27 = vld [vmem:[#allocation43_spill] sm:$0xff] }
 0x9d3   :  { %7911 = vmatpush1.bf16.msra.mxu0 %v13220_v13  ;;  %3826 = vmatprep.mubr.f32.mxu0 %v12636_v59  ;;  %v13230_v13 = vld [vmem:[#allocation45_spill] sm:$0xff] }
 0x9d4   :  { %7913 = vmatprep.subr.bf16.mxu0 %v13221_v42  ;;  %v13232_v42 = vld [vmem:[#allocation49_spill] sm:$0xff] }
 0x9d7   :  { %7915 = vmatpush1.bf16.msra.mxu0 %v13222_v15  ;;  %v13233_v15 = vld [vmem:[#allocation51_spill] sm:$0xff] }
 0x9d8   :  { %7917 = vmatprep.subr.bf16.mxu0 %v13223_v57  ;;  %v13234_v57 = vld [vmem:[#allocation53_spill] sm:$0xff] }
 0x9db   :  { %7919 = vmatpush1.bf16.msra.mxu0 %v13224_v10  ;;  %v13235_v10 = vld [vmem:[#allocation55_spill] sm:$0xff] }
 0x9dc   :  { %7921 = vmatprep.subr.bf16.mxu0 %v13225_v20 }
 0x9df   :  { %7923 = vmatpush1.bf16.msra.mxu0 %v13226_v4  ;;  %v13236_v4 = vld [vmem:[#allocation165_spill] sm:$0xff] }
 0x9e0   :  { %7925 = vmatprep.subr.bf16.mxu0 %v13227_v31 }
 0x9e3   :  { %7927 = vmatpush1.bf16.msra.mxu0 %v13228_v23 }
 0x9e4   :  { %7929 = vmatprep.subr.bf16.mxu0 %v13229_v27 }
 0x9e7   :  { %7931 = vmatpush1.bf16.msra.mxu0 %v13230_v13  ;;  %v13237_v13 = vld [vmem:[#allocation59_spill] sm:$0xff] }
 0x9e8   :  { %7933 = vmatprep.subr.bf16.mxu0 %v13231_v21  ;;  %v3332_v21 = vadd.f32 %v11304_v35, %v10042_v56 }
 0x9eb   :  { %7935 = vmatpush1.bf16.msra.mxu0 %v13232_v42  ;;  %v3331_v42 = vadd.f32 %v11302_v50, %v13237_v13 }
 0x9ec   :  { %7937 = vmatprep.subr.bf16.mxu0 %v13233_v15  ;;  %v5609_v15 = vmul.f32 -1.442695, %v3332_v21 }
 0x9ed   :  { %v5608_v27 = vmul.f32 -1.442695, %v3331_v42 }
 0x9ee   :  { %9236 = vpow2.f32 %v5609_v15 }
 0x9ef   :  { %7939 = vmatpush1.bf16.msra.mxu0 %v13234_v57  ;;  %9238 = vpow2.f32 %v5608_v27 }
 0x9f0   :  { %7973 = vmatprep.subr.bf16.mxu0 %v13235_v10 }
 0x9f8   :  { %v9237_v10 = vpop.eup %9236 }
 0x9f9   :  { %v9239_v57 = vpop.eup %9238  ;;  %v3345_v53 = vadd.f32 1.0, %v9237_v10 }
 0x9fb   :  { %9240 = vrcp.f32 %v3345_v53 }
 0xa05   :  { %v3184_v20 = vpop.f32.mrb[30].mxu0  ;;  %v9241_v50 = vpop.eup %9240 }
 0xa06   :  { %v3185_v32 = vadd.f32 %v3184_v20, %v13236_v4  ;;  %v5988_v31 = vpop.f32.mrb[31].mxu0  ;;  %v11369_v63 = vpop.f32.mrb[34].mxu1  ;;  %v3344_v20 = vadd.f32 1.0, %v9239_v57  ;;  %v3354_v27 = vmul.f32 %v9241_v50, %v11140_v0  ;;  %v3426_v0 = vadd.f32 %v11340_v61, %v12959_v41  ;;  %v13240_v50 = vld [vmem:[#allocation82_spill] sm:$0xff] }
 0xa07   :  { %v11371_v23 = vpop.f32.mrb[35].mxu1  ;;  %v13244_v61 = vld [vmem:[#allocation90_spill] sm:$0xff] }
 0xa08   :  { %3188 = vst [vmem:[#allocation16 + $0x10] sm:$0xff] %v3185_v32  ;;  %9242 = vrcp.f32 %v3344_v20  ;;  %v5611_v20 = vmul.f32 -1.442695, %v3426_v0 }
 0xa12   :  { %v9243_v21 = vpop.eup %9242 }
 0xa25   :  { %v3326_v31 = vpop.f32.mrb[32].mxu0 }
 0xa26   :  { %v3333_v4 = vadd.f32 %v3326_v31, %v10050_v22  ;;  %v3328_v38 = vpop.f32.mrb[33].mxu0 }
 0xa27   :  { %v3334_v32 = vadd.f32 %v3328_v38, %v12955_v49 }
 0xa28   :  { %v5610_v35 = vmul.f32 -1.442695, %v3333_v4  ;;  %v3428_v4 = vadd.f32 %v11343_v34, %v12821_v40  ;;  %v13241_v34 = vld [vmem:[#allocation84_spill] sm:$0xff] }
 0xa29   :  { %9244 = vtanh.f32 %v3334_v32  ;;  %v13238_v32 = vld [vmem:[#allocation78_spill] sm:$0xff] }
 0xa2a   :  { %9246 = vpow2.f32 %v5610_v35  ;;  %v13239_v35 = vld [vmem:[#allocation80_spill] sm:$0xff] }
 0xa33   :  { %v9245_v42 = vpop.eup %9244 }
 0xa34   :  { %v9247_v15 = vpop.eup %9246  ;;  %v3355_v13 = vmul.f32 %v9245_v42, %v9243_v21  ;;  %v13242_v21 = vld [vmem:[#allocation86_spill] sm:$0xff]  ;;  %v13243_v42 = vld [vmem:[#allocation88_spill] sm:$0xff] }
 0xa35   :  { %v3346_v10 = vadd.f32 1.0, %v9247_v15 }
 0xa36   :  { %v11380_v57 = vadd.f32 %v3355_v13, %v3354_v27  ;;  %v5612_v13 = vmul.f32 -1.442695, %v3428_v4 }
 0xa37   :  { %9248 = vrcp.f32 %v3346_v10  ;;  %v13245_v10 = vld [vmem:[#allocation92_spill] sm:$0xff] }
 0xa38   :  { %9250 = vtanh.f32 %v11380_v57 }
 0xa39   :  { %9252 = vpow2.f32 %v5612_v13  ;;  %v13247_v13 = vld [vmem:[#allocation127_spill] sm:$0xff] }
 0xa3a   :  { %9254 = vpow2.f32 %v5611_v20 }
 0xa41   :  { %v9249_v53 = vpop.eup %9248 }
 0xa42   :  { %v9251_v31 = vpop.eup %9250 }
 0xa43   :  { %v11383_v38 = vmul.f32 %v9251_v31, %v9249_v53  ;;  %v9253_v15 = vpop.eup %9252  ;;  %v13246_v31 = vld [vmem:[#allocation94_spill] sm:$0xff] }
 0xa44   :  { %v9255_v27 = vpop.eup %9254  ;;  %v3511_v53 = vadd.f32 1.0, %v9253_v15  ;;  %v13251_v15 = vld [vmem:[#allocation102_spill] sm:$0xff] }
 0xa45   :  { %3827 = vmatmul.mubr.f32.vlgmr.msra.gmra.mrb[38].mxu0 %v11383_v38  ;;  %v3510_v4 = vadd.f32 1.0, %v9255_v27  ;;  %v13252_v27 = vld [vmem:[#allocation104_spill] sm:$0xff] }
 0xa46   :  { %7975 = vmatpush1.bf16.msra.mxu0 %v10059_v46  ;;  %9256 = vrcp.f32 %v3511_v53 }
 0xa47   :  { %7977 = vmatprep.subr.bf16.mxu0 %v12692_v58  ;;  %9258 = vrcp.f32 %v3510_v4 }
 0xa4a   :  { %7979 = vmatpush1.bf16.msra.mxu0 %v12956_v37 }
 0xa4b   :  { %7981 = vmatprep.subr.bf16.mxu0 %v12957_v29 }
 0xa4e   :  { %7983 = vmatpush1.bf16.msra.mxu0 %v12958_v16 }
 0xa4f   :  { %7985 = vmatprep.subr.bf16.mxu0 %v12960_v26 }
 0xa52   :  { %7987 = vmatpush1.bf16.msra.mxu0 %v13097_v8 }
 0xa53   :  { %7989 = vmatprep.subr.bf16.mxu0 %v13238_v32 }
 0xa56   :  { %7991 = vmatpush1.bf16.msra.mxu0 %v13239_v35  ;;  %v13248_v35 = vld [vmem:[#allocation96_spill] sm:$0xff] }
 0xa57   :  { %7993 = vmatprep.subr.bf16.mxu0 %v13240_v50 }
 0xa5a   :  { %7995 = vmatpush1.bf16.msra.mxu0 %v13241_v34 }
 0xa5b   :  { %7997 = vmatprep.subr.bf16.mxu0 %v13242_v21 }
 0xa5e   :  { %7999 = vmatpush1.bf16.msra.mxu0 %v13243_v42  ;;  %v13249_v42 = vld [vmem:[#allocation98_spill] sm:$0xff] }
 0xa5f   :  { %8001 = vmatprep.subr.bf16.mxu0 %v13244_v61 }
 0xa62   :  { %8003 = vmatpush1.bf16.msra.mxu0 %v13245_v10  ;;  %v13250_v10 = vld [vmem:[#allocation100_spill] sm:$0xff] }
 0xa63   :  { %8005 = vmatprep.subr.bf16.mxu0 %v13246_v31  ;;  %v13253_v31 = vld [vmem:[#allocation106_spill] sm:$0xff] }
 0xa65   :  { %v3496_v0 = vpop.f32.mrb[34].mxu0 }
 0xa66   :  { %v3497_v20 = vadd.f32 %v3496_v0, %v13247_v13  ;;  %v3498_v50 = vpop.f32.mrb[35].mxu0  ;;  %8007 = vmatpush1.bf16.msra.mxu0 %v13248_v35  ;;  %v9257_v0 = vpop.eup %9256  ;;  %v13254_v35 = vld [vmem:[#allocation108_spill] sm:$0xff] }
 0xa67   :  { %v3499_v21 = vadd.f32 %v3498_v50, %v13109_v9  ;;  %8009 = vmatprep.subr.bf16.mxu0 %v13249_v42  ;;  %v9259_v13 = vpop.eup %9258  ;;  %v13255_v50 = vld [vmem:[#allocation110_spill] sm:$0xff]  ;;  %v3520_v4 = vmul.f32 %v9257_v0, %v11177_v7 }
 0xa68   :  { %v5613_v61 = vmul.f32 -1.442695, %v3497_v20 }
 0xa69   :  { %9260 = vtanh.f32 %v3499_v21 }
 0xa6a   :  { %9262 = vpow2.f32 %v5613_v61  ;;  %8011 = vmatpush1.bf16.msra.mxu0 %v13250_v10 }
 0xa6b   :  { %8013 = vmatprep.subr.bf16.mxu0 %v13251_v15 }
 0xa6e   :  { %8015 = vmatpush1.bf16.msra.mxu0 %v13252_v27  ;;  %v13258_v27 = vld [vmem:[#allocation120_spill] sm:$0xff] }
 0xa6f   :  { %8017 = vmatprep.subr.bf16.mxu0 %v13253_v31  ;;  %v13256_v31 = vld [vmem:[#allocation116_spill] sm:$0xff] }
 0xa72   :  { %8019 = vmatpush1.bf16.msra.mxu0 %v13254_v35  ;;  %v13257_v35 = vld [vmem:[#allocation118_spill] sm:$0xff] }
 0xa73   :  { %v9261_v53 = vpop.eup %9260  ;;  %8021 = vmatprep.subr.bf16.mxu0 %v13255_v50  ;;  %v13259_v50 = vld [vmem:[#allocation122_spill] sm:$0xff] }
 0xa74   :  { %v9263_v42 = vpop.eup %9262  ;;  %v3521_v21 = vmul.f32 %v9261_v53, %v9259_v13  ;;  %v13261_v53 = vld [vmem:[#allocation129_spill] sm:$0xff] }
 0xa75   :  { %v3512_v61 = vadd.f32 1.0, %v9263_v42  ;;  %v13260_v42 = vld [vmem:[#allocation124_spill] sm:$0xff] }
 0xa76   :  { %v11417_v20 = vadd.f32 %v3521_v21, %v3520_v4  ;;  %8023 = vmatpush1.bf16.msra.mxu0 %v13117_v11  ;;  %v13262_v4 = vld [vmem:[#allocation131_spill] sm:$0xff] }
 0xa77   :  { %9264 = vrcp.f32 %v3512_v61  ;;  %8025 = vmatprep.subr.bf16.mxu0 %v13118_v24  ;;  %v13263_v21 = vld [vmem:[#allocation135_spill] sm:$0xff]  ;;  %v13264_v61 = vld [vmem:[#allocation137_spill] sm:$0xff] }
 0xa78   :  { %9266 = vtanh.f32 %v11417_v20 }
 0xa7a   :  { %8027 = vmatpush1.bf16.msra.mxu0 %v13256_v31 }
 0xa7b   :  { %8029 = vmatprep.subr.bf16.mxu0 %v13257_v35 }
 0xa7e   :  { %8031 = vmatpush1.bf16.msra.mxu0 %v13258_v27 }
 0xa7f   :  { %8033 = vmatprep.subr.bf16.mxu0 %v13259_v50  ;;  %v13265_v50 = vld [vmem:[#allocation58_spill] sm:$0xff] }
 0xa80   :  { %v3594_v27 = vadd.f32 %v11371_v23, %v13265_v50  ;;  %v13269_v23 = vld [vmem:[#allocation151_spill] sm:$0xff] }
 0xa81   :  { %v9265_v7 = vpop.eup %9264 }
 0xa82   :  { %v9267_v13 = vpop.eup %9266  ;;  %8035 = vmatpush1.bf16.msra.mxu0 %v13260_v42 }
 0xa83   :  { %v11427_v0 = vmul.f32 %v9267_v13, %v9265_v7  ;;  %8101 = vmatprep.subr.bf16.mxu0 %v13261_v53  ;;  %v3592_v7 = vadd.f32 %v11369_v63, %v13128_v54  ;;  %v13266_v13 = vld [vmem:[#allocation139_spill] sm:$0xff]  ;;  %v5615_v53 = vmul.f32 -1.442695, %v3594_v27 }
 0xa84   :  { %v13270_v63 = vld [vmem:[#allocation155_spill] sm:$0xff] }
 0xa85   :  { %3996 = vmatprep.mubr.f32.mxu0 %v11427_v0  ;;  %v5614_v42 = vmul.f32 -1.442695, %v3592_v7  ;;  %9268 = vpow2.f32 %v5615_v53 }
 0xa86   :  { %3997 = vmatmul.mubr.f32.vlgmr.msra.gmra.mrb[40].mxu0 %v11383_v38 }
 0xa87   :  { %8103 = vmatpush1.bf16.msra.mxu0 %v13262_v4  ;;  %v13267_v4 = vld [vmem:[#allocation145_spill] sm:$0xff]  ;;  %9270 = vpow2.f32 %v5614_v42 }
 0xa88   :  { %8105 = vmatprep.subr.bf16.mxu0 %v12987_v1 }
 0xa8b   :  { %8107 = vmatpush1.bf16.msra.mxu0 %v13263_v21 }
 0xa8c   :  { %8109 = vmatprep.subr.bf16.mxu0 %v13264_v61  ;;  %v13268_v61 = vld [vmem:[#allocation149_spill] sm:$0xff] }
 0xa8f   :  { %8111 = vmatpush1.bf16.msra.mxu0 %v13266_v13  ;;  %v9269_v13 = vpop.eup %9268 }
 0xa90   :  { %8113 = vmatprep.subr.bf16.mxu0 %v13130_v5  ;;  %v3677_v7 = vadd.f32 1.0, %v9269_v13 }
 0xa91   :  { %v9271_v27 = vpop.eup %9270 }
 0xa92   :  { %9272 = vrcp.f32 %v3677_v7 }
 0xa93   :  { %8115 = vmatpush1.bf16.msra.mxu0 %v13131_v43 }
 0xa94   :  { %8117 = vmatprep.subr.bf16.mxu0 %v13267_v4  ;;  %v3676_v4 = vadd.f32 1.0, %v9271_v27 }
 0xa96   :  { %9274 = vrcp.f32 %v3676_v4 }
 0xa97   :  { %8119 = vmatpush1.bf16.msra.mxu0 %v13133_v44 }
 0xa98   :  { %8121 = vmatprep.subr.bf16.mxu0 %v13268_v61 }
 0xa9b   :  { %8123 = vmatpush1.bf16.msra.mxu0 %v13269_v23 }
 0xa9c   :  { %8125 = vmatprep.subr.bf16.mxu0 %v13136_v60  ;;  %v9273_v13 = vpop.eup %9272 }
 0xa9d   :  { %v3686_v4 = vmul.f32 %v9273_v13, %v11223_v19  ;;  %v13271_v19 = vld [vmem:[#allocation189_spill] sm:$0xff] }
 0xa9f   :  { %8127 = vmatpush1.bf16.msra.mxu0 %v13270_v63 }
 0xaa0   :  { %8129 = vmatprep.subr.bf16.mxu0 %v12999_v3  ;;  %v9275_v27 = vpop.eup %9274 }
 0xaa3   :  { %8131 = vmatpush1.bf16.msra.mxu0 %v13000_v30 }
 0xaa4   :  { %8133 = vmatprep.subr.bf16.mxu0 %v13001_v25 }
 0xaa5   :  { %v3662_v42 = vpop.f32.mrb[36].mxu0 }
 0xaa6   :  { %v3663_v53 = vadd.f32 %v3662_v42, %v13002_v17  ;;  %v3664_v61 = vpop.f32.mrb[37].mxu0 }
 0xaa7   :  { %v3665_v23 = vadd.f32 %v3664_v61, %v13003_v36  ;;  %8135 = vmatpush1.bf16.msra.mxu0 %v13004_v52 }
 0xaa8   :  { %v5616_v63 = vmul.f32 -1.442695, %v3663_v53  ;;  %8137 = vmatprep.subr.bf16.mxu0 %v12867_v55 }
 0xaa9   :  { %9276 = vtanh.f32 %v3665_v23 }
 0xaaa   :  { %9278 = vpow2.f32 %v5616_v63 }
 0xaab   :  { %8139 = vmatpush1.bf16.msra.mxu0 %v13005_v48 }
 0xaac   :  { %8141 = vmatprep.subr.bf16.mxu0 %v12869_v51 }
 0xaaf   :  { %8143 = vmatpush1.bf16.msra.mxu0 %v12870_v45 }
 0xab0   :  { %8145 = vmatprep.subr.bf16.mxu0 %v12871_v12 }
 0xab3   :  { %v9277_v7 = vpop.eup %9276  ;;  %8147 = vmatpush1.bf16.msra.mxu0 %v12872_v2 }
 0xab4   :  { %v9279_v61 = vpop.eup %9278  ;;  %v3687_v42 = vmul.f32 %v9277_v7, %v9275_v27  ;;  %8149 = vmatprep.subr.bf16.mxu0 %v12873_v47  ;;  %v13272_v27 = vld [vmem:[#allocation191_spill] sm:$0xff] }
 0xab5   :  { %v3678_v23 = vadd.f32 1.0, %v9279_v61  ;;  %v13273_v61 = vmov 0.0|0.0  }
 0xab6   :  { %v11463_v63 = vadd.f32 %v3687_v42, %v3686_v4  ;;  %v13274_v4 = vld [vmem:[#allocation26_spill] sm:$0xff]  ;;  %v13275_v42 = vld [vmem:[#allocation28_spill] sm:$0xff] }
 0xab7   :  { %9280 = vrcp.f32 %v3678_v23  ;;  %8151 = vmatpush1.bf16.msra.mxu0 %v12874_v33  ;;  %v13276_v23 = vld [vmem:[#allocation193_spill] sm:$0xff] }
 0xab8   :  { %9282 = vtanh.f32 %v11463_v63  ;;  %8153 = vmatprep.subr.bf16.mxu0 %v10547_v6 }
 0xabb   :  { %8155 = vmatpush1.bf16.msra.mxu0 %v10553_v39  ;;  %v13310_v39 = vld [vmem:[#allocation87_spill] sm:$0xff] }
 0xabc   :  { %8157 = vmatprep.subr.bf16.mxu0 %v10559_v18  ;;  %v13285_v18 = vld [vmem:[#allocation196_spill] sm:$0xff] }
 0xabf   :  { %8159 = vmatpush1.bf16.msra.mxu0 %v10565_v62  ;;  %v13284_v62 = vld [vmem:[#allocation40_spill] sm:$0xff] }
 0xac0   :  { %8161 = vmatprep.subr.bf16.mxu0 %v13271_v19  ;;  %v13282_v19 = vld [vmem:[#allocation195_spill] sm:$0xff] }
 0xac1   :  { %v9281_v53 = vpop.eup %9280 }
 0xac2   :  { %v9283_v13 = vpop.eup %9282 }
 0xac3   :  { %8163 = vmatpush1.bf16.msra.mxu0 %v13272_v27  ;;  %v11473_v7 = vmul.f32 %v9283_v13, %v9281_v53  ;;  %v13277_v53 = vld [vmem:[#allocation30_spill] sm:$0xff]  ;;  %v13278_v13 = vld [vmem:[#allocation32_spill] sm:$0xff] }
 0xac4   :  { %8228 = vmatprep.subr.bf16.mxu0 %v13273_v61  ;;  %v13279_v27 = vld [vmem:[#allocation194_spill] sm:$0xff] }
 0xac5   :  { %6022 = vmatmul.mubr.f32.vlgmr.msra.gmra.mrb[36].mxu1 %v11473_v7  ;;  %4162 = vmatprep.mubr.f32.mxu0 %v11473_v7 }
 0xac6   :  { %7943 = vmatpush1.bf16.msra.mxu1 %v13274_v4  ;;  %4163 = vmatmul.mubr.f32.vlgmr.msra.gmra.mrb[42].mxu0 %v11427_v0  ;;  %v13280_v4 = vld [vmem:[#allocation34_spill] sm:$0xff] }
 0xac7   :  { %7945 = vmatprep.subr.bf16.mxu1 %v13275_v42  ;;  %3897 = vmatprep.mubr.f32.mxu1 %v12636_v59  ;;  %v13281_v42 = vld [vmem:[#allocation36_spill] sm:$0xff] }
 0xac8   :  { %8230 = vmatpush3.bf16.msra.mxu0 %v13276_v23  ;;  %6056 = vmatprep.mubr.msk.f32.mxu0 %vm9652_vm0, %v12636_v59  ;;  %v13283_v23 = vld [vmem:[#allocation38_spill] sm:$0xff] }
 0xac9   :  { %8231 = vmatprep.subr.bf16.mxu0 %v13273_v61 }
 0xaca   :  { %7947 = vmatpush1.bf16.msra.mxu1 %v13277_v53  ;;  %v13288_v53 = vld [vmem:[#allocation197_spill] sm:$0xff] }
 0xacb   :  { %7949 = vmatprep.subr.bf16.mxu1 %v13278_v13  ;;  %v13286_v13 = vld [vmem:[#allocation42_spill] sm:$0xff] }
 0xacc   :  { %8233 = vmatpush3.bf16.msra.mxu0 %v13279_v27  ;;  %v13287_v27 = vld [vmem:[#allocation44_spill] sm:$0xff] }
 0xacd   :  { %8234 = vmatprep.subr.bf16.mxu0 %v13273_v61 }
 0xace   :  { %7951 = vmatpush1.bf16.msra.mxu1 %v13280_v4  ;;  %v13291_v4 = vld [vmem:[#allocation198_spill] sm:$0xff] }
 0xacf   :  { %7953 = vmatprep.subr.bf16.mxu1 %v13281_v42  ;;  %v13289_v42 = vld [vmem:[#allocation46_spill] sm:$0xff] }
 0xad0   :  { %8236 = vmatpush3.bf16.msra.mxu0 %v13282_v19  ;;  %v13290_v19 = vld [vmem:[#allocation48_spill] sm:$0xff] }
 0xad1   :  { %8237 = vmatprep.subr.bf16.mxu0 %v13273_v61 }
 0xad2   :  { %7955 = vmatpush1.bf16.msra.mxu1 %v13283_v23  ;;  %v13294_v23 = vld [vmem:[#allocation199_spill] sm:$0xff] }
 0xad3   :  { %7957 = vmatprep.subr.bf16.mxu1 %v13284_v62  ;;  %v13292_v62 = vld [vmem:[#allocation50_spill] sm:$0xff] }
 0xad4   :  { %8239 = vmatpush3.bf16.msra.mxu0 %v13285_v18  ;;  %v13293_v18 = vld [vmem:[#allocation52_spill] sm:$0xff] }
 0xad5   :  { %8240 = vmatprep.subr.bf16.mxu0 %v13273_v61 }
 0xad6   :  { %7959 = vmatpush1.bf16.msra.mxu1 %v13286_v13  ;;  %v13297_v13 = vld [vmem:[#allocation200_spill] sm:$0xff] }
 0xad7   :  { %7961 = vmatprep.subr.bf16.mxu1 %v13287_v27  ;;  %v13295_v27 = vld [vmem:[#allocation54_spill] sm:$0xff] }
 0xad8   :  { %8242 = vmatpush3.bf16.msra.mxu0 %v13288_v53  ;;  %v13296_v53 = vld [vmem:[#allocation56_spill] sm:$0xff] }
 0xad9   :  { %8243 = vmatprep.subr.bf16.mxu0 %v13273_v61 }
 0xada   :  { %7963 = vmatpush1.bf16.msra.mxu1 %v13289_v42  ;;  %v13303_v42 = vld [vmem:[#allocation73_spill] sm:$0xff] }
 0xadb   :  { %7965 = vmatprep.subr.bf16.mxu1 %v13290_v19  ;;  %v13298_v19 = vld [vmem:[#allocation24_spill] sm:$0xff] }
 0xadc   :  { %8245 = vmatpush3.bf16.msra.mxu0 %v13291_v4  ;;  %v13299_v4 = vld [vmem:[#allocation65_spill] sm:$0xff] }
 0xadd   :  { %8246 = vmatprep.subr.bf16.mxu0 %v13273_v61 }
 0xade   :  { %7967 = vmatpush1.bf16.msra.mxu1 %v13292_v62  ;;  %v13300_v62 = vld [vmem:[#allocation67_spill] sm:$0xff] }
 0xadf   :  { %7969 = vmatprep.subr.bf16.mxu1 %v13293_v18  ;;  %v13301_v18 = vld [vmem:[#allocation69_spill] sm:$0xff] }
 0xae0   :  { %8248 = vmatpush3.bf16.msra.mxu0 %v13294_v23  ;;  %v13302_v23 = vld [vmem:[#allocation71_spill] sm:$0xff] }
 0xae1   :  { %8249 = vmatprep.subr.bf16.mxu0 %v13273_v61  ;;  %v13307_v61 = vld [vmem:[#allocation81_spill] sm:$0xff] }
 0xae2   :  { %7971 = vmatpush1.bf16.msra.mxu1 %v13295_v27  ;;  %v13304_v27 = vld [vmem:[#allocation75_spill] sm:$0xff] }
 0xae3   :  { %8037 = vmatprep.subr.bf16.mxu1 %v13296_v53  ;;  %v13305_v53 = vld [vmem:[#allocation77_spill] sm:$0xff] }
 0xae4   :  { %8251 = vmatpush3.bf16.msra.mxu0 %v13297_v13  ;;  %v13306_v13 = vld [vmem:[#allocation79_spill] sm:$0xff] }
 0xae5   :  { %3898 = vmatmul.mubr.f32.vlgmr.msra.gmra.mrb[38].mxu1 %v11383_v38  ;;  %8285 = vmatprep.subr.bf16.mxu0 %v13298_v19  ;;  %v13308_v19 = vld [vmem:[#allocation83_spill] sm:$0xff] }
 0xae6   :  { %8039 = vmatpush1.bf16.msra.mxu1 %v13299_v4  ;;  %4067 = vmatprep.mubr.f32.mxu1 %v11427_v0  ;;  %v13309_v4 = vld [vmem:[#allocation85_spill] sm:$0xff] }
 0xae7   :  { %8041 = vmatprep.subr.bf16.mxu1 %v13300_v62  ;;  %v13311_v62 = vld [vmem:[#allocation89_spill] sm:$0xff] }
 0xaea   :  { %8043 = vmatpush1.bf16.msra.mxu1 %v13301_v18  ;;  %v13312_v18 = vld [vmem:[#allocation91_spill] sm:$0xff] }
 0xaeb   :  { %8045 = vmatprep.subr.bf16.mxu1 %v13302_v23  ;;  %v13313_v23 = vld [vmem:[#allocation93_spill] sm:$0xff] }
 0xaee   :  { %8047 = vmatpush1.bf16.msra.mxu1 %v13303_v42  ;;  %v13314_v42 = vld [vmem:[#allocation95_spill] sm:$0xff] }
 0xaef   :  { %8049 = vmatprep.subr.bf16.mxu1 %v13304_v27  ;;  %v13315_v27 = vld [vmem:[#allocation97_spill] sm:$0xff] }
 0xaf2   :  { %8051 = vmatpush1.bf16.msra.mxu1 %v13305_v53  ;;  %v13316_v53 = vld [vmem:[#allocation99_spill] sm:$0xff] }
 0xaf3   :  { %8053 = vmatprep.subr.bf16.mxu1 %v13306_v13  ;;  %v13317_v13 = vld [vmem:[#allocation101_spill] sm:$0xff] }
 0xaf6   :  { %8055 = vmatpush1.bf16.msra.mxu1 %v13307_v61  ;;  %v13318_v61 = vld [vmem:[#allocation103_spill] sm:$0xff] }
 0xaf7   :  { %8057 = vmatprep.subr.bf16.mxu1 %v13308_v19  ;;  %v13319_v19 = vld [vmem:[#allocation105_spill] sm:$0xff] }
 0xafa   :  { %8059 = vmatpush1.bf16.msra.mxu1 %v13309_v4  ;;  %v13320_v4 = vld [vmem:[#allocation107_spill] sm:$0xff] }
 0xafb   :  { %8061 = vmatprep.subr.bf16.mxu1 %v13310_v39  ;;  %v13321_v39 = vld [vmem:[#allocation109_spill] sm:$0xff] }
 0xafe   :  { %8063 = vmatpush1.bf16.msra.mxu1 %v13311_v62  ;;  %v13322_v62 = vld [vmem:[#allocation111_spill] sm:$0xff] }
 0xaff   :  { %8065 = vmatprep.subr.bf16.mxu1 %v13312_v18  ;;  %v13323_v18 = vld [vmem:[#allocation113_spill] sm:$0xff] }
 0xb02   :  { %8067 = vmatpush1.bf16.msra.mxu1 %v13313_v23  ;;  %v13324_v23 = vld [vmem:[#allocation115_spill] sm:$0xff] }
 0xb03   :  { %8069 = vmatprep.subr.bf16.mxu1 %v13314_v42 }
 0xb06   :  { %8071 = vmatpush1.bf16.msra.mxu1 %v13315_v27 }
 0xb07   :  { %8073 = vmatprep.subr.bf16.mxu1 %v13316_v53 }
 0xb0a   :  { %8075 = vmatpush1.bf16.msra.mxu1 %v13317_v13  ;;  %v13325_v13 = vld [vmem:[#allocation119_spill] sm:$0xff] }
 0xb0b   :  { %8077 = vmatprep.subr.bf16.mxu1 %v13318_v61  ;;  %v13372_v61 = vld [vmem:[#allocation47_spill] sm:$0xff] }
 0xb0e   :  { %8079 = vmatpush1.bf16.msra.mxu1 %v13319_v19  ;;  %v13326_v19 = vld [vmem:[#allocation123_spill] sm:$0xff] }
 0xb0f   :  { %8081 = vmatprep.subr.bf16.mxu1 %v13320_v4  ;;  %v13327_v4 = vld [vmem:[#allocation125_spill] sm:$0xff] }
 0xb12   :  { %8083 = vmatpush1.bf16.msra.mxu1 %v13321_v39  ;;  %v13328_v39 = vld [vmem:[#allocation130_spill] sm:$0xff] }
 0xb13   :  { %8085 = vmatprep.subr.bf16.mxu1 %v13322_v62  ;;  %v13331_v62 = vld [vmem:[#allocation136_spill] sm:$0xff] }
 0xb16   :  { %8087 = vmatpush1.bf16.msra.mxu1 %v13323_v18  ;;  %v13329_v18 = vld [vmem:[#allocation132_spill] sm:$0xff] }
 0xb17   :  { %8089 = vmatprep.subr.bf16.mxu1 %v13324_v23  ;;  %v13330_v23 = vld [vmem:[#allocation134_spill] sm:$0xff] }
 0xb18   :  { %v11542_v42 = vpop.f32.mrb[38].mxu0 }
 0xb19   :  { %v11544_v27 = vpop.f32.mrb[39].mxu0 }
 0xb1a   :  { %8091 = vmatpush1.bf16.msra.mxu1 %v13189_v28  ;;  %v13332_v28 = vld [vmem:[#allocation138_spill] sm:$0xff] }
 0xb1b   :  { %8093 = vmatprep.subr.bf16.mxu1 %v13325_v13  ;;  %v13333_v13 = vld [vmem:[#allocation140_spill] sm:$0xff] }
 0xb1e   :  { %8095 = vmatpush1.bf16.msra.mxu1 %v13191_v14  ;;  %v13334_v14 = vld [vmem:[#allocation142_spill] sm:$0xff] }
 0xb1f   :  { %8097 = vmatprep.subr.bf16.mxu1 %v13326_v19  ;;  %v13335_v19 = vld [vmem:[#allocation144_spill] sm:$0xff] }
 0xb22   :  { %8099 = vmatpush1.bf16.msra.mxu1 %v13327_v4  ;;  %v13336_v4 = vld [vmem:[#allocation146_spill] sm:$0xff] }
 0xb23   :  { %8165 = vmatprep.subr.bf16.mxu1 %v13328_v39  ;;  %v13337_v39 = vld [vmem:[#allocation148_spill] sm:$0xff] }
 0xb25   :  { %4068 = vmatmul.mubr.f32.vlgmr.msra.gmra.mrb[40].mxu1 %v11383_v38  ;;  %v13338_v38 = vld [vmem:[#allocation150_spill] sm:$0xff] }
 0xb26   :  { %8167 = vmatpush1.bf16.msra.mxu1 %v13329_v18  ;;  %4233 = vmatprep.mubr.f32.mxu1 %v11473_v7  ;;  %v13339_v18 = vld [vmem:[#allocation152_spill] sm:$0xff]  ;;  %v13340_v7 = vld [vmem:[#allocation154_spill] sm:$0xff] }
 0xb27   :  { %8169 = vmatprep.subr.bf16.mxu1 %v13330_v23  ;;  %v13341_v23 = vld [vmem:[#allocation156_spill] sm:$0xff] }
 0xb2a   :  { %8171 = vmatpush1.bf16.msra.mxu1 %v13331_v62  ;;  %v13342_v62 = vld [vmem:[#allocation158_spill] sm:$0xff] }
 0xb2b   :  { %8173 = vmatprep.subr.bf16.mxu1 %v13332_v28  ;;  %v13343_v28 = vld [vmem:[#allocation160_spill] sm:$0xff] }
 0xb2e   :  { %8175 = vmatpush1.bf16.msra.mxu1 %v13333_v13  ;;  %v13344_v13 = vld [vmem:[#allocation162_spill] sm:$0xff] }
 0xb2f   :  { %8177 = vmatprep.subr.bf16.mxu1 %v13334_v14  ;;  %v13345_v14 = vld [vmem:[#allocation164_spill] sm:$0xff] }
 0xb32   :  { %8179 = vmatpush1.bf16.msra.mxu1 %v13335_v19  ;;  %v13346_v19 = vld [vmem:[#allocation166_spill] sm:$0xff] }
 0xb33   :  { %8181 = vmatprep.subr.bf16.mxu1 %v13336_v4  ;;  %v13347_v4 = vld [vmem:[#allocation168_spill] sm:$0xff] }
 0xb36   :  { %8183 = vmatpush1.bf16.msra.mxu1 %v13337_v39  ;;  %v13348_v39 = vld [vmem:[#allocation170_spill] sm:$0xff] }
 0xb37   :  { %8185 = vmatprep.subr.bf16.mxu1 %v13338_v38  ;;  %v13349_v38 = vld [vmem:[#allocation172_spill] sm:$0xff] }
 0xb3a   :  { %8187 = vmatpush1.bf16.msra.mxu1 %v13339_v18  ;;  %v13350_v18 = vld [vmem:[#allocation174_spill] sm:$0xff] }
 0xb3b   :  { %8189 = vmatprep.subr.bf16.mxu1 %v13340_v7  ;;  %v13351_v7 = vld [vmem:[#allocation176_spill] sm:$0xff] }
 0xb3e   :  { %8191 = vmatpush1.bf16.msra.mxu1 %v13341_v23  ;;  %v13352_v23 = vld [vmem:[#allocation178_spill] sm:$0xff] }
 0xb3f   :  { %8193 = vmatprep.subr.bf16.mxu1 %v13342_v62  ;;  %v13353_v62 = vld [vmem:[#allocation180_spill] sm:$0xff] }
 0xb42   :  { %8195 = vmatpush1.bf16.msra.mxu1 %v13343_v28  ;;  %v13354_v28 = vld [vmem:[#allocation182_spill] sm:$0xff] }
 0xb43   :  { %8197 = vmatprep.subr.bf16.mxu1 %v13344_v13 }
 0xb46   :  { %8199 = vmatpush1.bf16.msra.mxu1 %v13345_v14  ;;  %v13355_v14 = vld [vmem:[#allocation184_spill] sm:$0xff] }
 0xb47   :  { %8201 = vmatprep.subr.bf16.mxu1 %v13346_v19 }
 0xb4a   :  { %8203 = vmatpush1.bf16.msra.mxu1 %v13347_v4  ;;  %v13356_v4 = vld [vmem:[#allocation186_spill] sm:$0xff] }
 0xb4b   :  { %8205 = vmatprep.subr.bf16.mxu1 %v13348_v39  ;;  %v13357_v39 = vld [vmem:[#allocation188_spill] sm:$0xff] }
 0xb4e   :  { %8207 = vmatpush1.bf16.msra.mxu1 %v13349_v38  ;;  %v13358_v38 = vld [vmem:[#allocation190_spill] sm:$0xff] }
 0xb4f   :  { %8209 = vmatprep.subr.bf16.mxu1 %v13350_v18  ;;  %v13359_v18 = vld [vmem:[#allocation192_spill] sm:$0xff] }
 0xb52   :  { %8211 = vmatpush1.bf16.msra.mxu1 %v13351_v7  ;;  %v13360_v7 = vld [vmem:[#allocation23_spill] sm:$0xff] }
 0xb53   :  { %8213 = vmatprep.subr.bf16.mxu1 %v13352_v23  ;;  %v13364_v23 = vld [vmem:[#allocation31_spill] sm:$0xff] }
 0xb56   :  { %8215 = vmatpush1.bf16.msra.mxu1 %v13353_v62  ;;  %v13361_v62 = vld [vmem:[#allocation25_spill] sm:$0xff] }
 0xb57   :  { %8217 = vmatprep.subr.bf16.mxu1 %v13354_v28  ;;  %v13362_v28 = vld [vmem:[#allocation27_spill] sm:$0xff] }
 0xb59   :  { %v11580_v13 = vpop.f32.mrb[40].mxu0 }
 0xb5a   :  { %8219 = vmatpush1.bf16.msra.mxu1 %v13355_v14  ;;  %v11583_v19 = vpop.f32.mrb[41].mxu0  ;;  %v13363_v14 = vld [vmem:[#allocation29_spill] sm:$0xff] }
 0xb5b   :  { %8221 = vmatprep.subr.bf16.mxu1 %v13356_v4  ;;  %v13365_v4 = vld [vmem:[#allocation33_spill] sm:$0xff] }
 0xb5e   :  { %8223 = vmatpush1.bf16.msra.mxu1 %v13357_v39  ;;  %v13366_v39 = vld [vmem:[#allocation35_spill] sm:$0xff] }
 0xb5f   :  { %8225 = vmatprep.subr.bf16.mxu1 %v13358_v38  ;;  %v13367_v38 = vld [vmem:[#allocation37_spill] sm:$0xff] }
 0xb62   :  { %8227 = vmatpush1.bf16.msra.mxu1 %v13359_v18  ;;  %v13368_v18 = vld [vmem:[#allocation39_spill] sm:$0xff] }
 0xb63   :  { %8253 = vmatprep.subr.bf16.mxu1 %v13360_v7  ;;  %v13369_v7 = vld [vmem:[#allocation41_spill] sm:$0xff] }
 0xb65   :  { %4234 = vmatmul.mubr.f32.vlgmr.msra.gmra.mrb[42].mxu1 %v11427_v0  ;;  %v13370_v0 = vld [vmem:[#allocation43_spill] sm:$0xff] }
 0xb66   :  { %8255 = vmatpush1.bf16.msra.mxu1 %v13361_v62  ;;  %4399 = vmatprep.mubr.f32.mxu1 %v12636_v59  ;;  %v13371_v62 = vld [vmem:[#allocation45_spill] sm:$0xff] }
 0xb67   :  { %8257 = vmatprep.subr.bf16.mxu1 %v13362_v28  ;;  %v13373_v28 = vld [vmem:[#allocation49_spill] sm:$0xff] }
 0xb6a   :  { %8259 = vmatpush1.bf16.msra.mxu1 %v13363_v14  ;;  %v13374_v14 = vld [vmem:[#allocation51_spill] sm:$0xff] }
 0xb6b   :  { %8261 = vmatprep.subr.bf16.mxu1 %v13364_v23  ;;  %v13375_v23 = vld [vmem:[#allocation53_spill] sm:$0xff] }
 0xb6e   :  { %8263 = vmatpush1.bf16.msra.mxu1 %v13365_v4  ;;  %v13376_v4 = vld [vmem:[#allocation55_spill] sm:$0xff] }
 0xb6f   :  { %8265 = vmatprep.subr.bf16.mxu1 %v13366_v39 }
 0xb72   :  { %8267 = vmatpush1.bf16.msra.mxu1 %v13367_v38  ;;  %v13377_v38 = vld [vmem:[#allocation165_spill] sm:$0xff] }
 0xb73   :  { %8269 = vmatprep.subr.bf16.mxu1 %v13368_v18 }
 0xb76   :  { %8271 = vmatpush1.bf16.msra.mxu1 %v13369_v7 }
 0xb77   :  { %8273 = vmatprep.subr.bf16.mxu1 %v13370_v0  ;;  %v13378_v0 = vld [vmem:[#allocation59_spill] sm:$0xff] }
 0xb7a   :  { %8275 = vmatpush1.bf16.msra.mxu1 %v13371_v62  ;;  %v3904_v62 = vadd.f32 %v11542_v42, %v13378_v0 }
 0xb7b   :  { %8277 = vmatprep.subr.bf16.mxu1 %v13372_v61  ;;  %v3905_v61 = vadd.f32 %v11544_v27, %v10042_v56  ;;  %v13396_v56 = vld [vmem:[#allocation122_spill] sm:$0xff] }
 0xb7e   :  { %8279 = vmatpush1.bf16.msra.mxu1 %v13373_v28  ;;  %v5618_v28 = vmul.f32 -1.442695, %v3905_v61 }
 0xb7f   :  { %8281 = vmatprep.subr.bf16.mxu1 %v13374_v14  ;;  %v5617_v14 = vmul.f32 -1.442695, %v3904_v62 }
 0xb80   :  { %9284 = vpow2.f32 %v5618_v28 }
 0xb81   :  { %9286 = vpow2.f32 %v5617_v14 }
 0xb82   :  { %8283 = vmatpush1.bf16.msra.mxu1 %v13375_v23 }
 0xb83   :  { %8317 = vmatprep.subr.bf16.mxu1 %v13376_v4 }
 0xb8a   :  { %v9285_v23 = vpop.eup %9284 }
 0xb8b   :  { %v9287_v4 = vpop.eup %9286  ;;  %v3918_v6 = vadd.f32 1.0, %v9285_v23 }
 0xb8d   :  { %9288 = vrcp.f32 %v3918_v6 }
 0xb97   :  { %v9289_v42 = vpop.eup %9288 }
 0xb98   :  { %v3757_v39 = vpop.f32.mrb[36].mxu1  ;;  %v3927_v14 = vmul.f32 %v9289_v42, %v11380_v57  ;;  %v4001_v57 = vadd.f32 %v11583_v19, %v12821_v40  ;;  %v13382_v19 = vld [vmem:[#allocation86_spill] sm:$0xff]  ;;  %v13383_v42 = vld [vmem:[#allocation88_spill] sm:$0xff] }
 0xb99   :  { %v3758_v53 = vadd.f32 %v3757_v39, %v13377_v38  ;;  %v6023_v18 = vpop.f32.mrb[37].mxu1  ;;  %v11609_v59 = vpop.f32.mrb[42].mxu0  ;;  %v3917_v39 = vadd.f32 1.0, %v9287_v4  ;;  %v13389_v40 = vld [vmem:[#allocation98_spill] sm:$0xff] }
 0xb9a   :  { %v11611_v7 = vpop.f32.mrb[43].mxu0 }
 0xb9b   :  { %3761 = vst [vmem:[#allocation16 + $0x18] sm:$0xff] %v3758_v53  ;;  %9290 = vrcp.f32 %v3917_v39 }
 0xba5   :  { %v9291_v61 = vpop.eup %9290 }
 0xbb8   :  { %v3899_v18 = vpop.f32.mrb[38].mxu1 }
 0xbb9   :  { %v3906_v38 = vadd.f32 %v3899_v18, %v10050_v22  ;;  %v3901_v33 = vpop.f32.mrb[39].mxu1  ;;  %v13395_v22 = vld [vmem:[#allocation120_spill] sm:$0xff] }
 0xbba   :  { %v3907_v53 = vadd.f32 %v3901_v33, %v12955_v49  ;;  %v13392_v49 = vld [vmem:[#allocation108_spill] sm:$0xff] }
 0xbbb   :  { %v5619_v27 = vmul.f32 -1.442695, %v3906_v38  ;;  %v3999_v38 = vadd.f32 %v11580_v13, %v12959_v41  ;;  %v13384_v13 = vld [vmem:[#allocation90_spill] sm:$0xff] }
 0xbbc   :  { %9292 = vtanh.f32 %v3907_v53  ;;  %v13380_v53 = vld [vmem:[#allocation80_spill] sm:$0xff] }
 0xbbd   :  { %9294 = vpow2.f32 %v5619_v27  ;;  %v5620_v39 = vmul.f32 -1.442695, %v3999_v38  ;;  %v13381_v27 = vld [vmem:[#allocation82_spill] sm:$0xff] }
 0xbc6   :  { %v9293_v62 = vpop.eup %9292 }
 0xbc7   :  { %v9295_v28 = vpop.eup %9294  ;;  %v3928_v0 = vmul.f32 %v9293_v62, %v9291_v61 }
 0xbc8   :  { %v3919_v23 = vadd.f32 1.0, %v9295_v28  ;;  %v13385_v28 = vld [vmem:[#allocation92_spill] sm:$0xff] }
 0xbc9   :  { %v11620_v4 = vadd.f32 %v3928_v0, %v3927_v14  ;;  %v5621_v0 = vmul.f32 -1.442695, %v4001_v57  ;;  %v13387_v57 = vld [vmem:[#allocation127_spill] sm:$0xff] }
 0xbca   :  { %9296 = vrcp.f32 %v3919_v23  ;;  %v13386_v23 = vld [vmem:[#allocation94_spill] sm:$0xff] }
 0xbcb   :  { %13379 = vst [vmem:[#allocation177_spill] sm:$0xff] %v11620_v4  ;;  %9298 = vtanh.f32 %v11620_v4 }
 0xbcc   :  { %9300 = vpow2.f32 %v5621_v0 }
 0xbcd   :  { %9302 = vpow2.f32 %v5620_v39  ;;  %v13388_v39 = vld [vmem:[#allocation96_spill] sm:$0xff] }
 0xbd4   :  { %v9297_v6 = vpop.eup %9296 }
 0xbd5   :  { %v9299_v18 = vpop.eup %9298 }
 0xbd6   :  { %v11623_v33 = vmul.f32 %v9299_v18, %v9297_v6  ;;  %v9301_v61 = vpop.eup %9300 }
 0xbd7   :  { %v9303_v62 = vpop.eup %9302  ;;  %v4084_v14 = vadd.f32 1.0, %v9301_v61  ;;  %v13390_v61 = vld [vmem:[#allocation104_spill] sm:$0xff] }
 0xbd8   :  { %4400 = vmatmul.mubr.f32.vlgmr.msra.gmra.mrb[44].mxu1 %v11623_v33  ;;  %v4083_v6 = vadd.f32 1.0, %v9303_v62  ;;  %v13391_v62 = vld [vmem:[#allocation106_spill] sm:$0xff] }
 0xbd9   :  { %8319 = vmatpush1.bf16.msra.mxu1 %v10059_v46  ;;  %9304 = vrcp.f32 %v4084_v14 }
 0xbda   :  { %8321 = vmatprep.subr.bf16.mxu1 %v12692_v58  ;;  %9306 = vrcp.f32 %v4083_v6 }
 0xbdd   :  { %8323 = vmatpush1.bf16.msra.mxu1 %v12956_v37 }
 0xbde   :  { %8325 = vmatprep.subr.bf16.mxu1 %v12957_v29 }
 0xbe1   :  { %8327 = vmatpush1.bf16.msra.mxu1 %v12958_v16 }
 0xbe2   :  { %8329 = vmatprep.subr.bf16.mxu1 %v12960_v26 }
 0xbe5   :  { %8331 = vmatpush1.bf16.msra.mxu1 %v13097_v8 }
 0xbe6   :  { %8333 = vmatprep.subr.bf16.mxu1 %v13238_v32 }
 0xbe9   :  { %8335 = vmatpush1.bf16.msra.mxu1 %v13380_v53 }
 0xbea   :  { %8337 = vmatprep.subr.bf16.mxu1 %v13381_v27 }
 0xbed   :  { %8339 = vmatpush1.bf16.msra.mxu1 %v13241_v34 }
 0xbee   :  { %8341 = vmatprep.subr.bf16.mxu1 %v13382_v19 }
 0xbf1   :  { %8343 = vmatpush1.bf16.msra.mxu1 %v13383_v42 }
 0xbf2   :  { %8345 = vmatprep.subr.bf16.mxu1 %v13384_v13 }
 0xbf5   :  { %8347 = vmatpush1.bf16.msra.mxu1 %v13385_v28 }
 0xbf6   :  { %8349 = vmatprep.subr.bf16.mxu1 %v13386_v23 }
 0xbf8   :  { %v4069_v18 = vpop.f32.mrb[40].mxu1 }
 0xbf9   :  { %v4070_v38 = vadd.f32 %v4069_v18, %v13387_v57  ;;  %v4071_v0 = vpop.f32.mrb[41].mxu1  ;;  %8351 = vmatpush1.bf16.msra.mxu1 %v13388_v39  ;;  %v9305_v18 = vpop.eup %9304 }
 0xbfa   :  { %v4072_v41 = vadd.f32 %v4071_v0, %v13109_v9  ;;  %8353 = vmatprep.subr.bf16.mxu1 %v13389_v40  ;;  %v9307_v57 = vpop.eup %9306  ;;  %v13393_v0 = vld [vmem:[#allocation110_spill] sm:$0xff]  ;;  %v4093_v6 = vmul.f32 %v9305_v18, %v11417_v20 }
 0xbfb   :  { %v5622_v4 = vmul.f32 -1.442695, %v4070_v38 }
 0xbfc   :  { %9308 = vtanh.f32 %v4072_v41 }
 0xbfd   :  { %9310 = vpow2.f32 %v5622_v4  ;;  %8355 = vmatpush1.bf16.msra.mxu1 %v13250_v10 }
 0xbfe   :  { %8357 = vmatprep.subr.bf16.mxu1 %v13251_v15 }
 0xc01   :  { %8359 = vmatpush1.bf16.msra.mxu1 %v13390_v61 }
 0xc02   :  { %8361 = vmatprep.subr.bf16.mxu1 %v13391_v62 }
 0xc05   :  { %8363 = vmatpush1.bf16.msra.mxu1 %v13392_v49 }
 0xc06   :  { %v9309_v14 = vpop.eup %9308  ;;  %8365 = vmatprep.subr.bf16.mxu1 %v13393_v0 }
 0xc07   :  { %v9311_v9 = vpop.eup %9310  ;;  %v4094_v41 = vmul.f32 %v9309_v14, %v9307_v57  ;;  %v13398_v14 = vld [vmem:[#allocation129_spill] sm:$0xff] }
 0xc08   :  { %v4085_v4 = vadd.f32 1.0, %v9311_v9  ;;  %v13397_v9 = vld [vmem:[#allocation124_spill] sm:$0xff] }
 0xc09   :  { %v11657_v38 = vadd.f32 %v4094_v41, %v4093_v6  ;;  %8367 = vmatpush1.bf16.msra.mxu1 %v13117_v11  ;;  %v13399_v6 = vld [vmem:[#allocation131_spill] sm:$0xff]  ;;  %v13400_v41 = vld [vmem:[#allocation137_spill] sm:$0xff] }
 0xc0a   :  { %9312 = vrcp.f32 %v4085_v4  ;;  %8369 = vmatprep.subr.bf16.mxu1 %v13118_v24  ;;  %v4167_v4 = vadd.f32 %v11611_v7, %v13265_v50  ;;  %v13404_v7 = vld [vmem:[#allocation151_spill] sm:$0xff] }
 0xc0b   :  { %13394 = vst [vmem:[#allocation68_spill] sm:$0xff] %v11657_v38  ;;  %9314 = vtanh.f32 %v11657_v38 }
 0xc0c   :  { %v5624_v38 = vmul.f32 -1.442695, %v4167_v4 }
 0xc0d   :  { %8371 = vmatpush1.bf16.msra.mxu1 %v13256_v31 }
 0xc0e   :  { %8373 = vmatprep.subr.bf16.mxu1 %v13257_v35  ;;  %9316 = vpow2.f32 %v5624_v38 }
 0xc11   :  { %8375 = vmatpush1.bf16.msra.mxu1 %v13395_v22 }
 0xc12   :  { %8377 = vmatprep.subr.bf16.mxu1 %v13396_v56 }
 0xc14   :  { %v9313_v20 = vpop.eup %9312 }
 0xc15   :  { %v9315_v57 = vpop.eup %9314  ;;  %8379 = vmatpush1.bf16.msra.mxu1 %v13397_v9 }
 0xc16   :  { %v11667_v18 = vmul.f32 %v9315_v57, %v9313_v20  ;;  %8445 = vmatprep.subr.bf16.mxu1 %v13398_v14  ;;  %v4165_v20 = vadd.f32 %v11609_v59, %v13128_v54  ;;  %v13401_v57 = vld [vmem:[#allocation139_spill] sm:$0xff] }
 0xc17   :  { %v13405_v59 = vld [vmem:[#allocation155_spill] sm:$0xff] }
 0xc18   :  { %4569 = vmatprep.mubr.f32.mxu1 %v11667_v18  ;;  %v5623_v14 = vmul.f32 -1.442695, %v4165_v20 }
 0xc19   :  { %4570 = vmatmul.mubr.f32.vlgmr.msra.gmra.mrb[46].mxu1 %v11623_v33 }
 0xc1a   :  { %8447 = vmatpush1.bf16.msra.mxu1 %v13399_v6  ;;  %v13402_v6 = vld [vmem:[#allocation145_spill] sm:$0xff]  ;;  %9318 = vpow2.f32 %v5623_v14 }
 0xc1b   :  { %8449 = vmatprep.subr.bf16.mxu1 %v12987_v1 }
 0xc1e   :  { %8451 = vmatpush1.bf16.msra.mxu1 %v13263_v21 }
 0xc1f   :  { %8453 = vmatprep.subr.bf16.mxu1 %v13400_v41  ;;  %v13403_v41 = vld [vmem:[#allocation149_spill] sm:$0xff] }
 0xc22   :  { %8455 = vmatpush1.bf16.msra.mxu1 %v13401_v57  ;;  %v9317_v57 = vpop.eup %9316 }
 0xc23   :  { %8457 = vmatprep.subr.bf16.mxu1 %v13130_v5  ;;  %v4250_v20 = vadd.f32 1.0, %v9317_v57 }
 0xc24   :  { %v9319_v4 = vpop.eup %9318 }
 0xc25   :  { %9320 = vrcp.f32 %v4250_v20 }
 0xc26   :  { %8459 = vmatpush1.bf16.msra.mxu1 %v13131_v43 }
 0xc27   :  { %8461 = vmatprep.subr.bf16.mxu1 %v13402_v6  ;;  %v4249_v6 = vadd.f32 1.0, %v9319_v4 }
 0xc29   :  { %9322 = vrcp.f32 %v4249_v6 }
 0xc2a   :  { %8463 = vmatpush1.bf16.msra.mxu1 %v13133_v44 }
 0xc2b   :  { %8465 = vmatprep.subr.bf16.mxu1 %v13403_v41 }
 0xc2e   :  { %8467 = vmatpush1.bf16.msra.mxu1 %v13404_v7 }
 0xc2f   :  { %8469 = vmatprep.subr.bf16.mxu1 %v13136_v60  ;;  %v9321_v57 = vpop.eup %9320 }
 0xc30   :  { %v4259_v6 = vmul.f32 %v9321_v57, %v11463_v63  ;;  %v13411_v63 = vld [vmem:[#allocation189_spill] sm:$0xff] }
 0xc32   :  { %8471 = vmatpush1.bf16.msra.mxu1 %v13405_v59 }
 0xc33   :  { %8473 = vmatprep.subr.bf16.mxu1 %v12999_v3  ;;  %v9323_v4 = vpop.eup %9322 }
 0xc36   :  { %8475 = vmatpush1.bf16.msra.mxu1 %v13000_v30 }
 0xc37   :  { %8477 = vmatprep.subr.bf16.mxu1 %v13001_v25 }
 0xc38   :  { %v4235_v38 = vpop.f32.mrb[42].mxu1 }
 0xc39   :  { %v4236_v14 = vadd.f32 %v4235_v38, %v13002_v17  ;;  %v4237_v41 = vpop.f32.mrb[43].mxu1 }
 0xc3a   :  { %v4238_v7 = vadd.f32 %v4237_v41, %v13003_v36  ;;  %8479 = vmatpush1.bf16.msra.mxu1 %v13004_v52 }
 0xc3b   :  { %v5625_v59 = vmul.f32 -1.442695, %v4236_v14  ;;  %8481 = vmatprep.subr.bf16.mxu1 %v12867_v55  ;;  %v13406_v14 = vld [vmem:[#allocation179_spill] sm:$0xff] }
 0xc3c   :  { %9324 = vtanh.f32 %v4238_v7 }
 0xc3d   :  { %9326 = vpow2.f32 %v5625_v59 }
 0xc3e   :  { %8483 = vmatpush1.bf16.msra.mxu1 %v13005_v48 }
 0xc3f   :  { %8485 = vmatprep.subr.bf16.mxu1 %v12869_v51  ;;  %v13409_v51 = vld [vmem:[#allocation185_spill] sm:$0xff] }
 0xc42   :  { %8487 = vmatpush1.bf16.msra.mxu1 %v12870_v45  ;;  %v13408_v45 = vld [vmem:[#allocation183_spill] sm:$0xff] }
 0xc43   :  { %8489 = vmatprep.subr.bf16.mxu1 %v12871_v12  ;;  %v13407_v12 = vld [vmem:[#allocation181_spill] sm:$0xff] }
 0xc46   :  { %v9325_v20 = vpop.eup %9324  ;;  %8491 = vmatpush1.bf16.msra.mxu1 %v12872_v2  ;;  %v13410_v2 = vld [vmem:[#allocation187_spill] sm:$0xff] }
 0xc47   :  { %v9327_v41 = vpop.eup %9326  ;;  %v4260_v38 = vmul.f32 %v9325_v20, %v9323_v4  ;;  %8493 = vmatprep.subr.bf16.mxu1 %v12873_v47  ;;  %v13412_v20 = vld [vmem:[#allocation191_spill] sm:$0xff] }
 0xc48   :  { %v4251_v7 = vadd.f32 1.0, %v9327_v41 }
 0xc49   :  { %v11703_v59 = vadd.f32 %v4260_v38, %v4259_v6  ;;  %v13413_v6 = vmov 0.0|0.0   ;;  %v13414_v38 = vld [vmem:[#allocation26_spill] sm:$0xff] }
 0xc4a   :  { %9328 = vrcp.f32 %v4251_v7  ;;  %8495 = vmatpush1.bf16.msra.mxu1 %v13406_v14  ;;  %v13415_v7 = vld [vmem:[#allocation28_spill] sm:$0xff] }
 0xc4b   :  { %9330 = vtanh.f32 %v11703_v59  ;;  %8497 = vmatprep.subr.bf16.mxu1 %v13407_v12  ;;  %v13450_v12 = vld [vmem:[#allocation87_spill] sm:$0xff] }
 0xc4e   :  { %8499 = vmatpush1.bf16.msra.mxu1 %v13408_v45  ;;  %v13426_v45 = vld [vmem:[#allocation196_spill] sm:$0xff] }
 0xc4f   :  { %8501 = vmatprep.subr.bf16.mxu1 %v13409_v51  ;;  %v13423_v51 = vld [vmem:[#allocation195_spill] sm:$0xff] }
 0xc52   :  { %8503 = vmatpush1.bf16.msra.mxu1 %v13410_v2  ;;  %v13416_v2 = vmov 0.0  }
 0xc53   :  { %8505 = vmatprep.subr.bf16.mxu1 %v13411_v63  ;;  %v13417_v63 = vld [vmem:[#allocation193_spill] sm:$0xff] }
 0xc54   :  { %v9329_v57 = vpop.eup %9328 }
 0xc55   :  { %v9331_v4 = vpop.eup %9330 }
 0xc56   :  { %8507 = vmatpush1.bf16.msra.mxu1 %v13412_v20  ;;  %v11713_v41 = vmul.f32 %v9331_v4, %v9329_v57  ;;  %v13418_v57 = vld [vmem:[#allocation30_spill] sm:$0xff]  ;;  %v13419_v4 = vld [vmem:[#allocation32_spill] sm:$0xff] }
 0xc57   :  { %8572 = vmatprep.subr.bf16.mxu1 %v13413_v6  ;;  %v13420_v20 = vld [vmem:[#allocation194_spill] sm:$0xff] }
 0xc58   :  { %6057 = vmatmul.mubr.f32.vlgmr.msra.gmra.mrb[44].mxu0 %v11713_v41  ;;  %4735 = vmatprep.mubr.f32.mxu1 %v11713_v41 }
 0xc59   :  { %8287 = vmatpush1.bf16.msra.mxu0 %v13414_v38  ;;  %4736 = vmatmul.mubr.f32.vlgmr.msra.gmra.mrb[48].mxu1 %v11667_v18  ;;  %v13421_v38 = vld [vmem:[#allocation34_spill] sm:$0xff] }
 0xc5a   :  { %8289 = vmatprep.subr.bf16.mxu0 %v13415_v7  ;;  %4470 = vmatprep.mubr.f32.mxu0 %v13416_v2  ;;  %v13422_v7 = vld [vmem:[#allocation36_spill] sm:$0xff] }
 0xc5b   :  { %8574 = vmatpush3.bf16.msra.mxu1 %v13417_v63  ;;  %6091 = vmatprep.mubr.msk.f32.mxu1 %vm9652_vm0, %v13416_v2  ;;  %v13424_v63 = vld [vmem:[#allocation38_spill] sm:$0xff]  ;;  %v13425_v2 = vld [vmem:[#allocation40_spill] sm:$0xff] }
 0xc5c   :  { %8575 = vmatprep.subr.bf16.mxu1 %v13413_v6 }
 0xc5d   :  { %8291 = vmatpush1.bf16.msra.mxu0 %v13418_v57  ;;  %v13427_v57 = vld [vmem:[#allocation42_spill] sm:$0xff] }
 0xc5e   :  { %8293 = vmatprep.subr.bf16.mxu0 %v13419_v4  ;;  %v13428_v4 = vld [vmem:[#allocation44_spill] sm:$0xff] }
 0xc5f   :  { %8577 = vmatpush3.bf16.msra.mxu1 %v13420_v20  ;;  %v13429_v20 = vld [vmem:[#allocation197_spill] sm:$0xff] }
 0xc60   :  { %8578 = vmatprep.subr.bf16.mxu1 %v13413_v6 }
 0xc61   :  { %8295 = vmatpush1.bf16.msra.mxu0 %v13421_v38  ;;  %v13430_v38 = vld [vmem:[#allocation46_spill] sm:$0xff] }
 0xc62   :  { %8297 = vmatprep.subr.bf16.mxu0 %v13422_v7  ;;  %v13431_v7 = vld [vmem:[#allocation48_spill] sm:$0xff] }
 0xc63   :  { %8580 = vmatpush3.bf16.msra.mxu1 %v13423_v51  ;;  %v13432_v51 = vld [vmem:[#allocation198_spill] sm:$0xff] }
 0xc64   :  { %8581 = vmatprep.subr.bf16.mxu1 %v13413_v6 }
 0xc65   :  { %8299 = vmatpush1.bf16.msra.mxu0 %v13424_v63  ;;  %v13434_v63 = vld [vmem:[#allocation52_spill] sm:$0xff] }
 0xc66   :  { %8301 = vmatprep.subr.bf16.mxu0 %v13425_v2  ;;  %v13433_v2 = vld [vmem:[#allocation50_spill] sm:$0xff] }
 0xc67   :  { %8583 = vmatpush3.bf16.msra.mxu1 %v13426_v45  ;;  %v13435_v45 = vld [vmem:[#allocation199_spill] sm:$0xff] }
 0xc68   :  { %8584 = vmatprep.subr.bf16.mxu1 %v13413_v6 }
 0xc69   :  { %8303 = vmatpush1.bf16.msra.mxu0 %v13427_v57  ;;  %v13436_v57 = vld [vmem:[#allocation54_spill] sm:$0xff] }
 0xc6a   :  { %8305 = vmatprep.subr.bf16.mxu0 %v13428_v4  ;;  %v13437_v4 = vld [vmem:[#allocation56_spill] sm:$0xff] }
 0xc6b   :  { %8586 = vmatpush3.bf16.msra.mxu1 %v13429_v20  ;;  %v13438_v20 = vld [vmem:[#allocation200_spill] sm:$0xff] }
 0xc6c   :  { %8587 = vmatprep.subr.bf16.mxu1 %v13413_v6 }
 0xc6d   :  { %8307 = vmatpush1.bf16.msra.mxu0 %v13430_v38  ;;  %v13439_v38 = vld [vmem:[#allocation65_spill] sm:$0xff] }
 0xc6e   :  { %8309 = vmatprep.subr.bf16.mxu0 %v13431_v7  ;;  %v13440_v7 = vld [vmem:[#allocation67_spill] sm:$0xff] }
 0xc6f   :  { %8589 = vmatpush3.bf16.msra.mxu1 %v13432_v51  ;;  %v13445_v51 = vld [vmem:[#allocation77_spill] sm:$0xff] }
 0xc70   :  { %8590 = vmatprep.subr.bf16.mxu1 %v13413_v6 }
 0xc71   :  { %8311 = vmatpush1.bf16.msra.mxu0 %v13433_v2  ;;  %v13441_v2 = vld [vmem:[#allocation69_spill] sm:$0xff] }
 0xc72   :  { %8313 = vmatprep.subr.bf16.mxu0 %v13434_v63  ;;  %v13442_v63 = vld [vmem:[#allocation71_spill] sm:$0xff] }
 0xc73   :  { %8592 = vmatpush3.bf16.msra.mxu1 %v13435_v45  ;;  %v13443_v45 = vld [vmem:[#allocation73_spill] sm:$0xff] }
 0xc74   :  { %8593 = vmatprep.subr.bf16.mxu1 %v13413_v6  ;;  %v13447_v6 = vld [vmem:[#allocation81_spill] sm:$0xff] }
 0xc75   :  { %8315 = vmatpush1.bf16.msra.mxu0 %v13436_v57  ;;  %v13444_v57 = vld [vmem:[#allocation75_spill] sm:$0xff] }
 0xc76   :  { %8381 = vmatprep.subr.bf16.mxu0 %v13437_v4 }
 0xc77   :  { %8595 = vmatpush3.bf16.msra.mxu1 %v13438_v20  ;;  %v13446_v20 = vld [vmem:[#allocation79_spill] sm:$0xff] }
 0xc78   :  { %4471 = vmatmul.mubr.f32.vlgmr.msra.gmra.mrb[46].mxu0 %v11623_v33  ;;  %8661 = vmatprep.subr.bf16.mxu1 %v13437_v4  ;;  %v13448_v4 = vld [vmem:[#allocation83_spill] sm:$0xff] }
 0xc79   :  { %8383 = vmatpush1.bf16.msra.mxu0 %v13439_v38  ;;  %4640 = vmatprep.mubr.f32.mxu0 %v11667_v18  ;;  %v13449_v38 = vld [vmem:[#allocation85_spill] sm:$0xff] }
 0xc7a   :  { %8385 = vmatprep.subr.bf16.mxu0 %v13440_v7  ;;  %v13451_v7 = vld [vmem:[#allocation89_spill] sm:$0xff] }
 0xc7d   :  { %8387 = vmatpush1.bf16.msra.mxu0 %v13441_v2  ;;  %v13452_v2 = vld [vmem:[#allocation91_spill] sm:$0xff] }
 0xc7e   :  { %8389 = vmatprep.subr.bf16.mxu0 %v13442_v63  ;;  %v13453_v63 = vld [vmem:[#allocation93_spill] sm:$0xff] }
 0xc81   :  { %8391 = vmatpush1.bf16.msra.mxu0 %v13443_v45  ;;  %v13454_v45 = vld [vmem:[#allocation95_spill] sm:$0xff] }
 0xc82   :  { %8393 = vmatprep.subr.bf16.mxu0 %v13444_v57  ;;  %v13455_v57 = vld [vmem:[#allocation97_spill] sm:$0xff] }
 0xc85   :  { %8395 = vmatpush1.bf16.msra.mxu0 %v13445_v51  ;;  %v13456_v51 = vld [vmem:[#allocation99_spill] sm:$0xff] }
 0xc86   :  { %8397 = vmatprep.subr.bf16.mxu0 %v13446_v20  ;;  %v13457_v20 = vld [vmem:[#allocation101_spill] sm:$0xff] }
 0xc89   :  { %8399 = vmatpush1.bf16.msra.mxu0 %v13447_v6  ;;  %v13458_v6 = vld [vmem:[#allocation103_spill] sm:$0xff] }
 0xc8a   :  { %8401 = vmatprep.subr.bf16.mxu0 %v13448_v4  ;;  %v13459_v4 = vld [vmem:[#allocation105_spill] sm:$0xff] }
 0xc8d   :  { %8403 = vmatpush1.bf16.msra.mxu0 %v13449_v38  ;;  %v13460_v38 = vld [vmem:[#allocation107_spill] sm:$0xff] }
 0xc8e   :  { %8405 = vmatprep.subr.bf16.mxu0 %v13450_v12  ;;  %v13461_v12 = vld [vmem:[#allocation109_spill] sm:$0xff] }
 0xc91   :  { %8407 = vmatpush1.bf16.msra.mxu0 %v13451_v7  ;;  %v13462_v7 = vld [vmem:[#allocation111_spill] sm:$0xff] }
 0xc92   :  { %8409 = vmatprep.subr.bf16.mxu0 %v13452_v2  ;;  %v13463_v2 = vld [vmem:[#allocation113_spill] sm:$0xff] }
 0xc95   :  { %8411 = vmatpush1.bf16.msra.mxu0 %v13453_v63  ;;  %v13464_v63 = vld [vmem:[#allocation115_spill] sm:$0xff] }
 0xc96   :  { %8413 = vmatprep.subr.bf16.mxu0 %v13454_v45 }
 0xc99   :  { %8415 = vmatpush1.bf16.msra.mxu0 %v13455_v57 }
 0xc9a   :  { %8417 = vmatprep.subr.bf16.mxu0 %v13456_v51  ;;  %v13465_v51 = vld [vmem:[#allocation117_spill] sm:$0xff] }
 0xc9d   :  { %8419 = vmatpush1.bf16.msra.mxu0 %v13457_v20  ;;  %v13466_v20 = vld [vmem:[#allocation119_spill] sm:$0xff] }
 0xc9e   :  { %8421 = vmatprep.subr.bf16.mxu0 %v13458_v6  ;;  %v13467_v6 = vld [vmem:[#allocation121_spill] sm:$0xff] }
 0xca1   :  { %8423 = vmatpush1.bf16.msra.mxu0 %v13459_v4  ;;  %v13468_v4 = vld [vmem:[#allocation123_spill] sm:$0xff] }
 0xca2   :  { %8425 = vmatprep.subr.bf16.mxu0 %v13460_v38  ;;  %v13469_v38 = vld [vmem:[#allocation125_spill] sm:$0xff] }
 0xca5   :  { %8427 = vmatpush1.bf16.msra.mxu0 %v13461_v12  ;;  %v13470_v12 = vld [vmem:[#allocation130_spill] sm:$0xff] }
 0xca6   :  { %8429 = vmatprep.subr.bf16.mxu0 %v13462_v7  ;;  %v13473_v7 = vld [vmem:[#allocation136_spill] sm:$0xff] }
 0xca9   :  { %8431 = vmatpush1.bf16.msra.mxu0 %v13463_v2  ;;  %v13471_v2 = vld [vmem:[#allocation132_spill] sm:$0xff] }
 0xcaa   :  { %8433 = vmatprep.subr.bf16.mxu0 %v13464_v63  ;;  %v13472_v63 = vld [vmem:[#allocation134_spill] sm:$0xff] }
 0xcab   :  { %v11782_v45 = vpop.f32.mrb[44].mxu1 }
 0xcac   :  { %v11784_v57 = vpop.f32.mrb[45].mxu1 }
 0xcad   :  { %8435 = vmatpush1.bf16.msra.mxu0 %v13465_v51  ;;  %v13474_v51 = vld [vmem:[#allocation138_spill] sm:$0xff] }
 0xcae   :  { %8437 = vmatprep.subr.bf16.mxu0 %v13466_v20  ;;  %v13475_v20 = vld [vmem:[#allocation140_spill] sm:$0xff] }
 0xcb1   :  { %8439 = vmatpush1.bf16.msra.mxu0 %v13467_v6  ;;  %v13476_v6 = vld [vmem:[#allocation142_spill] sm:$0xff] }
 0xcb2   :  { %8441 = vmatprep.subr.bf16.mxu0 %v13468_v4  ;;  %v13477_v4 = vld [vmem:[#allocation144_spill] sm:$0xff] }
 0xcb5   :  { %8443 = vmatpush1.bf16.msra.mxu0 %v13469_v38  ;;  %v13478_v38 = vld [vmem:[#allocation146_spill] sm:$0xff] }
 0xcb6   :  { %8509 = vmatprep.subr.bf16.mxu0 %v13470_v12  ;;  %v13479_v12 = vld [vmem:[#allocation148_spill] sm:$0xff] }
 0xcb8   :  { %4641 = vmatmul.mubr.f32.vlgmr.msra.gmra.mrb[48].mxu0 %v11623_v33  ;;  %v13480_v33 = vld [vmem:[#allocation150_spill] sm:$0xff] }
 0xcb9   :  { %8511 = vmatpush1.bf16.msra.mxu0 %v13471_v2  ;;  %4806 = vmatprep.mubr.f32.mxu0 %v11713_v41  ;;  %v13481_v2 = vld [vmem:[#allocation152_spill] sm:$0xff]  ;;  %v13482_v41 = vld [vmem:[#allocation154_spill] sm:$0xff] }
 0xcba   :  { %8513 = vmatprep.subr.bf16.mxu0 %v13472_v63  ;;  %v13483_v63 = vld [vmem:[#allocation156_spill] sm:$0xff] }
 0xcbd   :  { %8515 = vmatpush1.bf16.msra.mxu0 %v13473_v7  ;;  %v13484_v7 = vld [vmem:[#allocation158_spill] sm:$0xff] }
 0xcbe   :  { %8517 = vmatprep.subr.bf16.mxu0 %v13474_v51  ;;  %v13485_v51 = vld [vmem:[#allocation160_spill] sm:$0xff] }
 0xcc1   :  { %8519 = vmatpush1.bf16.msra.mxu0 %v13475_v20  ;;  %v13486_v20 = vld [vmem:[#allocation162_spill] sm:$0xff] }
 0xcc2   :  { %8521 = vmatprep.subr.bf16.mxu0 %v13476_v6  ;;  %v13487_v6 = vld [vmem:[#allocation164_spill] sm:$0xff] }
 0xcc5   :  { %8523 = vmatpush1.bf16.msra.mxu0 %v13477_v4  ;;  %v13488_v4 = vld [vmem:[#allocation166_spill] sm:$0xff] }
 0xcc6   :  { %8525 = vmatprep.subr.bf16.mxu0 %v13478_v38  ;;  %v13489_v38 = vld [vmem:[#allocation168_spill] sm:$0xff] }
 0xcc9   :  { %8527 = vmatpush1.bf16.msra.mxu0 %v13479_v12  ;;  %v13490_v12 = vld [vmem:[#allocation170_spill] sm:$0xff] }
 0xcca   :  { %8529 = vmatprep.subr.bf16.mxu0 %v13480_v33  ;;  %v13491_v33 = vld [vmem:[#allocation172_spill] sm:$0xff] }
 0xccd   :  { %8531 = vmatpush1.bf16.msra.mxu0 %v13481_v2  ;;  %v13492_v2 = vld [vmem:[#allocation174_spill] sm:$0xff] }
 0xcce   :  { %8533 = vmatprep.subr.bf16.mxu0 %v13482_v41  ;;  %v13493_v41 = vld [vmem:[#allocation176_spill] sm:$0xff] }
 0xcd1   :  { %8535 = vmatpush1.bf16.msra.mxu0 %v13483_v63  ;;  %v13494_v63 = vld [vmem:[#allocation178_spill] sm:$0xff] }
 0xcd2   :  { %8537 = vmatprep.subr.bf16.mxu0 %v13484_v7  ;;  %v13495_v7 = vld [vmem:[#allocation180_spill] sm:$0xff] }
 0xcd5   :  { %8539 = vmatpush1.bf16.msra.mxu0 %v13485_v51  ;;  %v13496_v51 = vld [vmem:[#allocation182_spill] sm:$0xff] }
 0xcd6   :  { %8541 = vmatprep.subr.bf16.mxu0 %v13486_v20 }
 0xcd9   :  { %8543 = vmatpush1.bf16.msra.mxu0 %v13487_v6  ;;  %v13497_v6 = vld [vmem:[#allocation184_spill] sm:$0xff] }
 0xcda   :  { %8545 = vmatprep.subr.bf16.mxu0 %v13488_v4 }
 0xcdd   :  { %8547 = vmatpush1.bf16.msra.mxu0 %v13489_v38  ;;  %v13498_v38 = vld [vmem:[#allocation186_spill] sm:$0xff] }
 0xcde   :  { %8549 = vmatprep.subr.bf16.mxu0 %v13490_v12  ;;  %v13499_v12 = vld [vmem:[#allocation188_spill] sm:$0xff] }
 0xce1   :  { %8551 = vmatpush1.bf16.msra.mxu0 %v13491_v33  ;;  %v13500_v33 = vld [vmem:[#allocation190_spill] sm:$0xff] }
 0xce2   :  { %8553 = vmatprep.subr.bf16.mxu0 %v13492_v2  ;;  %v13501_v2 = vld [vmem:[#allocation192_spill] sm:$0xff] }
 0xce5   :  { %8555 = vmatpush1.bf16.msra.mxu0 %v13493_v41  ;;  %v13502_v41 = vld [vmem:[#allocation55_spill] sm:$0xff] }
 0xce6   :  { %8557 = vmatprep.subr.bf16.mxu0 %v13494_v63 }
 0xce9   :  { %8559 = vmatpush1.bf16.msra.mxu0 %v13495_v7 }
 0xcea   :  { %8561 = vmatprep.subr.bf16.mxu0 %v13496_v51 }
 0xcec   :  { %v11820_v20 = vpop.f32.mrb[46].mxu1 }
 0xced   :  { %8563 = vmatpush1.bf16.msra.mxu0 %v13497_v6  ;;  %v11823_v4 = vpop.f32.mrb[47].mxu1 }
 0xcee   :  { %8565 = vmatprep.subr.bf16.mxu0 %v13498_v38 }
 0xcf1   :  { %8567 = vmatpush1.bf16.msra.mxu0 %v13499_v12 }
 0xcf2   :  { %8569 = vmatprep.subr.bf16.mxu0 %v13500_v33 }
 0xcf5   :  { %8571 = vmatpush1.bf16.msra.mxu0 %v13501_v2 }
 0xcf6   :  { %8597 = vmatprep.subr.bf16.mxu0 %v13502_v41 }
 0xcf8   :  { %4807 = vmatmul.mubr.f32.vlgmr.msra.gmra.mrb[50].mxu0 %v11667_v18 }
 0xcf9   :  { %8599 = vmatpush1.bf16.msra.mxu0 %v10059_v46 }
 0xcfa   :  { %8601 = vmatprep.subr.bf16.mxu0 %v12692_v58  ;;  %v13503_v58 = vld [vmem:[#allocation165_spill] sm:$0xff] }
 0xcfd   :  { %8603 = vmatpush1.bf16.msra.mxu0 %v12956_v37 }
 0xcfe   :  { %8605 = vmatprep.subr.bf16.mxu0 %v12957_v29 }
 0xd01   :  { %8607 = vmatpush1.bf16.msra.mxu0 %v12958_v16 }
 0xd02   :  { %8609 = vmatprep.subr.bf16.mxu0 %v12960_v26 }
 0xd05   :  { %8611 = vmatpush1.bf16.msra.mxu0 %v13097_v8  ;;  %v13505_v8 = vld [vmem:[#allocation59_spill] sm:$0xff] }
 0xd06   :  { %8613 = vmatprep.subr.bf16.mxu0 %v13238_v32 }
 0xd09   :  { %8615 = vmatpush1.bf16.msra.mxu0 %v13380_v53 }
 0xd0a   :  { %8617 = vmatprep.subr.bf16.mxu0 %v13381_v27 }
 0xd0d   :  { %8619 = vmatpush1.bf16.msra.mxu0 %v13241_v34 }
 0xd0e   :  { %8621 = vmatprep.subr.bf16.mxu0 %v13382_v19  ;;  %v13508_v19 = vld [vmem:[#allocation64_spill] sm:$0xff] }
 0xd11   :  { %8623 = vmatpush1.bf16.msra.mxu0 %v13383_v42 }
 0xd12   :  { %8625 = vmatprep.subr.bf16.mxu0 %v13384_v13 }
 0xd15   :  { %8627 = vmatpush1.bf16.msra.mxu0 %v13385_v28 }
 0xd16   :  { %8629 = vmatprep.subr.bf16.mxu0 %v13386_v23 }
 0xd19   :  { %8631 = vmatpush1.bf16.msra.mxu0 %v13388_v39 }
 0xd1a   :  { %8633 = vmatprep.subr.bf16.mxu0 %v13389_v40 }
 0xd1d   :  { %8635 = vmatpush1.bf16.msra.mxu0 %v13250_v10 }
 0xd1e   :  { %8637 = vmatprep.subr.bf16.mxu0 %v13251_v15 }
 0xd21   :  { %8639 = vmatpush1.bf16.msra.mxu0 %v13390_v61  ;;  %v13509_v61 = vld [vmem:[#allocation177_spill] sm:$0xff] }
 0xd22   :  { %8641 = vmatprep.subr.bf16.mxu0 %v13391_v62 }
 0xd25   :  { %8643 = vmatpush1.bf16.msra.mxu0 %v13392_v49  ;;  %v13504_v49 = vld [vmem:[#allocation61_spill] sm:$0xff] }
 0xd26   :  { %8645 = vmatprep.subr.bf16.mxu0 %v13393_v0  ;;  %v4478_v26 = vadd.f32 %v11784_v57, %v13504_v49  ;;  %v13511_v49 = vld [vmem:[#allocation66_spill] sm:$0xff] }
 0xd28   :  { %v5627_v32 = vmul.f32 -1.442695, %v4478_v26  ;;  %v4572_v26 = vadd.f32 %v11820_v20, %v13511_v49 }
 0xd29   :  { %8647 = vmatpush1.bf16.msra.mxu0 %v13117_v11  ;;  %v4477_v11 = vadd.f32 %v11782_v45, %v13505_v8 }
 0xd2a   :  { %8649 = vmatprep.subr.bf16.mxu0 %v13118_v24  ;;  %v13506_v24 = vld [vmem:[#allocation129_spill] sm:$0xff]  ;;  %9332 = vpow2.f32 %v5627_v32 }
 0xd2b   :  { %v4330_v46 = vpop.f32.mrb[44].mxu0  ;;  %v5626_v34 = vmul.f32 -1.442695, %v4477_v11  ;;  %v5629_v11 = vmul.f32 -1.442695, %v4572_v26  ;;  %v13517_v26 = vld [vmem:[#allocation139_spill] sm:$0xff] }
 0xd2c   :  { %v4331_v37 = vadd.f32 %v4330_v46, %v13503_v58  ;;  %v6058_v40 = vpop.f32.mrb[45].mxu0  ;;  %v11858_v29 = vpop.f32.mrb[48].mxu1 }
 0xd2d   :  { %v11860_v16 = vpop.f32.mrb[49].mxu1  ;;  %8651 = vmatpush1.bf16.msra.mxu0 %v13256_v31  ;;  %9334 = vpow2.f32 %v5626_v34 }
 0xd2e   :  { %4334 = vst [vmem:[#allocation16 + $0x20] sm:$0xff] %v4331_v37  ;;  %8653 = vmatprep.subr.bf16.mxu0 %v13257_v35  ;;  %v13510_v37 = vld [vmem:[#allocation126_spill] sm:$0xff] }
 0xd2f   :  { %v4574_v40 = vadd.f32 %v11823_v4, %v13510_v37 }
 0xd31   :  { %8655 = vmatpush1.bf16.msra.mxu0 %v13395_v22  ;;  %v5630_v8 = vmul.f32 -1.442695, %v4574_v40  ;;  %v4738_v40 = vadd.f32 %v11858_v29, %v13128_v54  ;;  %v13521_v29 = vld [vmem:[#allocation155_spill] sm:$0xff] }
 0xd32   :  { %8657 = vmatprep.subr.bf16.mxu0 %v13396_v56  ;;  %v13507_v56 = vld [vmem:[#allocation63_spill] sm:$0xff] }
 0xd34   :  { %v9333_v10 = vpop.eup %9332 }
 0xd35   :  { %8659 = vmatpush1.bf16.msra.mxu0 %v13397_v9  ;;  %v4491_v31 = vadd.f32 1.0, %v9333_v10 }
 0xd36   :  { %8725 = vmatprep.subr.bf16.mxu0 %v13506_v24 }
 0xd37   :  { %v9335_v35 = vpop.eup %9334  ;;  %9336 = vrcp.f32 %v4491_v31 }
 0xd38   :  { %v4490_v22 = vadd.f32 1.0, %v9335_v35 }
 0xd3a   :  { %9338 = vrcp.f32 %v4490_v22  ;;  %v13512_v22 = vld [vmem:[#allocation127_spill] sm:$0xff] }
 0xd41   :  { %v9337_v13 = vpop.eup %9336 }
 0xd42   :  { %v4500_v62 = vmul.f32 %v9337_v13, %v13509_v61  ;;  %v13514_v13 = vld [vmem:[#allocation68_spill] sm:$0xff] }
 0xd44   :  { %v9339_v28 = vpop.eup %9338 }
 0xd4b   :  { %v4472_v15 = vpop.f32.mrb[46].mxu0 }
 0xd4c   :  { %v4479_v53 = vadd.f32 %v4472_v15, %v13507_v56  ;;  %v4474_v27 = vpop.f32.mrb[47].mxu0 }
 0xd4d   :  { %v4480_v42 = vadd.f32 %v4474_v27, %v13508_v19 }
 0xd4e   :  { %v5628_v45 = vmul.f32 -1.442695, %v4479_v53  ;;  %v13513_v53 = vld [vmem:[#allocation128_spill] sm:$0xff] }
 0xd4f   :  { %9340 = vtanh.f32 %v4480_v42 }
 0xd50   :  { %9342 = vpow2.f32 %v5628_v45 }
 0xd59   :  { %v9341_v23 = vpop.eup %9340 }
 0xd5a   :  { %v9343_v39 = vpop.eup %9342  ;;  %v4501_v0 = vmul.f32 %v9341_v23, %v9339_v28 }
 0xd5b   :  { %v4492_v9 = vadd.f32 1.0, %v9343_v39 }
 0xd5c   :  { %v4502_v18 = vadd.f32 %v4501_v0, %v4500_v62 }
 0xd5d   :  { %9344 = vrcp.f32 %v4492_v9 }
 0xd5e   :  { %9346 = vtanh.f32 %v4502_v18  ;;  %v13515_v18 = vld [vmem:[#allocation131_spill] sm:$0xff] }
 0xd5f   :  { %9348 = vpow2.f32 %v5630_v8 }
 0xd60   :  { %9350 = vpow2.f32 %v5629_v11  ;;  %v5632_v11 = vmul.f32 -1.442695, %v4738_v40 }
 0xd67   :  { %v9345_v57 = vpop.eup %9344 }
 0xd68   :  { %v9347_v41 = vpop.eup %9346 }
 0xd69   :  { %v11875_v46 = vmul.f32 %v9347_v41, %v9345_v57  ;;  %v9349_v32 = vpop.eup %9348  ;;  %v13516_v57 = vld [vmem:[#allocation137_spill] sm:$0xff]  ;;  %v4740_v41 = vadd.f32 %v11860_v16, %v13265_v50  ;;  %v13520_v16 = vld [vmem:[#allocation151_spill] sm:$0xff] }
 0xd6a   :  { %v9351_v34 = vpop.eup %9350  ;;  %v4657_v10 = vadd.f32 1.0, %v9349_v32  ;;  %v13518_v32 = vld [vmem:[#allocation145_spill] sm:$0xff] }
 0xd6b   :  { %v4656_v35 = vadd.f32 1.0, %v9351_v34  ;;  %v5633_v8 = vmul.f32 -1.442695, %v4740_v41  ;;  %v13519_v34 = vld [vmem:[#allocation149_spill] sm:$0xff] }
 0xd6c   :  { %9352 = vrcp.f32 %v4657_v10 }
 0xd6d   :  { %9354 = vrcp.f32 %v4656_v35 }
 0xd76   :  { %v9353_v20 = vpop.eup %9352 }
 0xd77   :  { %v9355_v19 = vpop.eup %9354  ;;  %v4666_v28 = vmul.f32 %v9353_v20, %v13514_v13  ;;  %v13524_v13 = vld [vmem:[#allocation173_spill] sm:$0xff] }
 0xd8b   :  { %v4642_v31 = vpop.f32.mrb[48].mxu0 }
 0xd8c   :  { %v4643_v15 = vadd.f32 %v4642_v31, %v13512_v22  ;;  %v4644_v56 = vpop.f32.mrb[49].mxu0 }
 0xd8d   :  { %v4645_v27 = vadd.f32 %v4644_v56, %v13513_v53 }
 0xd8e   :  { %v5631_v4 = vmul.f32 -1.442695, %v4643_v15 }
 0xd8f   :  { %9356 = vtanh.f32 %v4645_v27 }
 0xd90   :  { %9358 = vpow2.f32 %v5631_v4 }
 0xd99   :  { %v9357_v42 = vpop.eup %9356 }
 0xd9a   :  { %v9359_v45 = vpop.eup %9358  ;;  %v4667_v23 = vmul.f32 %v9357_v42, %v9355_v19  ;;  %v13522_v42 = vld [vmem:[#allocation169_spill] sm:$0xff] }
 0xd9b   :  { %v4658_v39 = vadd.f32 1.0, %v9359_v45  ;;  %v13523_v45 = vld [vmem:[#allocation171_spill] sm:$0xff] }
 0xd9c   :  { %v11884_v61 = vadd.f32 %v4667_v23, %v4666_v28 }
 0xd9d   :  { %9360 = vrcp.f32 %v4658_v39 }
 0xd9e   :  { %9362 = vtanh.f32 %v11884_v61 }
 0xd9f   :  { %9364 = vpow2.f32 %v5633_v8 }
 0xda0   :  { %9366 = vpow2.f32 %v5632_v11 }
 0xda7   :  { %v9361_v62 = vpop.eup %9360 }
 0xda8   :  { %v9363_v0 = vpop.eup %9362 }
 0xda9   :  { %v11887_v9 = vmul.f32 %v9363_v0, %v9361_v62  ;;  %v9365_v10 = vpop.eup %9364  ;;  %v13525_v62 = vld [vmem:[#allocation175_spill] sm:$0xff] }
 0xdaa   :  { %v9367_v35 = vpop.eup %9366  ;;  %v4823_v31 = vadd.f32 1.0, %v9365_v10  ;;  %v13527_v10 = vld [vmem:[#allocation181_spill] sm:$0xff] }
 0xdab   :  { %4972 = vmatprep.mubr.f32.mxu0 %v11887_v9  ;;  %v4822_v15 = vadd.f32 1.0, %v9367_v35  ;;  %v13528_v35 = vld [vmem:[#allocation183_spill] sm:$0xff] }
 0xdac   :  { %4973 = vmatmul.mubr.f32.vlgmr.msra.gmra.mrb[52].mxu0 %v11875_v46  ;;  %9368 = vrcp.f32 %v4823_v31  ;;  %v13529_v31 = vld [vmem:[#allocation185_spill] sm:$0xff] }
 0xdad   :  { %8727 = vmatpush1.bf16.msra.mxu0 %v13515_v18  ;;  %9370 = vrcp.f32 %v4822_v15  ;;  %v13530_v15 = vld [vmem:[#allocation187_spill] sm:$0xff] }
 0xdae   :  { %8729 = vmatprep.subr.bf16.mxu0 %v12987_v1 }
 0xdb1   :  { %8731 = vmatpush1.bf16.msra.mxu0 %v13263_v21 }
 0xdb2   :  { %8733 = vmatprep.subr.bf16.mxu0 %v13516_v57 }
 0xdb5   :  { %8735 = vmatpush1.bf16.msra.mxu0 %v13517_v26 }
 0xdb6   :  { %8737 = vmatprep.subr.bf16.mxu0 %v13130_v5  ;;  %v9369_v28 = vpop.eup %9368 }
 0xdb7   :  { %v9371_v23 = vpop.eup %9370  ;;  %v4832_v41 = vmul.f32 %v9369_v28, %v11703_v59  ;;  %v13531_v59 = vld [vmem:[#allocation189_spill] sm:$0xff] }
 0xdb8   :  { %v13534_v28 = vld [vmem:[#allocation65_spill] sm:$0xff] }
 0xdb9   :  { %8739 = vmatpush1.bf16.msra.mxu0 %v13131_v43 }
 0xdba   :  { %8741 = vmatprep.subr.bf16.mxu0 %v13518_v32 }
 0xdbd   :  { %8743 = vmatpush1.bf16.msra.mxu0 %v13133_v44 }
 0xdbe   :  { %8745 = vmatprep.subr.bf16.mxu0 %v13519_v34 }
 0xdc1   :  { %8747 = vmatpush1.bf16.msra.mxu0 %v13520_v16 }
 0xdc2   :  { %8749 = vmatprep.subr.bf16.mxu0 %v13136_v60 }
 0xdc5   :  { %8751 = vmatpush1.bf16.msra.mxu0 %v13521_v29 }
 0xdc6   :  { %8753 = vmatprep.subr.bf16.mxu0 %v12999_v3 }
 0xdc9   :  { %8755 = vmatpush1.bf16.msra.mxu0 %v13000_v30 }
 0xdca   :  { %8757 = vmatprep.subr.bf16.mxu0 %v13001_v25 }
 0xdcb   :  { %v4808_v56 = vpop.f32.mrb[50].mxu0 }
 0xdcc   :  { %v4809_v27 = vadd.f32 %v4808_v56, %v13002_v17  ;;  %v4810_v4 = vpop.f32.mrb[51].mxu0  ;;  %v13570_v17 = vld [vmem:[#allocation117_spill] sm:$0xff] }
 0xdcd   :  { %v4811_v20 = vadd.f32 %v4810_v4, %v13003_v36  ;;  %8759 = vmatpush1.bf16.msra.mxu0 %v13004_v52  ;;  %v13532_v4 = vld [vmem:[#allocation191_spill] sm:$0xff]  ;;  %v13566_v36 = vld [vmem:[#allocation109_spill] sm:$0xff] }
 0xdce   :  { %v5634_v19 = vmul.f32 -1.442695, %v4809_v27  ;;  %8761 = vmatprep.subr.bf16.mxu0 %v12867_v55 }
 0xdcf   :  { %9372 = vtanh.f32 %v4811_v20 }
 0xdd0   :  { %9374 = vpow2.f32 %v5634_v19  ;;  %v13533_v19 = vmov 0.0|0.0  }
 0xdd1   :  { %8763 = vmatpush1.bf16.msra.mxu0 %v13005_v48 }
 0xdd2   :  { %8765 = vmatprep.subr.bf16.mxu0 %v13522_v42 }
 0xdd5   :  { %8767 = vmatpush1.bf16.msra.mxu0 %v13523_v45 }
 0xdd6   :  { %8769 = vmatprep.subr.bf16.mxu0 %v13524_v13 }
 0xdd9   :  { %v9373_v39 = vpop.eup %9372  ;;  %8771 = vmatpush1.bf16.msra.mxu0 %v13525_v62 }
 0xdda   :  { %v9375_v0 = vpop.eup %9374  ;;  %v4833_v40 = vmul.f32 %v9373_v39, %v9371_v23  ;;  %8773 = vmatprep.subr.bf16.mxu0 %v12873_v47  ;;  %v13535_v23 = vld [vmem:[#allocation67_spill] sm:$0xff]  ;;  %v13536_v39 = vld [vmem:[#allocation193_spill] sm:$0xff] }
 0xddb   :  { %v4824_v8 = vadd.f32 1.0, %v9375_v0  ;;  %v13537_v0 = vmov 0.0  }
 0xddc   :  { %v11922_v11 = vadd.f32 %v4833_v40, %v4832_v41  ;;  %v13538_v41 = vld [vmem:[#allocation69_spill] sm:$0xff]  ;;  %v13539_v40 = vld [vmem:[#allocation71_spill] sm:$0xff] }
 0xddd   :  { %9376 = vrcp.f32 %v4824_v8  ;;  %8775 = vmatpush1.bf16.msra.mxu0 %v13406_v14  ;;  %v13540_v8 = vld [vmem:[#allocation194_spill] sm:$0xff] }
 0xdde   :  { %13526 = vst [vmem:[#allocation70_spill] sm:$0xff] %v11922_v11  ;;  %9378 = vtanh.f32 %v11922_v11  ;;  %8777 = vmatprep.subr.bf16.mxu0 %v13527_v10  ;;  %v13562_v11 = vld [vmem:[#allocation101_spill] sm:$0xff] }
 0xde1   :  { %8779 = vmatpush1.bf16.msra.mxu0 %v13528_v35 }
 0xde2   :  { %8781 = vmatprep.subr.bf16.mxu0 %v13529_v31 }
 0xde5   :  { %8783 = vmatpush1.bf16.msra.mxu0 %v13530_v15 }
 0xde6   :  { %8785 = vmatprep.subr.bf16.mxu0 %v13531_v59 }
 0xde7   :  { %v9377_v56 = vpop.eup %9376 }
 0xde8   :  { %v9379_v27 = vpop.eup %9378 }
 0xde9   :  { %8787 = vmatpush1.bf16.msra.mxu0 %v13532_v4  ;;  %v4836_v20 = vmul.f32 %v9379_v27, %v9377_v56  ;;  %v13541_v56 = vld [vmem:[#allocation73_spill] sm:$0xff]  ;;  %v13542_v27 = vld [vmem:[#allocation75_spill] sm:$0xff] }
 0xdea   :  { %8852 = vmatprep.subr.bf16.mxu0 %v13533_v19 }
 0xdeb   :  { %6092 = vmatmul.mubr.f32.vlgmr.msra.gmra.mrb[50].mxu1 %v4836_v20  ;;  %5138 = vmatprep.mubr.f32.mxu0 %v4836_v20 }
 0xdec   :  { %8663 = vmatpush1.bf16.msra.mxu1 %v13534_v28  ;;  %5043 = vmatprep.mubr.f32.mxu1 %v11887_v9  ;;  %v13543_v28 = vld [vmem:[#allocation195_spill] sm:$0xff] }
 0xded   :  { %5139 = vmatmul.mubr.f32.vlgmr.msra.gmra.mrb[54].mxu0 %v11887_v9  ;;  %8665 = vmatprep.subr.bf16.mxu1 %v13535_v23  ;;  %v13544_v23 = vld [vmem:[#allocation77_spill] sm:$0xff] }
 0xdee   :  { %8854 = vmatpush3.bf16.msra.mxu0 %v13536_v39  ;;  %6126 = vmatprep.mubr.msk.f32.mxu0 %vm9652_vm0, %v13537_v0  ;;  %v13545_v0 = vld [vmem:[#allocation79_spill] sm:$0xff]  ;;  %v13546_v39 = vld [vmem:[#allocation196_spill] sm:$0xff] }
 0xdef   :  { %8855 = vmatprep.subr.bf16.mxu0 %v13533_v19 }
 0xdf0   :  { %8667 = vmatpush1.bf16.msra.mxu1 %v13538_v41  ;;  %v13547_v41 = vld [vmem:[#allocation81_spill] sm:$0xff] }
 0xdf1   :  { %8669 = vmatprep.subr.bf16.mxu1 %v13539_v40  ;;  %v13548_v40 = vld [vmem:[#allocation83_spill] sm:$0xff] }
 0xdf2   :  { %8857 = vmatpush3.bf16.msra.mxu0 %v13540_v8  ;;  %v13549_v8 = vld [vmem:[#allocation197_spill] sm:$0xff] }
 0xdf3   :  { %8858 = vmatprep.subr.bf16.mxu0 %v13533_v19 }
 0xdf4   :  { %8671 = vmatpush1.bf16.msra.mxu1 %v13541_v56  ;;  %v13550_v56 = vld [vmem:[#allocation85_spill] sm:$0xff] }
 0xdf5   :  { %8673 = vmatprep.subr.bf16.mxu1 %v13542_v27  ;;  %v13551_v27 = vld [vmem:[#allocation87_spill] sm:$0xff] }
 0xdf6   :  { %8860 = vmatpush3.bf16.msra.mxu0 %v13543_v28  ;;  %v13552_v28 = vld [vmem:[#allocation198_spill] sm:$0xff] }
 0xdf7   :  { %8861 = vmatprep.subr.bf16.mxu0 %v13533_v19 }
 0xdf8   :  { %8675 = vmatpush1.bf16.msra.mxu1 %v13544_v23  ;;  %v13554_v23 = vld [vmem:[#allocation91_spill] sm:$0xff] }
 0xdf9   :  { %8677 = vmatprep.subr.bf16.mxu1 %v13545_v0  ;;  %v13553_v0 = vld [vmem:[#allocation89_spill] sm:$0xff] }
 0xdfa   :  { %8863 = vmatpush3.bf16.msra.mxu0 %v13546_v39  ;;  %v13555_v39 = vld [vmem:[#allocation199_spill] sm:$0xff] }
 0xdfb   :  { %8864 = vmatprep.subr.bf16.mxu0 %v13533_v19 }
 0xdfc   :  { %8679 = vmatpush1.bf16.msra.mxu1 %v13547_v41  ;;  %v13556_v41 = vld [vmem:[#allocation93_spill] sm:$0xff] }
 0xdfd   :  { %8681 = vmatprep.subr.bf16.mxu1 %v13548_v40  ;;  %v13557_v40 = vld [vmem:[#allocation95_spill] sm:$0xff] }
 0xdfe   :  { %8866 = vmatpush3.bf16.msra.mxu0 %v13549_v8  ;;  %v13558_v8 = vld [vmem:[#allocation200_spill] sm:$0xff] }
 0xdff   :  { %8867 = vmatprep.subr.bf16.mxu0 %v13533_v19 }
 0xe00   :  { %8683 = vmatpush1.bf16.msra.mxu1 %v13550_v56  ;;  %v13559_v56 = vld [vmem:[#allocation130_spill] sm:$0xff] }
 0xe01   :  { %8685 = vmatprep.subr.bf16.mxu1 %v13551_v27  ;;  %v13560_v27 = vld [vmem:[#allocation97_spill] sm:$0xff] }
 0xe02   :  { %8869 = vmatpush3.bf16.msra.mxu0 %v13552_v28  ;;  %v13561_v28 = vld [vmem:[#allocation99_spill] sm:$0xff] }
 0xe03   :  { %8870 = vmatprep.subr.bf16.mxu0 %v13533_v19 }
 0xe04   :  { %8687 = vmatpush1.bf16.msra.mxu1 %v13553_v0  ;;  %v13563_v0 = vld [vmem:[#allocation103_spill] sm:$0xff] }
 0xe05   :  { %8689 = vmatprep.subr.bf16.mxu1 %v13554_v23  ;;  %v13564_v23 = vld [vmem:[#allocation105_spill] sm:$0xff] }
 0xe06   :  { %8872 = vmatpush3.bf16.msra.mxu0 %v13555_v39  ;;  %v13565_v39 = vld [vmem:[#allocation107_spill] sm:$0xff] }
 0xe07   :  { %8873 = vmatprep.subr.bf16.mxu0 %v13533_v19 }
 0xe08   :  { %8691 = vmatpush1.bf16.msra.mxu1 %v13556_v41  ;;  %v13567_v41 = vld [vmem:[#allocation111_spill] sm:$0xff] }
 0xe09   :  { %8693 = vmatprep.subr.bf16.mxu1 %v13557_v40  ;;  %v13568_v40 = vld [vmem:[#allocation113_spill] sm:$0xff] }
 0xe0a   :  { %8875 = vmatpush3.bf16.msra.mxu0 %v13558_v8  ;;  %v13569_v8 = vld [vmem:[#allocation115_spill] sm:$0xff] }
 0xe0b   :  { %8941 = vmatprep.subr.bf16.mxu0 %v13559_v56 }
 0xe0c   :  { %8695 = vmatpush1.bf16.msra.mxu1 %v13560_v27  ;;  %v13571_v27 = vld [vmem:[#allocation119_spill] sm:$0xff] }
 0xe0d   :  { %8697 = vmatprep.subr.bf16.mxu1 %v13561_v28  ;;  %v13572_v28 = vld [vmem:[#allocation121_spill] sm:$0xff] }
 0xe10   :  { %8699 = vmatpush1.bf16.msra.mxu1 %v13562_v11  ;;  %v13573_v11 = vld [vmem:[#allocation123_spill] sm:$0xff] }
 0xe11   :  { %8701 = vmatprep.subr.bf16.mxu1 %v13563_v0  ;;  %v13574_v0 = vld [vmem:[#allocation125_spill] sm:$0xff] }
 0xe14   :  { %8703 = vmatpush1.bf16.msra.mxu1 %v13564_v23  ;;  %v13579_v23 = vld [vmem:[#allocation140_spill] sm:$0xff] }
 0xe15   :  { %8705 = vmatprep.subr.bf16.mxu1 %v13565_v39  ;;  %v13576_v39 = vld [vmem:[#allocation134_spill] sm:$0xff] }
 0xe18   :  { %8707 = vmatpush1.bf16.msra.mxu1 %v13566_v36  ;;  %v13575_v36 = vld [vmem:[#allocation132_spill] sm:$0xff] }
 0xe19   :  { %8709 = vmatprep.subr.bf16.mxu1 %v13567_v41  ;;  %v13580_v41 = vld [vmem:[#allocation142_spill] sm:$0xff] }
 0xe1c   :  { %8711 = vmatpush1.bf16.msra.mxu1 %v13568_v40  ;;  %v13581_v40 = vld [vmem:[#allocation144_spill] sm:$0xff] }
 0xe1d   :  { %8713 = vmatprep.subr.bf16.mxu1 %v13569_v8  ;;  %v13577_v8 = vld [vmem:[#allocation136_spill] sm:$0xff] }
 0xe20   :  { %8715 = vmatpush1.bf16.msra.mxu1 %v13570_v17  ;;  %v13578_v17 = vld [vmem:[#allocation138_spill] sm:$0xff] }
 0xe21   :  { %8717 = vmatprep.subr.bf16.mxu1 %v13571_v27  ;;  %v13582_v27 = vld [vmem:[#allocation146_spill] sm:$0xff] }
 0xe24   :  { %8719 = vmatpush1.bf16.msra.mxu1 %v13572_v28  ;;  %v13585_v28 = vld [vmem:[#allocation152_spill] sm:$0xff] }
 0xe25   :  { %8721 = vmatprep.subr.bf16.mxu1 %v13573_v11  ;;  %v13587_v11 = vld [vmem:[#allocation156_spill] sm:$0xff] }
 0xe28   :  { %8723 = vmatpush1.bf16.msra.mxu1 %v13574_v0  ;;  %v13588_v0 = vld [vmem:[#allocation158_spill] sm:$0xff] }
 0xe29   :  { %8789 = vmatprep.subr.bf16.mxu1 %v13559_v56  ;;  %v13583_v56 = vld [vmem:[#allocation148_spill] sm:$0xff] }
 0xe2b   :  { %5044 = vmatmul.mubr.f32.vlgmr.msra.gmra.mrb[52].mxu1 %v11875_v46  ;;  %v13584_v46 = vld [vmem:[#allocation150_spill] sm:$0xff] }
 0xe2c   :  { %8791 = vmatpush1.bf16.msra.mxu1 %v13575_v36  ;;  %5209 = vmatprep.mubr.f32.mxu1 %v4836_v20  ;;  %v13586_v20 = vld [vmem:[#allocation154_spill] sm:$0xff] }
 0xe2d   :  { %8793 = vmatprep.subr.bf16.mxu1 %v13576_v39 }
 0xe30   :  { %8795 = vmatpush1.bf16.msra.mxu1 %v13577_v8 }
 0xe31   :  { %8797 = vmatprep.subr.bf16.mxu1 %v13578_v17  ;;  %v13589_v17 = vld [vmem:[#allocation160_spill] sm:$0xff] }
 0xe34   :  { %8799 = vmatpush1.bf16.msra.mxu1 %v13579_v23  ;;  %v13590_v23 = vld [vmem:[#allocation162_spill] sm:$0xff] }
 0xe35   :  { %8801 = vmatprep.subr.bf16.mxu1 %v13580_v41  ;;  %v13591_v41 = vld [vmem:[#allocation164_spill] sm:$0xff] }
 0xe38   :  { %8803 = vmatpush1.bf16.msra.mxu1 %v13581_v40  ;;  %v13592_v40 = vld [vmem:[#allocation166_spill] sm:$0xff] }
 0xe39   :  { %8805 = vmatprep.subr.bf16.mxu1 %v13582_v27  ;;  %v13593_v27 = vld [vmem:[#allocation168_spill] sm:$0xff] }
 0xe3c   :  { %8807 = vmatpush1.bf16.msra.mxu1 %v13583_v56  ;;  %v13594_v56 = vld [vmem:[#allocation170_spill] sm:$0xff] }
 0xe3d   :  { %8809 = vmatprep.subr.bf16.mxu1 %v13584_v46  ;;  %v13595_v46 = vld [vmem:[#allocation172_spill] sm:$0xff] }
 0xe40   :  { %8811 = vmatpush1.bf16.msra.mxu1 %v13585_v28  ;;  %v13596_v28 = vld [vmem:[#allocation174_spill] sm:$0xff] }
 0xe41   :  { %8813 = vmatprep.subr.bf16.mxu1 %v13586_v20  ;;  %v13597_v20 = vld [vmem:[#allocation176_spill] sm:$0xff] }
 0xe44   :  { %8815 = vmatpush1.bf16.msra.mxu1 %v13587_v11 }
 0xe45   :  { %8817 = vmatprep.subr.bf16.mxu1 %v13588_v0 }
 0xe48   :  { %8819 = vmatpush1.bf16.msra.mxu1 %v13589_v17 }
 0xe49   :  { %8821 = vmatprep.subr.bf16.mxu1 %v13590_v23 }
 0xe4c   :  { %8823 = vmatpush1.bf16.msra.mxu1 %v13591_v41 }
 0xe4d   :  { %8825 = vmatprep.subr.bf16.mxu1 %v13592_v40 }
 0xe50   :  { %8827 = vmatpush1.bf16.msra.mxu1 %v13593_v27 }
 0xe51   :  { %8829 = vmatprep.subr.bf16.mxu1 %v13594_v56 }
 0xe54   :  { %8831 = vmatpush1.bf16.msra.mxu1 %v13595_v46 }
 0xe55   :  { %8833 = vmatprep.subr.bf16.mxu1 %v13596_v28 }
 0xe58   :  { %8835 = vmatpush1.bf16.msra.mxu1 %v13597_v20 }
 0xe59   :  { %8837 = vmatprep.subr.bf16.mxu1 %v13494_v63 }
 0xe5c   :  { %8839 = vmatpush1.bf16.msra.mxu1 %v13495_v7 }
 0xe5d   :  { %8841 = vmatprep.subr.bf16.mxu1 %v13496_v51 }
 0xe60   :  { %8843 = vmatpush1.bf16.msra.mxu1 %v13497_v6 }
 0xe61   :  { %8845 = vmatprep.subr.bf16.mxu1 %v13498_v38 }
 0xe64   :  { %8847 = vmatpush1.bf16.msra.mxu1 %v13499_v12 }
 0xe65   :  { %8849 = vmatprep.subr.bf16.mxu1 %v13500_v33 }
 0xe68   :  { %8851 = vmatpush1.bf16.msra.mxu1 %v13501_v2 }
 0xe69   :  { %8877 = vmatprep.subr.bf16.mxu1 %v13506_v24 }
 0xe6b   :  { %5210 = vmatmul.mubr.f32.vlgmr.msra.gmra.mrb[54].mxu1 %v11887_v9 }
 0xe6c   :  { %8879 = vmatpush1.bf16.msra.mxu1 %v13515_v18 }
 0xe6d   :  { %8881 = vmatprep.subr.bf16.mxu1 %v12987_v1 }
 0xe70   :  { %8883 = vmatpush1.bf16.msra.mxu1 %v13263_v21 }
 0xe71   :  { %8885 = vmatprep.subr.bf16.mxu1 %v13516_v57 }
 0xe74   :  { %8887 = vmatpush1.bf16.msra.mxu1 %v13517_v26 }
 0xe75   :  { %8889 = vmatprep.subr.bf16.mxu1 %v13130_v5 }
 0xe78   :  { %8891 = vmatpush1.bf16.msra.mxu1 %v13131_v43 }
 0xe79   :  { %8893 = vmatprep.subr.bf16.mxu1 %v13518_v32 }
 0xe7c   :  { %8895 = vmatpush1.bf16.msra.mxu1 %v13133_v44 }
 0xe7d   :  { %8897 = vmatprep.subr.bf16.mxu1 %v13519_v34 }
 0xe7f   :  { %v4974_v24 = vpop.f32.mrb[52].mxu0 }
 0xe80   :  { %v4976_v9 = vpop.f32.mrb[53].mxu0  ;;  %8899 = vmatpush1.bf16.msra.mxu1 %v13520_v16 }
 0xe81   :  { %8901 = vmatprep.subr.bf16.mxu1 %v13136_v60  ;;  %v4977_v1 = vadd.f32 %v4976_v9, %v13510_v37 }
 0xe84   :  { %8903 = vmatpush1.bf16.msra.mxu1 %v13521_v29 }
 0xe85   :  { %8905 = vmatprep.subr.bf16.mxu1 %v12999_v3 }
 0xe88   :  { %8907 = vmatpush1.bf16.msra.mxu1 %v13000_v30 }
 0xe89   :  { %8909 = vmatprep.subr.bf16.mxu1 %v13001_v25  ;;  %v5636_v25 = vmul.f32 -1.442695, %v4977_v1  ;;  %v13599_v1 = vld [vmem:[#allocation62_spill] sm:$0xff] }
 0xe8b   :  { %9380 = vpow2.f32 %v5636_v25 }
 0xe8c   :  { %8911 = vmatpush1.bf16.msra.mxu1 %v13004_v52  ;;  %v4975_v52 = vadd.f32 %v4974_v24, %v13511_v49 }
 0xe8d   :  { %8913 = vmatprep.subr.bf16.mxu1 %v12867_v55 }
 0xe90   :  { %8915 = vmatpush1.bf16.msra.mxu1 %v13005_v48  ;;  %v5635_v48 = vmul.f32 -1.442695, %v4975_v52 }
 0xe91   :  { %8917 = vmatprep.subr.bf16.mxu1 %v13522_v42 }
 0xe92   :  { %9382 = vpow2.f32 %v5635_v48 }
 0xe94   :  { %8919 = vmatpush1.bf16.msra.mxu1 %v13523_v45 }
 0xe95   :  { %8921 = vmatprep.subr.bf16.mxu1 %v13524_v13  ;;  %v9381_v43 = vpop.eup %9380 }
 0xe96   :  { %v5060_v44 = vadd.f32 1.0, %v9381_v43 }
 0xe98   :  { %8923 = vmatpush1.bf16.msra.mxu1 %v13525_v62  ;;  %9384 = vrcp.f32 %v5060_v44 }
 0xe99   :  { %8925 = vmatprep.subr.bf16.mxu1 %v12873_v47 }
 0xe9c   :  { %8927 = vmatpush1.bf16.msra.mxu1 %v13406_v14  ;;  %v9383_v5 = vpop.eup %9382 }
 0xe9d   :  { %8929 = vmatprep.subr.bf16.mxu1 %v13527_v10  ;;  %v5059_v21 = vadd.f32 1.0, %v9383_v5  ;;  %v13600_v5 = vld [vmem:[#allocation70_spill] sm:$0xff] }
 0xe9f   :  { %9386 = vrcp.f32 %v5059_v21 }
 0xea0   :  { %8931 = vmatpush1.bf16.msra.mxu1 %v13528_v35 }
 0xea1   :  { %8933 = vmatprep.subr.bf16.mxu1 %v13529_v31 }
 0xea2   :  { %v9385_v37 = vpop.eup %9384 }
 0xea3   :  { %v5069_v29 = vmul.f32 %v9385_v37, %v11884_v61  ;;  %v13601_v37 = vld [vmem:[#allocation193_spill] sm:$0xff] }
 0xea4   :  { %8935 = vmatpush1.bf16.msra.mxu1 %v13530_v15 }
 0xea5   :  { %8937 = vmatprep.subr.bf16.mxu1 %v13531_v59 }
 0xea8   :  { %8939 = vmatpush1.bf16.msra.mxu1 %v13532_v4 }
 0xea9   :  { %9004 = vmatprep.subr.bf16.mxu1 %v13533_v19  ;;  %v9387_v49 = vpop.eup %9386 }
 0xebe   :  { %v4903_v30 = vpop.f32.mrb[50].mxu1 }
 0xebf   :  { %v4904_v55 = vadd.f32 %v4903_v30, %v13503_v58  ;;  %v6093_v47 = vpop.f32.mrb[51].mxu1  ;;  %v13598_v30 = vld [vmem:[#allocation60_spill] sm:$0xff] }
 0xec0   :  { %v5140_v60 = vpop.f32.mrb[54].mxu0 }
 0xec1   :  { %4907 = vst [vmem:[#allocation16 + $0x28] sm:$0xff] %v4904_v55  ;;  %v5142_v3 = vpop.f32.mrb[55].mxu0  ;;  %v5141_v35 = vadd.f32 %v5140_v60, %v13128_v54 }
 0xec3   :  { %v5638_v15 = vmul.f32 -1.442695, %v5141_v35  ;;  %v13615_v35 = vld [vmem:[#allocation154_spill] sm:$0xff] }
 0xefe   :  { %v5045_v14 = vpop.f32.mrb[52].mxu1 }
 0xeff   :  { %v5046_v18 = vadd.f32 %v5045_v14, %v13512_v22  ;;  %v5047_v57 = vpop.f32.mrb[53].mxu1 }
 0xf00   :  { %v5048_v26 = vadd.f32 %v5047_v57, %v13513_v53  ;;  %v5143_v53 = vadd.f32 %v5142_v3, %v13265_v50 }
 0xf01   :  { %v5637_v32 = vmul.f32 -1.442695, %v5046_v18 }
 0xf02   :  { %9388 = vtanh.f32 %v5048_v26  ;;  %v5639_v31 = vmul.f32 -1.442695, %v5143_v53  ;;  %v13614_v53 = vld [vmem:[#allocation152_spill] sm:$0xff] }
 0xf03   :  { %9390 = vpow2.f32 %v5637_v32 }
 0xf0c   :  { %v9389_v34 = vpop.eup %9388 }
 0xf0d   :  { %v9391_v16 = vpop.eup %9390  ;;  %v5070_v42 = vmul.f32 %v9389_v34, %v9387_v49  ;;  %v13602_v49 = vmov 0.0   ;;  %v13603_v34 = vld [vmem:[#allocation138_spill] sm:$0xff] }
 0xf0e   :  { %v5061_v45 = vadd.f32 1.0, %v9391_v16  ;;  %v13604_v16 = vld [vmem:[#allocation194_spill] sm:$0xff] }
 0xf0f   :  { %v5071_v13 = vadd.f32 %v5070_v42, %v5069_v29  ;;  %v13606_v29 = vld [vmem:[#allocation142_spill] sm:$0xff]  ;;  %v13608_v42 = vld [vmem:[#allocation144_spill] sm:$0xff] }
 0xf10   :  { %9392 = vrcp.f32 %v5061_v45  ;;  %v13609_v45 = vld [vmem:[#allocation146_spill] sm:$0xff] }
 0xf11   :  { %9394 = vtanh.f32 %v5071_v13  ;;  %v13610_v13 = vld [vmem:[#allocation196_spill] sm:$0xff] }
 0xf12   :  { %9396 = vpow2.f32 %v5639_v31  ;;  %v13616_v31 = vld [vmem:[#allocation198_spill] sm:$0xff] }
 0xf13   :  { %9398 = vpow2.f32 %v5638_v15  ;;  %v13617_v15 = vld [vmem:[#allocation199_spill] sm:$0xff] }
 0xf1a   :  { %v9393_v22 = vpop.eup %9392 }
 0xf1b   :  { %v9395_v62 = vpop.eup %9394 }
 0xf1c   :  { %v12057_v10 = vmul.f32 %v9395_v62, %v9393_v22  ;;  %v9397_v59 = vpop.eup %9396  ;;  %v13612_v22 = vld [vmem:[#allocation150_spill] sm:$0xff]  ;;  %v13613_v62 = vld [vmem:[#allocation197_spill] sm:$0xff] }
 0xf1d   :  { %v9399_v4 = vpop.eup %9398  ;;  %v5226_v61 = vadd.f32 1.0, %v9397_v59  ;;  %v13618_v59 = vld [vmem:[#allocation200_spill] sm:$0xff] }
 0xf1e   :  { %v5225_v24 = vadd.f32 1.0, %v9399_v4 }
 0xf1f   :  { %9400 = vrcp.f32 %v5226_v61 }
 0xf20   :  { %9402 = vrcp.f32 %v5225_v24 }
 0xf29   :  { %v9401_v60 = vpop.eup %9400 }
 0xf2a   :  { %v9403_v3 = vpop.eup %9402  ;;  %v5235_v44 = vmul.f32 %v9401_v60, %v13600_v5 }
 0xf3e   :  { %v5211_v9 = vpop.f32.mrb[54].mxu1 }
 0xf3f   :  { %v5212_v55 = vadd.f32 %v5211_v9, %v13598_v30  ;;  %v5213_v47 = vpop.f32.mrb[55].mxu1 }
 0xf40   :  { %v5214_v52 = vadd.f32 %v5213_v47, %v13599_v1 }
 0xf41   :  { %v5640_v25 = vmul.f32 -1.442695, %v5212_v55 }
 0xf42   :  { %9404 = vtanh.f32 %v5214_v52 }
 0xf43   :  { %9406 = vpow2.f32 %v5640_v25 }
 0xf4c   :  { %v9405_v48 = vpop.eup %9404 }
 0xf4d   :  { %v9407_v43 = vpop.eup %9406  ;;  %v5236_v21 = vmul.f32 %v9405_v48, %v9403_v3 }
 0xf4e   :  { %v5227_v14 = vadd.f32 1.0, %v9407_v43 }
 0xf4f   :  { %v12064_v18 = vadd.f32 %v5236_v21, %v5235_v44 }
 0xf50   :  { %9408 = vrcp.f32 %v5227_v14 }
 0xf51   :  { %9410 = vtanh.f32 %v12064_v18 }
 0xf5a   :  { %v9409_v57 = vpop.eup %9408 }
 0xf5b   :  { %v9411_v26 = vpop.eup %9410 }
 0xf5c   :  { %v5239_v32 = vmul.f32 %v9411_v26, %v9409_v57 }
 0xf5e   :  { %6127 = vmatmul.mubr.f32.vlgmr.msra.gmra.mrb[56].mxu0 %v5239_v32  ;;  %5375 = vmatprep.mubr.f32.mxu1 %v5239_v32 }
 0xf5f   :  { %8943 = vmatpush1.bf16.msra.mxu0 %v13575_v36  ;;  %5376 = vmatmul.mubr.f32.vlgmr.msra.gmra.mrb[56].mxu1 %v12057_v10  ;;  %v13605_v36 = vld [vmem:[#allocation140_spill] sm:$0xff] }
 0xf60   :  { %5446 = vmatprep.mubr.f32.mxu0 %v5239_v32  ;;  %8945 = vmatprep.subr.bf16.mxu0 %v13576_v39  ;;  %v13607_v39 = vld [vmem:[#allocation195_spill] sm:$0xff] }
 0xf61   :  { %9006 = vmatpush3.bf16.msra.mxu1 %v13601_v37  ;;  %6161 = vmatprep.mubr.msk.f32.mxu1 %vm9652_vm0, %v13602_v49 }
 0xf62   :  { %9007 = vmatprep.subr.bf16.mxu1 %v13533_v19 }
 0xf63   :  { %8947 = vmatpush1.bf16.msra.mxu0 %v13577_v8  ;;  %v13611_v8 = vld [vmem:[#allocation148_spill] sm:$0xff] }
 0xf64   :  { %8949 = vmatprep.subr.bf16.mxu0 %v13603_v34 }
 0xf65   :  { %9009 = vmatpush3.bf16.msra.mxu1 %v13604_v16 }
 0xf66   :  { %9010 = vmatprep.subr.bf16.mxu1 %v13533_v19 }
 0xf67   :  { %8951 = vmatpush1.bf16.msra.mxu0 %v13605_v36 }
 0xf68   :  { %8953 = vmatprep.subr.bf16.mxu0 %v13606_v29 }
 0xf69   :  { %9012 = vmatpush3.bf16.msra.mxu1 %v13607_v39 }
 0xf6a   :  { %9013 = vmatprep.subr.bf16.mxu1 %v13533_v19 }
 0xf6b   :  { %8955 = vmatpush1.bf16.msra.mxu0 %v13608_v42 }
 0xf6c   :  { %8957 = vmatprep.subr.bf16.mxu0 %v13609_v45 }
 0xf6d   :  { %9015 = vmatpush3.bf16.msra.mxu1 %v13610_v13 }
 0xf6e   :  { %9016 = vmatprep.subr.bf16.mxu1 %v13533_v19 }
 0xf6f   :  { %8959 = vmatpush1.bf16.msra.mxu0 %v13611_v8 }
 0xf70   :  { %8961 = vmatprep.subr.bf16.mxu0 %v13612_v22 }
 0xf71   :  { %9018 = vmatpush3.bf16.msra.mxu1 %v13613_v62 }
 0xf72   :  { %9019 = vmatprep.subr.bf16.mxu1 %v13533_v19 }
 0xf73   :  { %8963 = vmatpush1.bf16.msra.mxu0 %v13614_v53 }
 0xf74   :  { %8965 = vmatprep.subr.bf16.mxu0 %v13615_v35 }
 0xf75   :  { %9021 = vmatpush3.bf16.msra.mxu1 %v13616_v31 }
 0xf76   :  { %9022 = vmatprep.subr.bf16.mxu1 %v13533_v19 }
 0xf77   :  { %8967 = vmatpush1.bf16.msra.mxu0 %v13587_v11 }
 0xf78   :  { %8969 = vmatprep.subr.bf16.mxu0 %v13588_v0 }
 0xf79   :  { %9024 = vmatpush3.bf16.msra.mxu1 %v13617_v15 }
 0xf7a   :  { %9025 = vmatprep.subr.bf16.mxu1 %v13533_v19 }
 0xf7b   :  { %8971 = vmatpush1.bf16.msra.mxu0 %v13589_v17 }
 0xf7c   :  { %8973 = vmatprep.subr.bf16.mxu0 %v13590_v23 }
 0xf7d   :  { %9027 = vmatpush3.bf16.msra.mxu1 %v13618_v59 }
 0xf7f   :  { %8975 = vmatpush1.bf16.msra.mxu0 %v13591_v41 }
 0xf80   :  { %8977 = vmatprep.subr.bf16.mxu0 %v13592_v40 }
 0xf83   :  { %8979 = vmatpush1.bf16.msra.mxu0 %v13593_v27 }
 0xf84   :  { %8981 = vmatprep.subr.bf16.mxu0 %v13594_v56 }
 0xf87   :  { %8983 = vmatpush1.bf16.msra.mxu0 %v13595_v46 }
 0xf88   :  { %8985 = vmatprep.subr.bf16.mxu0 %v13596_v28 }
 0xf8b   :  { %8987 = vmatpush1.bf16.msra.mxu0 %v13597_v20 }
 0xf8c   :  { %8989 = vmatprep.subr.bf16.mxu0 %v13494_v63 }
 0xf8f   :  { %8991 = vmatpush1.bf16.msra.mxu0 %v13495_v7 }
 0xf90   :  { %8993 = vmatprep.subr.bf16.mxu0 %v13496_v51 }
 0xf93   :  { %8995 = vmatpush1.bf16.msra.mxu0 %v13497_v6 }
 0xf94   :  { %8997 = vmatprep.subr.bf16.mxu0 %v13498_v38 }
 0xf97   :  { %8999 = vmatpush1.bf16.msra.mxu0 %v13499_v12 }
 0xf98   :  { %9001 = vmatprep.subr.bf16.mxu0 %v13500_v33 }
 0xf9b   :  { %9003 = vmatpush1.bf16.msra.mxu0 %v13501_v2 }
 0xf9e   :  { %5447 = vmatmul.mubr.f32.vlgmr.msra.gmra.mrb[58].mxu0 %v12057_v10 }
0x1031   :  { %v5306_v19 = vpop.f32.mrb[56].mxu0 }
0x1032   :  { %v5307_v17 = vadd.f32 %v5306_v19, %v13503_v58  ;;  %v6128_v63 = vpop.f32.mrb[57].mxu0  ;;  %v5377_v23 = vpop.f32.mrb[56].mxu1 }
0x1033   :  { %v5379_v7 = vpop.f32.mrb[57].mxu1  ;;  %v5378_v6 = vadd.f32 %v5377_v23, %v13128_v54 }
0x1034   :  { %5310 = vst [vmem:[#allocation16 + $0x30] sm:$0xff] %v5307_v17  ;;  %v5380_v51 = vadd.f32 %v5379_v7, %v13265_v50 }
0x1035   :  { %v5641_v41 = vmul.f32 -1.442695, %v5378_v6 }
0x1036   :  { %v5642_v38 = vmul.f32 -1.442695, %v5380_v51 }
0x1038   :  { %9412 = vpow2.f32 %v5642_v38 }
0x1039   :  { %9414 = vpow2.f32 %v5641_v41 }
0x1042   :  { %v9413_v12 = vpop.eup %9412 }
0x1043   :  { %v9415_v33 = vpop.eup %9414  ;;  %v5463_v2 = vadd.f32 1.0, %v9413_v12 }
0x1044   :  { %v5462_v40 = vadd.f32 1.0, %v9415_v33 }
0x1045   :  { %9416 = vrcp.f32 %v5463_v2 }
0x1046   :  { %9418 = vrcp.f32 %v5462_v40 }
0x104f   :  { %v9417_v54 = vpop.eup %9416 }
0x1050   :  { %v9419_v50 = vpop.eup %9418  ;;  %v5472_v10 = vmul.f32 %v9417_v54, %v12064_v18 }
0x1071   :  { %v5448_v27 = vpop.f32.mrb[58].mxu0 }
0x1072   :  { %v5449_v56 = vadd.f32 %v5448_v27, %v13598_v30  ;;  %v5450_v46 = vpop.f32.mrb[59].mxu0 }
0x1073   :  { %v5451_v28 = vadd.f32 %v5450_v46, %v13599_v1 }
0x1074   :  { %v5643_v20 = vmul.f32 -1.442695, %v5449_v56 }
0x1075   :  { %9420 = vtanh.f32 %v5451_v28 }
0x1076   :  { %9422 = vpow2.f32 %v5643_v20 }
0x107f   :  { %v9421_v11 = vpop.eup %9420 }
0x1080   :  { %v9423_v0 = vpop.eup %9422  ;;  %v5473_v4 = vmul.f32 %v9421_v11, %v9419_v50 }
0x1081   :  { %v5464_v61 = vadd.f32 1.0, %v9423_v0 }
0x1082   :  { %v5474_v24 = vadd.f32 %v5473_v4, %v5472_v10 }
0x1083   :  { %9424 = vrcp.f32 %v5464_v61 }
0x1084   :  { %9426 = vtanh.f32 %v5474_v24 }
0x108d   :  { %v9425_v9 = vpop.eup %9424 }
0x108e   :  { %v9427_v30 = vpop.eup %9426 }
0x108f   :  { %v5476_v55 = vmul.f32 %v9427_v30, %v9425_v9 }
0x1091   :  { %6162 = vmatmul.mubr.f32.vlgmr.msra.gmra.mrb[58].mxu1 %v5476_v55 }
0x1164   :  { %v5543_v47 = vpop.f32.mrb[58].mxu1 }
0x1165   :  { %v5544_v1 = vadd.f32 %v5543_v47, %v13503_v58  ;;  %v6163_v52 = vpop.f32.mrb[59].mxu1 }
0x1167   :  { %5547 = vst [vmem:[#allocation16 + $0x38] sm:$0xff] %v5544_v1 }
0x1168   :  { %9616 = shalt.err (!%p9613_p12)
}
0x1169   :  { %s9617_s25 = scalar_lea.hbm %s12153_s14, 1024 }
0x116a   :  { %p9618_p13 = scmp.ne.s32.totalorder %s12153_s14, %s9617_s25  ;;  %p9621_p0 = scmp.lt.u32.totalorder %s9617_s25, %s12153_s14 }
0x116c   :  { %p9623_p1 = pnand %p9621_p0, %p9618_p13 }
0x116e   :  { %9626 = shalt.err (!%p9623_p1)
}
0x116f   :  { %5559 = dma.vmem_to_hbm [thread:$0]  %s5554_s5, 1024, %s12153_s14, [#allocation4], %s12586_s15, %s12586_s15, %s9641_s24  }
0x1170   :  { %9637 = dma.done.wait [#allocation4], 1024  }
0x1171   :  { %9638 = vsyncadd [#allocation4], 4294966272 }
0x1172   :  { %5563 = vsyncpa [#allocation3], 1 }
0x1173   :  { %5564 = vsyncpa [#allocation6], 1 }
0x1174   :  { %5565 = vsyncpa [#allocation9], 1 }
0x1175   :  { %5566 = vsyncpa [#allocation12], 1 }
0x1176   :  { %5567 = vsyncpa [#allocation15], 1 }
0x1177   :  { %5568 = vsyncpa [#allocation4], 1 }

</bundles_post_ra>
